<compile_context>
chip_gen: v7x
topology: tpu7x:2x2x1
jax: 0.10.0
libtpu: 0.0.40
codegen_flags: <defaults>
</compile_context>

<pallas_src>
import functools

import jax
import jax.numpy as jnp
from jax.experimental import pallas as pl
from jax.experimental.pallas import tpu as pltpu

LANES = 128          # TPU lane width; channel / feature dims are zero-padded to this
N_CLASSES = 10

# Static flat-layout geometry:
#   conv1 patches / pre-act : row = oh*32 + ow   (29*32 = 928 rows materialized)
#   pooled1 (compact)       : row = h2*16 + w2   (14*16 = 224 rows, valid 14x14)
#   conv2 pre-act           : row = oh2*16 + ow2 (176 rows materialized, valid 10x10)
#   pooled2 (kernel output) : row = ph*16 + pw   (80 rows, valid 5x5)
_P1_ROWS = 928       # conv1 pre-activation rows (stride 32); pool reads up to row 927
_POOL1_ROWS = 448    # pool1 rows before compaction (14 * 32)
_PL1_VALID = 224     # compact pooled1 rows (14 * 16)
_PL1_ROWS = 248      # pooled1 scratch rows (kw-expansion reads up to row 243)
_PEXP_ROWS = 240     # kw-expanded pooled1 rows (conv2 LHS reads up to row 239)
_C2_ROWS = 176       # conv2 pre-activation rows (pool2 reads up to row 175)
_OUT_ROWS = 80       # pooled2 rows written out (5 * 16)


# ----------------------------- Pallas kernels -----------------------------

def _conv_stack_kernel(p1_ref, w1_ref, b1_ref, w2_ref, b2_ref, o_ref,
                       a1_s, pl1_s, pexp_s, c2_s):
    """Fused conv1 -> pool1 -> conv2 -> pool2 for ONE image.

    p1_ref : (1, 928, 128) bf16  conv1 im2col patches, row = oh*32+ow, K=75 (pad 128)
    w1_ref : (128, 128)    bf16  conv1 weight: (kh*5+kw)*3+cin rows x cout cols (padded)
    b1_ref : (1, 128)      f32
    w2_ref : (5, 640, 128) bf16  conv2 weight per kh row: (kw*128+cin) rows x cout cols
    b2_ref : (1, 128)      f32
    o_ref  : (1, 80, 128)  bf16  pooled2, row = ph*16+pw (valid ph,pw < 5)
    a1_s   : (928, 128)    f32   conv1 pre-activation scratch
    pl1_s  : (248, 128)    bf16  compact pooled1 (row = h2*16+w2), tail zero-filled
    pexp_s : (240, 640)    bf16  kw-expanded pooled1: [:, j*128:(j+1)*128] = pl1[j:j+240]
    c2_s   : (176, 128)    f32   conv2 pre-activation scratch
    """
    # ---- conv1: one K=128 matmul, written to scratch exactly once ---------------
    a1_s[...] = jnp.dot(p1_ref[0], w1_ref[...], preferred_element_type=jnp.float32)

    # ---- pool1 (2x2 / 2) on the stride-32 pre-activation ------------------------
    p = jnp.maximum(
        jnp.maximum(a1_s[pl.ds(0, _POOL1_ROWS, 2), :],
                    a1_s[pl.ds(1, _POOL1_ROWS, 2), :]),
        jnp.maximum(a1_s[pl.ds(32, _POOL1_ROWS, 2), :],
                    a1_s[pl.ds(33, _POOL1_ROWS, 2), :]))
    # compact row stride 32 -> 16 (all boundaries sublane-aligned), then bias+ReLU
    p = p.reshape(14, 32, LANES)[:, :16, :].reshape(_PL1_VALID, LANES)
    pl1_s[pl.ds(0, _PL1_VALID), :] = jnp.maximum(p + b1_ref[...], 0.0).astype(pl1_s.dtype)
    pl1_s[pl.ds(_PL1_VALID, _PL1_ROWS - _PL1_VALID), :] = jnp.zeros(
        (_PL1_ROWS - _PL1_VALID, LANES), dtype=pl1_s.dtype)

    # ---- conv2: fold kw x Cin_pad into K = 640; one matmul per kernel row -------
    for j in range(5):                     # kw-expand once: 5 shifted copies side by side
        pexp_s[:, pl.ds(j * LANES, LANES)] = pl1_s[pl.ds(j, _PEXP_ROWS), :]
    acc = jnp.dot(pexp_s[pl.ds(0, _C2_ROWS), :], w2_ref[0],
                  preferred_element_type=jnp.float32)
    for i in range(1, 5):                  # value accumulation (no scratch RMW)
        acc = acc + jnp.dot(pexp_s[pl.ds(i * 16, _C2_ROWS), :], w2_ref[i],
                            preferred_element_type=jnp.float32)
    c2_s[...] = acc

    # ---- pool2 (2x2 / 2) + bias + ReLU -------------------------------------------
    q = jnp.maximum(
        jnp.maximum(c2_s[pl.ds(0, _OUT_ROWS, 2), :],
                    c2_s[pl.ds(1, _OUT_ROWS, 2), :]),
        jnp.maximum(c2_s[pl.ds(16, _OUT_ROWS, 2), :],
                    c2_s[pl.ds(17, _OUT_ROWS, 2), :]))
    o_ref[0] = jnp.maximum(q + b2_ref[...], 0.0).astype(o_ref.dtype)


def _fc_stack_kernel(x_ref, w1_ref, b1_ref, w2_ref, b2_ref, w3_ref, b3_ref,
                     o_ref, *, predict):
    """fc1 -> ReLU -> fc2 -> ReLU -> fc3 -> ReLU (-> masked softmax), fused."""
    h = jnp.dot(x_ref[...], w1_ref[...], preferred_element_type=jnp.float32)
    h = jnp.maximum(h + b1_ref[...], 0.0)
    h = jnp.dot(h.astype(jnp.bfloat16), w2_ref[...],
                preferred_element_type=jnp.float32)
    h = jnp.maximum(h + b2_ref[...], 0.0)
    h = jnp.dot(h.astype(jnp.bfloat16), w3_ref[...],
                preferred_element_type=jnp.float32)
    h = jnp.maximum(h + b3_ref[...], 0.0)        # the PyTorch spec ReLUs fc3 too
    if predict:
        col = jax.lax.broadcasted_iota(jnp.int32, h.shape, 1)
        hm = jnp.where(col < N_CLASSES, h, -jnp.inf)   # mask padded class columns
        m = jnp.max(hm, axis=1, keepdims=True)
        e = jnp.exp(hm - m)
        h = e * pl.reciprocal(jnp.sum(e, axis=1, keepdims=True), approx=True)
    o_ref[...] = h.astype(o_ref.dtype)


# ------------------------------ wrappers -----------------------------------

def _round_up(v, m):
    return ((v + m - 1) // m) * m


def conv_stack(p1, w1, b1, w2, b2):
    """p1: (B, 928, 128) bf16 conv1 im2col patches.  Returns (B, 80, 128) bf16
    pooled conv2 features at row stride 16 (valid 5x5 window in rows/cols < 5)."""
    B = p1.shape[0]
    return pl.pallas_call(
        _conv_stack_kernel,
        out_shape=jax.ShapeDtypeStruct((B, _OUT_ROWS, LANES), jnp.bfloat16),
        grid=(B,),
        in_specs=[
            pl.BlockSpec((1, _P1_ROWS, LANES), lambda n: (n, 0, 0)),
            pl.BlockSpec((LANES, LANES), lambda n: (0, 0)),
            pl.BlockSpec((1, LANES), lambda n: (0, 0)),
            pl.BlockSpec((5, 5 * LANES, LANES), lambda n: (0, 0, 0)),
            pl.BlockSpec((1, LANES), lambda n: (0, 0)),
        ],
        out_specs=pl.BlockSpec((1, _OUT_ROWS, LANES), lambda n: (n, 0, 0)),
        scratch_shapes=[
            pltpu.VMEM((_P1_ROWS, LANES), jnp.float32),
            pltpu.VMEM((_PL1_ROWS, LANES), jnp.bfloat16),
            pltpu.VMEM((_PEXP_ROWS, 5 * LANES), jnp.bfloat16),
            pltpu.VMEM((_C2_ROWS, LANES), jnp.float32),
        ],
        compiler_params=pltpu.CompilerParams(dimension_semantics=("parallel",)),
    )(p1, w1, b1, w2, b2)


def fc_stack(x, w1, b1, w2, b2, w3, b3, *, predict):
    """x: (B, 3200) bf16 -> (m_pad, 128) f32 (caller slices valid rows / classes)."""
    B, K = x.shape
    # >=2 grid steps whenever B > 1 so both v7x TensorCores run the FC stack; tiles
    # rounded to 16 rows (bf16 sublane packing) for B >= 16 and capped at 512.
    grid_m = 1 if B == 1 else max(2, -(-B // 512))
    tile_m = _round_up(-(-B // grid_m), 16 if B >= 16 else 8)
    m_pad = grid_m * tile_m
    if m_pad > B:
        x = jnp.pad(x, ((0, m_pad - B), (0, 0)))
    kernel = functools.partial(_fc_stack_kernel, predict=predict)
    return pl.pallas_call(
        kernel,
        out_shape=jax.ShapeDtypeStruct((m_pad, LANES), jnp.float32),
        grid=(grid_m,),
        in_specs=[
            pl.BlockSpec((tile_m, K), lambda i: (i, 0)),
            pl.BlockSpec((K, LANES), lambda i: (0, 0)),
            pl.BlockSpec((1, LANES), lambda i: (0, 0)),
            pl.BlockSpec((LANES, LANES), lambda i: (0, 0)),
            pl.BlockSpec((1, LANES), lambda i: (0, 0)),
            pl.BlockSpec((LANES, LANES), lambda i: (0, 0)),
            pl.BlockSpec((1, LANES), lambda i: (0, 0)),
        ],
        out_specs=pl.BlockSpec((tile_m, LANES), lambda i: (i, 0)),
        compiler_params=pltpu.CompilerParams(
            dimension_semantics=("parallel",),
            vmem_limit_bytes=32 * 1024 * 1024),
    )(x, w1, b1, w2, b2, w3, b3)


# --------------------------- parameter plumbing ------------------------------

def prepare_params(params):
    """One-time conversion of torch-layout params into kernel layouts (bf16 weights,
    f32 biases, channel/feature dims zero-padded to 128).  Call once, outside jit."""
    # conv1: (6,3,5,5) -> (128,128); row = (kh*5+kw)*3 + cin, col = cout.
    w1 = jnp.transpose(params["conv1_w"], (2, 3, 1, 0)).reshape(75, 6)
    w1 = jnp.pad(w1, ((0, LANES - 75), (0, LANES - 6))).astype(jnp.bfloat16)
    b1 = jnp.pad(params["conv1_b"], (0, LANES - 6)).reshape(1, LANES).astype(jnp.float32)
    # conv2: (16,6,5,5) -> (5, 640, 128); per kh row: row = kw*128 + cin, col = cout.
    w2 = jnp.transpose(params["conv2_w"], (2, 3, 1, 0))                  # (5,5,6,16)
    w2 = jnp.pad(w2, ((0, 0), (0, 0), (0, LANES - 6), (0, LANES - 16)))
    w2 = w2.reshape(5, 5 * LANES, LANES).astype(jnp.bfloat16)
    b2 = jnp.pad(params["conv2_b"], (0, LANES - 16)).reshape(1, LANES).astype(jnp.float32)
    # fc1: rows follow torch's (C,H,W) flatten; re-order to the kernels' (H,W,Cpad).
    f1 = jnp.transpose(params["fc1_w"].reshape(16, 5, 5, 128), (1, 2, 0, 3))
    f1 = jnp.pad(f1, ((0, 0), (0, 0), (0, LANES - 16), (0, 0)))
    f1 = f1.reshape(5 * 5 * LANES, 128).astype(jnp.bfloat16)
    fb1 = params["fc1_b"].reshape(1, 128).astype(jnp.float32)
    f2 = jnp.pad(params["fc2_w"], ((0, 0), (0, LANES - 64))).astype(jnp.bfloat16)
    fb2 = jnp.pad(params["fc2_b"], (0, LANES - 64)).reshape(1, LANES).astype(jnp.float32)
    f3 = jnp.pad(params["fc3_w"], ((0, LANES - 64), (0, LANES - 10))).astype(jnp.bfloat16)
    fb3 = jnp.pad(params["fc3_b"], (0, LANES - 10)).reshape(1, LANES).astype(jnp.float32)
    return {"conv1_w": w1, "conv1_b": b1, "conv2_w": w2, "conv2_b": b2,
            "fc1_w": f1, "fc1_b": fb1, "fc2_w": f2, "fc2_b": fb2,
            "fc3_w": f3, "fc3_b": fb3}


def init_params(key):
    """PyTorch-style uniform(-1/sqrt(fan_in), 1/sqrt(fan_in)) init.
    FC weights are stored (in, out); fc1 rows follow torch's (C,H,W) flatten order."""
    def uniform(k, shape, fan_in):
        bound = 1.0 / float(fan_in) ** 0.5
        return jax.random.uniform(k, shape, jnp.float32, -bound, bound)

    ks = jax.random.split(key, 10)
    return {
        "conv1_w": uniform(ks[0], (6, 3, 5, 5), 3 * 5 * 5),
        "conv1_b": uniform(ks[1], (6,), 3 * 5 * 5),
        "conv2_w": uniform(ks[2], (16, 6, 5, 5), 6 * 5 * 5),
        "conv2_b": uniform(ks[3], (16,), 6 * 5 * 5),
        "fc1_w": uniform(ks[4], (16 * 5 * 5, 128), 16 * 5 * 5),
        "fc1_b": uniform(ks[5], (128,), 16 * 5 * 5),
        "fc2_w": uniform(ks[6], (128, 64), 128),
        "fc2_b": uniform(ks[7], (64,), 128),
        "fc3_w": uniform(ks[8], (64, 10), 64),
        "fc3_b": uniform(ks[9], (10,), 64),
    }


# --------------------------- model forward ------------------------------

def image_model_forward(prep, x, predict=False):
    """x: (B, 3, 32, 32) float32 NCHW (PyTorch layout); prep = prepare_params(...)."""
    B = x.shape[0]
    # One-time boundary conversion + conv1 im2col (tiny: ~12 KB/image of raw input).
    # Patch row = oh*32 + ow (oh in [0,29), ow in [0,32)); feature = (kh*5+kw)*3 + cin.
    xh = jnp.transpose(x, (0, 2, 3, 1))                     # NHWC
    xh = jnp.pad(xh, ((0, 0), (0, 4), (0, 4), (0, 0)))      # (B, 36, 36, 3), zero halo
    cols = [xh[:, i:i + 29, j:j + 32, :] for i in range(5) for j in range(5)]
    p1 = jnp.concatenate(cols, axis=-1).reshape(B, _P1_ROWS, 75)
    p1 = jnp.pad(p1, ((0, 0), (0, 0), (0, LANES - 75))).astype(jnp.bfloat16)

    h = conv_stack(p1, prep["conv1_w"], prep["conv1_b"],
                   prep["conv2_w"], prep["conv2_b"])          # (B, 80, 128)

    # Valid 5x5 window of the pooled conv2 map; padded channels are exactly zero and
    # the matching fc1 weight rows are zero, so they contribute nothing.
    feats = h.reshape(B, 5, 16, LANES)[:, :, :5, :].reshape(B, 5 * 5 * LANES)

    out = fc_stack(feats, prep["fc1_w"], prep["fc1_b"], prep["fc2_w"], prep["fc2_b"],
                   prep["fc3_w"], prep["fc3_b"], predict=predict)
    return out[:B, :N_CLASSES]


# --------------------------------- main -------------------------------------

if __name__ == "__main__":
    key = jax.random.PRNGKey(0)
    pkey, xkey = jax.random.split(key)
    params = init_params(pkey)
    prep = prepare_params(params)        # weight prep hoisted out of the forward
    x = jax.random.normal(xkey, (2, 3, 32, 32), jnp.float32)

    fwd = jax.jit(functools.partial(image_model_forward, predict=False))
    logits = fwd(prep, x)
    jax.block_until_ready(logits)
    assert logits.shape == (2, N_CLASSES) and logits.dtype == jnp.float32

    # also exercise the predict=True (fused, masked softmax) path
    pfwd = jax.jit(functools.partial(image_model_forward, predict=True))
    probs = pfwd(prep, x)
    jax.block_until_ready(probs)
    assert probs.shape == (2, N_CLASSES)

    print("KERNEL_OK")
</pallas_src>

<mosaic_0001>
module attributes {stable_mosaic.version = 11 : i64} {
  func.func @_conv_stack_kernel(%arg0: i32, %arg1: memref<1x928x128xbf16, #tpu.memory_space<vmem>>, %arg2: memref<128x128xbf16, #tpu.memory_space<vmem>>, %arg3: memref<1x128xf32, #tpu.memory_space<vmem>>, %arg4: memref<5x640x128xbf16, #tpu.memory_space<vmem>>, %arg5: memref<1x128xf32, #tpu.memory_space<vmem>>, %arg6: memref<1x80x128xbf16, #tpu.memory_space<vmem>>, %arg7: memref<928x128xf32, #tpu.memory_space<vmem>>, %arg8: memref<248x128xbf16, #tpu.memory_space<vmem>>, %arg9: memref<240x640xbf16, #tpu.memory_space<vmem>>, %arg10: memref<176x128xf32, #tpu.memory_space<vmem>>) attributes {dimension_semantics = [#tpu.dimension_semantics<parallel>], iteration_bounds = array<i64: 2>, scalar_prefetch = 0 : i64, scratch_operands = 4 : i64, tpu.core_type = #tpu.core_type<tc>, window_params = [{transform_indices = @transform_0, window_bounds = array<i64: 1, 928, 128>}, {pipeline_mode = #tpu.pipeline_mode<synchronous>, transform_indices = @transform_1, window_bounds = array<i64: 128, 128>}, {pipeline_mode = #tpu.pipeline_mode<synchronous>, transform_indices = @transform_2, window_bounds = array<i64: 1, 128>}, {pipeline_mode = #tpu.pipeline_mode<synchronous>, transform_indices = @transform_3, window_bounds = array<i64: 5, 640, 128>}, {pipeline_mode = #tpu.pipeline_mode<synchronous>, transform_indices = @transform_4, window_bounds = array<i64: 1, 128>}, {transform_indices = @transform_5, window_bounds = array<i64: 1, 80, 128>}]} {
    %c0 = arith.constant 0 : index
    %c0_0 = arith.constant 0 : index
    %c0_1 = arith.constant 0 : index
    %0 = vector.load %arg1[%c0, %c0_0, %c0_1] : memref<1x928x128xbf16, #tpu.memory_space<vmem>>, vector<1x928x128xbf16>
    %1 = vector.shape_cast %0 : vector<1x928x128xbf16> to vector<928x128xbf16>
    %c0_2 = arith.constant 0 : index
    %c0_3 = arith.constant 0 : index
    %2 = vector.load %arg2[%c0_2, %c0_3] : memref<128x128xbf16, #tpu.memory_space<vmem>>, vector<128x128xbf16>
    %cst = arith.constant dense<0.000000e+00> : vector<928x128xf32>
    %3 = tpu.matmul %1, %2, %cst {dimension_numbers = #tpu.dot_dimension_numbers<[1], [0], [0], [1], [0, 0, 1, 1], [], []>} : vector<928x128xbf16>, vector<128x128xbf16>, vector<928x128xf32> -> vector<928x128xf32>
    %c0_4 = arith.constant 0 : index
    %c0_5 = arith.constant 0 : index
    %4 = vector.load %arg7[%c0_4, %c0_5] : memref<928x128xf32, #tpu.memory_space<vmem>>, vector<928x128xf32>
    tpu.vector_store %arg7[%c0_4, %c0_5], %3 {strides = array<i32>} : memref<928x128xf32, #tpu.memory_space<vmem>>, vector<928x128xf32>,
    %c0_6 = arith.constant 0 : index
    %c0_7 = arith.constant 0 : index
    %5 = tpu.strided_load %arg7[%c0_6, %c0_7] {strides = array<i32: 2, 1>} : memref<928x128xf32, #tpu.memory_space<vmem>>, vector<448x128xf32>
    %c1 = arith.constant 1 : index
    %c0_8 = arith.constant 0 : index
    %6 = tpu.strided_load %arg7[%c1, %c0_8] {strides = array<i32: 2, 1>} : memref<928x128xf32, #tpu.memory_space<vmem>>, vector<448x128xf32>
    %7 = arith.maximumf %5, %6 : vector<448x128xf32>
    %c32 = arith.constant 32 : index
    %c0_9 = arith.constant 0 : index
    %8 = tpu.strided_load %arg7[%c32, %c0_9] {strides = array<i32: 2, 1>} : memref<928x128xf32, #tpu.memory_space<vmem>>, vector<448x128xf32>
    %c33 = arith.constant 33 : index
    %c0_10 = arith.constant 0 : index
    %9 = tpu.strided_load %arg7[%c33, %c0_10] {strides = array<i32: 2, 1>} : memref<928x128xf32, #tpu.memory_space<vmem>>, vector<448x128xf32>
    %10 = arith.maximumf %8, %9 : vector<448x128xf32>
    %11 = arith.maximumf %7, %10 : vector<448x128xf32>
    %12 = vector.shape_cast %11 : vector<448x128xf32> to vector<14x32x128xf32>
    %13 = vector.extract_strided_slice %12 {offsets = [0, 0, 0], sizes = [14, 16, 128], strides = [1, 1, 1]} : vector<14x32x128xf32> to vector<14x16x128xf32>
    %14 = vector.shape_cast %13 : vector<14x16x128xf32> to vector<224x128xf32>
    %c0_11 = arith.constant 0 : index
    %c0_12 = arith.constant 0 : index
    %15 = vector.load %arg3[%c0_11, %c0_12] : memref<1x128xf32, #tpu.memory_space<vmem>>, vector<1x128xf32>
    %16 = vector.broadcast %15 : vector<1x128xf32> to vector<224x128xf32>
    %17 = arith.addf %14, %16 : vector<224x128xf32>
    %cst_13 = arith.constant 0.000000e+00 : f32
    %18 = vector.broadcast %cst_13 : f32 to vector<224x128xf32>
    %19 = arith.maximumf %17, %18 : vector<224x128xf32>
    %20 = arith.truncf %19 : vector<224x128xf32> to vector<224x128xbf16>
    %c0_14 = arith.constant 0 : index
    %c0_15 = arith.constant 0 : index
    %21 = vector.load %arg8[%c0_14, %c0_15] : memref<248x128xbf16, #tpu.memory_space<vmem>>, vector<224x128xbf16>
    tpu.vector_store %arg8[%c0_14, %c0_15], %20 {strides = array<i32>} : memref<248x128xbf16, #tpu.memory_space<vmem>>, vector<224x128xbf16>,
    %cst_16 = arith.constant 0.000000e+00 : bf16
    %22 = vector.broadcast %cst_16 : bf16 to vector<24x128xbf16>
    %c224 = arith.constant 224 : index
    %c0_17 = arith.constant 0 : index
    %23 = vector.load %arg8[%c224, %c0_17] : memref<248x128xbf16, #tpu.memory_space<vmem>>, vector<24x128xbf16>
    tpu.vector_store %arg8[%c224, %c0_17], %22 {strides = array<i32>} : memref<248x128xbf16, #tpu.memory_space<vmem>>, vector<24x128xbf16>,
    %c0_18 = arith.constant 0 : index
    %c0_19 = arith.constant 0 : index
    %24 = vector.load %arg8[%c0_18, %c0_19] : memref<248x128xbf16, #tpu.memory_space<vmem>>, vector<240x128xbf16>
    %c0_20 = arith.constant 0 : index
    %c0_21 = arith.constant 0 : index
    %25 = vector.load %arg9[%c0_20, %c0_21] : memref<240x640xbf16, #tpu.memory_space<vmem>>, vector<240x128xbf16>
    tpu.vector_store %arg9[%c0_20, %c0_21], %24 {strides = array<i32>} : memref<240x640xbf16, #tpu.memory_space<vmem>>, vector<240x128xbf16>,
    %c1_22 = arith.constant 1 : index
    %c0_23 = arith.constant 0 : index
    %26 = vector.load %arg8[%c1_22, %c0_23] : memref<248x128xbf16, #tpu.memory_space<vmem>>, vector<240x128xbf16>
    %c0_24 = arith.constant 0 : index
    %c128 = arith.constant 128 : index
    %27 = vector.load %arg9[%c0_24, %c128] : memref<240x640xbf16, #tpu.memory_space<vmem>>, vector<240x128xbf16>
    tpu.vector_store %arg9[%c0_24, %c128], %26 {strides = array<i32>} : memref<240x640xbf16, #tpu.memory_space<vmem>>, vector<240x128xbf16>,
    %c2 = arith.constant 2 : index
    %c0_25 = arith.constant 0 : index
    %28 = vector.load %arg8[%c2, %c0_25] : memref<248x128xbf16, #tpu.memory_space<vmem>>, vector<240x128xbf16>
    %c0_26 = arith.constant 0 : index
    %c256 = arith.constant 256 : index
    %29 = vector.load %arg9[%c0_26, %c256] : memref<240x640xbf16, #tpu.memory_space<vmem>>, vector<240x128xbf16>
    tpu.vector_store %arg9[%c0_26, %c256], %28 {strides = array<i32>} : memref<240x640xbf16, #tpu.memory_space<vmem>>, vector<240x128xbf16>,
    %c3 = arith.constant 3 : index
    %c0_27 = arith.constant 0 : index
    %30 = vector.load %arg8[%c3, %c0_27] : memref<248x128xbf16, #tpu.memory_space<vmem>>, vector<240x128xbf16>
    %c0_28 = arith.constant 0 : index
    %c384 = arith.constant 384 : index
    %31 = vector.load %arg9[%c0_28, %c384] : memref<240x640xbf16, #tpu.memory_space<vmem>>, vector<240x128xbf16>
    tpu.vector_store %arg9[%c0_28, %c384], %30 {strides = array<i32>} : memref<240x640xbf16, #tpu.memory_space<vmem>>, vector<240x128xbf16>,
    %c4 = arith.constant 4 : index
    %c0_29 = arith.constant 0 : index
    %32 = vector.load %arg8[%c4, %c0_29] : memref<248x128xbf16, #tpu.memory_space<vmem>>, vector<240x128xbf16>
    %c0_30 = arith.constant 0 : index
    %c512 = arith.constant 512 : index
    %33 = vector.load %arg9[%c0_30, %c512] : memref<240x640xbf16, #tpu.memory_space<vmem>>, vector<240x128xbf16>
    tpu.vector_store %arg9[%c0_30, %c512], %32 {strides = array<i32>} : memref<240x640xbf16, #tpu.memory_space<vmem>>, vector<240x128xbf16>,
    %c0_31 = arith.constant 0 : index
    %c0_32 = arith.constant 0 : index
    %34 = vector.load %arg9[%c0_31, %c0_32] : memref<240x640xbf16, #tpu.memory_space<vmem>>, vector<176x640xbf16>
    %c0_33 = arith.constant 0 : index
    %c0_34 = arith.constant 0 : index
    %c0_35 = arith.constant 0 : index
    %35 = vector.load %arg4[%c0_33, %c0_34, %c0_35] : memref<5x640x128xbf16, #tpu.memory_space<vmem>>, vector<1x640x128xbf16>
    %36 = vector.shape_cast %35 : vector<1x640x128xbf16> to vector<640x128xbf16>
    %cst_36 = arith.constant dense<0.000000e+00> : vector<176x128xf32>
    %37 = tpu.matmul %34, %36, %cst_36 {dimension_numbers = #tpu.dot_dimension_numbers<[1], [0], [0], [1], [0, 0, 1, 1], [], []>} : vector<176x640xbf16>, vector<640x128xbf16>, vector<176x128xf32> -> vector<176x128xf32>
    %c16 = arith.constant 16 : index
    %c0_37 = arith.constant 0 : index
    %38 = vector.load %arg9[%c16, %c0_37] : memref<240x640xbf16, #tpu.memory_space<vmem>>, vector<176x640xbf16>
    %c1_38 = arith.constant 1 : index
    %c0_39 = arith.constant 0 : index
    %c0_40 = arith.constant 0 : index
    %39 = vector.load %arg4[%c1_38, %c0_39, %c0_40] : memref<5x640x128xbf16, #tpu.memory_space<vmem>>, vector<1x640x128xbf16>
    %40 = vector.shape_cast %39 : vector<1x640x128xbf16> to vector<640x128xbf16>
    %cst_41 = arith.constant dense<0.000000e+00> : vector<176x128xf32>
    %41 = tpu.matmul %38, %40, %cst_41 {dimension_numbers = #tpu.dot_dimension_numbers<[1], [0], [0], [1], [0, 0, 1, 1], [], []>} : vector<176x640xbf16>, vector<640x128xbf16>, vector<176x128xf32> -> vector<176x128xf32>
    %42 = arith.addf %37, %41 : vector<176x128xf32>
    %c32_42 = arith.constant 32 : index
    %c0_43 = arith.constant 0 : index
    %43 = vector.load %arg9[%c32_42, %c0_43] : memref<240x640xbf16, #tpu.memory_space<vmem>>, vector<176x640xbf16>
    %c2_44 = arith.constant 2 : index
    %c0_45 = arith.constant 0 : index
    %c0_46 = arith.constant 0 : index
    %44 = vector.load %arg4[%c2_44, %c0_45, %c0_46] : memref<5x640x128xbf16, #tpu.memory_space<vmem>>, vector<1x640x128xbf16>
    %45 = vector.shape_cast %44 : vector<1x640x128xbf16> to vector<640x128xbf16>
    %cst_47 = arith.constant dense<0.000000e+00> : vector<176x128xf32>
    %46 = tpu.matmul %43, %45, %cst_47 {dimension_numbers = #tpu.dot_dimension_numbers<[1], [0], [0], [1], [0, 0, 1, 1], [], []>} : vector<176x640xbf16>, vector<640x128xbf16>, vector<176x128xf32> -> vector<176x128xf32>
    %47 = arith.addf %42, %46 : vector<176x128xf32>
    %c48 = arith.constant 48 : index
    %c0_48 = arith.constant 0 : index
    %48 = vector.load %arg9[%c48, %c0_48] : memref<240x640xbf16, #tpu.memory_space<vmem>>, vector<176x640xbf16>
    %c3_49 = arith.constant 3 : index
    %c0_50 = arith.constant 0 : index
    %c0_51 = arith.constant 0 : index
    %49 = vector.load %arg4[%c3_49, %c0_50, %c0_51] : memref<5x640x128xbf16, #tpu.memory_space<vmem>>, vector<1x640x128xbf16>
    %50 = vector.shape_cast %49 : vector<1x640x128xbf16> to vector<640x128xbf16>
    %cst_52 = arith.constant dense<0.000000e+00> : vector<176x128xf32>
    %51 = tpu.matmul %48, %50, %cst_52 {dimension_numbers = #tpu.dot_dimension_numbers<[1], [0], [0], [1], [0, 0, 1, 1], [], []>} : vector<176x640xbf16>, vector<640x128xbf16>, vector<176x128xf32> -> vector<176x128xf32>
    %52 = arith.addf %47, %51 : vector<176x128xf32>
    %c64 = arith.constant 64 : index
    %c0_53 = arith.constant 0 : index
    %53 = vector.load %arg9[%c64, %c0_53] : memref<240x640xbf16, #tpu.memory_space<vmem>>, vector<176x640xbf16>
    %c4_54 = arith.constant 4 : index
    %c0_55 = arith.constant 0 : index
    %c0_56 = arith.constant 0 : index
    %54 = vector.load %arg4[%c4_54, %c0_55, %c0_56] : memref<5x640x128xbf16, #tpu.memory_space<vmem>>, vector<1x640x128xbf16>
    %55 = vector.shape_cast %54 : vector<1x640x128xbf16> to vector<640x128xbf16>
    %cst_57 = arith.constant dense<0.000000e+00> : vector<176x128xf32>
    %56 = tpu.matmul %53, %55, %cst_57 {dimension_numbers = #tpu.dot_dimension_numbers<[1], [0], [0], [1], [0, 0, 1, 1], [], []>} : vector<176x640xbf16>, vector<640x128xbf16>, vector<176x128xf32> -> vector<176x128xf32>
    %57 = arith.addf %52, %56 : vector<176x128xf32>
    %c0_58 = arith.constant 0 : index
    %c0_59 = arith.constant 0 : index
    %58 = vector.load %arg10[%c0_58, %c0_59] : memref<176x128xf32, #tpu.memory_space<vmem>>, vector<176x128xf32>
    tpu.vector_store %arg10[%c0_58, %c0_59], %57 {strides = array<i32>} : memref<176x128xf32, #tpu.memory_space<vmem>>, vector<176x128xf32>,
    %c0_60 = arith.constant 0 : index
    %c0_61 = arith.constant 0 : index
    %59 = tpu.strided_load %arg10[%c0_60, %c0_61] {strides = array<i32: 2, 1>} : memref<176x128xf32, #tpu.memory_space<vmem>>, vector<80x128xf32>
    %c1_62 = arith.constant 1 : index
    %c0_63 = arith.constant 0 : index
    %60 = tpu.strided_load %arg10[%c1_62, %c0_63] {strides = array<i32: 2, 1>} : memref<176x128xf32, #tpu.memory_space<vmem>>, vector<80x128xf32>
    %61 = arith.maximumf %59, %60 : vector<80x128xf32>
    %c16_64 = arith.constant 16 : index
    %c0_65 = arith.constant 0 : index
    %62 = tpu.strided_load %arg10[%c16_64, %c0_65] {strides = array<i32: 2, 1>} : memref<176x128xf32, #tpu.memory_space<vmem>>, vector<80x128xf32>
    %c17 = arith.constant 17 : index
    %c0_66 = arith.constant 0 : index
    %63 = tpu.strided_load %arg10[%c17, %c0_66] {strides = array<i32: 2, 1>} : memref<176x128xf32, #tpu.memory_space<vmem>>, vector<80x128xf32>
    %64 = arith.maximumf %62, %63 : vector<80x128xf32>
    %65 = arith.maximumf %61, %64 : vector<80x128xf32>
    %c0_67 = arith.constant 0 : index
    %c0_68 = arith.constant 0 : index
    %66 = vector.load %arg5[%c0_67, %c0_68] : memref<1x128xf32, #tpu.memory_space<vmem>>, vector<1x128xf32>
    %67 = vector.broadcast %66 : vector<1x128xf32> to vector<80x128xf32>
    %68 = arith.addf %65, %67 : vector<80x128xf32>
    %cst_69 = arith.constant 0.000000e+00 : f32
    %69 = vector.broadcast %cst_69 : f32 to vector<80x128xf32>
    %70 = arith.maximumf %68, %69 : vector<80x128xf32>
    %71 = arith.truncf %70 : vector<80x128xf32> to vector<80x128xbf16>
    %c0_70 = arith.constant 0 : index
    %c0_71 = arith.constant 0 : index
    %c0_72 = arith.constant 0 : index
    %72 = vector.load %arg6[%c0_70, %c0_71, %c0_72] : memref<1x80x128xbf16, #tpu.memory_space<vmem>>, vector<1x80x128xbf16>
    %73 = vector.shape_cast %72 : vector<1x80x128xbf16> to vector<80x128xbf16>
    %74 = vector.shape_cast %71 : vector<80x128xbf16> to vector<1x80x128xbf16>
    tpu.vector_store %arg6[%c0_70, %c0_71, %c0_72], %74 {strides = array<i32>} : memref<1x80x128xbf16, #tpu.memory_space<vmem>>, vector<1x80x128xbf16>,
    return
  }
  func.func @transform_0(%arg0: i32) -> (i32, i32, i32) {
    %c0_i32 = arith.constant 0 : i32
    %c0_i32_0 = arith.constant 0 : i32
    %c0_i32_1 = arith.constant 0 : i32
    return %arg0, %c0_i32, %c0_i32_0 : i32, i32, i32
  }
  func.func @transform_1(%arg0: i32) -> (i32, i32) {
    %c0_i32 = arith.constant 0 : i32
    %c0_i32_0 = arith.constant 0 : i32
    %c0_i32_1 = arith.constant 0 : i32
    return %c0_i32, %c0_i32_0 : i32, i32
  }
  func.func @transform_2(%arg0: i32) -> (i32, i32) {
    %c0_i32 = arith.constant 0 : i32
    %c0_i32_0 = arith.constant 0 : i32
    %c0_i32_1 = arith.constant 0 : i32
    return %c0_i32, %c0_i32_0 : i32, i32
  }
  func.func @transform_3(%arg0: i32) -> (i32, i32, i32) {
    %c0_i32 = arith.constant 0 : i32
    %c0_i32_0 = arith.constant 0 : i32
    %c0_i32_1 = arith.constant 0 : i32
    %c0_i32_2 = arith.constant 0 : i32
    return %c0_i32, %c0_i32_0, %c0_i32_1 : i32, i32, i32
  }
  func.func @transform_4(%arg0: i32) -> (i32, i32) {
    %c0_i32 = arith.constant 0 : i32
    %c0_i32_0 = arith.constant 0 : i32
    %c0_i32_1 = arith.constant 0 : i32
    return %c0_i32, %c0_i32_0 : i32, i32
  }
  func.func @transform_5(%arg0: i32) -> (i32, i32, i32) {
    %c0_i32 = arith.constant 0 : i32
    %c0_i32_0 = arith.constant 0 : i32
    %c0_i32_1 = arith.constant 0 : i32
    return %arg0, %c0_i32, %c0_i32_0 : i32, i32, i32
  }
}

module attributes {stable_mosaic.version = 11 : i64} {
  func.func @_fc_stack_kernel(%arg0: i32, %arg1: memref<8x3200xbf16, #tpu.memory_space<vmem>>, %arg2: memref<3200x128xbf16, #tpu.memory_space<vmem>>, %arg3: memref<1x128xf32, #tpu.memory_space<vmem>>, %arg4: memref<128x128xbf16, #tpu.memory_space<vmem>>, %arg5: memref<1x128xf32, #tpu.memory_space<vmem>>, %arg6: memref<128x128xbf16, #tpu.memory_space<vmem>>, %arg7: memref<1x128xf32, #tpu.memory_space<vmem>>, %arg8: memref<8x128xf32, #tpu.memory_space<vmem>>) attributes {dimension_semantics = [#tpu.dimension_semantics<parallel>], iteration_bounds = array<i64: 2>, scalar_prefetch = 0 : i64, scratch_operands = 0 : i64, tpu.core_type = #tpu.core_type<tc>, window_params = [{transform_indices = @transform_0, window_bounds = array<i64: 8, 3200>}, {pipeline_mode = #tpu.pipeline_mode<synchronous>, transform_indices = @transform_1, window_bounds = array<i64: 3200, 128>}, {pipeline_mode = #tpu.pipeline_mode<synchronous>, transform_indices = @transform_2, window_bounds = array<i64: 1, 128>}, {pipeline_mode = #tpu.pipeline_mode<synchronous>, transform_indices = @transform_3, window_bounds = array<i64: 128, 128>}, {pipeline_mode = #tpu.pipeline_mode<synchronous>, transform_indices = @transform_4, window_bounds = array<i64: 1, 128>}, {pipeline_mode = #tpu.pipeline_mode<synchronous>, transform_indices = @transform_5, window_bounds = array<i64: 128, 128>}, {pipeline_mode = #tpu.pipeline_mode<synchronous>, transform_indices = @transform_6, window_bounds = array<i64: 1, 128>}, {transform_indices = @transform_7, window_bounds = array<i64: 8, 128>}]} {
    %c0 = arith.constant 0 : index
    %c0_0 = arith.constant 0 : index
    %0 = vector.load %arg1[%c0, %c0_0] : memref<8x3200xbf16, #tpu.memory_space<vmem>>, vector<8x3200xbf16>
    %c0_1 = arith.constant 0 : index
    %c0_2 = arith.constant 0 : index
    %1 = vector.load %arg2[%c0_1, %c0_2] : memref<3200x128xbf16, #tpu.memory_space<vmem>>, vector<3200x128xbf16>
    %cst = arith.constant dense<0.000000e+00> : vector<8x128xf32>
    %2 = tpu.matmul %0, %1, %cst {dimension_numbers = #tpu.dot_dimension_numbers<[1], [0], [0], [1], [0, 0, 1, 1], [], []>} : vector<8x3200xbf16>, vector<3200x128xbf16>, vector<8x128xf32> -> vector<8x128xf32>
    %c0_3 = arith.constant 0 : index
    %c0_4 = arith.constant 0 : index
    %3 = vector.load %arg3[%c0_3, %c0_4] : memref<1x128xf32, #tpu.memory_space<vmem>>, vector<1x128xf32>
    %4 = vector.broadcast %3 : vector<1x128xf32> to vector<8x128xf32>
    %5 = arith.addf %2, %4 : vector<8x128xf32>
    %cst_5 = arith.constant 0.000000e+00 : f32
    %6 = vector.broadcast %cst_5 : f32 to vector<8x128xf32>
    %7 = arith.maximumf %5, %6 : vector<8x128xf32>
    %8 = arith.truncf %7 : vector<8x128xf32> to vector<8x128xbf16>
    %c0_6 = arith.constant 0 : index
    %c0_7 = arith.constant 0 : index
    %9 = vector.load %arg4[%c0_6, %c0_7] : memref<128x128xbf16, #tpu.memory_space<vmem>>, vector<128x128xbf16>
    %cst_8 = arith.constant dense<0.000000e+00> : vector<8x128xf32>
    %10 = tpu.matmul %8, %9, %cst_8 {dimension_numbers = #tpu.dot_dimension_numbers<[1], [0], [0], [1], [0, 0, 1, 1], [], []>} : vector<8x128xbf16>, vector<128x128xbf16>, vector<8x128xf32> -> vector<8x128xf32>
    %c0_9 = arith.constant 0 : index
    %c0_10 = arith.constant 0 : index
    %11 = vector.load %arg5[%c0_9, %c0_10] : memref<1x128xf32, #tpu.memory_space<vmem>>, vector<1x128xf32>
    %12 = vector.broadcast %11 : vector<1x128xf32> to vector<8x128xf32>
    %13 = arith.addf %10, %12 : vector<8x128xf32>
    %cst_11 = arith.constant 0.000000e+00 : f32
    %14 = vector.broadcast %cst_11 : f32 to vector<8x128xf32>
    %15 = arith.maximumf %13, %14 : vector<8x128xf32>
    %16 = arith.truncf %15 : vector<8x128xf32> to vector<8x128xbf16>
    %c0_12 = arith.constant 0 : index
    %c0_13 = arith.constant 0 : index
    %17 = vector.load %arg6[%c0_12, %c0_13] : memref<128x128xbf16, #tpu.memory_space<vmem>>, vector<128x128xbf16>
    %cst_14 = arith.constant dense<0.000000e+00> : vector<8x128xf32>
    %18 = tpu.matmul %16, %17, %cst_14 {dimension_numbers = #tpu.dot_dimension_numbers<[1], [0], [0], [1], [0, 0, 1, 1], [], []>} : vector<8x128xbf16>, vector<128x128xbf16>, vector<8x128xf32> -> vector<8x128xf32>
    %c0_15 = arith.constant 0 : index
    %c0_16 = arith.constant 0 : index
    %19 = vector.load %arg7[%c0_15, %c0_16] : memref<1x128xf32, #tpu.memory_space<vmem>>, vector<1x128xf32>
    %20 = vector.broadcast %19 : vector<1x128xf32> to vector<8x128xf32>
    %21 = arith.addf %18, %20 : vector<8x128xf32>
    %cst_17 = arith.constant 0.000000e+00 : f32
    %22 = vector.broadcast %cst_17 : f32 to vector<8x128xf32>
    %23 = arith.maximumf %21, %22 : vector<8x128xf32>
    %c0_18 = arith.constant 0 : index
    %c0_19 = arith.constant 0 : index
    %24 = vector.load %arg8[%c0_18, %c0_19] : memref<8x128xf32, #tpu.memory_space<vmem>>, vector<8x128xf32>
    tpu.vector_store %arg8[%c0_18, %c0_19], %23 {strides = array<i32>} : memref<8x128xf32, #tpu.memory_space<vmem>>, vector<8x128xf32>,
    return
  }
  func.func @transform_0(%arg0: i32) -> (i32, i32) {
    %c0_i32 = arith.constant 0 : i32
    %c0_i32_0 = arith.constant 0 : i32
    return %arg0, %c0_i32 : i32, i32
  }
  func.func @transform_1(%arg0: i32) -> (i32, i32) {
    %c0_i32 = arith.constant 0 : i32
    %c0_i32_0 = arith.constant 0 : i32
    %c0_i32_1 = arith.constant 0 : i32
    return %c0_i32, %c0_i32_0 : i32, i32
  }
  func.func @transform_2(%arg0: i32) -> (i32, i32) {
    %c0_i32 = arith.constant 0 : i32
    %c0_i32_0 = arith.constant 0 : i32
    %c0_i32_1 = arith.constant 0 : i32
    return %c0_i32, %c0_i32_0 : i32, i32
  }
  func.func @transform_3(%arg0: i32) -> (i32, i32) {
    %c0_i32 = arith.constant 0 : i32
    %c0_i32_0 = arith.constant 0 : i32
    %c0_i32_1 = arith.constant 0 : i32
    return %c0_i32, %c0_i32_0 : i32, i32
  }
  func.func @transform_4(%arg0: i32) -> (i32, i32) {
    %c0_i32 = arith.constant 0 : i32
    %c0_i32_0 = arith.constant 0 : i32
    %c0_i32_1 = arith.constant 0 : i32
    return %c0_i32, %c0_i32_0 : i32, i32
  }
  func.func @transform_5(%arg0: i32) -> (i32, i32) {
    %c0_i32 = arith.constant 0 : i32
    %c0_i32_0 = arith.constant 0 : i32
    %c0_i32_1 = arith.constant 0 : i32
    return %c0_i32, %c0_i32_0 : i32, i32
  }
  func.func @transform_6(%arg0: i32) -> (i32, i32) {
    %c0_i32 = arith.constant 0 : i32
    %c0_i32_0 = arith.constant 0 : i32
    %c0_i32_1 = arith.constant 0 : i32
    return %c0_i32, %c0_i32_0 : i32, i32
  }
  func.func @transform_7(%arg0: i32) -> (i32, i32) {
    %c0_i32 = arith.constant 0 : i32
    %c0_i32_0 = arith.constant 0 : i32
    return %arg0, %c0_i32 : i32, i32
  }
}

</mosaic_0001>

<bundles_post_ra>
// kernel: image_model_forward.3
= control target key start
LH: loop header
LB: loop body
LE: loop exit
PB: predicated region body
PF: predicated region fallthrough
CT: control target
= control target key end

     0   :  { %s3693_s24 = smov 0   ;;  %s4420_s0 = inlined_call_operand.vmem [shape: bf16[16,3200], index: 0, kind: input, shape index: {}]   ;;  %s4421_s1 = inlined_call_operand.vmem [shape: bf16[3200,128], index: 1, kind: input, shape index: {}]   ;;  %s4422_s2 = inlined_call_operand.vmem [shape: f32[1,128], index: 2, kind: input, shape index: {}]   ;;  %s4423_s3 = inlined_call_operand.vmem [shape: bf16[128,128], index: 3, kind: input, shape index: {}]   ;;  %s4424_s4 = inlined_call_operand.vmem [shape: f32[1,128], index: 4, kind: input, shape index: {}]   ;;  %s4425_s5 = inlined_call_operand.vmem [shape: bf16[128,128], index: 5, kind: input, shape index: {}]   ;;  %s4426_s6 = inlined_call_operand.vmem [shape: f32[1,128], index: 6, kind: input, shape index: {}]   ;;  %s4427_s7 = inlined_call_operand.vmem [shape: f32[16,128], index: 7, kind: output, shape index: {}]  }
   0x1 LB: > { %s2787_s25 = sadd.s32 4294967295, %s3649_s24   ;;  %p2791_p0 = scmp.ge.s32.totalorder %s3649_s24, 1  ;;  %s3649_s24 = sphi %s3693_s24, %s17_s24  }
   0x2   : > { %p237_p1 = scmp.lt.s32.totalorder %s3649_s24, 3 }
   0x4   : > { %p238_p2 = pnand %p2791_p0, %p237_p1 }
   0x5   : > { %v3402_v0 = vld [vmem:[%s4421_s1 + $0x40] sm:$0xff] (!%p238_p2)   ;;  %v3406_v4 = vld [vmem:[%s4421_s1 + $0x48] sm:$0xff] (!%p238_p2)   ;;  %v3410_v8 = vld [vmem:[%s4421_s1 + $0x50] sm:$0xff] (!%p238_p2)   ;;  %p268_p3 = scmp.lt.s32.totalorder (!%p238_p2), %s2787_s25, 1  ;;  %vm3652_vm0 = vmmov (!%p238_p2), 0  }
   0x6   : > { %241 = sbr.rel (%p238_p2) target bundleno = 883 (0x373), region = 48  ;;  %v3403_v1 = vld [vmem:[%s4421_s1] sm:$0xff] (!%p238_p2)   ;;  %3040 = vmatprep.subr.bf16.mxu0 (!%p238_p2), %v3402_v0  ;;  %v3407_v5 = vld [vmem:[%s4421_s1 + $0x8] sm:$0xff] (!%p238_p2)   ;;  %v3411_v9 = vld [vmem:[%s4421_s1 + $0x10] sm:$0xff] (!%p238_p2)  }
   0x7   : > { %v3404_v2 = vld [vmem:[%s4421_s1 + $0xc0] sm:$0xff] (!%p238_p2)   ;;  %3041 = vmatpush3.bf16.msra.mxu0 (!%p238_p2), %v3403_v1  ;;  %v3408_v6 = vld [vmem:[%s4421_s1 + $0xc8] sm:$0xff] (!%p238_p2)   ;;  %v3412_v10 = vld [vmem:[%s4421_s1 + $0xd0] sm:$0xff] (!%p238_p2)  }
   0x8   : > { %v3405_v3 = vld [vmem:[%s4421_s1 + $0x80] sm:$0xff] (!%p238_p2)   ;;  %3062 = vmatprep.subr.bf16.mxu1 (!%p238_p2), %v3404_v2  ;;  %3042 = vmatprep.subr.bf16.mxu0 (!%p238_p2), %v3406_v4  ;;  %v3409_v7 = vld [vmem:[%s4421_s1 + $0x88] sm:$0xff] (!%p238_p2)   ;;  %v3413_v11 = vld [vmem:[%s4421_s1 + $0x90] sm:$0xff] (!%p238_p2)  }
   0x9   : > { %3063 = vmatpush3.bf16.msra.mxu1 (!%p238_p2), %v3405_v3  ;;  %v3414_v12 = vld [vmem:[%s4421_s1 + $0x58] sm:$0xff] (!%p238_p2)   ;;  %v3418_v16 = vld [vmem:[%s4421_s1 + $0x60] sm:$0xff] (!%p238_p2)   ;;  %v3422_v20 = vld [vmem:[%s4421_s1 + $0x68] sm:$0xff] (!%p238_p2)  }
   0xa   : > { %3064 = vmatprep.subr.bf16.mxu1 (!%p238_p2), %v3408_v6  ;;  %v3415_v13 = vld [vmem:[%s4421_s1 + $0x18] sm:$0xff] (!%p238_p2)   ;;  %v3419_v17 = vld [vmem:[%s4421_s1 + $0x20] sm:$0xff] (!%p238_p2)   ;;  %v3423_v21 = vld [vmem:[%s4421_s1 + $0x28] sm:$0xff] (!%p238_p2)  }
   0xb   : > { %3043 = vmatpush3.bf16.msra.mxu0 (!%p238_p2), %v3407_v5  ;;  %v3416_v14 = vld [vmem:[%s4421_s1 + $0xd8] sm:$0xff] (!%p238_p2)   ;;  %v3420_v18 = vld [vmem:[%s4421_s1 + $0xe0] sm:$0xff] (!%p238_p2)   ;;  %v3424_v22 = vld [vmem:[%s4421_s1 + $0xe8] sm:$0xff] (!%p238_p2)  }
   0xc   : > { %3044 = vmatprep.subr.bf16.mxu0 (!%p238_p2), %v3410_v8  ;;  %v3417_v15 = vld [vmem:[%s4421_s1 + $0x98] sm:$0xff] (!%p238_p2)   ;;  %v3421_v19 = vld [vmem:[%s4421_s1 + $0xa0] sm:$0xff] (!%p238_p2)   ;;  %v3425_v23 = vld [vmem:[%s4421_s1 + $0xa8] sm:$0xff] (!%p238_p2)  }
   0xd   : > { %3065 = vmatpush3.bf16.msra.mxu1 %v3409_v7  ;;  %s4429_s25 = smov (!%p268_p3, %s2787_s25), 1  ;;  %v3426_v24 = vld [vmem:[%s4421_s1 + $0x70] sm:$0xff]   ;;  %v3430_v28 = vld [vmem:[%s4421_s1 + $0x78] sm:$0xff]   ;;  %v3436_v35 = vld [vmem:[%s4421_s1 + $0x140] sm:$0xff]  }
   0xe   : > { %3066 = vmatprep.subr.bf16.mxu1 %v3412_v10  ;;  %s3391_s11 = smul.u32 100, %s4429_s25  ;;  %v3427_v25 = vld [vmem:[%s4421_s1 + $0x30] sm:$0xff]   ;;  %v3431_v29 = vld [vmem:[%s4421_s1 + $0x38] sm:$0xff]   ;;  %v3439_v39 = vld [vmem:[%s4421_s1 + $0x100] sm:$0xff]   ;;  %s2793_s20 = sshll.u32 %s4429_s25, 3 }
   0xf   : > { %3045 = vmatpush3.bf16.msra.mxu0 %v3411_v9  ;;  %v3428_v26 = vld [vmem:[%s4421_s1 + $0xf0] sm:$0xff]   ;;  %v3432_v30 = vld [vmem:[%s4421_s1 + $0xf8] sm:$0xff]   ;;  %v3440_v40 = vld [vmem:[%s4421_s1 + $0x1c0] sm:$0xff]   ;;  %s276_s26 = scalar_lea.vmem %s4427_s7, %s2793_s20 }
  0x10   : > { %3046 = vmatprep.subr.bf16.mxu0 %v3414_v12  ;;  %v3429_v27 = vld [vmem:[%s4421_s1 + $0xb0] sm:$0xff]   ;;  %s3798_s22 = scalar_lea.vmem %s4420_s0, %s3391_s11  ;;  %v3435_v34 = vld [vmem:[%s4421_s1 + $0xb8] sm:$0xff]   ;;  %v3441_v41 = vld [vmem:[%s4421_s1 + $0x180] sm:$0xff]  }
  0x11   : > { %3067 = vmatpush3.bf16.msra.mxu1 %v3413_v11  ;;  %v278_v31 = vld [vmem:[%s3798_s22] sm:$0xff]  ;;  %v279_v36 = vld [vmem:[%s3798_s22 + $0x8] sm:$0xff]  ;;  %v3446_v46 = vld [vmem:[%s4421_s1 + $0x150] sm:$0xff]  }
  0x12   : > { %3068 = vmatprep.subr.bf16.mxu1 %v3416_v14  ;;  %v2795_v32 = vcombine.low %v278_v31, %v278_v31  ;;  %v2796_v33 = vcombine.high %v278_v31, %v278_v31  ;;  %v2797_v37 = vcombine.low %v279_v36, %v279_v36  ;;  %v2798_v38 = vcombine.high %v279_v36, %v279_v36  ;;  %v3442_v42 = vld [vmem:[%s4421_s1 + $0x148] sm:$0xff]   ;;  %v3447_v47 = vld [vmem:[%s4421_s1 + $0x110] sm:$0xff]   ;;  %v3450_v50 = vld [vmem:[%s4421_s1 + $0x158] sm:$0xff]  }
  0x13   : > { %3047 = vmatpush3.bf16.msra.mxu0 %v3415_v13  ;;  %v3443_v43 = vld [vmem:[%s4421_s1 + $0x108] sm:$0xff]   ;;  %v3448_v48 = vld [vmem:[%s4421_s1 + $0x1d0] sm:$0xff]   ;;  %v3451_v51 = vld [vmem:[%s4421_s1 + $0x118] sm:$0xff]  }
  0x14   : > { %3048 = vmatprep.subr.bf16.mxu0 %v3418_v16  ;;  %2018 = vmatprep.mubr.bf16.mxu0 %v2796_v33  ;;  %v3444_v44 = vld [vmem:[%s4421_s1 + $0x1c8] sm:$0xff]   ;;  %v3449_v49 = vld [vmem:[%s4421_s1 + $0x190] sm:$0xff]   ;;  %v3452_v52 = vld [vmem:[%s4421_s1 + $0x1d8] sm:$0xff]  }
  0x15   : > { %3069 = vmatpush3.bf16.msra.mxu1 %v3417_v15  ;;  %2058 = vmatprep.mubr.bf16.mxu1 %v2798_v38  ;;  %v3445_v45 = vld [vmem:[%s4421_s1 + $0x188] sm:$0xff]   ;;  %v3453_v53 = vld [vmem:[%s4421_s1 + $0x198] sm:$0xff]   ;;  %v3454_v54 = vld [vmem:[%s4421_s1 + $0x160] sm:$0xff]  }
  0x16   : > { %3070 = vmatprep.subr.bf16.mxu1 %v3420_v18  ;;  %v3455_v55 = vld [vmem:[%s4421_s1 + $0x120] sm:$0xff]   ;;  %v3458_v58 = vld [vmem:[%s4421_s1 + $0x168] sm:$0xff]   ;;  %v3462_v62 = vld [vmem:[%s4421_s1 + $0x170] sm:$0xff]  }
  0x17   : > { %3049 = vmatpush3.bf16.msra.mxu0 %v3419_v17  ;;  %v3456_v56 = vld [vmem:[%s4421_s1 + $0x1e0] sm:$0xff]   ;;  %v3459_v59 = vld [vmem:[%s4421_s1 + $0x128] sm:$0xff]   ;;  %v3463_v63 = vld [vmem:[%s4421_s1 + $0x130] sm:$0xff]  }
  0x18   : > { %3050 = vmatprep.subr.bf16.mxu0 %v3422_v20  ;;  %v3457_v57 = vld [vmem:[%s4421_s1 + $0x1a0] sm:$0xff]   ;;  %v3460_v60 = vld [vmem:[%s4421_s1 + $0x1e8] sm:$0xff]   ;;  %v3464_v0 = vld [vmem:[%s4421_s1 + $0x1f0] sm:$0xff]  }
  0x19   : > { %3071 = vmatpush3.bf16.msra.mxu1 %v3421_v19  ;;  %v3461_v61 = vld [vmem:[%s4421_s1 + $0x1a8] sm:$0xff]   ;;  %v3465_v1 = vld [vmem:[%s4421_s1 + $0x1b0] sm:$0xff]   ;;  %v3466_v2 = vld [vmem:[%s4421_s1 + $0x178] sm:$0xff]  }
  0x1a   : > { %3072 = vmatprep.subr.bf16.mxu1 %v3424_v22  ;;  %v3467_v3 = vld [vmem:[%s4421_s1 + $0x138] sm:$0xff]   ;;  %v280_v5 = vld [vmem:[%s3798_s22 + $0x10] sm:$0xff]  ;;  %v3472_v9 = vld [vmem:[%s4421_s1 + $0x240] sm:$0xff]  }
  0x1b   : > { %3051 = vmatpush3.bf16.msra.mxu0 %v3423_v21  ;;  %v3468_v4 = vld [vmem:[%s4421_s1 + $0x1f8] sm:$0xff]   ;;  %v2799_v6 = vcombine.low %v280_v5, %v280_v5  ;;  %v2800_v7 = vcombine.high %v280_v5, %v280_v5  ;;  %v3475_v13 = vld [vmem:[%s4421_s1 + $0x200] sm:$0xff]   ;;  %v3478_v16 = vld [vmem:[%s4421_s1 + $0x248] sm:$0xff]  }
  0x1c   : > { %3052 = vmatprep.subr.bf16.mxu0 %v3426_v24  ;;  %v3471_v8 = vld [vmem:[%s4421_s1 + $0x1b8] sm:$0xff]   ;;  %v3476_v14 = vld [vmem:[%s4421_s1 + $0x2c0] sm:$0xff]   ;;  %v3479_v17 = vld [vmem:[%s4421_s1 + $0x208] sm:$0xff]  }
  0x1d   : > { %3073 = vmatpush3.bf16.msra.mxu1 %v3425_v23  ;;  %v281_v10 = vld [vmem:[%s3798_s22 + $0x18] sm:$0xff]  ;;  %v3477_v15 = vld [vmem:[%s4421_s1 + $0x280] sm:$0xff]   ;;  %v3480_v18 = vld [vmem:[%s4421_s1 + $0x2c8] sm:$0xff]  }
  0x1e   : > { %3074 = vmatprep.subr.bf16.mxu1 %v3428_v26  ;;  %v2801_v11 = vcombine.low %v281_v10, %v281_v10  ;;  %v2802_v12 = vcombine.high %v281_v10, %v281_v10  ;;  %v3481_v19 = vld [vmem:[%s4421_s1 + $0x288] sm:$0xff]   ;;  %v3482_v20 = vld [vmem:[%s4421_s1 + $0x250] sm:$0xff]   ;;  %v3486_v24 = vld [vmem:[%s4421_s1 + $0x258] sm:$0xff]  }
  0x1f   : > { %3053 = vmatpush3.bf16.msra.mxu0 %v3427_v25  ;;  %v3483_v21 = vld [vmem:[%s4421_s1 + $0x210] sm:$0xff]   ;;  %v3487_v25 = vld [vmem:[%s4421_s1 + $0x218] sm:$0xff]   ;;  %v3493_v31 = vld [vmem:[%s4421_s1 + $0x2a0] sm:$0xff]  }
  0x20   : > { %3054 = vmatprep.subr.bf16.mxu0 %v3430_v28  ;;  %v3484_v22 = vld [vmem:[%s4421_s1 + $0x2d0] sm:$0xff]   ;;  %v3488_v26 = vld [vmem:[%s4421_s1 + $0x2d8] sm:$0xff]   ;;  %v3490_v28 = vld [vmem:[%s4421_s1 + $0x260] sm:$0xff]  }
  0x21   : > { %3075 = vmatpush3.bf16.msra.mxu1 %v3429_v27  ;;  %v3485_v23 = vld [vmem:[%s4421_s1 + $0x290] sm:$0xff]   ;;  %v3489_v27 = vld [vmem:[%s4421_s1 + $0x298] sm:$0xff]   ;;  %v3495_v33 = vld [vmem:[%s4421_s1 + $0x228] sm:$0xff]  }
  0x22   : > { %3076 = vmatprep.subr.bf16.mxu1 %v3432_v30  ;;  %v3492_v30 = vld [vmem:[%s4421_s1 + $0x2e0] sm:$0xff]   ;;  %v3498_v36 = vld [vmem:[%s4421_s1 + $0x270] sm:$0xff]  }
  0x23   : > { %3055 = vmatpush3.bf16.msra.mxu0 %v3431_v29  ;;  %v3491_v29 = vld [vmem:[%s4421_s1 + $0x220] sm:$0xff]   ;;  %v3500_v38 = vld [vmem:[%s4421_s1 + $0x2f0] sm:$0xff]  }
  0x24   : > { %3084 = vmatprep.subr.bf16.mxu0 %v3436_v35  ;;  %v3497_v35 = vld [vmem:[%s4421_s1 + $0x2a8] sm:$0xff]   ;;  %v3529_v5 = vld [vmem:[%s4421_s1 + $0x3a0] sm:$0xff]   ;;  %v3534_v10 = vld [vmem:[%s4421_s1 + $0x370] sm:$0xff]  }
  0x25   : > { %3077 = vmatpush3.bf16.msra.mxu1 %v3435_v34  ;;  %v3496_v34 = vld [vmem:[%s4421_s1 + $0x2e8] sm:$0xff]  }
  0x26   : > { %2019 = vmatmul.mubr.bf16.vlgmr.msra.gmra.mrb[0].mxu0 %v2795_v32  ;;  %3106 = vmatprep.subr.bf16.mxu1 %v3440_v40  ;;  %v3494_v32 = vld [vmem:[%s4421_s1 + $0x268] sm:$0xff]   ;;  %v3502_v40 = vld [vmem:[%s4421_s1 + $0x278] sm:$0xff]  }
  0x27   : > { %3085 = vmatpush3.bf16.msra.mxu0 %v3439_v39  ;;  %2098 = vmatprep.mubr.bf16.mxu0 %v2800_v7  ;;  %v3501_v39 = vld [vmem:[%s4421_s1 + $0x2b0] sm:$0xff]   ;;  %v3531_v7 = vld [vmem:[%s4421_s1 + $0x328] sm:$0xff]  }
  0x28   : > { %2059 = vmatmul.mubr.bf16.vlgmr.msra.gmra.mrb[0].mxu1 %v2797_v37  ;;  %3086 = vmatprep.subr.bf16.mxu0 %v3442_v42  ;;  %v3499_v37 = vld [vmem:[%s4421_s1 + $0x230] sm:$0xff]   ;;  %v3504_v42 = vld [vmem:[%s4421_s1 + $0x2f8] sm:$0xff]  }
  0x29   : > { %3107 = vmatpush3.bf16.msra.mxu1 %v3441_v41  ;;  %2138 = vmatprep.mubr.bf16.mxu1 %v2802_v12  ;;  %v3503_v41 = vld [vmem:[%s4421_s1 + $0x238] sm:$0xff]   ;;  %v3536_v12 = vld [vmem:[%s4421_s1 + $0x3f0] sm:$0xff]  }
  0x2a   : > { %3108 = vmatprep.subr.bf16.mxu1 %v3444_v44 }
  0x2b   : > { %3087 = vmatpush3.bf16.msra.mxu0 %v3443_v43  ;;  %v282_v43 = vld [vmem:[%s3798_s22 + $0x20] sm:$0xff] }
  0x2c   : > { %3088 = vmatprep.subr.bf16.mxu0 %v3446_v46  ;;  %v2803_v44 = vcombine.low %v282_v43, %v282_v43  ;;  %v3507_v46 = vld [vmem:[%s4421_s1 + $0x2b8] sm:$0xff]  }
  0x2d   : > { %3109 = vmatpush3.bf16.msra.mxu1 %v3445_v45  ;;  %v2804_v45 = vcombine.high %v282_v43, %v282_v43  ;;  %v3565_v43 = vld [vmem:[%s4421_s1 + $0x4a0] sm:$0xff]  }
  0x2e   : > { %3110 = vmatprep.subr.bf16.mxu1 %v3448_v48  ;;  %v283_v48 = vld [vmem:[%s3798_s22 + $0x28] sm:$0xff] }
  0x2f   : > { %3089 = vmatpush3.bf16.msra.mxu0 %v3447_v47  ;;  %v3508_v47 = vld [vmem:[%s4421_s1 + $0x340] sm:$0xff]  }
  0x30   : > { %3090 = vmatprep.subr.bf16.mxu0 %v3450_v50  ;;  %v2806_v50 = vcombine.high %v283_v48, %v283_v48 }
  0x31   : > { %3111 = vmatpush3.bf16.msra.mxu1 %v3449_v49  ;;  %v2805_v49 = vcombine.low %v283_v48, %v283_v48  ;;  %v3570_v48 = vld [vmem:[%s4421_s1 + $0x470] sm:$0xff]  }
  0x32   : > { %3112 = vmatprep.subr.bf16.mxu1 %v3452_v52  ;;  %v3512_v52 = vld [vmem:[%s4421_s1 + $0x3c0] sm:$0xff]  }
  0x33   : > { %3091 = vmatpush3.bf16.msra.mxu0 %v3451_v51  ;;  %v3511_v51 = vld [vmem:[%s4421_s1 + $0x300] sm:$0xff]  }
  0x34   : > { %3092 = vmatprep.subr.bf16.mxu0 %v3454_v54  ;;  %v3514_v54 = vld [vmem:[%s4421_s1 + $0x348] sm:$0xff]  }
  0x35   : > { %3113 = vmatpush3.bf16.msra.mxu1 %v3453_v53  ;;  %v3513_v53 = vld [vmem:[%s4421_s1 + $0x380] sm:$0xff]  }
  0x36   : > { %3114 = vmatprep.subr.bf16.mxu1 %v3456_v56  ;;  %v3516_v56 = vld [vmem:[%s4421_s1 + $0x3c8] sm:$0xff]  }
  0x37   : > { %3093 = vmatpush3.bf16.msra.mxu0 %v3455_v55  ;;  %v3515_v55 = vld [vmem:[%s4421_s1 + $0x308] sm:$0xff]  }
  0x38   : > { %3094 = vmatprep.subr.bf16.mxu0 %v3458_v58  ;;  %v3518_v58 = vld [vmem:[%s4421_s1 + $0x350] sm:$0xff]  }
  0x39   : > { %3115 = vmatpush3.bf16.msra.mxu1 %v3457_v57  ;;  %v3517_v57 = vld [vmem:[%s4421_s1 + $0x388] sm:$0xff]  }
  0x3a   : > { %3116 = vmatprep.subr.bf16.mxu1 %v3460_v60  ;;  %v3520_v60 = vld [vmem:[%s4421_s1 + $0x3d0] sm:$0xff]  }
  0x3b   : > { %3095 = vmatpush3.bf16.msra.mxu0 %v3459_v59  ;;  %v3519_v59 = vld [vmem:[%s4421_s1 + $0x310] sm:$0xff]  }
  0x3c   : > { %3096 = vmatprep.subr.bf16.mxu0 %v3462_v62  ;;  %v3522_v62 = vld [vmem:[%s4421_s1 + $0x358] sm:$0xff]  }
  0x3d   : > { %3117 = vmatpush3.bf16.msra.mxu1 %v3461_v61  ;;  %v3521_v61 = vld [vmem:[%s4421_s1 + $0x390] sm:$0xff]  }
  0x3e   : > { %3118 = vmatprep.subr.bf16.mxu1 %v3464_v0  ;;  %v3524_v0 = vld [vmem:[%s4421_s1 + $0x3d8] sm:$0xff]  }
  0x3f   : > { %3097 = vmatpush3.bf16.msra.mxu0 %v3463_v63  ;;  %v3523_v63 = vld [vmem:[%s4421_s1 + $0x318] sm:$0xff]  }
  0x40   : > { %3098 = vmatprep.subr.bf16.mxu0 %v3466_v2  ;;  %v3526_v2 = vld [vmem:[%s4421_s1 + $0x360] sm:$0xff]  }
  0x41   : > { %3119 = vmatpush3.bf16.msra.mxu1 %v3465_v1  ;;  %v3525_v1 = vld [vmem:[%s4421_s1 + $0x398] sm:$0xff]  }
  0x42   : > { %3120 = vmatprep.subr.bf16.mxu1 %v3468_v4  ;;  %v3528_v4 = vld [vmem:[%s4421_s1 + $0x3e0] sm:$0xff]  }
  0x43   : > { %3099 = vmatpush3.bf16.msra.mxu0 %v3467_v3  ;;  %v3527_v3 = vld [vmem:[%s4421_s1 + $0x320] sm:$0xff]  }
  0x44   : > { %3128 = vmatprep.subr.bf16.mxu0 %v3472_v9  ;;  %v3533_v9 = vld [vmem:[%s4421_s1 + $0x3a8] sm:$0xff]  }
  0x45   : > { %3121 = vmatpush3.bf16.msra.mxu1 %v3471_v8  ;;  %v3532_v8 = vld [vmem:[%s4421_s1 + $0x3e8] sm:$0xff]  }
  0x46   : > { %2099 = vmatmul.mubr.bf16.vlgmr.msra.gmra.mrb[4].mxu0 %v2799_v6  ;;  %3150 = vmatprep.subr.bf16.mxu1 %v3476_v14  ;;  %v3530_v6 = vld [vmem:[%s4421_s1 + $0x368] sm:$0xff]   ;;  %v3538_v14 = vld [vmem:[%s4421_s1 + $0x378] sm:$0xff]  }
  0x47   : > { %3129 = vmatpush3.bf16.msra.mxu0 %v3475_v13  ;;  %2178 = vmatprep.mubr.bf16.mxu0 %v2804_v45  ;;  %v3537_v13 = vld [vmem:[%s4421_s1 + $0x3b0] sm:$0xff]   ;;  %v3567_v45 = vld [vmem:[%s4421_s1 + $0x428] sm:$0xff]  }
  0x48   : > { %2139 = vmatmul.mubr.bf16.vlgmr.msra.gmra.mrb[4].mxu1 %v2801_v11  ;;  %3130 = vmatprep.subr.bf16.mxu0 %v3478_v16  ;;  %v3535_v11 = vld [vmem:[%s4421_s1 + $0x330] sm:$0xff]   ;;  %v3540_v16 = vld [vmem:[%s4421_s1 + $0x3f8] sm:$0xff]  }
  0x49   : > { %3151 = vmatpush3.bf16.msra.mxu1 %v3477_v15  ;;  %2218 = vmatprep.mubr.bf16.mxu1 %v2806_v50  ;;  %v3539_v15 = vld [vmem:[%s4421_s1 + $0x338] sm:$0xff]   ;;  %v3572_v50 = vld [vmem:[%s4421_s1 + $0x4f0] sm:$0xff]  }
  0x4a   : > { %3152 = vmatprep.subr.bf16.mxu1 %v3480_v18 }
  0x4b   : > { %3131 = vmatpush3.bf16.msra.mxu0 %v3479_v17  ;;  %v284_v17 = vld [vmem:[%s3798_s22 + $0x30] sm:$0xff] }
  0x4c   : > { %3132 = vmatprep.subr.bf16.mxu0 %v3482_v20  ;;  %v2807_v18 = vcombine.low %v284_v17, %v284_v17  ;;  %v3543_v20 = vld [vmem:[%s4421_s1 + $0x3b8] sm:$0xff]  }
  0x4d   : > { %3153 = vmatpush3.bf16.msra.mxu1 %v3481_v19  ;;  %v2808_v19 = vcombine.high %v284_v17, %v284_v17  ;;  %v3601_v17 = vld [vmem:[%s4421_s1 + $0x5a0] sm:$0xff]  }
  0x4e   : > { %3154 = vmatprep.subr.bf16.mxu1 %v3484_v22  ;;  %v285_v22 = vld [vmem:[%s3798_s22 + $0x38] sm:$0xff] }
  0x4f   : > { %3133 = vmatpush3.bf16.msra.mxu0 %v3483_v21  ;;  %v3544_v21 = vld [vmem:[%s4421_s1 + $0x440] sm:$0xff]  }
  0x50   : > { %3134 = vmatprep.subr.bf16.mxu0 %v3486_v24  ;;  %v2810_v24 = vcombine.high %v285_v22, %v285_v22 }
  0x51   : > { %3155 = vmatpush3.bf16.msra.mxu1 %v3485_v23  ;;  %v2809_v23 = vcombine.low %v285_v22, %v285_v22  ;;  %v3606_v22 = vld [vmem:[%s4421_s1 + $0x570] sm:$0xff]  }
  0x52   : > { %3156 = vmatprep.subr.bf16.mxu1 %v3488_v26  ;;  %v3548_v26 = vld [vmem:[%s4421_s1 + $0x4c0] sm:$0xff]  }
  0x53   : > { %3135 = vmatpush3.bf16.msra.mxu0 %v3487_v25  ;;  %v3547_v25 = vld [vmem:[%s4421_s1 + $0x400] sm:$0xff]  }
  0x54   : > { %3136 = vmatprep.subr.bf16.mxu0 %v3490_v28  ;;  %v3550_v28 = vld [vmem:[%s4421_s1 + $0x448] sm:$0xff]  }
  0x55   : > { %3157 = vmatpush3.bf16.msra.mxu1 %v3489_v27  ;;  %v3549_v27 = vld [vmem:[%s4421_s1 + $0x480] sm:$0xff]  }
  0x56   : > { %3158 = vmatprep.subr.bf16.mxu1 %v3492_v30  ;;  %v3552_v30 = vld [vmem:[%s4421_s1 + $0x4c8] sm:$0xff]  }
  0x57   : > { %3137 = vmatpush3.bf16.msra.mxu0 %v3491_v29  ;;  %v3551_v29 = vld [vmem:[%s4421_s1 + $0x408] sm:$0xff]  }
  0x58   : > { %3138 = vmatprep.subr.bf16.mxu0 %v3494_v32  ;;  %v3554_v32 = vld [vmem:[%s4421_s1 + $0x450] sm:$0xff]  }
  0x59   : > { %3159 = vmatpush3.bf16.msra.mxu1 %v3493_v31  ;;  %v3553_v31 = vld [vmem:[%s4421_s1 + $0x488] sm:$0xff]  }
  0x5a   : > { %3160 = vmatprep.subr.bf16.mxu1 %v3496_v34  ;;  %v3556_v34 = vld [vmem:[%s4421_s1 + $0x4d0] sm:$0xff]  }
  0x5b   : > { %3139 = vmatpush3.bf16.msra.mxu0 %v3495_v33  ;;  %v3555_v33 = vld [vmem:[%s4421_s1 + $0x410] sm:$0xff]  }
  0x5c   : > { %3140 = vmatprep.subr.bf16.mxu0 %v3498_v36  ;;  %v3558_v36 = vld [vmem:[%s4421_s1 + $0x458] sm:$0xff]  }
  0x5d   : > { %3161 = vmatpush3.bf16.msra.mxu1 %v3497_v35  ;;  %v3557_v35 = vld [vmem:[%s4421_s1 + $0x490] sm:$0xff]  }
  0x5e   : > { %3162 = vmatprep.subr.bf16.mxu1 %v3500_v38  ;;  %v3560_v38 = vld [vmem:[%s4421_s1 + $0x4d8] sm:$0xff]  }
  0x5f   : > { %3141 = vmatpush3.bf16.msra.mxu0 %v3499_v37  ;;  %v3559_v37 = vld [vmem:[%s4421_s1 + $0x418] sm:$0xff]  }
  0x60   : > { %3142 = vmatprep.subr.bf16.mxu0 %v3502_v40  ;;  %v3562_v40 = vld [vmem:[%s4421_s1 + $0x460] sm:$0xff]  }
  0x61   : > { %3163 = vmatpush3.bf16.msra.mxu1 %v3501_v39  ;;  %v3561_v39 = vld [vmem:[%s4421_s1 + $0x498] sm:$0xff]  }
  0x62   : > { %3164 = vmatprep.subr.bf16.mxu1 %v3504_v42  ;;  %v3564_v42 = vld [vmem:[%s4421_s1 + $0x4e0] sm:$0xff]  }
  0x63   : > { %3143 = vmatpush3.bf16.msra.mxu0 %v3503_v41  ;;  %v3563_v41 = vld [vmem:[%s4421_s1 + $0x420] sm:$0xff]  }
  0x64   : > { %3172 = vmatprep.subr.bf16.mxu0 %v3508_v47  ;;  %v3569_v47 = vld [vmem:[%s4421_s1 + $0x4a8] sm:$0xff]  }
  0x65   : > { %3165 = vmatpush3.bf16.msra.mxu1 %v3507_v46  ;;  %v3568_v46 = vld [vmem:[%s4421_s1 + $0x4e8] sm:$0xff]  }
  0x66   : > { %2179 = vmatmul.mubr.bf16.vlgmr.msra.gmra.mrb[8].mxu0 %v2803_v44  ;;  %3194 = vmatprep.subr.bf16.mxu1 %v3512_v52  ;;  %v3566_v44 = vld [vmem:[%s4421_s1 + $0x468] sm:$0xff]   ;;  %v3574_v52 = vld [vmem:[%s4421_s1 + $0x478] sm:$0xff]  }
  0x67   : > { %3173 = vmatpush3.bf16.msra.mxu0 %v3511_v51  ;;  %2258 = vmatprep.mubr.bf16.mxu0 %v2808_v19  ;;  %v3573_v51 = vld [vmem:[%s4421_s1 + $0x4b0] sm:$0xff]   ;;  %v3603_v19 = vld [vmem:[%s4421_s1 + $0x528] sm:$0xff]  }
  0x68   : > { %2219 = vmatmul.mubr.bf16.vlgmr.msra.gmra.mrb[8].mxu1 %v2805_v49  ;;  %3174 = vmatprep.subr.bf16.mxu0 %v3514_v54  ;;  %v3571_v49 = vld [vmem:[%s4421_s1 + $0x430] sm:$0xff]   ;;  %v3576_v54 = vld [vmem:[%s4421_s1 + $0x4f8] sm:$0xff]  }
  0x69   : > { %3195 = vmatpush3.bf16.msra.mxu1 %v3513_v53  ;;  %2298 = vmatprep.mubr.bf16.mxu1 %v2810_v24  ;;  %v3575_v53 = vld [vmem:[%s4421_s1 + $0x438] sm:$0xff]   ;;  %v3608_v24 = vld [vmem:[%s4421_s1 + $0x5f0] sm:$0xff]  }
  0x6a   : > { %3196 = vmatprep.subr.bf16.mxu1 %v3516_v56 }
  0x6b   : > { %3175 = vmatpush3.bf16.msra.mxu0 %v3515_v55  ;;  %v286_v55 = vld [vmem:[%s3798_s22 + $0x40] sm:$0xff] }
  0x6c   : > { %3176 = vmatprep.subr.bf16.mxu0 %v3518_v58  ;;  %v2811_v56 = vcombine.low %v286_v55, %v286_v55  ;;  %v3579_v58 = vld [vmem:[%s4421_s1 + $0x4b8] sm:$0xff]  }
  0x6d   : > { %3197 = vmatpush3.bf16.msra.mxu1 %v3517_v57  ;;  %v2812_v57 = vcombine.high %v286_v55, %v286_v55 }
  0x6e   : > { %3198 = vmatprep.subr.bf16.mxu1 %v3520_v60  ;;  %v287_v60 = vld [vmem:[%s3798_s22 + $0x48] sm:$0xff] }
  0x6f   : > { %3177 = vmatpush3.bf16.msra.mxu0 %v3519_v59  ;;  %v3580_v59 = vld [vmem:[%s4421_s1 + $0x540] sm:$0xff]  }
  0x70   : > { %3178 = vmatprep.subr.bf16.mxu0 %v3522_v62  ;;  %v2814_v62 = vcombine.high %v287_v60, %v287_v60 }
  0x71   : > { %3199 = vmatpush3.bf16.msra.mxu1 %v3521_v61  ;;  %v2813_v61 = vcombine.low %v287_v60, %v287_v60 }
  0x72   : > { %3200 = vmatprep.subr.bf16.mxu1 %v3524_v0  ;;  %v3584_v0 = vld [vmem:[%s4421_s1 + $0x5c0] sm:$0xff]  }
  0x73   : > { %3179 = vmatpush3.bf16.msra.mxu0 %v3523_v63  ;;  %v3583_v63 = vld [vmem:[%s4421_s1 + $0x500] sm:$0xff]  }
  0x74   : > { %3180 = vmatprep.subr.bf16.mxu0 %v3526_v2  ;;  %v3586_v2 = vld [vmem:[%s4421_s1 + $0x548] sm:$0xff]  }
  0x75   : > { %3201 = vmatpush3.bf16.msra.mxu1 %v3525_v1  ;;  %v3585_v1 = vld [vmem:[%s4421_s1 + $0x580] sm:$0xff]  }
  0x76   : > { %3202 = vmatprep.subr.bf16.mxu1 %v3528_v4  ;;  %v3588_v4 = vld [vmem:[%s4421_s1 + $0x5c8] sm:$0xff]  }
  0x77   : > { %3181 = vmatpush3.bf16.msra.mxu0 %v3527_v3  ;;  %v3587_v3 = vld [vmem:[%s4421_s1 + $0x508] sm:$0xff]  }
  0x78   : > { %3182 = vmatprep.subr.bf16.mxu0 %v3530_v6  ;;  %v3590_v6 = vld [vmem:[%s4421_s1 + $0x550] sm:$0xff]  }
  0x79   : > { %3203 = vmatpush3.bf16.msra.mxu1 %v3529_v5  ;;  %v3589_v5 = vld [vmem:[%s4421_s1 + $0x588] sm:$0xff]  }
  0x7a   : > { %3204 = vmatprep.subr.bf16.mxu1 %v3532_v8  ;;  %v3592_v8 = vld [vmem:[%s4421_s1 + $0x5d0] sm:$0xff]  }
  0x7b   : > { %3183 = vmatpush3.bf16.msra.mxu0 %v3531_v7  ;;  %v3591_v7 = vld [vmem:[%s4421_s1 + $0x510] sm:$0xff]  }
  0x7c   : > { %3184 = vmatprep.subr.bf16.mxu0 %v3534_v10  ;;  %v3594_v10 = vld [vmem:[%s4421_s1 + $0x558] sm:$0xff]  }
  0x7d   : > { %3205 = vmatpush3.bf16.msra.mxu1 %v3533_v9  ;;  %v3593_v9 = vld [vmem:[%s4421_s1 + $0x590] sm:$0xff]  }
  0x7e   : > { %3206 = vmatprep.subr.bf16.mxu1 %v3536_v12  ;;  %v3596_v12 = vld [vmem:[%s4421_s1 + $0x5d8] sm:$0xff]  }
  0x7f   : > { %3185 = vmatpush3.bf16.msra.mxu0 %v3535_v11  ;;  %v3595_v11 = vld [vmem:[%s4421_s1 + $0x518] sm:$0xff]  }
  0x80   : > { %3186 = vmatprep.subr.bf16.mxu0 %v3538_v14  ;;  %v3598_v14 = vld [vmem:[%s4421_s1 + $0x560] sm:$0xff]  }
  0x81   : > { %3207 = vmatpush3.bf16.msra.mxu1 %v3537_v13  ;;  %v3597_v13 = vld [vmem:[%s4421_s1 + $0x598] sm:$0xff]  }
  0x82   : > { %3208 = vmatprep.subr.bf16.mxu1 %v3540_v16  ;;  %v3600_v16 = vld [vmem:[%s4421_s1 + $0x5e0] sm:$0xff]  }
  0x83   : > { %3187 = vmatpush3.bf16.msra.mxu0 %v3539_v15  ;;  %v3599_v15 = vld [vmem:[%s4421_s1 + $0x520] sm:$0xff]  }
  0x84   : > { %3216 = vmatprep.subr.bf16.mxu0 %v3544_v21  ;;  %v3605_v21 = vld [vmem:[%s4421_s1 + $0x5a8] sm:$0xff]  }
  0x85   : > { %3209 = vmatpush3.bf16.msra.mxu1 %v3543_v20  ;;  %v3604_v20 = vld [vmem:[%s4421_s1 + $0x5e8] sm:$0xff]  }
  0x86   : > { %2259 = vmatmul.mubr.bf16.vlgmr.msra.gmra.mrb[12].mxu0 %v2807_v18  ;;  %3238 = vmatprep.subr.bf16.mxu1 %v3548_v26  ;;  %v3602_v18 = vld [vmem:[%s4421_s1 + $0x568] sm:$0xff]   ;;  %v3610_v26 = vld [vmem:[%s4421_s1 + $0x578] sm:$0xff]  }
  0x87   : > { %3217 = vmatpush3.bf16.msra.mxu0 %v3547_v25  ;;  %2338 = vmatprep.mubr.bf16.mxu0 %v2812_v57  ;;  %v3609_v25 = vld [vmem:[%s4421_s1 + $0x5b0] sm:$0xff]  }
  0x88   : > { %2299 = vmatmul.mubr.bf16.vlgmr.msra.gmra.mrb[12].mxu1 %v2809_v23  ;;  %3218 = vmatprep.subr.bf16.mxu0 %v3550_v28  ;;  %v3607_v23 = vld [vmem:[%s4421_s1 + $0x530] sm:$0xff]   ;;  %v3612_v28 = vld [vmem:[%s4421_s1 + $0x5f8] sm:$0xff]  }
  0x89   : > { %3239 = vmatpush3.bf16.msra.mxu1 %v3549_v27  ;;  %2378 = vmatprep.mubr.bf16.mxu1 %v2814_v62  ;;  %v3611_v27 = vld [vmem:[%s4421_s1 + $0x538] sm:$0xff]  }
  0x8a   : > { %3240 = vmatprep.subr.bf16.mxu1 %v3552_v30 }
  0x8b   : > { %3219 = vmatpush3.bf16.msra.mxu0 %v3551_v29  ;;  %v288_v29 = vld [vmem:[%s3798_s22 + $0x50] sm:$0xff] }
  0x8c   : > { %3220 = vmatprep.subr.bf16.mxu0 %v3554_v32  ;;  %v2815_v30 = vcombine.low %v288_v29, %v288_v29  ;;  %v3615_v32 = vld [vmem:[%s4421_s1 + $0x5b8] sm:$0xff]  }
  0x8d   : > { %3241 = vmatpush3.bf16.msra.mxu1 %v3553_v31  ;;  %v2816_v31 = vcombine.high %v288_v29, %v288_v29  ;;  %v3637_v29 = vld [vmem:[%s4425_s5 + $0x10] sm:$0xff]  }
  0x8e   : > { %3242 = vmatprep.subr.bf16.mxu1 %v3556_v34  ;;  %v3651_v34 = vmov 0.0  }
  0x8f   : > { %3221 = vmatpush3.bf16.msra.mxu0 %v3555_v33  ;;  %v289_v33 = vld [vmem:[%s3798_s22 + $0x58] sm:$0xff] }
  0x90   : > { %3222 = vmatprep.subr.bf16.mxu0 %v3558_v36  ;;  %v2818_v36 = vcombine.high %v289_v33, %v289_v33 }
  0x91   : > { %3243 = vmatpush3.bf16.msra.mxu1 %v3557_v35  ;;  %v2817_v35 = vcombine.low %v289_v33, %v289_v33 }
  0x92   : > { %3244 = vmatprep.subr.bf16.mxu1 %v3560_v38  ;;  %v3619_v38 = vld [vmem:[%s4421_s1 + $0x608] sm:$0xff]  }
  0x93   : > { %3223 = vmatpush3.bf16.msra.mxu0 %v3559_v37  ;;  %v3618_v37 = vld [vmem:[%s4421_s1 + $0x600] sm:$0xff]  }
  0x94   : > { %3224 = vmatprep.subr.bf16.mxu0 %v3562_v40  ;;  %v3621_v40 = vld [vmem:[%s4421_s1 + $0x618] sm:$0xff]  }
  0x95   : > { %3245 = vmatpush3.bf16.msra.mxu1 %v3561_v39  ;;  %v3620_v39 = vld [vmem:[%s4421_s1 + $0x610] sm:$0xff]  }
  0x96   : > { %3246 = vmatprep.subr.bf16.mxu1 %v3564_v42  ;;  %v3623_v42 = vld [vmem:[%s4421_s1 + $0x628] sm:$0xff]  }
  0x97   : > { %3225 = vmatpush3.bf16.msra.mxu0 %v3563_v41  ;;  %v3622_v41 = vld [vmem:[%s4421_s1 + $0x620] sm:$0xff]  }
  0x98   : > { %3226 = vmatprep.subr.bf16.mxu0 %v3566_v44  ;;  %v3625_v44 = vld [vmem:[%s4421_s1 + $0x638] sm:$0xff]  }
  0x99   : > { %3247 = vmatpush3.bf16.msra.mxu1 %v3565_v43  ;;  %v3624_v43 = vld [vmem:[%s4421_s1 + $0x630] sm:$0xff]  }
  0x9a   : > { %3248 = vmatprep.subr.bf16.mxu1 %v3568_v46 }
  0x9b   : > { %3227 = vmatpush3.bf16.msra.mxu0 %v3567_v45  ;;  %v3626_v45 = vld [vmem:[%s3798_s22 + $0x60] ss:$0 sps:$4 sm:$0xff]  }
  0x9c   : > { %3228 = vmatprep.subr.bf16.mxu0 %v3570_v48 }
  0x9d   : > { %3249 = vmatpush3.bf16.msra.mxu1 %v3569_v47  ;;  %v2794_v47 = vld [vmem:[%s4422_s2] ss:$0 sm:$0xff] }
  0x9e   : > { %3250 = vmatprep.subr.bf16.mxu1 %v3572_v50 }
  0x9f   : > { %3229 = vmatpush3.bf16.msra.mxu0 %v3571_v49 }
  0xa0   : > { %3230 = vmatprep.subr.bf16.mxu0 %v3574_v52 }
  0xa1   : > { %3251 = vmatpush3.bf16.msra.mxu1 %v3573_v51 }
  0xa2   : > { %3252 = vmatprep.subr.bf16.mxu1 %v3576_v54 }
  0xa3   : > { %3231 = vmatpush3.bf16.msra.mxu0 %v3575_v53 }
  0xa4   : > { %3260 = vmatprep.subr.bf16.mxu0 %v3580_v59 }
  0xa5   : > { %3253 = vmatpush3.bf16.msra.mxu1 %v3579_v58 }
  0xa6   : > { %2339 = vmatmul.mubr.bf16.vlgmr.msra.gmra.mrb[16].mxu0 %v2811_v56  ;;  %3282 = vmatprep.subr.bf16.mxu1 %v3584_v0 }
  0xa7   : > { %3261 = vmatpush3.bf16.msra.mxu0 %v3583_v63  ;;  %2418 = vmatprep.mubr.bf16.mxu0 %v2816_v31  ;;  %v3639_v31 = vld [vmem:[%s4425_s5 + $0x20] sm:$0xff]  }
  0xa8   : > { %2379 = vmatmul.mubr.bf16.vlgmr.msra.gmra.mrb[16].mxu1 %v2813_v61  ;;  %3262 = vmatprep.subr.bf16.mxu0 %v3586_v2 }
  0xa9   : > { %3283 = vmatpush3.bf16.msra.mxu1 %v3585_v1  ;;  %2458 = vmatprep.mubr.bf16.mxu1 %v2818_v36 }
  0xaa   : > { %3284 = vmatprep.subr.bf16.mxu1 %v3588_v4 }
  0xab   : > { %3263 = vmatpush3.bf16.msra.mxu0 %v3587_v3 }
  0xac   : > { %3264 = vmatprep.subr.bf16.mxu0 %v3590_v6 }
  0xad   : > { %3285 = vmatpush3.bf16.msra.mxu1 %v3589_v5 }
  0xae   : > { %3286 = vmatprep.subr.bf16.mxu1 %v3592_v8  ;;  %v3628_v8 = vld [vmem:[%s4423_s3 + $0x8] sm:$0xff]  }
  0xaf   : > { %3265 = vmatpush3.bf16.msra.mxu0 %v3591_v7  ;;  %v3627_v7 = vld [vmem:[%s4423_s3] sm:$0xff]  }
  0xb0   : > { %3266 = vmatprep.subr.bf16.mxu0 %v3594_v10  ;;  %v3630_v10 = vld [vmem:[%s4423_s3 + $0x18] sm:$0xff]  }
  0xb1   : > { %3287 = vmatpush3.bf16.msra.mxu1 %v3593_v9  ;;  %v3629_v9 = vld [vmem:[%s4423_s3 + $0x10] sm:$0xff]  }
  0xb2   : > { %3288 = vmatprep.subr.bf16.mxu1 %v3596_v12  ;;  %v3632_v12 = vld [vmem:[%s4423_s3 + $0x28] sm:$0xff]  }
  0xb3   : > { %3267 = vmatpush3.bf16.msra.mxu0 %v3595_v11  ;;  %v3631_v11 = vld [vmem:[%s4423_s3 + $0x20] sm:$0xff]  }
  0xb4   : > { %3268 = vmatprep.subr.bf16.mxu0 %v3598_v14  ;;  %v3633_v14 = vld [vmem:[%s4423_s3 + $0x30] sm:$0xff]  }
  0xb5   : > { %3289 = vmatpush3.bf16.msra.mxu1 %v3597_v13 }
  0xb6   : > { %3290 = vmatprep.subr.bf16.mxu1 %v3600_v16 }
  0xb7   : > { %3269 = vmatpush3.bf16.msra.mxu0 %v3599_v15 }
  0xb8   : > { %3270 = vmatprep.subr.bf16.mxu0 %v3602_v18 }
  0xb9   : > { %3291 = vmatpush3.bf16.msra.mxu1 %v3601_v17 }
  0xba   : > { %3292 = vmatprep.subr.bf16.mxu1 %v3604_v20 }
  0xbb   : > { %3271 = vmatpush3.bf16.msra.mxu0 %v3603_v19 }
  0xbc   : > { %3272 = vmatprep.subr.bf16.mxu0 %v3606_v22 }
  0xbd   : > { %3293 = vmatpush3.bf16.msra.mxu1 %v3605_v21 }
  0xbe   : > { %3294 = vmatprep.subr.bf16.mxu1 %v3608_v24  ;;  %v3634_v24 = vld [vmem:[%s4423_s3 + $0x38] sm:$0xff]  }
  0xbf   : > { %3273 = vmatpush3.bf16.msra.mxu0 %v3607_v23 }
  0xc0   : > { %3274 = vmatprep.subr.bf16.mxu0 %v3610_v26 }
  0xc1   : > { %3295 = vmatpush3.bf16.msra.mxu1 %v3609_v25 }
  0xc2   : > { %3296 = vmatprep.subr.bf16.mxu1 %v3612_v28  ;;  %v3636_v28 = vld [vmem:[%s4425_s5 + $0x8] sm:$0xff]  }
  0xc3   : > { %3275 = vmatpush3.bf16.msra.mxu0 %v3611_v27  ;;  %v3635_v27 = vld [vmem:[%s4425_s5] sm:$0xff]  }
  0xc4   : > { %3331 = vmatprep.subr.bf16.mxu0 %v3651_v34 }
  0xc5   : > { %3297 = vmatpush3.bf16.msra.mxu1 %v3615_v32  ;;  %v3640_v32 = vld [vmem:[%s4425_s5 + $0x28] sm:$0xff]  }
  0xc6   : > { %2419 = vmatmul.mubr.bf16.vlgmr.msra.gmra.mrb[20].mxu0 %v2815_v30  ;;  %3351 = vmatprep.subr.bf16.mxu1 %v3651_v34  ;;  %v3638_v30 = vld [vmem:[%s4425_s5 + $0x18] sm:$0xff]  }
  0xc7   : > { %3332 = vmatpush3.bf16.msra.mxu0 %v3618_v37  ;;  %3347 = vmatprep.mubr.msk.bf16.mxu0 %vm3652_vm0, %v3651_v34 }
  0xc8   : > { %2459 = vmatmul.mubr.bf16.vlgmr.msra.gmra.mrb[20].mxu1 %v2817_v35  ;;  %3333 = vmatprep.subr.bf16.mxu0 %v3651_v34 }
  0xc9   : > { %3367 = vmatprep.mubr.msk.bf16.mxu1 %vm3652_vm0, %v3651_v34  ;;  %3352 = vmatpush3.bf16.msra.mxu1 %v3627_v7 }
  0xca   : > { %3353 = vmatprep.subr.bf16.mxu1 %v3651_v34 }
  0xcb   : > { %3334 = vmatpush3.bf16.msra.mxu0 %v3619_v38 }
  0xcc   : > { %3335 = vmatprep.subr.bf16.mxu0 %v3651_v34 }
  0xcd   : > { %3354 = vmatpush3.bf16.msra.mxu1 %v3628_v8 }
  0xce   : > { %3355 = vmatprep.subr.bf16.mxu1 %v3651_v34 }
  0xcf   : > { %3336 = vmatpush3.bf16.msra.mxu0 %v3620_v39 }
  0xd0   : > { %3337 = vmatprep.subr.bf16.mxu0 %v3651_v34 }
  0xd1   : > { %3356 = vmatpush3.bf16.msra.mxu1 %v3629_v9 }
  0xd2   : > { %3357 = vmatprep.subr.bf16.mxu1 %v3651_v34 }
  0xd3   : > { %3338 = vmatpush3.bf16.msra.mxu0 %v3621_v40 }
  0xd4   : > { %3339 = vmatprep.subr.bf16.mxu0 %v3651_v34 }
  0xd5   : > { %3358 = vmatpush3.bf16.msra.mxu1 %v3630_v10 }
  0xd6   : > { %3359 = vmatprep.subr.bf16.mxu1 %v3651_v34 }
  0xd7   : > { %3340 = vmatpush3.bf16.msra.mxu0 %v3622_v41 }
  0xd8   : > { %3341 = vmatprep.subr.bf16.mxu0 %v3651_v34 }
  0xd9   : > { %3360 = vmatpush3.bf16.msra.mxu1 %v3631_v11 }
  0xda   : > { %3361 = vmatprep.subr.bf16.mxu1 %v3651_v34 }
  0xdb   : > { %3342 = vmatpush3.bf16.msra.mxu0 %v3623_v42 }
  0xdc   : > { %3343 = vmatprep.subr.bf16.mxu0 %v3651_v34 }
  0xdd   : > { %3362 = vmatpush3.bf16.msra.mxu1 %v3632_v12 }
  0xde   : > { %3363 = vmatprep.subr.bf16.mxu1 %v3651_v34 }
  0xdf   : > { %3344 = vmatpush3.bf16.msra.mxu0 %v3624_v43 }
  0xe0   : > { %3345 = vmatprep.subr.bf16.mxu0 %v3651_v34 }
  0xe1   : > { %3364 = vmatpush3.bf16.msra.mxu1 %v3633_v14  ;;  %v3642_v14 = vld [vmem:[%s4425_s5 + $0x38] sm:$0xff]  }
  0xe2   : > { %3365 = vmatprep.subr.bf16.mxu1 %v3651_v34 }
  0xe3   : > { %3346 = vmatpush3.bf16.msra.mxu0 %v3625_v44 }
  0xe4   : > { %3371 = vmatprep.subr.bf16.mxu0 %v3651_v34 }
  0xe5   : > { %3366 = vmatpush3.bf16.msra.mxu1 %v3634_v24 }
  0xe6   : > { %3348 = vmatmul.mubr.bf16.vlgmr.msra.gmra.mrb[24].mxu0 %v3626_v45 }
  0xe7   : > { %3387 = vmatprep.mubr.msk.bf16.mxu0 %vm3652_vm0, %v3651_v34  ;;  %3372 = vmatpush3.bf16.msra.mxu0 %v3635_v27 }
  0xe8   : > { %3373 = vmatprep.subr.bf16.mxu0 %v3651_v34 }
  0xeb   : > { %3374 = vmatpush3.bf16.msra.mxu0 %v3636_v28 }
  0xec   : > { %3375 = vmatprep.subr.bf16.mxu0 %v3651_v34 }
  0xef   : > { %3376 = vmatpush3.bf16.msra.mxu0 %v3637_v29 }
  0xf0   : > { %3377 = vmatprep.subr.bf16.mxu0 %v3651_v34 }
  0xf3   : > { %3378 = vmatpush3.bf16.msra.mxu0 %v3638_v30 }
  0xf4   : > { %3379 = vmatprep.subr.bf16.mxu0 %v3651_v34 }
  0xf7   : > { %3380 = vmatpush3.bf16.msra.mxu0 %v3639_v31 }
  0xf8   : > { %3381 = vmatprep.subr.bf16.mxu0 %v3651_v34 }
  0xf9   : > { %v3056_v46 = vpop.f32.mrb[0].mxu0 }
  0xfa   : > { %v3057_v48 = vpop.f32.mrb[1].mxu0 }
  0xfb   : > { %v3058_v49 = vadd.f32 %v3057_v48, %v3056_v46  ;;  %v3059_v50 = vpop.f32.mrb[2].mxu0  ;;  %v3078_v51 = vpop.f32.mrb[0].mxu1  ;;  %3382 = vmatpush3.bf16.msra.mxu0 %v3640_v32 }
  0xfc   : > { %v3060_v52 = vpop.f32.mrb[3].mxu0  ;;  %v3079_v53 = vpop.f32.mrb[1].mxu1  ;;  %3383 = vmatprep.subr.bf16.mxu0 %v3651_v34 }
  0xfd   : > { %v2021_v54 = vadd.f32 %v3058_v49, %v2794_v47  ;;  %v3080_v55 = vadd.f32 %v3079_v53, %v3078_v51  ;;  %v3081_v56 = vpop.f32.mrb[2].mxu1 }
  0xfe   : > { %v3082_v57 = vpop.f32.mrb[3].mxu1 }
  0xff   : > { %v2061_v58 = vadd.f32 %v3080_v55, %v2021_v54 }
 0x119   : > { %v3100_v59 = vpop.f32.mrb[4].mxu0 }
 0x11a   : > { %v3101_v60 = vpop.f32.mrb[5].mxu0 }
 0x11b   : > { %v3102_v61 = vadd.f32 %v3101_v60, %v3100_v59  ;;  %v3103_v62 = vpop.f32.mrb[6].mxu0  ;;  %v3122_v63 = vpop.f32.mrb[4].mxu1 }
 0x11c   : > { %v3104_v0 = vpop.f32.mrb[7].mxu0  ;;  %v3123_v2 = vpop.f32.mrb[5].mxu1 }
 0x11d   : > { %v2101_v1 = vadd.f32 %v3102_v61, %v2061_v58  ;;  %v3124_v3 = vadd.f32 %v3123_v2, %v3122_v63  ;;  %v3125_v4 = vpop.f32.mrb[6].mxu1 }
 0x11e   : > { %v3126_v5 = vpop.f32.mrb[7].mxu1 }
 0x11f   : > { %v2141_v6 = vadd.f32 %v3124_v3, %v2101_v1 }
 0x139   : > { %v3144_v13 = vpop.f32.mrb[8].mxu0 }
 0x13a   : > { %v3145_v15 = vpop.f32.mrb[9].mxu0 }
 0x13b   : > { %v3146_v16 = vadd.f32 %v3145_v15, %v3144_v13  ;;  %v3147_v17 = vpop.f32.mrb[10].mxu0  ;;  %v3166_v18 = vpop.f32.mrb[8].mxu1  ;;  %v3641_v13 = vld [vmem:[%s4425_s5 + $0x30] sm:$0xff]   ;;  %v3020_v15 = vld [vmem:[%s4424_s4] ss:$0 sm:$0xff] }
 0x13c   : > { %v3148_v19 = vpop.f32.mrb[11].mxu0  ;;  %v3167_v20 = vpop.f32.mrb[9].mxu1  ;;  %3384 = vmatpush3.bf16.msra.mxu0 %v3641_v13 }
 0x13d   : > { %v2181_v21 = vadd.f32 %v3146_v16, %v2141_v6  ;;  %v3168_v22 = vadd.f32 %v3167_v20, %v3166_v18  ;;  %v3169_v23 = vpop.f32.mrb[10].mxu1  ;;  %3385 = vmatprep.subr.bf16.mxu0 %v3651_v34  ;;  %v3029_v34 = vld [vmem:[%s4426_s6] ss:$0 sm:$0xff] }
 0x13e   : > { %v3170_v25 = vpop.f32.mrb[11].mxu1 }
 0x13f   : > { %v2221_v26 = vadd.f32 %v3168_v22, %v2181_v21 }
 0x140   : > { %3386 = vmatpush3.bf16.msra.mxu0 %v3642_v14 }
 0x159   : > { %v3188_v33 = vpop.f32.mrb[12].mxu0 }
 0x15a   : > { %v3189_v35 = vpop.f32.mrb[13].mxu0 }
 0x15b   : > { %v3190_v36 = vadd.f32 %v3189_v35, %v3188_v33  ;;  %v3191_v37 = vpop.f32.mrb[14].mxu0  ;;  %v3210_v38 = vpop.f32.mrb[12].mxu1 }
 0x15c   : > { %v3192_v39 = vpop.f32.mrb[15].mxu0  ;;  %v3211_v40 = vpop.f32.mrb[13].mxu1 }
 0x15d   : > { %v2261_v41 = vadd.f32 %v3190_v36, %v2221_v26  ;;  %v3212_v42 = vadd.f32 %v3211_v40, %v3210_v38  ;;  %v3213_v43 = vpop.f32.mrb[14].mxu1 }
 0x15e   : > { %v3214_v44 = vpop.f32.mrb[15].mxu1 }
 0x15f   : > { %v2301_v45 = vadd.f32 %v3212_v42, %v2261_v41 }
 0x179   : > { %v3232_v46 = vpop.f32.mrb[16].mxu0 }
 0x17a   : > { %v3233_v47 = vpop.f32.mrb[17].mxu0 }
 0x17b   : > { %v3234_v48 = vadd.f32 %v3233_v47, %v3232_v46  ;;  %v3235_v49 = vpop.f32.mrb[18].mxu0  ;;  %v3254_v50 = vpop.f32.mrb[16].mxu1 }
 0x17c   : > { %v3236_v51 = vpop.f32.mrb[19].mxu0  ;;  %v3255_v53 = vpop.f32.mrb[17].mxu1 }
 0x17d   : > { %v2341_v52 = vadd.f32 %v3234_v48, %v2301_v45  ;;  %v3256_v54 = vadd.f32 %v3255_v53, %v3254_v50  ;;  %v3257_v55 = vpop.f32.mrb[18].mxu1 }
 0x17e   : > { %v3258_v56 = vpop.f32.mrb[19].mxu1 }
 0x17f   : > { %v2381_v57 = vadd.f32 %v3256_v54, %v2341_v52 }
 0x199   : > { %v3276_v58 = vpop.f32.mrb[20].mxu0 }
 0x19a   : > { %v3277_v59 = vpop.f32.mrb[21].mxu0 }
 0x19b   : > { %v3278_v60 = vadd.f32 %v3277_v59, %v3276_v58  ;;  %v3279_v61 = vpop.f32.mrb[22].mxu0  ;;  %v3298_v62 = vpop.f32.mrb[20].mxu1 }
 0x19c   : > { %v3280_v63 = vpop.f32.mrb[23].mxu0  ;;  %v3299_v0 = vpop.f32.mrb[21].mxu1 }
 0x19d   : > { %v2421_v1 = vadd.f32 %v3278_v60, %v2381_v57  ;;  %v3300_v2 = vadd.f32 %v3299_v0, %v3298_v62  ;;  %v3301_v3 = vpop.f32.mrb[22].mxu1 }
 0x19e   : > { %v3302_v4 = vpop.f32.mrb[23].mxu1 }
 0x19f   : > { %v2461_v5 = vadd.f32 %v3300_v2, %v2421_v1 }
 0x1b9   : > { %v2500_v6 = vpop.f32.mrb[24].mxu0 }
 0x1ba   : > { %v2501_v7 = vadd.f32 %v2500_v6, %v2461_v5  ;;  %v3349_v8 = vpop.f32.mrb[25].mxu0 }
 0x1bb   : > { %v2503_v9 = vpop.f32.mrb[26].mxu0 }
 0x1bc   : > { %v2506_v10 = vmax.f32 %v2501_v7, 0.0  ;;  %v3350_v11 = vpop.f32.mrb[27].mxu0 }
 0x1be   : > { %v2507_v12 = vpack.c.bf16 %v2506_v10, %v2506_v10 }
 0x1c0   : > { %3368 = vmatmul.mubr.bf16.vlgmr.msra.gmra.mrb[24].mxu1 %v2507_v12 }
 0x293   : > { %v2613_v16 = vpop.f32.mrb[24].mxu1 }
 0x294   : > { %v2614_v17 = vadd.f32 %v3020_v15, %v2613_v16  ;;  %v3369_v18 = vpop.f32.mrb[25].mxu1 }
 0x295   : > { %v2616_v19 = vpop.f32.mrb[26].mxu1 }
 0x296   : > { %v2619_v20 = vmax.f32 %v2614_v17, 0.0  ;;  %v3370_v21 = vpop.f32.mrb[27].mxu1 }
 0x298   : > { %v2620_v22 = vpack.c.bf16 %v2619_v20, %v2619_v20 }
 0x29a   : > { %3388 = vmatmul.mubr.bf16.vlgmr.msra.gmra.mrb[28].mxu0 %v2620_v22 }
 0x36d   : > { %v2726_v23 = vpop.f32.mrb[28].mxu0 }
 0x36e   : > { %v2727_v24 = vadd.f32 %v3029_v34, %v2726_v23  ;;  %v3389_v25 = vpop.f32.mrb[29].mxu0 }
 0x36f   : > { %v2729_v26 = vpop.f32.mrb[30].mxu0 }
 0x370   : > { %v2732_v27 = vmax.f32 %v2727_v24, 0.0  ;;  %v3390_v28 = vpop.f32.mrb[31].mxu0 }
 0x372   : > { %2733 = vst [vmem:[%s276_s26] sm:$0xff] %v2732_v27 }
 0x373 PF: > { %s17_s24 = sadd.s32 1, %s3649_s24  }
 0x374   : > { %p14_p4 = scmp.ge.s32.totalorder %s17_s24, 4  }
 0x376   :  { %16 = sbr.rel (!%p14_p4) target bundleno = 1 (0x1), region = 78 }

// kernel: image_model_forward.2
= control target key start
LH: loop header
LB: loop body
LE: loop exit
PB: predicated region body
PF: predicated region fallthrough
CT: control target
= control target key end

     0   :  { %s9867_s18 = smov 0   ;;  %s12058_s0 = inlined_call_operand.vmem [shape: bf16[2,928,128], index: 0, kind: input, shape index: {}]   ;;  %s12059_s1 = inlined_call_operand.vmem [shape: bf16[128,128], index: 1, kind: input, shape index: {}]   ;;  %s12060_s2 = inlined_call_operand.vmem [shape: f32[1,128], index: 2, kind: input, shape index: {}]   ;;  %s12061_s3 = inlined_call_operand.vmem [shape: bf16[5,640,128], index: 3, kind: input, shape index: {}]   ;;  %s12062_s4 = inlined_call_operand.vmem [shape: f32[1,128], index: 4, kind: input, shape index: {}]   ;;  %s12063_s5 = inlined_call_operand.vmem [shape: bf16[2,80,128], index: 5, kind: output, shape index: {}]  }
   0x1 LB: > { %s6859_s19 = sadd.s32 4294967295, %s9832_s18   ;;  %p6863_p0 = scmp.ge.s32.totalorder %s9832_s18, 1  ;;  %s9832_s18 = sphi %s9867_s18, %s15_s18  }
   0x2   : > { %p187_p1 = scmp.lt.s32.totalorder %s9832_s18, 3 }
   0x4   : > { %p188_p2 = pnand %p6863_p0, %p187_p1 }
   0x6   : > { %191 = sbr.rel (%p188_p2) target bundleno = 1416 (0x588), region = 40 }
   0xd   : > { %v9469_v0 = vld [vmem:[%s12059_s1] sm:$0xff]   ;;  %p215_p3 = scmp.lt.s32.totalorder %s6859_s19, 1  ;;  %v9470_v1 = vld [vmem:[%s12059_s1 + $0x8] sm:$0xff]   ;;  %v9471_v2 = vld [vmem:[%s12059_s1 + $0x10] sm:$0xff]   ;;  %vm2124_vm0 = vsmask.f32 7424 }
   0xe   : > { %8704 = vmatprep.subr.bf16.mxu0 %v9469_v0  ;;  %v9472_v3 = vld [vmem:[%s12059_s1 + $0x18] sm:$0xff]   ;;  %v9473_v5 = vld [vmem:[%s12059_s1 + $0x20] sm:$0xff]   ;;  %v9474_v6 = vld [vmem:[%s12059_s1 + $0x28] sm:$0xff]   ;;  %vm2559_vm1 = vsmask.f32 6400  ;;  %vm2388_vm2 = vcmask 1046528  }
   0xf   : > { %s12397_s19 = smov (!%p215_p3, %s6859_s19), 1  ;;  %8705 = vmatpush3.bf16.msra.mxu0 %v9469_v0  ;;  %v9475_v7 = vld [vmem:[%s12059_s1 + $0x30] sm:$0xff]   ;;  %v9476_v8 = vld [vmem:[%s12059_s1 + $0x38] sm:$0xff]   ;;  %v9533_v39 = vld [vmem:[%s12061_s3 + $0x40] sm:$0xff]   ;;  %vm9836_vm3 = vmmov 0   ;;  %vm2842_vm4 = vcmask 1045504  }
  0x10   : > { %8706 = vmatprep.subr.bf16.mxu0 %v9470_v1  ;;  %s9456_s26 = smul.u32 464, %s12397_s19  ;;  %v9534_v40 = vld [vmem:[%s12061_s3] sm:$0xff]   ;;  %v9535_v42 = vld [vmem:[%s12061_s3 + $0x48] sm:$0xff]   ;;  %v9537_v45 = vld [vmem:[%s12061_s3 + $0x50] sm:$0xff]  }
  0x11   : > { %v9536_v44 = vld [vmem:[%s12061_s3 + $0x8] sm:$0xff]   ;;  %v9538_v46 = vld [vmem:[%s12061_s3 + $0x10] sm:$0xff]   ;;  %v9539_v48 = vld [vmem:[%s12061_s3 + $0x58] sm:$0xff]   ;;  %s9457_s10 = smul.u32 40, %s12397_s19 }
  0x12   : > { %s9890_s29 = scalar_lea.vmem %s12058_s0, %s9456_s26  ;;  %v9540_v50 = vld [vmem:[%s12061_s3 + $0x18] sm:$0xff]   ;;  %v9541_v51 = vld [vmem:[%s12061_s3 + $0x180] sm:$0xff]   ;;  %v9545_v56 = vld [vmem:[%s12061_s3 + $0x188] sm:$0xff]  }
  0x13   : > { %8707 = vmatpush3.bf16.msra.mxu0 %v9470_v1  ;;  %v9477_v4 = vld [vmem:[%s9890_s29] sm:$0xff]   ;;  %v9478_v9 = vld [vmem:[%s9890_s29 + $0x8] sm:$0xff]   ;;  %v9479_v10 = vld [vmem:[%s9890_s29 + $0x10] sm:$0xff]   ;;  %7789 = vmatprep.subr.bf16.mxu1 %v9541_v51 }
  0x14   : > { %8708 = vmatprep.subr.bf16.mxu0 %v9471_v2  ;;  %8720 = vmatprep.mubr.bf16.mxu0 %v9477_v4  ;;  %v9480_v11 = vld [vmem:[%s9890_s29 + $0x18] sm:$0xff]   ;;  %v9481_v12 = vld [vmem:[%s9890_s29 + $0x20] sm:$0xff]   ;;  %v9482_v13 = vld [vmem:[%s9890_s29 + $0x28] sm:$0xff]  }
  0x15   : > { %v9483_v14 = vld [vmem:[%s9890_s29 + $0x30] sm:$0xff]   ;;  %v9484_v15 = vld [vmem:[%s9890_s29 + $0x38] sm:$0xff]   ;;  %v9485_v16 = vld [vmem:[%s9890_s29 + $0x40] sm:$0xff]  }
  0x16   : > { %v9486_v17 = vld [vmem:[%s9890_s29 + $0x48] sm:$0xff]   ;;  %v9487_v18 = vld [vmem:[%s9890_s29 + $0x50] sm:$0xff]   ;;  %v9488_v19 = vld [vmem:[%s9890_s29 + $0x58] sm:$0xff]  }
  0x17   : > { %8709 = vmatpush3.bf16.msra.mxu0 %v9471_v2  ;;  %v9489_v20 = vld [vmem:[%s9890_s29 + $0x60] sm:$0xff]   ;;  %v9490_v21 = vld [vmem:[%s9890_s29 + $0x68] sm:$0xff]   ;;  %v9491_v22 = vld [vmem:[%s9890_s29 + $0x70] sm:$0xff]  }
  0x18   : > { %8710 = vmatprep.subr.bf16.mxu0 %v9472_v3  ;;  %v9492_v23 = vld [vmem:[%s9890_s29 + $0x78] sm:$0xff]   ;;  %v9493_v24 = vld [vmem:[%s9890_s29 + $0x80] sm:$0xff]   ;;  %v9494_v25 = vld [vmem:[%s9890_s29 + $0x88] sm:$0xff]  }
  0x19   : > { %v9495_v26 = vld [vmem:[%s9890_s29 + $0x90] sm:$0xff]   ;;  %v9496_v27 = vld [vmem:[%s9890_s29 + $0x98] sm:$0xff]   ;;  %v9497_v28 = vld [vmem:[%s9890_s29 + $0xa0] sm:$0xff]  }
  0x1a   : > { %v9498_v29 = vld [vmem:[%s9890_s29 + $0xa8] sm:$0xff]   ;;  %v9499_v30 = vld [vmem:[%s9890_s29 + $0xb0] sm:$0xff]   ;;  %v9500_v31 = vld [vmem:[%s9890_s29 + $0xb8] sm:$0xff]  }
  0x1b   : > { %8711 = vmatpush3.bf16.msra.mxu0 %v9472_v3  ;;  %v9501_v32 = vld [vmem:[%s9890_s29 + $0xc0] sm:$0xff]   ;;  %v9502_v33 = vld [vmem:[%s9890_s29 + $0xc8] sm:$0xff]   ;;  %v9503_v34 = vld [vmem:[%s9890_s29 + $0xd0] sm:$0xff]  }
  0x1c   : > { %8712 = vmatprep.subr.bf16.mxu0 %v9473_v5  ;;  %v9504_v35 = vld [vmem:[%s9890_s29 + $0xd8] sm:$0xff]   ;;  %v9505_v36 = vld [vmem:[%s9890_s29 + $0xe0] sm:$0xff]   ;;  %v9506_v37 = vld [vmem:[%s9890_s29 + $0xe8] sm:$0xff]  }
  0x1d   : > { %v9507_v38 = vld [vmem:[%s9890_s29 + $0xf0] sm:$0xff]   ;;  %v9508_v41 = vld [vmem:[%s9890_s29 + $0xf8] sm:$0xff]   ;;  %v9509_v43 = vld [vmem:[%s9890_s29 + $0x100] sm:$0xff]  }
  0x1e   : > { %v9510_v47 = vld [vmem:[%s9890_s29 + $0x108] sm:$0xff]   ;;  %v9511_v49 = vld [vmem:[%s9890_s29 + $0x110] sm:$0xff]   ;;  %v9542_v52 = vld [vmem:[%s12061_s3 + $0x60] sm:$0xff]  }
  0x1f   : > { %8713 = vmatpush3.bf16.msra.mxu0 %v9473_v5  ;;  %v9543_v53 = vld [vmem:[%s12061_s3 + $0x140] sm:$0xff]   ;;  %v9512_v55 = vld [vmem:[%s9890_s29 + $0x118] sm:$0xff]   ;;  %v9546_v57 = vld [vmem:[%s12061_s3 + $0x68] sm:$0xff]  }
  0x20   : > { %8714 = vmatprep.subr.bf16.mxu0 %v9474_v6  ;;  %v9544_v54 = vld [vmem:[%s12061_s3 + $0x20] sm:$0xff]   ;;  %7790 = vmatpush3.bf16.msra.mxu1 %v9543_v53  ;;  %v9547_v58 = vld [vmem:[%s12061_s3 + $0x148] sm:$0xff]   ;;  %v9551_v61 = vld [vmem:[%s12061_s3 + $0x190] sm:$0xff]  }
  0x21   : > { %v9548_v59 = vld [vmem:[%s12061_s3 + $0x28] sm:$0xff]   ;;  %7791 = vmatprep.subr.bf16.mxu1 %v9545_v56  ;;  %v9513_v60 = vld [vmem:[%s9890_s29 + $0x120] sm:$0xff]   ;;  %v9552_v62 = vld [vmem:[%s12061_s3 + $0x70] sm:$0xff]  }
  0x22   : > { %v9553_v63 = vld [vmem:[%s12061_s3 + $0x150] sm:$0xff]   ;;  %v9514_v1 = vld [vmem:[%s9890_s29 + $0x128] sm:$0xff]   ;;  %v9555_v2 = vld [vmem:[%s12061_s3 + $0x198] sm:$0xff]  }
  0x23   : > { %8715 = vmatpush3.bf16.msra.mxu0 %v9474_v6  ;;  %v9554_v0 = vld [vmem:[%s12061_s3 + $0x30] sm:$0xff]   ;;  %v9556_v3 = vld [vmem:[%s12061_s3 + $0x78] sm:$0xff]  }
  0x24   : > { %8716 = vmatprep.subr.bf16.mxu0 %v9475_v7  ;;  %7792 = vmatpush3.bf16.msra.mxu1 %v9547_v58  ;;  %v9557_v4 = vld [vmem:[%s12061_s3 + $0x158] sm:$0xff]   ;;  %v9515_v6 = vld [vmem:[%s9890_s29 + $0x130] sm:$0xff]  }
  0x25   : > { %7793 = vmatprep.subr.bf16.mxu1 %v9551_v61  ;;  %v9558_v5 = vld [vmem:[%s12061_s3 + $0x38] sm:$0xff]  }
  0x27   : > { %8717 = vmatpush3.bf16.msra.mxu0 %v9475_v7  ;;  %v9561_v7 = vld [vmem:[%s12061_s3 + $0x1a0] sm:$0xff]  }
  0x28   : > { %8718 = vmatprep.subr.bf16.mxu0 %v9476_v8  ;;  %7794 = vmatpush3.bf16.msra.mxu1 %v9553_v63 }
  0x29   : > { %7795 = vmatprep.subr.bf16.mxu1 %v9555_v2 }
  0x2b   : > { %8719 = vmatpush3.bf16.msra.mxu0 %v9476_v8  ;;  %v9563_v8 = vld [vmem:[%s12061_s3 + $0x160] sm:$0xff]  }
  0x2c   : > { %7972 = vmatprep.subr.bf16.mxu0 %v9533_v39  ;;  %7796 = vmatpush3.bf16.msra.mxu1 %v9557_v4  ;;  %v9550_v39 = vld [vmem:[%s9890_s29 + $0x1c8] sm:$0xff]  }
  0x2d   : > { %7797 = vmatprep.subr.bf16.mxu1 %v9561_v7 }
  0x2e   : > { %8721 = vmatmul.mubr.bf16.vlgmr.msra.gmra.mrb[0].mxu0 %v9478_v9  ;;  %v9516_v9 = vld [vmem:[%s9890_s29 + $0x138] sm:$0xff]  }
  0x2f   : > { %8724 = vmatprep.mubr.bf16.mxu0 %v9479_v10  ;;  %7973 = vmatpush3.bf16.msra.mxu0 %v9534_v40  ;;  %v9564_v10 = vld [vmem:[%s12061_s3 + $0x1a8] sm:$0xff]  }
  0x30   : > { %7974 = vmatprep.subr.bf16.mxu0 %v9535_v42  ;;  %7798 = vmatpush3.bf16.msra.mxu1 %v9563_v8 }
  0x31   : > { %7799 = vmatprep.subr.bf16.mxu1 %v9564_v10 }
  0x33   : > { %7975 = vmatpush3.bf16.msra.mxu0 %v9536_v44 }
  0x34   : > { %7976 = vmatprep.subr.bf16.mxu0 %v9537_v45 }
  0x36   : > { %8725 = vmatmul.mubr.bf16.gmra.mrb[4].mxu0 %v9480_v11  ;;  %v9565_v11 = vld [vmem:[%s12061_s3 + $0x168] sm:$0xff]  }
  0x37   : > { %8728 = vmatprep.mubr.bf16.mxu0 %v9481_v12  ;;  %7977 = vmatpush3.bf16.msra.mxu0 %v9538_v46  ;;  %v9517_v12 = vld [vmem:[%s9890_s29 + $0x140] sm:$0xff]  }
  0x38   : > { %7978 = vmatprep.subr.bf16.mxu0 %v9539_v48  ;;  %7800 = vmatpush3.bf16.msra.mxu1 %v9565_v11 }
  0x3b   : > { %7979 = vmatpush3.bf16.msra.mxu0 %v9540_v50 }
  0x3c   : > { %7980 = vmatprep.subr.bf16.mxu0 %v9542_v52 }
  0x3e   : > { %8729 = vmatmul.mubr.bf16.gmra.mrb[8].mxu0 %v9482_v13  ;;  %v9566_v13 = vld [vmem:[%s12061_s3 + $0x1b0] sm:$0xff]  }
  0x3f   : > { %8732 = vmatprep.mubr.bf16.mxu0 %v9483_v14  ;;  %7981 = vmatpush3.bf16.msra.mxu0 %v9544_v54  ;;  %v9567_v14 = vld [vmem:[%s12061_s3 + $0x170] sm:$0xff]  }
  0x40   : > { %7982 = vmatprep.subr.bf16.mxu0 %v9546_v57  ;;  %7801 = vmatprep.subr.bf16.mxu1 %v9566_v13  ;;  %v10064_v57 = vld [vmem:[%s12060_s2] ss:$0 sm:$0xff] }
  0x41   : > { %7802 = vmatpush3.bf16.msra.mxu1 %v9567_v14 }
  0x43   : > { %7983 = vmatpush3.bf16.msra.mxu0 %v9548_v59 }
  0x44   : > { %7984 = vmatprep.subr.bf16.mxu0 %v9552_v62 }
  0x46   : > { %8733 = vmatmul.mubr.bf16.gmra.mrb[12].mxu0 %v9484_v15  ;;  %v9518_v15 = vld [vmem:[%s9890_s29 + $0x148] sm:$0xff]  }
  0x47   : > { %8736 = vmatprep.mubr.bf16.mxu0 %v9485_v16  ;;  %7985 = vmatpush3.bf16.msra.mxu0 %v9554_v0  ;;  %v9519_v16 = vld [vmem:[%s9890_s29 + $0x150] sm:$0xff]  }
  0x48   : > { %7986 = vmatprep.subr.bf16.mxu0 %v9556_v3 }
  0x4b   : > { %7987 = vmatpush3.bf16.msra.mxu0 %v9558_v5 }
  0x4e   : > { %8737 = vmatmul.mubr.bf16.gmra.mrb[16].mxu0 %v9486_v17  ;;  %v9568_v17 = vld [vmem:[%s12061_s3 + $0x1b8] sm:$0xff]  }
  0x4f   : > { %8740 = vmatprep.mubr.bf16.mxu0 %v9487_v18  ;;  %v9569_v18 = vld [vmem:[%s12061_s3 + $0x178] sm:$0xff]   ;;  %7803 = vmatprep.subr.bf16.mxu1 %v9568_v17 }
  0x50   : > { %7804 = vmatpush3.bf16.msra.mxu1 %v9569_v18 }
  0x56   : > { %8741 = vmatmul.mubr.bf16.gmra.mrb[20].mxu0 %v9488_v19  ;;  %v9520_v19 = vld [vmem:[%s9890_s29 + $0x158] sm:$0xff]  }
  0x57   : > { %8744 = vmatprep.mubr.bf16.mxu0 %v9489_v20  ;;  %v9521_v20 = vld [vmem:[%s9890_s29 + $0x160] sm:$0xff]  }
  0x5e   : > { %8745 = vmatmul.mubr.bf16.gmra.mrb[24].mxu0 %v9490_v21  ;;  %v9522_v21 = vld [vmem:[%s9890_s29 + $0x168] sm:$0xff]  }
  0x5f   : > { %8748 = vmatprep.mubr.bf16.mxu0 %v9491_v22  ;;  %v9523_v22 = vld [vmem:[%s9890_s29 + $0x170] sm:$0xff]  }
  0x66   : > { %8749 = vmatmul.mubr.bf16.gmra.mrb[28].mxu0 %v9492_v23  ;;  %v9524_v23 = vld [vmem:[%s9890_s29 + $0x178] sm:$0xff]  }
  0x67   : > { %8752 = vmatprep.mubr.bf16.mxu0 %v9493_v24  ;;  %v9525_v24 = vld [vmem:[%s9890_s29 + $0x180] sm:$0xff]  }
  0x6e   : > { %8753 = vmatmul.mubr.bf16.gmra.mrb[32].mxu0 %v9494_v25  ;;  %v9526_v25 = vld [vmem:[%s9890_s29 + $0x188] sm:$0xff]  }
  0x6f   : > { %8756 = vmatprep.mubr.bf16.mxu0 %v9495_v26  ;;  %v9527_v26 = vld [vmem:[%s9890_s29 + $0x190] sm:$0xff]  }
  0x76   : > { %8757 = vmatmul.mubr.bf16.gmra.mrb[36].mxu0 %v9496_v27  ;;  %v9528_v27 = vld [vmem:[%s9890_s29 + $0x198] sm:$0xff]  }
  0x77   : > { %8760 = vmatprep.mubr.bf16.mxu0 %v9497_v28  ;;  %v9529_v28 = vld [vmem:[%s9890_s29 + $0x1a0] sm:$0xff]  }
  0x7e   : > { %8761 = vmatmul.mubr.bf16.gmra.mrb[40].mxu0 %v9498_v29  ;;  %v9530_v29 = vld [vmem:[%s9890_s29 + $0x1a8] sm:$0xff]  }
  0x7f   : > { %8764 = vmatprep.mubr.bf16.mxu0 %v9499_v30  ;;  %v9531_v30 = vld [vmem:[%s9890_s29 + $0x1b0] sm:$0xff]  }
  0x86   : > { %8765 = vmatmul.mubr.bf16.gmra.mrb[44].mxu0 %v9500_v31 }
  0x87   : > { %8768 = vmatprep.mubr.bf16.mxu0 %v9501_v32 }
  0x8e   : > { %8769 = vmatmul.mubr.bf16.gmra.mrb[48].mxu0 %v9502_v33  ;;  %v9532_v33 = vld [vmem:[%s9890_s29 + $0x1b8] sm:$0xff]  }
  0x8f   : > { %8772 = vmatprep.mubr.bf16.mxu0 %v9503_v34 }
  0x96   : > { %8773 = vmatmul.mubr.bf16.gmra.mrb[52].mxu0 %v9504_v35  ;;  %v9549_v35 = vld [vmem:[%s9890_s29 + $0x1c0] sm:$0xff]   ;;  %s12028_s29 = scalar_lea.vmem %s12063_s5, %s9457_s10 }
  0x97   : > { %8776 = vmatprep.mubr.bf16.mxu0 %v9505_v36 }
  0x9e   : > { %8777 = vmatmul.mubr.bf16.gmra.mrb[56].mxu0 %v9506_v37 }
  0x9f   : > { %8780 = vmatprep.mubr.bf16.mxu0 %v9507_v38 }
  0xa6   : > { %8781 = vmatmul.mubr.bf16.gmra.mrb[60].mxu0 %v9508_v41 }
  0xa7   : > { %8784 = vmatprep.mubr.bf16.mxu0 %v9509_v43 }
  0xae   : > { %8785 = vmatmul.mubr.bf16.gmra.mrb[64].mxu0 %v9510_v47 }
  0xaf   : > { %8788 = vmatprep.mubr.bf16.mxu0 %v9511_v49 }
  0xb6   : > { %8789 = vmatmul.mubr.bf16.gmra.mrb[68].mxu0 %v9512_v55 }
  0xb7   : > { %8792 = vmatprep.mubr.bf16.mxu0 %v9513_v60 }
  0xbe   : > { %8793 = vmatmul.mubr.bf16.gmra.mrb[72].mxu0 %v9514_v1 }
  0xbf   : > { %8796 = vmatprep.mubr.bf16.mxu0 %v9515_v6 }
  0xc6   : > { %8797 = vmatmul.mubr.bf16.gmra.mrb[76].mxu0 %v9516_v9 }
  0xc7   : > { %8800 = vmatprep.mubr.bf16.mxu0 %v9517_v12 }
  0xce   : > { %8801 = vmatmul.mubr.bf16.gmra.mrb[80].mxu0 %v9518_v15 }
  0xcf   : > { %8804 = vmatprep.mubr.bf16.mxu0 %v9519_v16 }
  0xd6   : > { %8805 = vmatmul.mubr.bf16.gmra.mrb[84].mxu0 %v9520_v19 }
  0xd7   : > { %8808 = vmatprep.mubr.bf16.mxu0 %v9521_v20 }
  0xde   : > { %8809 = vmatmul.mubr.bf16.gmra.mrb[88].mxu0 %v9522_v21 }
  0xdf   : > { %8812 = vmatprep.mubr.bf16.mxu0 %v9523_v22 }
  0xe6   : > { %8813 = vmatmul.mubr.bf16.gmra.mrb[92].mxu0 %v9524_v23 }
  0xe7   : > { %8816 = vmatprep.mubr.bf16.mxu0 %v9525_v24 }
  0xee   : > { %8817 = vmatmul.mubr.bf16.gmra.mrb[96].mxu0 %v9526_v25 }
  0xef   : > { %8820 = vmatprep.mubr.bf16.mxu0 %v9527_v26 }
  0xf6   : > { %8821 = vmatmul.mubr.bf16.gmra.mrb[100].mxu0 %v9528_v27 }
  0xf7   : > { %8824 = vmatprep.mubr.bf16.mxu0 %v9529_v28 }
  0xfe   : > { %8825 = vmatmul.mubr.bf16.gmra.mrb[104].mxu0 %v9530_v29 }
  0xff   : > { %8828 = vmatprep.mubr.bf16.mxu0 %v9531_v30 }
 0x101   : > { %v8722_v31 = vpop.f32.mrb[0].mxu0 }
 0x102   : > { %1253 = vst [vmem:[#allocation2 + $0x10] sm:$0xff] %v8722_v31  ;;  %v788_v32 = vpop.f32.mrb[1].mxu0 }
 0x103   : > { %1251 = vst [vmem:[#allocation2] sm:$0xff] %v788_v32  ;;  %v8723_v34 = vpop.f32.mrb[2].mxu0 }
 0x104   : > { %1254 = vst [vmem:[#allocation2 + $0x18] sm:$0xff] %v8723_v34  ;;  %v791_v36 = vpop.f32.mrb[3].mxu0  ;;  %v9581_v34 = vld [vmem:[%s12061_s3 + $0x200] sm:$0xff]  }
 0x105   : > { %1252 = vst [vmem:[#allocation2 + $0x8] sm:$0xff] %v791_v36  ;;  %7871 = vmatprep.subr.bf16.mxu1 %v9581_v34  ;;  %v9598_v34 = vld [vmem:[%s12061_s3 + $0x2c8] sm:$0xff]  }
 0x106   : > { %8829 = vmatmul.mubr.bf16.gmra.mrb[108].mxu0 %v9532_v33 }
 0x107   : > { %8832 = vmatprep.mubr.bf16.mxu0 %v9549_v35 }
 0x109   : > { %v8726_v37 = vpop.f32.mrb[4].mxu0 }
 0x10a   : > { %1257 = vst [vmem:[#allocation2 + $0x30] sm:$0xff] %v8726_v37  ;;  %v804_v38 = vpop.f32.mrb[5].mxu0 }
 0x10b   : > { %1255 = vst [vmem:[#allocation2 + $0x20] sm:$0xff] %v804_v38  ;;  %v8727_v40 = vpop.f32.mrb[6].mxu0  ;;  %v1369_v42 = vld [vmem:[#allocation2 + $0x10] ss:$2 sm:$0xff]  ;;  %v1425_v43 = vld [vmem:[#allocation2 + $0x11] ss:$2 sm:$0xff] }
 0x10c   : > { %1258 = vst [vmem:[#allocation2 + $0x38] sm:$0xff] %v8727_v40  ;;  %v807_v41 = vpop.f32.mrb[7].mxu0  ;;  %v1367_v45 = vld [vmem:[#allocation2] ss:$2 sm:$0xff]  ;;  %v1423_v46 = vld [vmem:[#allocation2 + $0x1] ss:$2 sm:$0xff]  ;;  %v1479_v51 = vmax.f32 %v1369_v42, %v1425_v43 }
 0x10d   : > { %1256 = vst [vmem:[#allocation2 + $0x28] sm:$0xff] %v807_v41  ;;  %v1478_v56 = vmax.f32 %v1367_v45, %v1423_v46 }
 0x10e   : > { %8833 = vmatmul.mubr.bf16.gmra.mrb[112].mxu0 %v9550_v39 }
 0x111   : > { %v8730_v44 = vpop.f32.mrb[8].mxu0 }
 0x112   : > { %1261 = vst [vmem:[#allocation2 + $0x50] sm:$0xff] %v8730_v44  ;;  %v820_v47 = vpop.f32.mrb[9].mxu0 }
 0x113   : > { %v1509_v48 = vld [vmem:[#allocation2 + $0x30] ss:$2 sm:$0xff]  ;;  %v1565_v49 = vld [vmem:[#allocation2 + $0x31] ss:$2 sm:$0xff]  ;;  %1259 = vst [vmem:[#allocation2 + $0x40] sm:$0xff] %v820_v47  ;;  %v8731_v50 = vpop.f32.mrb[10].mxu0 }
 0x114   : > { %v1619_v52 = vmax.f32 %v1509_v48, %v1565_v49  ;;  %v1507_v53 = vld [vmem:[#allocation2 + $0x20] ss:$2 sm:$0xff]  ;;  %v1563_v54 = vld [vmem:[#allocation2 + $0x21] ss:$2 sm:$0xff]  ;;  %1262 = vst [vmem:[#allocation2 + $0x58] sm:$0xff] %v8731_v50  ;;  %v823_v55 = vpop.f32.mrb[11].mxu0 }
 0x115   : > { %v1618_v58 = vmax.f32 %v1507_v53, %v1563_v54  ;;  %1260 = vst [vmem:[#allocation2 + $0x48] sm:$0xff] %v823_v55 }
 0x116   : > { %v1647_v59 = vmax.f32 %v1479_v51, %v1619_v52 }
 0x117   : > { %v1646_v60 = vmax.f32 %v1478_v56, %v1618_v58 }
 0x118   : > { %v1682_v61 = vadd.f32 %v10064_v57, %v1647_v59 }
 0x119   : > { %v1681_v62 = vadd.f32 %v10064_v57, %v1646_v60  ;;  %v8734_v63 = vpop.f32.mrb[12].mxu0 }
 0x11a   : > { %v1710_v0 = vmax.f32 %v1682_v61, 0.0  ;;  %1265 = vst [vmem:[#allocation2 + $0x70] sm:$0xff] %v8734_v63  ;;  %v836_v1 = vpop.f32.mrb[13].mxu0 }
 0x11b   : > { %v1709_v2 = vmax.f32 %v1681_v62, 0.0  ;;  %1263 = vst [vmem:[#allocation2 + $0x60] sm:$0xff] %v836_v1  ;;  %v8735_v3 = vpop.f32.mrb[14].mxu0  ;;  %v1373_v6 = vld [vmem:[#allocation2 + $0x50] ss:$2 sm:$0xff] }
 0x11c   : > { %1266 = vst [vmem:[#allocation2 + $0x78] sm:$0xff] %v8735_v3  ;;  %v839_v4 = vpop.f32.mrb[15].mxu0  ;;  %v1429_v7 = vld [vmem:[#allocation2 + $0x51] ss:$2 sm:$0xff]  ;;  %v1371_v9 = vld [vmem:[#allocation2 + $0x40] ss:$2 sm:$0xff] }
 0x11d   : > { %v7614_v5 = vpack.c.bf16 %v1710_v0, %v1709_v2  ;;  %1264 = vst [vmem:[#allocation2 + $0x68] sm:$0xff] %v839_v4  ;;  %v1427_v10 = vld [vmem:[#allocation2 + $0x41] ss:$2 sm:$0xff]  ;;  %v1481_v15 = vmax.f32 %v1373_v6, %v1429_v7 }
 0x11e   : > { %v1480_v20 = vmax.f32 %v1371_v9, %v1427_v10 }
 0x11f   : > { %7615 = vst [vmem:[#allocation3] sm:$0xff] %v7614_v5  }
 0x121   : > { %v8738_v8 = vpop.f32.mrb[16].mxu0 }
 0x122   : > { %1269 = vst [vmem:[#allocation2 + $0x90] sm:$0xff] %v8738_v8  ;;  %v852_v11 = vpop.f32.mrb[17].mxu0 }
 0x123   : > { %v1513_v12 = vld [vmem:[#allocation2 + $0x70] ss:$2 sm:$0xff]  ;;  %v1569_v13 = vld [vmem:[#allocation2 + $0x71] ss:$2 sm:$0xff]  ;;  %1267 = vst [vmem:[#allocation2 + $0x80] sm:$0xff] %v852_v11  ;;  %v8739_v14 = vpop.f32.mrb[18].mxu0 }
 0x124   : > { %v1621_v16 = vmax.f32 %v1513_v12, %v1569_v13  ;;  %v1511_v17 = vld [vmem:[#allocation2 + $0x60] ss:$2 sm:$0xff]  ;;  %v1567_v18 = vld [vmem:[#allocation2 + $0x61] ss:$2 sm:$0xff]  ;;  %1270 = vst [vmem:[#allocation2 + $0x98] sm:$0xff] %v8739_v14  ;;  %v855_v19 = vpop.f32.mrb[19].mxu0 }
 0x125   : > { %v1620_v21 = vmax.f32 %v1511_v17, %v1567_v18  ;;  %1268 = vst [vmem:[#allocation2 + $0x88] sm:$0xff] %v855_v19 }
 0x126   : > { %v1649_v22 = vmax.f32 %v1481_v15, %v1621_v16  ;;  %v9559_v33 = vld [vmem:[#allocation3] sm:$0xff]  }
 0x127   : > { %v1648_v23 = vmax.f32 %v1480_v20, %v1620_v21  ;;  %v2128_v41 = vshll.u32 %v9559_v33, 16  ;;  %v2126_v58 = vshrl.u32 %v9559_v33, 16  ;;  %v9562_v6 = vld [vmem:[#allocation3] sm:$0xff]  }
 0x128   : > { %v1684_v24 = vadd.f32 %v10064_v57, %v1649_v22 }
 0x129   : > { %v1683_v25 = vadd.f32 %v10064_v57, %v1648_v23  ;;  %v8742_v26 = vpop.f32.mrb[20].mxu0  ;;  %v2130_v54 = vrot.slane %v2128_v41, 1  ;;  %v9583_v41 = vld [vmem:[%s12061_s3 + $0x1c0] sm:$0xff]  }
 0x12a   : > { %v1712_v27 = vmax.f32 %v1684_v24, 0.0  ;;  %1273 = vst [vmem:[#allocation2 + $0xb0] sm:$0xff] %v8742_v26  ;;  %v868_v28 = vpop.f32.mrb[21].mxu0  ;;  %v9594_v24 = vld [vmem:[%s12061_s3 + $0x2c0] sm:$0xff]  }
 0x12b   : > { %v1711_v29 = vmax.f32 %v1683_v25, 0.0  ;;  %1271 = vst [vmem:[#allocation2 + $0xa0] sm:$0xff] %v868_v28  ;;  %v8743_v30 = vpop.f32.mrb[22].mxu0  ;;  %v1377_v35 = vld [vmem:[#allocation2 + $0x90] ss:$2 sm:$0xff]  ;;  %v2131_v0 = vor.u32 %v2130_v54, %v2126_v58  ;;  %8155 = vmatprep.subr.bf16.mxu0 %v9594_v24 }
 0x12c   : > { %1274 = vst [vmem:[#allocation2 + $0xb8] sm:$0xff] %v8743_v30  ;;  %v871_v31 = vpop.f32.mrb[23].mxu0  ;;  %v1433_v36 = vld [vmem:[#allocation2 + $0x91] ss:$2 sm:$0xff]  ;;  %v1375_v38 = vld [vmem:[#allocation2 + $0x80] ss:$2 sm:$0xff] }
 0x12d   : > { %1272 = vst [vmem:[#allocation2 + $0xa8] sm:$0xff] %v871_v31  ;;  %v7619_v32 = vpack.c.bf16 %v1712_v27, %v1711_v29  ;;  %v1431_v39 = vld [vmem:[#allocation2 + $0x81] ss:$2 sm:$0xff]  ;;  %v1483_v45 = vmax.f32 %v1377_v35, %v1433_v36 }
 0x12e   : > { %v1482_v50 = vmax.f32 %v1375_v38, %v1431_v39  ;;  %v9595_v31 = vld [vmem:[%s12061_s3 + $0x280] sm:$0xff]  }
 0x12f   : > { %7706 = vst [vmem:[#allocation3 + $0x8] sm:$0xff] %v7619_v32  }
 0x131   : > { %v8746_v37 = vpop.f32.mrb[24].mxu0 }
 0x132   : > { %1277 = vst [vmem:[#allocation2 + $0xd0] sm:$0xff] %v8746_v37  ;;  %v884_v40 = vpop.f32.mrb[25].mxu0 }
 0x133   : > { %v1517_v42 = vld [vmem:[#allocation2 + $0xb0] ss:$2 sm:$0xff]  ;;  %v1573_v43 = vld [vmem:[#allocation2 + $0xb1] ss:$2 sm:$0xff]  ;;  %1275 = vst [vmem:[#allocation2 + $0xc0] sm:$0xff] %v884_v40  ;;  %v8747_v44 = vpop.f32.mrb[26].mxu0 }
 0x134   : > { %v1623_v46 = vmax.f32 %v1517_v42, %v1573_v43  ;;  %v1515_v47 = vld [vmem:[#allocation2 + $0xa0] ss:$2 sm:$0xff]  ;;  %v1571_v48 = vld [vmem:[#allocation2 + $0xa1] ss:$2 sm:$0xff]  ;;  %1278 = vst [vmem:[#allocation2 + $0xd8] sm:$0xff] %v8747_v44  ;;  %v887_v49 = vpop.f32.mrb[27].mxu0 }
 0x135   : > { %v1622_v51 = vmax.f32 %v1515_v47, %v1571_v48  ;;  %1276 = vst [vmem:[#allocation2 + $0xc8] sm:$0xff] %v887_v49  ;;  %v9599_v42 = vld [vmem:[%s12061_s3 + $0x288] sm:$0xff]   ;;  %v9602_v48 = vld [vmem:[%s12061_s3 + $0x2d0] sm:$0xff]  }
 0x136   : > { %v1651_v52 = vmax.f32 %v1483_v45, %v1623_v46  ;;  %v9560_v53 = vld [vmem:[#allocation3 + $0x8] sm:$0xff]  }
 0x137   : > { %v1650_v55 = vmax.f32 %v1482_v50, %v1622_v51  ;;  %v2133_v59 = vshll.u32 %v9560_v53, 16  ;;  %v2137_v29 = vshrl.u32 %v9560_v53, 16  ;;  %v9571_v45 = vld [vmem:[#allocation3 + $0x8] sm:$0xff]   ;;  %v9603_v50 = vld [vmem:[%s12061_s3 + $0x290] sm:$0xff]  }
 0x138   : > { %v1686_v56 = vadd.f32 %v10064_v57, %v1651_v52  ;;  %v9584_v46 = vld [vmem:[%s12061_s3 + $0x208] sm:$0xff]   ;;  %v9588_v51 = vld [vmem:[%s12061_s3 + $0x210] sm:$0xff]  }
 0x139   : > { %v1685_v60 = vadd.f32 %v10064_v57, %v1650_v55  ;;  %v8750_v61 = vpop.f32.mrb[28].mxu0  ;;  %v2135_v1 = vrot.slane %v2133_v59, 1  ;;  %v9585_v49 = vld [vmem:[%s12061_s3 + $0x1c8] sm:$0xff]   ;;  %v9604_v55 = vld [vmem:[%s12061_s3 + $0x2d8] sm:$0xff]  }
 0x13a   : > { %v1714_v62 = vmax.f32 %v1686_v56, 0.0  ;;  %1281 = vst [vmem:[#allocation2 + $0xf0] sm:$0xff] %v8750_v61  ;;  %v900_v63 = vpop.f32.mrb[29].mxu0 }
 0x13b   : > { %v1713_v2 = vmax.f32 %v1685_v60, 0.0  ;;  %1279 = vst [vmem:[#allocation2 + $0xe0] sm:$0xff] %v900_v63  ;;  %v8751_v3 = vpop.f32.mrb[30].mxu0  ;;  %v2136_v5 = vsel %vm2124_vm0, %v2131_v0, %v2135_v1  ;;  %v1381_v8 = vld [vmem:[#allocation2 + $0xd0] ss:$2 sm:$0xff]  ;;  %v2139_v37 = vor.u32 %v2137_v29, %v2135_v1  ;;  %v9611_v29 = vld [vmem:[%s12061_s3 + $0x2a8] sm:$0xff]  }
 0x13c   : > { %1282 = vst [vmem:[#allocation2 + $0xf8] sm:$0xff] %v8751_v3  ;;  %v903_v4 = vpop.f32.mrb[31].mxu0  ;;  %4000 = vmatprep.mubr.bf16.mxu0 %v2136_v5  ;;  %v1437_v9 = vld [vmem:[#allocation2 + $0xd1] ss:$2 sm:$0xff]  ;;  %v1379_v11 = vld [vmem:[#allocation2 + $0xc0] ss:$2 sm:$0xff] }
 0x13d   : > { %1280 = vst [vmem:[#allocation2 + $0xe8] sm:$0xff] %v903_v4  ;;  %v7624_v7 = vpack.c.bf16 %v1714_v62, %v1713_v2  ;;  %4001 = vmatmul.mubr.bf16.vlgmr.msra.gmra.mrb[116].mxu0 %v9562_v6  ;;  %v1435_v12 = vld [vmem:[#allocation2 + $0xc1] ss:$2 sm:$0xff]  ;;  %v1485_v17 = vmax.f32 %v1381_v8, %v1437_v9  ;;  %v9589_v60 = vld [vmem:[%s12061_s3 + $0x1d0] sm:$0xff]   ;;  %v9605_v0 = vld [vmem:[%s12061_s3 + $0x298] sm:$0xff]  }
 0x13e   : > { %v1484_v22 = vmax.f32 %v1379_v11, %v1435_v12  ;;  %8156 = vmatpush3.bf16.msra.mxu0 %v9595_v31  ;;  %v9592_v6 = vld [vmem:[%s12061_s3 + $0x218] sm:$0xff]   ;;  %v9608_v9 = vld [vmem:[%s12061_s3 + $0x2e0] sm:$0xff]  }
 0x13f   : > { %7707 = vst [vmem:[#allocation3 + $0x10] sm:$0xff] %v7624_v7   ;;  %8157 = vmatprep.subr.bf16.mxu0 %v9598_v34  ;;  %v9614_v34 = vld [vmem:[%s12061_s3 + $0x2f0] sm:$0xff]  }
 0x141   : > { %v8754_v10 = vpop.f32.mrb[32].mxu0 }
 0x142   : > { %1285 = vst [vmem:[#allocation2 + $0x110] sm:$0xff] %v8754_v10  ;;  %v916_v13 = vpop.f32.mrb[33].mxu0  ;;  %8158 = vmatpush3.bf16.msra.mxu0 %v9599_v42 }
 0x143   : > { %v1521_v14 = vld [vmem:[#allocation2 + $0xf0] ss:$2 sm:$0xff]  ;;  %v1577_v15 = vld [vmem:[#allocation2 + $0xf1] ss:$2 sm:$0xff]  ;;  %1283 = vst [vmem:[#allocation2 + $0x100] sm:$0xff] %v916_v13  ;;  %v8755_v16 = vpop.f32.mrb[34].mxu0  ;;  %8159 = vmatprep.subr.bf16.mxu0 %v9602_v48 }
 0x144   : > { %v1625_v18 = vmax.f32 %v1521_v14, %v1577_v15  ;;  %v1519_v19 = vld [vmem:[#allocation2 + $0xe0] ss:$2 sm:$0xff]  ;;  %v1575_v20 = vld [vmem:[#allocation2 + $0xe1] ss:$2 sm:$0xff]  ;;  %1286 = vst [vmem:[#allocation2 + $0x118] sm:$0xff] %v8755_v16  ;;  %v919_v21 = vpop.f32.mrb[35].mxu0 }
 0x145   : > { %v1624_v23 = vmax.f32 %v1519_v19, %v1575_v20  ;;  %1284 = vst [vmem:[#allocation2 + $0x108] sm:$0xff] %v919_v21  ;;  %v9593_v13 = vld [vmem:[%s12061_s3 + $0x1d8] sm:$0xff]   ;;  %v9610_v21 = vld [vmem:[%s12061_s3 + $0x2e8] sm:$0xff]  }
 0x146   : > { %v1653_v25 = vmax.f32 %v1485_v17, %v1625_v18  ;;  %v10079_v26 = vld [vmem:[#allocation3 + $0x10] sm:$0xff]   ;;  %8160 = vmatpush3.bf16.msra.mxu0 %v9603_v50  ;;  %v9596_v17 = vld [vmem:[%s12061_s3 + $0x220] sm:$0xff]   ;;  %v9619_v48 = vld [vmem:[%s12061_s3 + $0x2b8] sm:$0xff]  }
 0x147   : > { %v1652_v27 = vmax.f32 %v1484_v22, %v1624_v23  ;;  %v2141_v30 = vshll.u32 %v10079_v26, 16  ;;  %8161 = vmatprep.subr.bf16.mxu0 %v9604_v55  ;;  %v2145_v15 = vshrl.u32 %v10079_v26, 16  ;;  %v9609_v18 = vld [vmem:[%s12061_s3 + $0x2a0] sm:$0xff]  }
 0x148   : > { %v1688_v28 = vadd.f32 %v10064_v57, %v1653_v25 }
 0x149   : > { %v1687_v32 = vadd.f32 %v10064_v57, %v1652_v27  ;;  %v8758_v33 = vpop.f32.mrb[36].mxu0  ;;  %v10090_v38 = vrot.slane %v2141_v30, 1 }
 0x14a   : > { %v1716_v35 = vmax.f32 %v1688_v28, 0.0  ;;  %1289 = vst [vmem:[#allocation2 + $0x130] sm:$0xff] %v8758_v33  ;;  %v932_v36 = vpop.f32.mrb[37].mxu0  ;;  %8162 = vmatpush3.bf16.msra.mxu0 %v9605_v0  ;;  %v9597_v28 = vld [vmem:[%s12061_s3 + $0x1e0] sm:$0xff]  }
 0x14b   : > { %v1715_v39 = vmax.f32 %v1687_v32, 0.0  ;;  %1287 = vst [vmem:[#allocation2 + $0x120] sm:$0xff] %v932_v36  ;;  %v8759_v40 = vpop.f32.mrb[38].mxu0  ;;  %v2144_v44 = vsel %vm2124_vm0, %v2139_v37, %v10090_v38  ;;  %v1385_v52 = vld [vmem:[#allocation2 + $0x110] ss:$2 sm:$0xff]  ;;  %8163 = vmatprep.subr.bf16.mxu0 %v9608_v9  ;;  %v2147_v24 = vor.u32 %v2145_v15, %v10090_v38  ;;  %v9607_v36 = vld [vmem:[%s12061_s3 + $0x1e8] sm:$0xff]  }
 0x14c   : > { %1290 = vst [vmem:[#allocation2 + $0x138] sm:$0xff] %v8759_v40  ;;  %v935_v43 = vpop.f32.mrb[39].mxu0  ;;  %3397 = vmatprep.mubr.bf16.mxu1 %v2144_v44  ;;  %4008 = vmatprep.mubr.bf16.mxu0 %v2144_v44  ;;  %v1441_v53 = vld [vmem:[#allocation2 + $0x111] ss:$2 sm:$0xff]  ;;  %v1383_v56 = vld [vmem:[#allocation2 + $0x100] ss:$2 sm:$0xff] }
 0x14d   : > { %1288 = vst [vmem:[#allocation2 + $0x128] sm:$0xff] %v935_v43  ;;  %v7629_v47 = vpack.c.bf16 %v1716_v35, %v1715_v39  ;;  %3398 = vmatmul.mubr.bf16.vlgmr.msra.gmra.mrb[0].mxu1 %v9571_v45  ;;  %4009 = vmatmul.mubr.bf16.gmra.mrb[120].mxu0 %v9571_v45  ;;  %v1439_v58 = vld [vmem:[#allocation2 + $0x101] ss:$2 sm:$0xff]  ;;  %v1487_v1 = vmax.f32 %v1385_v52, %v1441_v53  ;;  %v9573_v32 = vld [vmem:[#allocation3 + $0x10] sm:$0xff]  }
 0x14e   : > { %7872 = vmatpush3.bf16.msra.mxu1 %v9583_v41  ;;  %v1486_v7 = vmax.f32 %v1383_v56, %v1439_v58  ;;  %8164 = vmatpush3.bf16.msra.mxu0 %v9609_v18  ;;  %v9606_v35 = vld [vmem:[%s12061_s3 + $0x228] sm:$0xff]   ;;  %v9616_v37 = vld [vmem:[%s12061_s3 + $0x2b0] sm:$0xff]   ;;  %v9618_v41 = vld [vmem:[%s12061_s3 + $0x2f8] sm:$0xff]  }
 0x14f   : > { %7708 = vst [vmem:[#allocation3 + $0x18] sm:$0xff] %v7629_v47   ;;  %7873 = vmatprep.subr.bf16.mxu1 %v9584_v46  ;;  %8165 = vmatprep.subr.bf16.mxu0 %v9610_v21 }
 0x151   : > { %v8762_v54 = vpop.f32.mrb[40].mxu0 }
 0x152   : > { %1293 = vst [vmem:[#allocation2 + $0x150] sm:$0xff] %v8762_v54  ;;  %v948_v59 = vpop.f32.mrb[41].mxu0  ;;  %7874 = vmatpush3.bf16.msra.mxu1 %v9585_v49  ;;  %8166 = vmatpush3.bf16.msra.mxu0 %v9611_v29 }
 0x153   : > { %v1525_v61 = vld [vmem:[#allocation2 + $0x130] ss:$2 sm:$0xff]  ;;  %v1581_v62 = vld [vmem:[#allocation2 + $0x131] ss:$2 sm:$0xff]  ;;  %1291 = vst [vmem:[#allocation2 + $0x140] sm:$0xff] %v948_v59  ;;  %v8763_v63 = vpop.f32.mrb[42].mxu0  ;;  %7875 = vmatprep.subr.bf16.mxu1 %v9588_v51  ;;  %8167 = vmatprep.subr.bf16.mxu0 %v9614_v34 }
 0x154   : > { %v1627_v2 = vmax.f32 %v1525_v61, %v1581_v62  ;;  %v1523_v3 = vld [vmem:[#allocation2 + $0x120] ss:$2 sm:$0xff]  ;;  %v1579_v4 = vld [vmem:[#allocation2 + $0x121] ss:$2 sm:$0xff]  ;;  %1294 = vst [vmem:[#allocation2 + $0x158] sm:$0xff] %v8763_v63  ;;  %v951_v5 = vpop.f32.mrb[43].mxu0 }
 0x155   : > { %v1626_v8 = vmax.f32 %v1523_v3, %v1579_v4  ;;  %1292 = vst [vmem:[#allocation2 + $0x148] sm:$0xff] %v951_v5 }
 0x156   : > { %v1655_v10 = vmax.f32 %v1487_v1, %v1627_v2  ;;  %v10130_v11 = vld [vmem:[#allocation3 + $0x18] sm:$0xff]   ;;  %7876 = vmatpush3.bf16.msra.mxu1 %v9589_v60  ;;  %8168 = vmatpush3.bf16.msra.mxu0 %v9616_v37 }
 0x157   : > { %v1654_v12 = vmax.f32 %v1486_v7, %v1626_v8  ;;  %v2149_v16 = vshll.u32 %v10130_v11, 16  ;;  %7877 = vmatprep.subr.bf16.mxu1 %v9592_v6  ;;  %8169 = vmatprep.subr.bf16.mxu0 %v9618_v41  ;;  %v2153_v61 = vshrl.u32 %v10130_v11, 16  ;;  %v10191_v9 = vld [vmem:[#allocation3 + $0x18] sm:$0xff]  }
 0x158   : > { %v1690_v14 = vadd.f32 %v10064_v57, %v1655_v10  ;;  %v9615_v10 = vld [vmem:[%s12061_s3 + $0x230] sm:$0xff]  }
 0x159   : > { %v1689_v19 = vadd.f32 %v10064_v57, %v1654_v12  ;;  %v8766_v20 = vpop.f32.mrb[44].mxu0  ;;  %v10149_v25 = vrot.slane %v2149_v16, 1  ;;  %v9617_v12 = vld [vmem:[%s12061_s3 + $0x1f0] sm:$0xff]  }
 0x15a   : > { %v1718_v22 = vmax.f32 %v1690_v14, 0.0  ;;  %1297 = vst [vmem:[#allocation2 + $0x170] sm:$0xff] %v8766_v20  ;;  %v964_v23 = vpop.f32.mrb[45].mxu0  ;;  %7878 = vmatpush3.bf16.msra.mxu1 %v9593_v13  ;;  %8170 = vmatpush3.bf16.msra.mxu0 %v9619_v48  ;;  %v9620_v13 = vld [vmem:[%s12061_s3 + $0x238] sm:$0xff]  }
 0x15b   : > { %v1717_v26 = vmax.f32 %v1689_v19, 0.0  ;;  %1295 = vst [vmem:[#allocation2 + $0x160] sm:$0xff] %v964_v23  ;;  %v8767_v27 = vpop.f32.mrb[46].mxu0  ;;  %v10159_v31 = vsel %vm2124_vm0, %v2147_v24, %v10149_v25  ;;  %7879 = vmatprep.subr.bf16.mxu1 %v9596_v17  ;;  %v1389_v38 = vld [vmem:[#allocation2 + $0x150] ss:$2 sm:$0xff]  ;;  %v2155_v3 = vor.u32 %v2153_v61, %v10149_v25 }
 0x15c   : > { %1298 = vst [vmem:[#allocation2 + $0x178] sm:$0xff] %v8767_v27  ;;  %v967_v30 = vpop.f32.mrb[47].mxu0  ;;  %3405 = vmatprep.mubr.bf16.mxu1 %v10159_v31  ;;  %4016 = vmatprep.mubr.bf16.mxu0 %v10159_v31  ;;  %v1445_v39 = vld [vmem:[#allocation2 + $0x151] ss:$2 sm:$0xff]  ;;  %v1387_v42 = vld [vmem:[#allocation2 + $0x140] ss:$2 sm:$0xff] }
 0x15d   : > { %v7634_v33 = vpack.c.bf16 %v1718_v22, %v1717_v26  ;;  %1296 = vst [vmem:[#allocation2 + $0x168] sm:$0xff] %v967_v30  ;;  %3406 = vmatmul.mubr.bf16.gmra.mrb[4].mxu1 %v9573_v32  ;;  %4017 = vmatmul.mubr.bf16.gmra.mrb[124].mxu0 %v9573_v32  ;;  %v1443_v43 = vld [vmem:[#allocation2 + $0x141] ss:$2 sm:$0xff]  ;;  %v1489_v49 = vmax.f32 %v1389_v38, %v1445_v39  ;;  %v9621_v14 = vld [vmem:[%s12061_s3 + $0x1f8] sm:$0xff]   ;;  %v12065_v32 = vmov 0.0  }
 0x15e   : > { %7880 = vmatpush3.bf16.msra.mxu1 %v9597_v28  ;;  %v1488_v54 = vmax.f32 %v1387_v42, %v1443_v43 }
 0x15f   : > { %7709 = vst [vmem:[#allocation3 + $0x20] sm:$0xff] %v7634_v33   ;;  %7881 = vmatprep.subr.bf16.mxu1 %v9606_v35 }
 0x161   : > { %v8770_v40 = vpop.f32.mrb[48].mxu0 }
 0x162   : > { %1301 = vst [vmem:[#allocation2 + $0x190] sm:$0xff] %v8770_v40  ;;  %v980_v44 = vpop.f32.mrb[49].mxu0  ;;  %7882 = vmatpush3.bf16.msra.mxu1 %v9607_v36 }
 0x163   : > { %v1529_v45 = vld [vmem:[#allocation2 + $0x170] ss:$2 sm:$0xff]  ;;  %v1585_v46 = vld [vmem:[#allocation2 + $0x171] ss:$2 sm:$0xff]  ;;  %1299 = vst [vmem:[#allocation2 + $0x180] sm:$0xff] %v980_v44  ;;  %v8771_v47 = vpop.f32.mrb[50].mxu0  ;;  %7883 = vmatprep.subr.bf16.mxu1 %v9615_v10 }
 0x164   : > { %v1629_v50 = vmax.f32 %v1529_v45, %v1585_v46  ;;  %v1527_v51 = vld [vmem:[#allocation2 + $0x160] ss:$2 sm:$0xff]  ;;  %v1583_v52 = vld [vmem:[#allocation2 + $0x161] ss:$2 sm:$0xff]  ;;  %1302 = vst [vmem:[#allocation2 + $0x198] sm:$0xff] %v8771_v47  ;;  %v983_v53 = vpop.f32.mrb[51].mxu0 }
 0x165   : > { %v1628_v55 = vmax.f32 %v1527_v51, %v1583_v52  ;;  %1300 = vst [vmem:[#allocation2 + $0x188] sm:$0xff] %v983_v53 }
 0x166   : > { %v1657_v56 = vmax.f32 %v1489_v49, %v1629_v50  ;;  %v10181_v58 = vld [vmem:[#allocation3 + $0x20] sm:$0xff]   ;;  %7884 = vmatpush3.bf16.msra.mxu1 %v9617_v12 }
 0x167   : > { %v1656_v59 = vmax.f32 %v1488_v54, %v1628_v55  ;;  %v2157_v62 = vshll.u32 %v10181_v58, 16  ;;  %7885 = vmatprep.subr.bf16.mxu1 %v9620_v13  ;;  %v2161_v37 = vshrl.u32 %v10181_v58, 16  ;;  %v10216_v49 = vld [vmem:[#allocation3 + $0x20] sm:$0xff]  }
 0x168   : > { %v1692_v60 = vadd.f32 %v10064_v57, %v1657_v56 }
 0x169   : > { %v1691_v63 = vadd.f32 %v10064_v57, %v1656_v59  ;;  %v8774_v0 = vpop.f32.mrb[52].mxu0  ;;  %v2159_v4 = vrot.slane %v2157_v62, 1 }
 0x16a   : > { %v1720_v1 = vmax.f32 %v1692_v60, 0.0  ;;  %1305 = vst [vmem:[#allocation2 + $0x1b0] sm:$0xff] %v8774_v0  ;;  %v996_v2 = vpop.f32.mrb[53].mxu0  ;;  %7886 = vmatpush3.bf16.msra.mxu1 %v9621_v14 }
 0x16b   : > { %v1719_v5 = vmax.f32 %v1691_v63, 0.0  ;;  %1303 = vst [vmem:[#allocation2 + $0x1a0] sm:$0xff] %v996_v2  ;;  %v8775_v6 = vpop.f32.mrb[54].mxu0  ;;  %v10189_v8 = vsel %vm2124_vm0, %v2155_v3, %v2159_v4  ;;  %v1393_v15 = vld [vmem:[#allocation2 + $0x190] ss:$2 sm:$0xff]  ;;  %8836 = vmatprep.subr.bf16.mxu1 %v12065_v32  ;;  %v2163_v42 = vor.u32 %v2161_v37, %v2159_v4 }
 0x16c   : > { %1306 = vst [vmem:[#allocation2 + $0x1b8] sm:$0xff] %v8775_v6  ;;  %v999_v7 = vpop.f32.mrb[55].mxu0  ;;  %3413 = vmatprep.mubr.bf16.mxu1 %v10189_v8  ;;  %4024 = vmatprep.mubr.bf16.mxu0 %v10189_v8  ;;  %v1449_v16 = vld [vmem:[#allocation2 + $0x191] ss:$2 sm:$0xff]  ;;  %v1391_v18 = vld [vmem:[#allocation2 + $0x180] ss:$2 sm:$0xff] }
 0x16d   : > { %v7639_v11 = vpack.c.bf16 %v1720_v1, %v1719_v5  ;;  %1304 = vst [vmem:[#allocation2 + $0x1a8] sm:$0xff] %v999_v7  ;;  %3414 = vmatmul.mubr.bf16.gmra.mrb[8].mxu1 %v10191_v9  ;;  %4025 = vmatmul.mubr.bf16.gmra.mrb[128].mxu0 %v10191_v9  ;;  %v1447_v19 = vld [vmem:[#allocation2 + $0x181] ss:$2 sm:$0xff]  ;;  %v1491_v24 = vmax.f32 %v1393_v15, %v1449_v16 }
 0x16e   : > { %v1490_v29 = vmax.f32 %v1391_v18, %v1447_v19 }
 0x16f   : > { %7710 = vst [vmem:[#allocation3 + $0x28] sm:$0xff] %v7639_v11  }
 0x171   : > { %v8778_v17 = vpop.f32.mrb[56].mxu0 }
 0x172   : > { %1309 = vst [vmem:[#allocation2 + $0x1d0] sm:$0xff] %v8778_v17  ;;  %v1012_v20 = vpop.f32.mrb[57].mxu0 }
 0x173   : > { %v1533_v21 = vld [vmem:[#allocation2 + $0x1b0] ss:$2 sm:$0xff]  ;;  %v1589_v22 = vld [vmem:[#allocation2 + $0x1b1] ss:$2 sm:$0xff]  ;;  %1307 = vst [vmem:[#allocation2 + $0x1c0] sm:$0xff] %v1012_v20  ;;  %v8779_v23 = vpop.f32.mrb[58].mxu0 }
 0x174   : > { %v1631_v25 = vmax.f32 %v1533_v21, %v1589_v22  ;;  %v1531_v26 = vld [vmem:[#allocation2 + $0x1a0] ss:$2 sm:$0xff]  ;;  %v1587_v27 = vld [vmem:[#allocation2 + $0x1a1] ss:$2 sm:$0xff]  ;;  %1310 = vst [vmem:[#allocation2 + $0x1d8] sm:$0xff] %v8779_v23  ;;  %v1015_v28 = vpop.f32.mrb[59].mxu0 }
 0x175   : > { %v1630_v30 = vmax.f32 %v1531_v26, %v1587_v27  ;;  %1308 = vst [vmem:[#allocation2 + $0x1c8] sm:$0xff] %v1015_v28 }
 0x176   : > { %v1659_v33 = vmax.f32 %v1491_v24, %v1631_v25  ;;  %v9576_v34 = vld [vmem:[#allocation3 + $0x28] sm:$0xff]  }
 0x177   : > { %v1658_v35 = vmax.f32 %v1490_v29, %v1630_v30  ;;  %v2165_v38 = vshll.u32 %v9576_v34, 16  ;;  %v2169_v10 = vshrl.u32 %v9576_v34, 16  ;;  %v10227_v22 = vld [vmem:[#allocation3 + $0x28] sm:$0xff]  }
 0x178   : > { %v1694_v36 = vadd.f32 %v10064_v57, %v1659_v33 }
 0x179   : > { %v1693_v39 = vadd.f32 %v10064_v57, %v1658_v35  ;;  %v8782_v40 = vpop.f32.mrb[60].mxu0  ;;  %v2167_v44 = vrot.slane %v2165_v38, 1 }
 0x17a   : > { %v1722_v41 = vmax.f32 %v1694_v36, 0.0  ;;  %1313 = vst [vmem:[#allocation2 + $0x1f0] sm:$0xff] %v8782_v40  ;;  %v1028_v43 = vpop.f32.mrb[61].mxu0 }
 0x17b   : > { %v1721_v45 = vmax.f32 %v1693_v39, 0.0  ;;  %1311 = vst [vmem:[#allocation2 + $0x1e0] sm:$0xff] %v1028_v43  ;;  %v8783_v46 = vpop.f32.mrb[62].mxu0  ;;  %v10214_v48 = vsel %vm2124_vm0, %v2163_v42, %v2167_v44  ;;  %v1397_v51 = vld [vmem:[#allocation2 + $0x1d0] ss:$2 sm:$0xff]  ;;  %v2171_v16 = vor.u32 %v2169_v10, %v2167_v44 }
 0x17c   : > { %1314 = vst [vmem:[#allocation2 + $0x1f8] sm:$0xff] %v8783_v46  ;;  %v1031_v47 = vpop.f32.mrb[63].mxu0  ;;  %3421 = vmatprep.mubr.bf16.mxu1 %v10214_v48  ;;  %4032 = vmatprep.mubr.bf16.mxu0 %v10214_v48  ;;  %v1453_v52 = vld [vmem:[#allocation2 + $0x1d1] ss:$2 sm:$0xff]  ;;  %v1395_v54 = vld [vmem:[#allocation2 + $0x1c0] ss:$2 sm:$0xff] }
 0x17d   : > { %v7644_v50 = vpack.c.bf16 %v1722_v41, %v1721_v45  ;;  %1312 = vst [vmem:[#allocation2 + $0x1e8] sm:$0xff] %v1031_v47  ;;  %3422 = vmatmul.mubr.bf16.gmra.mrb[12].mxu1 %v10216_v49  ;;  %4033 = vmatmul.mubr.bf16.gmra.mrb[132].mxu0 %v10216_v49  ;;  %v1451_v55 = vld [vmem:[#allocation2 + $0x1c1] ss:$2 sm:$0xff]  ;;  %v1493_v61 = vmax.f32 %v1397_v51, %v1453_v52 }
 0x17e   : > { %v1492_v2 = vmax.f32 %v1395_v54, %v1451_v55 }
 0x17f   : > { %7711 = vst [vmem:[#allocation3 + $0x30] sm:$0xff] %v7644_v50  }
 0x181   : > { %v8786_v53 = vpop.f32.mrb[64].mxu0 }
 0x182   : > { %1317 = vst [vmem:[#allocation2 + $0x210] sm:$0xff] %v8786_v53  ;;  %v1044_v56 = vpop.f32.mrb[65].mxu0 }
 0x183   : > { %v1537_v58 = vld [vmem:[#allocation2 + $0x1f0] ss:$2 sm:$0xff]  ;;  %v1593_v59 = vld [vmem:[#allocation2 + $0x1f1] ss:$2 sm:$0xff]  ;;  %1315 = vst [vmem:[#allocation2 + $0x200] sm:$0xff] %v1044_v56  ;;  %v8787_v60 = vpop.f32.mrb[66].mxu0 }
 0x184   : > { %v1633_v62 = vmax.f32 %v1537_v58, %v1593_v59  ;;  %v1535_v63 = vld [vmem:[#allocation2 + $0x1e0] ss:$2 sm:$0xff]  ;;  %v1591_v0 = vld [vmem:[#allocation2 + $0x1e1] ss:$2 sm:$0xff]  ;;  %1318 = vst [vmem:[#allocation2 + $0x218] sm:$0xff] %v8787_v60  ;;  %v1047_v1 = vpop.f32.mrb[67].mxu0 }
 0x185   : > { %v1632_v3 = vmax.f32 %v1535_v63, %v1591_v0  ;;  %1316 = vst [vmem:[#allocation2 + $0x208] sm:$0xff] %v1047_v1 }
 0x186   : > { %v1661_v4 = vmax.f32 %v1493_v61, %v1633_v62  ;;  %v9578_v5 = vld [vmem:[#allocation3 + $0x30] sm:$0xff]  }
 0x187   : > { %v1660_v6 = vmax.f32 %v1492_v2, %v1632_v3  ;;  %v2173_v11 = vshll.u32 %v9578_v5, 16  ;;  %v2177_v46 = vshrl.u32 %v9578_v5, 16  ;;  %v10238_v61 = vld [vmem:[#allocation3 + $0x30] sm:$0xff]  }
 0x188   : > { %v1696_v7 = vadd.f32 %v10064_v57, %v1661_v4 }
 0x189   : > { %v1695_v12 = vadd.f32 %v10064_v57, %v1660_v6  ;;  %v8790_v13 = vpop.f32.mrb[68].mxu0  ;;  %v2175_v17 = vrot.slane %v2173_v11, 1 }
 0x18a   : > { %v1724_v14 = vmax.f32 %v1696_v7, 0.0  ;;  %1321 = vst [vmem:[#allocation2 + $0x230] sm:$0xff] %v8790_v13  ;;  %v1060_v15 = vpop.f32.mrb[69].mxu0 }
 0x18b   : > { %v1723_v18 = vmax.f32 %v1695_v12, 0.0  ;;  %1319 = vst [vmem:[#allocation2 + $0x220] sm:$0xff] %v1060_v15  ;;  %v8791_v19 = vpop.f32.mrb[70].mxu0  ;;  %v10225_v21 = vsel %vm2124_vm0, %v2171_v16, %v2175_v17  ;;  %v1401_v24 = vld [vmem:[#allocation2 + $0x210] ss:$2 sm:$0xff]  ;;  %v2179_v54 = vor.u32 %v2177_v46, %v2175_v17 }
 0x18c   : > { %1322 = vst [vmem:[#allocation2 + $0x238] sm:$0xff] %v8791_v19  ;;  %v1063_v20 = vpop.f32.mrb[71].mxu0  ;;  %3429 = vmatprep.mubr.bf16.mxu1 %v10225_v21  ;;  %4040 = vmatprep.mubr.bf16.mxu0 %v10225_v21  ;;  %v1457_v25 = vld [vmem:[#allocation2 + $0x211] ss:$2 sm:$0xff]  ;;  %v1399_v27 = vld [vmem:[#allocation2 + $0x200] ss:$2 sm:$0xff] }
 0x18d   : > { %v7649_v23 = vpack.c.bf16 %v1724_v14, %v1723_v18  ;;  %1320 = vst [vmem:[#allocation2 + $0x228] sm:$0xff] %v1063_v20  ;;  %3430 = vmatmul.mubr.bf16.gmra.mrb[16].mxu1 %v10227_v22  ;;  %4041 = vmatmul.mubr.bf16.gmra.mrb[136].mxu0 %v10227_v22  ;;  %v1455_v28 = vld [vmem:[#allocation2 + $0x201] ss:$2 sm:$0xff]  ;;  %v1495_v35 = vmax.f32 %v1401_v24, %v1457_v25  ;;  %v10250_v20 = vld [vmem:[%s12060_s2] ss:$0 sm:$0xff] }
 0x18e   : > { %v1494_v40 = vmax.f32 %v1399_v27, %v1455_v28 }
 0x18f   : > { %7712 = vst [vmem:[#allocation3 + $0x38] sm:$0xff] %v7649_v23  }
 0x191   : > { %v8794_v26 = vpop.f32.mrb[72].mxu0 }
 0x192   : > { %1325 = vst [vmem:[#allocation2 + $0x250] sm:$0xff] %v8794_v26  ;;  %v1076_v29 = vpop.f32.mrb[73].mxu0 }
 0x193   : > { %v1541_v30 = vld [vmem:[#allocation2 + $0x230] ss:$2 sm:$0xff]  ;;  %v1597_v33 = vld [vmem:[#allocation2 + $0x231] ss:$2 sm:$0xff]  ;;  %1323 = vst [vmem:[#allocation2 + $0x240] sm:$0xff] %v1076_v29  ;;  %v8795_v34 = vpop.f32.mrb[74].mxu0 }
 0x194   : > { %v1635_v36 = vmax.f32 %v1541_v30, %v1597_v33  ;;  %v1539_v37 = vld [vmem:[#allocation2 + $0x220] ss:$2 sm:$0xff]  ;;  %v1595_v38 = vld [vmem:[#allocation2 + $0x221] ss:$2 sm:$0xff]  ;;  %1326 = vst [vmem:[#allocation2 + $0x258] sm:$0xff] %v8795_v34  ;;  %v1079_v39 = vpop.f32.mrb[75].mxu0 }
 0x195   : > { %v1634_v41 = vmax.f32 %v1539_v37, %v1595_v38  ;;  %1324 = vst [vmem:[#allocation2 + $0x248] sm:$0xff] %v1079_v39 }
 0x196   : > { %v1663_v42 = vmax.f32 %v1495_v35, %v1635_v36  ;;  %v9580_v43 = vld [vmem:[#allocation3 + $0x38] sm:$0xff]  }
 0x197   : > { %v1662_v44 = vmax.f32 %v1494_v40, %v1634_v41  ;;  %v2181_v47 = vshll.u32 %v9580_v43, 16  ;;  %v2185_v24 = vshrl.u32 %v9580_v43, 16  ;;  %v10257_v38 = vld [vmem:[#allocation3 + $0x38] sm:$0xff]  }
 0x198   : > { %v1698_v45 = vadd.f32 %v10064_v57, %v1663_v42 }
 0x199   : > { %v1697_v50 = vadd.f32 %v10064_v57, %v1662_v44  ;;  %v8798_v51 = vpop.f32.mrb[76].mxu0  ;;  %v2183_v55 = vrot.slane %v2181_v47, 1  ;;  %v9642_v57 = vld [vmem:[%s12061_s3 + $0x340] sm:$0xff]  }
 0x19a   : > { %v1726_v52 = vmax.f32 %v1698_v45, 0.0  ;;  %1329 = vst [vmem:[#allocation2 + $0x270] sm:$0xff] %v8798_v51  ;;  %v1092_v53 = vpop.f32.mrb[77].mxu0  ;;  %8237 = vmatprep.subr.bf16.mxu0 %v9642_v57 }
 0x19b   : > { %v1725_v56 = vmax.f32 %v1697_v50, 0.0  ;;  %1327 = vst [vmem:[#allocation2 + $0x260] sm:$0xff] %v1092_v53  ;;  %v8799_v58 = vpop.f32.mrb[78].mxu0  ;;  %v10236_v60 = vsel %vm2124_vm0, %v2179_v54, %v2183_v55  ;;  %v1405_v63 = vld [vmem:[#allocation2 + $0x250] ss:$2 sm:$0xff]  ;;  %v2187_v30 = vor.u32 %v2185_v24, %v2183_v55 }
 0x19c   : > { %1330 = vst [vmem:[#allocation2 + $0x278] sm:$0xff] %v8799_v58  ;;  %v1095_v59 = vpop.f32.mrb[79].mxu0  ;;  %3437 = vmatprep.mubr.bf16.mxu1 %v10236_v60  ;;  %4048 = vmatprep.mubr.bf16.mxu0 %v10236_v60  ;;  %v1461_v0 = vld [vmem:[#allocation2 + $0x251] ss:$2 sm:$0xff]  ;;  %v1403_v2 = vld [vmem:[#allocation2 + $0x240] ss:$2 sm:$0xff] }
 0x19d   : > { %v7654_v62 = vpack.c.bf16 %v1726_v52, %v1725_v56  ;;  %1328 = vst [vmem:[#allocation2 + $0x268] sm:$0xff] %v1095_v59  ;;  %3438 = vmatmul.mubr.bf16.gmra.mrb[20].mxu1 %v10238_v61  ;;  %4049 = vmatmul.mubr.bf16.gmra.mrb[140].mxu0 %v10238_v61  ;;  %v1459_v3 = vld [vmem:[#allocation2 + $0x241] ss:$2 sm:$0xff]  ;;  %v1497_v10 = vmax.f32 %v1405_v63, %v1461_v0 }
 0x19e   : > { %v1496_v15 = vmax.f32 %v1403_v2, %v1459_v3 }
 0x19f   : > { %7713 = vst [vmem:[#allocation3 + $0x40] sm:$0xff] %v7654_v62  }
 0x1a1   : > { %v8802_v1 = vpop.f32.mrb[80].mxu0 }
 0x1a2   : > { %1333 = vst [vmem:[#allocation2 + $0x290] sm:$0xff] %v8802_v1  ;;  %v1108_v4 = vpop.f32.mrb[81].mxu0 }
 0x1a3   : > { %v1545_v5 = vld [vmem:[#allocation2 + $0x270] ss:$2 sm:$0xff]  ;;  %v1601_v6 = vld [vmem:[#allocation2 + $0x271] ss:$2 sm:$0xff]  ;;  %1331 = vst [vmem:[#allocation2 + $0x280] sm:$0xff] %v1108_v4  ;;  %v8803_v7 = vpop.f32.mrb[82].mxu0 }
 0x1a4   : > { %v1637_v11 = vmax.f32 %v1545_v5, %v1601_v6  ;;  %v1543_v12 = vld [vmem:[#allocation2 + $0x260] ss:$2 sm:$0xff]  ;;  %v1599_v13 = vld [vmem:[#allocation2 + $0x261] ss:$2 sm:$0xff]  ;;  %1334 = vst [vmem:[#allocation2 + $0x298] sm:$0xff] %v8803_v7  ;;  %v1111_v14 = vpop.f32.mrb[83].mxu0 }
 0x1a5   : > { %v1636_v16 = vmax.f32 %v1543_v12, %v1599_v13  ;;  %1332 = vst [vmem:[#allocation2 + $0x288] sm:$0xff] %v1111_v14 }
 0x1a6   : > { %v1665_v17 = vmax.f32 %v1497_v10, %v1637_v11  ;;  %v9586_v18 = vld [vmem:[#allocation3 + $0x40] sm:$0xff]  }
 0x1a7   : > { %v1664_v19 = vmax.f32 %v1496_v15, %v1636_v16  ;;  %v2189_v25 = vshll.u32 %v9586_v18, 16  ;;  %v2193_v0 = vshrl.u32 %v9586_v18, 16  ;;  %v10268_v14 = vld [vmem:[#allocation3 + $0x40] sm:$0xff]  }
 0x1a8   : > { %v1700_v23 = vadd.f32 %v10250_v20, %v1665_v17 }
 0x1a9   : > { %v1699_v26 = vadd.f32 %v10250_v20, %v1664_v19  ;;  %v8806_v27 = vpop.f32.mrb[84].mxu0  ;;  %v2191_v33 = vrot.slane %v2189_v25, 1 }
 0x1aa   : > { %v1728_v28 = vmax.f32 %v1700_v23, 0.0  ;;  %1337 = vst [vmem:[#allocation2 + $0x2b0] sm:$0xff] %v8806_v27  ;;  %v1124_v29 = vpop.f32.mrb[85].mxu0 }
 0x1ab   : > { %v1727_v34 = vmax.f32 %v1699_v26, 0.0  ;;  %1335 = vst [vmem:[#allocation2 + $0x2a0] sm:$0xff] %v1124_v29  ;;  %v8807_v35 = vpop.f32.mrb[86].mxu0  ;;  %v10255_v37 = vsel %vm2124_vm0, %v2187_v30, %v2191_v33  ;;  %v1409_v40 = vld [vmem:[#allocation2 + $0x290] ss:$2 sm:$0xff]  ;;  %v2195_v6 = vor.u32 %v2193_v0, %v2191_v33 }
 0x1ac   : > { %1338 = vst [vmem:[#allocation2 + $0x2b8] sm:$0xff] %v8807_v35  ;;  %v1127_v36 = vpop.f32.mrb[87].mxu0  ;;  %3445 = vmatprep.mubr.bf16.mxu1 %v10255_v37  ;;  %4056 = vmatprep.mubr.bf16.mxu0 %v10255_v37  ;;  %v1465_v41 = vld [vmem:[#allocation2 + $0x291] ss:$2 sm:$0xff]  ;;  %v1407_v43 = vld [vmem:[#allocation2 + $0x280] ss:$2 sm:$0xff] }
 0x1ad   : > { %v7659_v39 = vpack.c.bf16 %v1728_v28, %v1727_v34  ;;  %1336 = vst [vmem:[#allocation2 + $0x2a8] sm:$0xff] %v1127_v36  ;;  %3446 = vmatmul.mubr.bf16.gmra.mrb[24].mxu1 %v10257_v38  ;;  %4057 = vmatmul.mubr.bf16.gmra.mrb[144].mxu0 %v10257_v38  ;;  %v1463_v44 = vld [vmem:[#allocation2 + $0x281] ss:$2 sm:$0xff]  ;;  %v1499_v51 = vmax.f32 %v1409_v40, %v1465_v41 }
 0x1ae   : > { %v1498_v56 = vmax.f32 %v1407_v43, %v1463_v44 }
 0x1af   : > { %7714 = vst [vmem:[#allocation3 + $0x48] sm:$0xff] %v7659_v39  }
 0x1b1   : > { %v8810_v42 = vpop.f32.mrb[88].mxu0 }
 0x1b2   : > { %1341 = vst [vmem:[#allocation2 + $0x2d0] sm:$0xff] %v8810_v42  ;;  %v1140_v45 = vpop.f32.mrb[89].mxu0 }
 0x1b3   : > { %v1549_v46 = vld [vmem:[#allocation2 + $0x2b0] ss:$2 sm:$0xff]  ;;  %v1605_v47 = vld [vmem:[#allocation2 + $0x2b1] ss:$2 sm:$0xff]  ;;  %1339 = vst [vmem:[#allocation2 + $0x2c0] sm:$0xff] %v1140_v45  ;;  %v8811_v50 = vpop.f32.mrb[90].mxu0 }
 0x1b4   : > { %v1639_v52 = vmax.f32 %v1549_v46, %v1605_v47  ;;  %v1547_v53 = vld [vmem:[#allocation2 + $0x2a0] ss:$2 sm:$0xff]  ;;  %v1603_v54 = vld [vmem:[#allocation2 + $0x2a1] ss:$2 sm:$0xff]  ;;  %1342 = vst [vmem:[#allocation2 + $0x2d8] sm:$0xff] %v8811_v50  ;;  %v1143_v55 = vpop.f32.mrb[91].mxu0 }
 0x1b5   : > { %v1638_v58 = vmax.f32 %v1547_v53, %v1603_v54  ;;  %1340 = vst [vmem:[#allocation2 + $0x2c8] sm:$0xff] %v1143_v55 }
 0x1b6   : > { %v1667_v59 = vmax.f32 %v1499_v51, %v1639_v52  ;;  %v9590_v62 = vld [vmem:[#allocation3 + $0x48] sm:$0xff]  }
 0x1b7   : > { %v1666_v57 = vmax.f32 %v1498_v56, %v1638_v58  ;;  %v2197_v1 = vshll.u32 %v9590_v62, 16  ;;  %v2201_v43 = vshrl.u32 %v9590_v62, 16  ;;  %v10279_v58 = vld [vmem:[#allocation3 + $0x48] sm:$0xff]  }
 0x1b8   : > { %v1702_v63 = vadd.f32 %v10250_v20, %v1667_v59 }
 0x1b9   : > { %v1701_v2 = vadd.f32 %v10250_v20, %v1666_v57  ;;  %v8814_v3 = vpop.f32.mrb[92].mxu0  ;;  %v2199_v7 = vrot.slane %v2197_v1, 1 }
 0x1ba   : > { %v1730_v4 = vmax.f32 %v1702_v63, 0.0  ;;  %1345 = vst [vmem:[#allocation2 + $0x2f0] sm:$0xff] %v8814_v3  ;;  %v1156_v5 = vpop.f32.mrb[93].mxu0 }
 0x1bb   : > { %v1729_v10 = vmax.f32 %v1701_v2, 0.0  ;;  %1343 = vst [vmem:[#allocation2 + $0x2e0] sm:$0xff] %v1156_v5  ;;  %v8815_v11 = vpop.f32.mrb[94].mxu0  ;;  %v10266_v13 = vsel %vm2124_vm0, %v2195_v6, %v2199_v7  ;;  %v1413_v16 = vld [vmem:[#allocation2 + $0x2d0] ss:$2 sm:$0xff]  ;;  %v2203_v51 = vor.u32 %v2201_v43, %v2199_v7  ;;  %v9624_v43 = vld [vmem:[#allocation3 + $0x8] sm:$0xff]  }
 0x1bc   : > { %1346 = vst [vmem:[#allocation2 + $0x2f8] sm:$0xff] %v8815_v11  ;;  %v1159_v12 = vpop.f32.mrb[95].mxu0  ;;  %3453 = vmatprep.mubr.bf16.mxu1 %v10266_v13  ;;  %4064 = vmatprep.mubr.bf16.mxu0 %v10266_v13  ;;  %v1469_v17 = vld [vmem:[#allocation2 + $0x2d1] ss:$2 sm:$0xff]  ;;  %v1411_v19 = vld [vmem:[#allocation2 + $0x2c0] ss:$2 sm:$0xff] }
 0x1bd   : > { %v7664_v15 = vpack.c.bf16 %v1730_v4, %v1729_v10  ;;  %1344 = vst [vmem:[#allocation2 + $0x2e8] sm:$0xff] %v1159_v12  ;;  %3454 = vmatmul.mubr.bf16.gmra.mrb[28].mxu1 %v10268_v14  ;;  %4065 = vmatmul.mubr.bf16.gmra.mrb[148].mxu0 %v10268_v14  ;;  %v1467_v23 = vld [vmem:[#allocation2 + $0x2c1] ss:$2 sm:$0xff]  ;;  %v1501_v28 = vmax.f32 %v1413_v16, %v1469_v17 }
 0x1be   : > { %v1500_v35 = vmax.f32 %v1411_v19, %v1467_v23 }
 0x1bf   : > { %7715 = vst [vmem:[#allocation3 + $0x50] sm:$0xff] %v7664_v15  }
 0x1c1   : > { %v8818_v18 = vpop.f32.mrb[96].mxu0 }
 0x1c2   : > { %1349 = vst [vmem:[#allocation2 + $0x310] sm:$0xff] %v8818_v18  ;;  %v1172_v24 = vpop.f32.mrb[97].mxu0 }
 0x1c3   : > { %v1553_v25 = vld [vmem:[#allocation2 + $0x2f0] ss:$2 sm:$0xff]  ;;  %v1609_v26 = vld [vmem:[#allocation2 + $0x2f1] ss:$2 sm:$0xff]  ;;  %1347 = vst [vmem:[#allocation2 + $0x300] sm:$0xff] %v1172_v24  ;;  %v8819_v27 = vpop.f32.mrb[98].mxu0 }
 0x1c4   : > { %v1641_v29 = vmax.f32 %v1553_v25, %v1609_v26  ;;  %v1551_v30 = vld [vmem:[#allocation2 + $0x2e0] ss:$2 sm:$0xff]  ;;  %v1607_v33 = vld [vmem:[#allocation2 + $0x2e1] ss:$2 sm:$0xff]  ;;  %1350 = vst [vmem:[#allocation2 + $0x318] sm:$0xff] %v8819_v27  ;;  %v1175_v34 = vpop.f32.mrb[99].mxu0 }
 0x1c5   : > { %v1640_v36 = vmax.f32 %v1551_v30, %v1607_v33  ;;  %1348 = vst [vmem:[#allocation2 + $0x308] sm:$0xff] %v1175_v34 }
 0x1c6   : > { %v1669_v39 = vmax.f32 %v1501_v28, %v1641_v29  ;;  %v9600_v40 = vld [vmem:[#allocation3 + $0x50] sm:$0xff]  }
 0x1c7   : > { %v1668_v41 = vmax.f32 %v1500_v35, %v1640_v36  ;;  %v2205_v44 = vshll.u32 %v9600_v40, 16  ;;  %v2209_v24 = vshrl.u32 %v9600_v40, 16  ;;  %v10296_v40 = vld [vmem:[#allocation3 + $0x50] sm:$0xff]  }
 0x1c8   : > { %v1704_v42 = vadd.f32 %v10250_v20, %v1669_v39 }
 0x1c9   : > { %v1703_v45 = vadd.f32 %v10250_v20, %v1668_v41  ;;  %v8822_v46 = vpop.f32.mrb[100].mxu0  ;;  %v2207_v52 = vrot.slane %v2205_v44, 1 }
 0x1ca   : > { %v1732_v47 = vmax.f32 %v1704_v42, 0.0  ;;  %1353 = vst [vmem:[#allocation2 + $0x330] sm:$0xff] %v8822_v46  ;;  %v1188_v50 = vpop.f32.mrb[101].mxu0  ;;  %v9625_v42 = vld [vmem:[#allocation3 + $0x10] sm:$0xff]  }
 0x1cb   : > { %v1731_v53 = vmax.f32 %v1703_v45, 0.0  ;;  %1351 = vst [vmem:[#allocation2 + $0x320] sm:$0xff] %v1188_v50  ;;  %v8823_v54 = vpop.f32.mrb[102].mxu0  ;;  %v10277_v56 = vsel %vm2124_vm0, %v2203_v51, %v2207_v52  ;;  %v1417_v62 = vld [vmem:[#allocation2 + $0x310] ss:$2 sm:$0xff]  ;;  %v2211_v30 = vor.u32 %v2209_v24, %v2207_v52  ;;  %v2578_v50 = vshrl.u32 %v9625_v42, 16 }
 0x1cc   : > { %1354 = vst [vmem:[#allocation2 + $0x338] sm:$0xff] %v8823_v54  ;;  %v1191_v55 = vpop.f32.mrb[103].mxu0  ;;  %3461 = vmatprep.mubr.bf16.mxu1 %v10277_v56  ;;  %4072 = vmatprep.mubr.bf16.mxu0 %v10277_v56  ;;  %v1473_v57 = vld [vmem:[#allocation2 + $0x311] ss:$2 sm:$0xff]  ;;  %v1415_v0 = vld [vmem:[#allocation2 + $0x300] ss:$2 sm:$0xff] }
 0x1cd   : > { %v7669_v59 = vpack.c.bf16 %v1732_v47, %v1731_v53  ;;  %1352 = vst [vmem:[#allocation2 + $0x328] sm:$0xff] %v1191_v55  ;;  %3462 = vmatmul.mubr.bf16.gmra.mrb[32].mxu1 %v10279_v58  ;;  %4073 = vmatmul.mubr.bf16.gmra.mrb[152].mxu0 %v10279_v58  ;;  %v1471_v1 = vld [vmem:[#allocation2 + $0x301] ss:$2 sm:$0xff]  ;;  %v1503_v6 = vmax.f32 %v1417_v62, %v1473_v57  ;;  %v2581_v51 = vshll.u32 %v9625_v42, 16  ;;  %v2569_v54 = vshrl.u32 %v9624_v43, 16 }
 0x1ce   : > { %v1502_v15 = vmax.f32 %v1415_v0, %v1471_v1  ;;  %v2572_v55 = vshll.u32 %v9624_v43, 16  ;;  %v9644_v1 = vld [vmem:[%s12061_s3 + $0x300] sm:$0xff]  }
 0x1cf   : > { %7716 = vst [vmem:[#allocation3 + $0x58] sm:$0xff] %v7669_v59  }
 0x1d0   : > { %v2574_v24 = vrot.slane %v2572_v55, 2 }
 0x1d1   : > { %v8826_v63 = vpop.f32.mrb[104].mxu0 }
 0x1d2   : > { %1357 = vst [vmem:[#allocation2 + $0x350] sm:$0xff] %v8826_v63  ;;  %v1204_v2 = vpop.f32.mrb[105].mxu0 }
 0x1d3   : > { %v1557_v3 = vld [vmem:[#allocation2 + $0x330] ss:$2 sm:$0xff]  ;;  %v1613_v4 = vld [vmem:[#allocation2 + $0x331] ss:$2 sm:$0xff]  ;;  %1355 = vst [vmem:[#allocation2 + $0x340] sm:$0xff] %v1204_v2  ;;  %v8827_v5 = vpop.f32.mrb[106].mxu0 }
 0x1d4   : > { %v1643_v7 = vmax.f32 %v1557_v3, %v1613_v4  ;;  %v1555_v10 = vld [vmem:[#allocation2 + $0x320] ss:$2 sm:$0xff]  ;;  %v1611_v11 = vld [vmem:[#allocation2 + $0x321] ss:$2 sm:$0xff]  ;;  %1358 = vst [vmem:[#allocation2 + $0x358] sm:$0xff] %v8827_v5  ;;  %v1207_v12 = vpop.f32.mrb[107].mxu0 }
 0x1d5   : > { %v1642_v16 = vmax.f32 %v1555_v10, %v1611_v11  ;;  %1356 = vst [vmem:[#allocation2 + $0x348] sm:$0xff] %v1207_v12  ;;  %v9646_v5 = vld [vmem:[%s12061_s3 + $0x348] sm:$0xff]   ;;  %v2583_v10 = vrot.slane %v2581_v51, 2  ;;  %v9629_v11 = vld [vmem:[#allocation3 + $0x18] sm:$0xff]  }
 0x1d6   : > { %v1671_v17 = vmax.f32 %v1503_v6, %v1643_v7  ;;  %v10285_v18 = vld [vmem:[#allocation3 + $0x58] sm:$0xff]   ;;  %v2580_v7 = vrot.slane %v2578_v50, 1  ;;  %v9647_v12 = vld [vmem:[%s12061_s3 + $0x308] sm:$0xff]   ;;  %v9631_v50 = vld [vmem:[#allocation3 + $0x20] sm:$0xff]  }
 0x1d7   : > { %v1670_v19 = vmax.f32 %v1502_v15, %v1642_v16  ;;  %v2213_v25 = vshll.u32 %v10285_v18, 16  ;;  %v9815_v16 = vld [vmem:[#allocation3 + $0x10] sm:$0xff]   ;;  %v9652_v51 = vld [vmem:[%s12061_s3 + $0x358] sm:$0xff]  }
 0x1d8   : > { %v1706_v23 = vadd.f32 %v10250_v20, %v1671_v17 }
 0x1d9   : > { %v1705_v26 = vadd.f32 %v10250_v20, %v1670_v19  ;;  %v8830_v27 = vpop.f32.mrb[108].mxu0  ;;  %v10290_v33 = vrot.slane %v2213_v25, 1  ;;  %v2571_v19 = vrot.slane %v2569_v54, 1  ;;  %v9649_v25 = vld [vmem:[%s12061_s3 + $0x350] sm:$0xff]  }
 0x1da   : > { %v1734_v28 = vmax.f32 %v1706_v23, 0.0  ;;  %1361 = vst [vmem:[#allocation2 + $0x370] sm:$0xff] %v8830_v27  ;;  %v1220_v29 = vpop.f32.mrb[109].mxu0  ;;  %v2217_v27 = vshrl.u32 %v10285_v18, 16 }
 0x1db   : > { %v1733_v34 = vmax.f32 %v1705_v26, 0.0  ;;  %1359 = vst [vmem:[#allocation2 + $0x360] sm:$0xff] %v1220_v29  ;;  %v8831_v35 = vpop.f32.mrb[110].mxu0  ;;  %v10294_v39 = vsel %vm2124_vm0, %v2211_v30, %v10290_v33  ;;  %v1421_v44 = vld [vmem:[#allocation2 + $0x350] ss:$2 sm:$0xff]  ;;  %v2584_v30 = vor.u32 %v2583_v10, %v2580_v7  ;;  %v10325_v18 = vor.u32 %v2574_v24, %v2571_v19  ;;  %v9659_v7 = vld [vmem:[%s12061_s3 + $0x320] sm:$0xff]  }
 0x1dc   : > { %1362 = vst [vmem:[#allocation2 + $0x378] sm:$0xff] %v8831_v35  ;;  %v1223_v36 = vpop.f32.mrb[111].mxu0  ;;  %3469 = vmatprep.mubr.bf16.mxu1 %v10294_v39  ;;  %4080 = vmatprep.mubr.bf16.mxu0 %v10294_v39  ;;  %v1477_v45 = vld [vmem:[#allocation2 + $0x351] ss:$2 sm:$0xff]  ;;  %v1419_v46 = vld [vmem:[#allocation2 + $0x340] ss:$2 sm:$0xff] }
 0x1dd   : > { %v7674_v41 = vpack.c.bf16 %v1734_v28, %v1733_v34  ;;  %1360 = vst [vmem:[#allocation2 + $0x368] sm:$0xff] %v1223_v36  ;;  %3470 = vmatmul.mubr.bf16.gmra.mrb[36].mxu1 %v10296_v40  ;;  %4081 = vmatmul.mubr.bf16.gmra.mrb[156].mxu0 %v10296_v40  ;;  %v1475_v47 = vld [vmem:[#allocation2 + $0x341] ss:$2 sm:$0xff]  ;;  %v1505_v53 = vmax.f32 %v1421_v44, %v1477_v45  ;;  %v2587_v34 = vshrl.u32 %v9629_v11, 16  ;;  %v2590_v35 = vshll.u32 %v9629_v11, 16  ;;  %v9635_v24 = vld [vmem:[%s12061_s3 + $0x250] sm:$0xff]  }
 0x1de   : > { %4739 = vmatprep.mubr.bf16.mxu0 %v10159_v31  ;;  %v1504_v62 = vmax.f32 %v1419_v46, %v1475_v47  ;;  %v10323_v46 = vld [vmem:[#allocation3 + $0x58] sm:$0xff]  }
 0x1df   : > { %7717 = vst [vmem:[#allocation3 + $0x60] sm:$0xff] %v7674_v41   ;;  %v2219_v41 = vor.u32 %v2217_v27, %v10290_v33  ;;  %v9627_v33 = vld [vmem:[#allocation3 + $0x10] sm:$0xff]   ;;  %v2589_v54 = vrot.slane %v2587_v34, 1  ;;  %v2592_v55 = vrot.slane %v2590_v35, 2  ;;  %v9633_v27 = vld [vmem:[#allocation3 + $0x20] sm:$0xff]  }
 0x1e0   : > { %v9637_v35 = vld [vmem:[#allocation3 + $0x30] sm:$0xff]  }
 0x1e1   : > { %v8834_v52 = vpop.f32.mrb[112].mxu0 }
 0x1e2   : > { %v1236_v59 = vpop.f32.mrb[113].mxu0 }
 0x1e3   : > { %v1561_v57 = vld [vmem:[#allocation2 + $0x370] ss:$2 sm:$0xff]  ;;  %v1617_v63 = vld [vmem:[#allocation2 + $0x371] ss:$2 sm:$0xff]  ;;  %v8835_v0 = vpop.f32.mrb[114].mxu0  ;;  %v10344_v59 = vld [vmem:[#allocation3 + $0x8] sm:$0xff]  }
 0x1e4   : > { %v1645_v2 = vmax.f32 %v1561_v57, %v1617_v63  ;;  %v1559_v3 = vld [vmem:[#allocation2 + $0x360] ss:$2 sm:$0xff]  ;;  %v1615_v31 = vld [vmem:[#allocation2 + $0x361] ss:$2 sm:$0xff]  ;;  %v1239_v4 = vpop.f32.mrb[115].mxu0  ;;  %v2392_v57 = vrot.slane %v9627_v33, 1  ;;  %v2593_v0 = vor.u32 %v2592_v55, %v2589_v54 }
 0x1e5   : > { %v1644_v6 = vmax.f32 %v1559_v3, %v1615_v31  ;;  %4740 = vmatmul.mubr.bf16.vlgmr.msra.gmra.mrb[160].mxu0 %v9815_v16  ;;  %v9656_v63 = vld [vmem:[%s12061_s3 + $0x360] sm:$0xff]   ;;  %v9630_v4 = vld [vmem:[#allocation3 + $0x18] sm:$0xff]   ;;  %v9661_v16 = vld [vmem:[%s12061_s3 + $0x328] sm:$0xff]  }
 0x1e6   : > { %v1673_v15 = vmax.f32 %v1505_v53, %v1645_v2  ;;  %v9622_v17 = vld [vmem:[#allocation3 + $0x60] sm:$0xff]   ;;  %4747 = vmatprep.mubr.bf16.mxu0 %v10189_v8  ;;  %8238 = vmatpush3.bf16.msra.mxu0 %v9644_v1  ;;  %v10340_v53 = vsel %vm2559_vm1, %v10325_v18, %v2584_v30  ;;  %v2599_v1 = vshll.u32 %v9631_v50, 16  ;;  %v12064_v2 = vrot.slane %v10344_v59, 1 }
 0x1e7   : > { %v1672_v23 = vmax.f32 %v1504_v62, %v1644_v6  ;;  %v2221_v28 = vshll.u32 %v9622_v17, 16  ;;  %8239 = vmatprep.subr.bf16.mxu0 %v9646_v5  ;;  %v2225_v43 = vshrl.u32 %v9622_v17, 16  ;;  %v9653_v62 = vld [vmem:[%s12061_s3 + $0x318] sm:$0xff]   ;;  %v9628_v3 = vld [vmem:[%s12061_s3 + $0x240] sm:$0xff]   ;;  %v9634_v6 = vld [vmem:[#allocation3 + $0x28] sm:$0xff]   ;;  %v10367_v10 = vsel %vm2559_vm1, %v2584_v30, %v2593_v0 }
 0x1e8   : > { %v1708_v26 = vadd.f32 %v10250_v20, %v1673_v15  ;;  %v10359_v31 = vsel %vm2388_vm2, %v12064_v2, %v2392_v57  ;;  %v2601_v11 = vrot.slane %v2599_v1, 2  ;;  %v9632_v15 = vld [vmem:[%s12061_s3 + $0x248] sm:$0xff]   ;;  %v2605_v19 = vshrl.u32 %v9634_v6, 16  ;;  %v9645_v33 = vld [vmem:[%s12061_s3 + $0x260] sm:$0xff]  }
 0x1e9   : > { %v1707_v29 = vadd.f32 %v10250_v20, %v1672_v23  ;;  %v2223_v42 = vrot.slane %v2221_v28, 1  ;;  %v9651_v20 = vld [vmem:[%s12061_s3 + $0x310] sm:$0xff]   ;;  %v2608_v23 = vshll.u32 %v9634_v6, 16 }
 0x1ea   : > { %v1736_v36 = vmax.f32 %v1708_v26, 0.0  ;;  %8240 = vmatpush3.bf16.msra.mxu0 %v9647_v12  ;;  %v9660_v12 = vld [vmem:[%s12061_s3 + $0x368] sm:$0xff]   ;;  %v9666_v28 = vld [vmem:[%s12061_s3 + $0x330] sm:$0xff]   ;;  %v2607_v30 = vrot.slane %v2605_v19, 1 }
 0x1eb   : > { %v1735_v44 = vmax.f32 %v1707_v29, 0.0  ;;  %v10321_v45 = vsel %vm2124_vm0, %v2219_v41, %v2223_v42  ;;  %8241 = vmatprep.subr.bf16.mxu0 %v9649_v25  ;;  %v10330_v47 = vor.u32 %v2225_v43, %v2223_v42  ;;  %v9664_v25 = vld [vmem:[%s12061_s3 + $0x370] sm:$0xff]   ;;  %v2610_v34 = vrot.slane %v2608_v23, 2  ;;  %v9640_v41 = vld [vmem:[%s12061_s3 + $0x258] sm:$0xff]  }
 0x1ec   : > { %3477 = vmatprep.mubr.bf16.mxu1 %v10321_v45  ;;  %v9669_v42 = vld [vmem:[%s12061_s3 + $0x338] sm:$0xff]  }
 0x1ed   : > { %v7679_v52 = vpack.c.bf16 %v1736_v36, %v1735_v44  ;;  %3478 = vmatmul.mubr.bf16.gmra.mrb[40].mxu1 %v10323_v46  ;;  %4748 = vmatmul.mubr.bf16.gmra.mrb[164].mxu0 %v10191_v9  ;;  %v2596_v9 = vshrl.u32 %v9631_v50, 16  ;;  %v9668_v36 = vld [vmem:[%s12061_s3 + $0x378] sm:$0xff]   ;;  %v2611_v43 = vor.u32 %v2610_v34, %v2607_v30  ;;  %v2614_v44 = vshrl.u32 %v9637_v35, 16  ;;  %v9689_v50 = vld [vmem:[%s12061_s3 + $0x400] sm:$0xff]  }
 0x1ee   : > { %3518 = vmatprep.mubr.bf16.mxu1 %v10340_v53  ;;  %4755 = vmatprep.mubr.bf16.mxu0 %v10214_v48  ;;  %v9641_v30 = vld [vmem:[#allocation3 + $0x38] sm:$0xff]  }
 0x1ef   : > { %7718 = vst [vmem:[#allocation3 + $0x68] sm:$0xff] %v7679_v52   ;;  %8242 = vmatpush3.bf16.msra.mxu0 %v9651_v20  ;;  %v2598_v5 = vrot.slane %v2596_v9, 1  ;;  %v2617_v20 = vshll.u32 %v9637_v35, 16  ;;  %v9636_v52 = vld [vmem:[#allocation3 + $0x28] sm:$0xff]   ;;  %v2616_v55 = vrot.slane %v2614_v44, 1  ;;  %v2402_v44 = vrot.slane %v9641_v30, 1 }
 0x1f0   : > { %8243 = vmatprep.subr.bf16.mxu0 %v9652_v51  ;;  %v9654_v9 = vld [vmem:[%s12061_s3 + $0x268] sm:$0xff]  }
 0x1f1   : > { %v2602_v17 = vor.u32 %v2601_v11, %v2598_v5  ;;  %v9638_v5 = vld [vmem:[#allocation3 + $0x30] sm:$0xff]   ;;  %v9650_v35 = vld [vmem:[#allocation3 + $0x48] sm:$0xff]  }
 0x1f3   : > { %8244 = vmatpush3.bf16.msra.mxu0 %v9653_v62  ;;  %v10397_v29 = vsel %vm2559_vm1, %v2593_v0, %v2602_v17  ;;  %v10424_v54 = vsel %vm2559_vm1, %v2602_v17, %v2611_v43  ;;  %v2619_v62 = vrot.slane %v2617_v20, 2  ;;  %v9674_v17 = vld [vmem:[%s12061_s3 + $0xc0] sm:$0xff]   ;;  %v2641_v20 = vshrl.u32 %v9650_v35, 16 }
 0x1f4   : > { %8245 = vmatprep.subr.bf16.mxu0 %v9656_v63  ;;  %12146 = vst [vmem:[#allocation6_spill] sm:$0xff] %v10397_v29  ;;  %12148 = vst [vmem:[#allocation8_spill] sm:$0xff] %v10424_v54  ;;  %v2398_v63 = vrot.slane %v9636_v52, 1 }
 0x1f5   : > { %3519 = vmatmul.mubr.bf16.vlgmr.msra.gmra.mrb[44].mxu1 %v10359_v31  ;;  %4756 = vmatmul.mubr.bf16.gmra.mrb[168].mxu0 %v10216_v49  ;;  %v2394_v49 = vrot.slane %v9630_v4, 1 }
 0x1f6   : > { %8837 = vmatpush3.bf16.msra.mxu1 %v9628_v3  ;;  %3526 = vmatprep.mubr.bf16.mxu1 %v10367_v10  ;;  %v9667_v3 = vld [vmem:[%s12061_s3 + $0x270] sm:$0xff]  }
 0x1f7   : > { %4763 = vmatprep.mubr.bf16.mxu0 %v10225_v21  ;;  %8838 = vmatprep.subr.bf16.mxu1 %v12065_v32  ;;  %v10389_v26 = vsel %vm2388_vm2, %v2392_v57, %v2394_v49  ;;  %v9639_v57 = vld [vmem:[#allocation3 + $0x38] sm:$0xff]  }
 0x1f8   : > { %8246 = vmatpush3.bf16.msra.mxu0 %v9659_v7  ;;  %v2623_v0 = vshrl.u32 %v9639_v57, 16  ;;  %v2626_v1 = vshll.u32 %v9639_v57, 16 }
 0x1f9   : > { %8247 = vmatprep.subr.bf16.mxu0 %v9660_v12  ;;  %v9643_v12 = vld [vmem:[#allocation3 + $0x40] sm:$0xff]  }
 0x1fa   : > { %8839 = vmatpush3.bf16.msra.mxu1 %v9632_v15  ;;  %v2625_v7 = vrot.slane %v2623_v0, 1  ;;  %v2628_v11 = vrot.slane %v2626_v1, 2  ;;  %v9835_v15 = vmov 0  }
 0x1fb   : > { %8840 = vmatprep.subr.bf16.mxu1 %v12065_v32  ;;  %1877 = vst [vmem:[#allocation3 + $0x70] sm:$0xf] %v9835_v15  ;;  %1878 = vst [vmem:[#allocation3 + $0x74] sm:$0xf] %v9835_v15 }
 0x1fc   : > { %8248 = vmatpush3.bf16.msra.mxu0 %v9661_v16  ;;  %1879 = vst [vmem:[#allocation3 + $0x78] sm:$0xf] %v9835_v15  ;;  %v2400_v16 = vrot.slane %v9638_v5, 1  ;;  %v2629_v23 = vor.u32 %v2628_v11, %v2625_v7 }
 0x1fd   : > { %3527 = vmatmul.mubr.bf16.gmra.mrb[48].mxu1 %v10389_v26  ;;  %4764 = vmatmul.mubr.bf16.gmra.mrb[172].mxu0 %v10227_v22  ;;  %v2396_v22 = vrot.slane %v9633_v27, 1 }
 0x1fe   : > { %3534 = vmatprep.mubr.bf16.mxu1 %v10397_v29  ;;  %4771 = vmatprep.mubr.bf16.mxu0 %v10236_v60  ;;  %v10468_v52 = vsel %vm2388_vm2, %v2400_v16, %v2402_v44 }
 0x1ff   : > { %8841 = vmatpush3.bf16.msra.mxu1 %v9635_v24  ;;  %8249 = vmatprep.subr.bf16.mxu0 %v9664_v25  ;;  %v10418_v51 = vsel %vm2388_vm2, %v2394_v49, %v2396_v22  ;;  %v10436_v4 = vsel %vm2388_vm2, %v2396_v22, %v2398_v63  ;;  %v9672_v49 = vld [vmem:[%s12061_s3 + $0x278] sm:$0xff]   ;;  %v2632_v24 = vshrl.u32 %v9643_v12, 16  ;;  %v2635_v25 = vshll.u32 %v9643_v12, 16  ;;  %12153 = vst [vmem:[#allocation13_spill] sm:$0xff] %v10468_v52  ;;  %v10477_v12 = vld [vmem:[#allocation3 + $0x68] sm:$0xff]  }
 0x200   : > { %8842 = vmatprep.subr.bf16.mxu1 %v12065_v32  ;;  %8250 = vmatpush3.bf16.msra.mxu0 %v9666_v28  ;;  %12147 = vst [vmem:[#allocation7_spill] sm:$0xff] %v10418_v51  ;;  %12149 = vst [vmem:[#allocation9_spill] sm:$0xff] %v10436_v4 }
 0x201   : > { %8251 = vmatprep.subr.bf16.mxu0 %v9668_v36 }
 0x203   : > { %8843 = vmatpush3.bf16.msra.mxu1 %v9640_v41  ;;  %v10458_v41 = vsel %vm2388_vm2, %v2398_v63, %v2400_v16 }
 0x204   : > { %8844 = vmatprep.subr.bf16.mxu1 %v12065_v32  ;;  %8252 = vmatpush3.bf16.msra.mxu0 %v9669_v42  ;;  %12151 = vst [vmem:[#allocation11_spill] sm:$0xff] %v10458_v41  ;;  %v2634_v42 = vrot.slane %v2632_v24, 1 }
 0x205   : > { %3535 = vmatmul.mubr.bf16.gmra.mrb[52].mxu1 %v10418_v51  ;;  %4772 = vmatmul.mubr.bf16.gmra.mrb[176].mxu0 %v10238_v61  ;;  %v2620_v61 = vor.u32 %v2619_v62, %v2616_v55  ;;  %v9648_v55 = vld [vmem:[#allocation3 + $0x40] sm:$0xff]   ;;  %v2643_v62 = vrot.slane %v2641_v20, 1 }
 0x206   : > { %3542 = vmatprep.mubr.bf16.mxu1 %v10424_v54  ;;  %4779 = vmatprep.mubr.bf16.mxu0 %v10255_v37  ;;  %v2404_v0 = vrot.slane %v9648_v55, 1 }
 0x207   : > { %8845 = vmatpush3.bf16.msra.mxu1 %v9645_v33  ;;  %8338 = vmatprep.subr.bf16.mxu0 %v9689_v50  ;;  %v10442_v6 = vsel %vm2559_vm1, %v2611_v43, %v2620_v61  ;;  %v10463_v22 = vsel %vm2559_vm1, %v2620_v61, %v2629_v23  ;;  %v2637_v43 = vrot.slane %v2635_v25, 2  ;;  %v2644_v33 = vshll.u32 %v9650_v35, 16  ;;  %v9655_v25 = vld [vmem:[#allocation3 + $0x48] sm:$0xff]  }
 0x208   : > { %8846 = vmatprep.subr.bf16.mxu1 %v12065_v32  ;;  %12150 = vst [vmem:[#allocation10_spill] sm:$0xff] %v10442_v6  ;;  %12152 = vst [vmem:[#allocation12_spill] sm:$0xff] %v10463_v22  ;;  %v10488_v24 = vsel %vm2388_vm2, %v2402_v44, %v2404_v0  ;;  %v2229_v35 = vshll.u32 %v10477_v12, 16 }
 0x209   : > { %v2638_v50 = vor.u32 %v2637_v43, %v2634_v42  ;;  %v2646_v57 = vrot.slane %v2644_v33, 2  ;;  %12156 = vst [vmem:[#allocation16_spill] sm:$0xff] %v10488_v24  ;;  %v9665_v42 = vld [vmem:[#allocation3 + $0x58] sm:$0xff]   ;;  %v2406_v43 = vrot.slane %v9655_v25, 1 }
 0x20a   : > { %v10498_v20 = vrot.slane %v2229_v35, 1  ;;  %v2659_v33 = vshrl.u32 %v9665_v42, 16  ;;  %v2662_v55 = vshll.u32 %v9665_v42, 16 }
 0x20b   : > { %8847 = vmatpush3.bf16.msra.mxu1 %v9654_v9  ;;  %v9657_v9 = vld [vmem:[#allocation3 + $0x50] sm:$0xff]   ;;  %v2647_v5 = vor.u32 %v2646_v57, %v2643_v62 }
 0x20c   : > { %8848 = vmatprep.subr.bf16.mxu1 %v12065_v32  ;;  %v2650_v7 = vshrl.u32 %v9657_v9, 16  ;;  %v2653_v11 = vshll.u32 %v9657_v9, 16  ;;  %12158 = vst [vmem:[#allocation18_spill] sm:$0xff] %v10498_v20  ;;  %v10511_v57 = vsel %vm2124_vm0, %v10330_v47, %v10498_v20  ;;  %v2661_v9 = vrot.slane %v2659_v33, 1 }
 0x20d   : > { %3543 = vmatmul.mubr.bf16.gmra.mrb[56].mxu1 %v10436_v4  ;;  %4780 = vmatmul.mubr.bf16.gmra.mrb[180].mxu0 %v10257_v38 }
 0x20e   : > { %3550 = vmatprep.mubr.bf16.mxu1 %v10442_v6  ;;  %4787 = vmatprep.mubr.bf16.mxu0 %v10266_v13  ;;  %v2652_v30 = vrot.slane %v2650_v7, 1 }
 0x20f   : > { %8849 = vmatpush3.bf16.msra.mxu1 %v9667_v3 }
 0x210   : > { %v7988_v38 = vpop.f32.mrb[116].mxu0  ;;  %8850 = vmatprep.subr.bf16.mxu1 %v12065_v32  ;;  %v9697_v32 = vld [vmem:[%s12061_s3 + $0x3d0] sm:$0xff]  }
 0x211   : > { %v7989_v19 = vpop.f32.mrb[117].mxu0 }
 0x212   : > { %v10453_v27 = vadd.f32 %v7989_v19, %v7988_v38  ;;  %v7991_v28 = vpop.f32.mrb[118].mxu0 }
 0x213   : > { %v7992_v34 = vpop.f32.mrb[119].mxu0  ;;  %8851 = vmatpush3.bf16.msra.mxu1 %v9672_v49 }
 0x214   : > { %v10455_v36 = vadd.f32 %v7992_v34, %v7991_v28  ;;  %8054 = vmatprep.subr.bf16.mxu1 %v9674_v17  ;;  %v10493_v28 = vsel %vm2559_vm1, %v2638_v50, %v2647_v5  ;;  %v2655_v34 = vrot.slane %v2653_v11, 2 }
 0x215   : > { %3551 = vmatmul.mubr.bf16.gmra.mrb[60].mxu1 %v10458_v41  ;;  %4788 = vmatmul.mubr.bf16.gmra.mrb[184].mxu0 %v10268_v14  ;;  %v10473_v14 = vsel %vm2559_vm1, %v2629_v23, %v2638_v50  ;;  %12157 = vst [vmem:[#allocation17_spill] sm:$0xff] %v10493_v28  ;;  %v9662_v50 = vld [vmem:[#allocation3 + $0x50] sm:$0xff]  }
 0x216   : > { %3558 = vmatprep.mubr.bf16.mxu1 %v10463_v22  ;;  %4795 = vmatprep.mubr.bf16.mxu0 %v10277_v56  ;;  %12154 = vst [vmem:[#allocation14_spill] sm:$0xff] %v10473_v14  ;;  %v2656_v44 = vor.u32 %v2655_v34, %v2652_v30  ;;  %v10519_v34 = vld [vmem:[#allocation3 + $0x60] sm:$0xff]  }
 0x217   : > { %12162 = vst [vmem:[#allocation22_spill] sm:$0xff] %v10519_v34 }
 0x218   : > { %v10506_v62 = vsel %vm2559_vm1, %v2647_v5, %v2656_v44 }
 0x219   : > { %12160 = vst [vmem:[#allocation20_spill] sm:$0xff] %v10506_v62 }
 0x21d   : > { %3559 = vmatmul.mubr.bf16.gmra.mrb[64].mxu1 %v10468_v52  ;;  %4796 = vmatmul.mubr.bf16.gmra.mrb[188].mxu0 %v10279_v58 }
 0x21e   : > { %3566 = vmatprep.mubr.bf16.mxu1 %v10473_v14  ;;  %4803 = vmatprep.mubr.bf16.mxu0 %v10294_v39 }
 0x220   : > { %v7805_v63 = vpop.f32.mrb[0].mxu1  ;;  %v7994_v61 = vpop.f32.mrb[120].mxu0 }
 0x221   : > { %v7806_v1 = vpop.f32.mrb[1].mxu1  ;;  %v7995_v3 = vpop.f32.mrb[121].mxu0 }
 0x222   : > { %v10479_v58 = vadd.f32 %v7806_v1, %v7805_v63  ;;  %v10481_v15 = vadd.f32 %v7995_v3, %v7994_v61  ;;  %v7808_v49 = vpop.f32.mrb[2].mxu1  ;;  %v7997_v38 = vpop.f32.mrb[122].mxu0  ;;  %v2664_v63 = vrot.slane %v2662_v55, 2  ;;  %v9671_v61 = vld [vmem:[#allocation3 + $0x60] sm:$0xff]   ;;  %v2408_v3 = vrot.slane %v9662_v50, 1  ;;  %v9670_v55 = vld [vmem:[#allocation3 + $0x58] sm:$0xff]  }
 0x223   : > { %v7809_v16 = vpop.f32.mrb[3].mxu1  ;;  %v7998_v17 = vpop.f32.mrb[123].mxu0  ;;  %v2668_v5 = vshrl.u32 %v9671_v61, 16 }
 0x224   : > { %v10483_v19 = vadd.f32 %v7809_v16, %v7808_v49  ;;  %v10485_v23 = vadd.f32 %v7998_v17, %v7997_v38  ;;  %v2665_v11 = vor.u32 %v2664_v63, %v2661_v9  ;;  %v2671_v49 = vshll.u32 %v9671_v61, 16 }
 0x225   : > { %3567 = vmatmul.mubr.bf16.gmra.mrb[68].mxu1 %v10488_v24  ;;  %4804 = vmatmul.mubr.bf16.gmra.mrb[192].mxu0 %v10296_v40  ;;  %v10501_v40 = vsel %vm2388_vm2, %v2404_v0, %v2406_v43  ;;  %v10526_v33 = vsel %vm2388_vm2, %v2406_v43, %v2408_v3  ;;  %v2670_v9 = vrot.slane %v2668_v5, 1  ;;  %v2410_v61 = vrot.slane %v9670_v55, 1  ;;  %v9690_v43 = vld [vmem:[%s12061_s3 + $0x3c0] sm:$0xff]  }
 0x226   : > { %12155 = vst [vmem:[#allocation15_spill] sm:$0xff] %v10485_v23  ;;  %3574 = vmatprep.mubr.bf16.mxu1 %v10493_v28  ;;  %4811 = vmatprep.mubr.bf16.mxu0 %v10321_v45  ;;  %12159 = vst [vmem:[#allocation19_spill] sm:$0xff] %v10501_v40  ;;  %v10531_v50 = vsel %vm2559_vm1, %v2656_v44, %v2665_v11  ;;  %v2673_v63 = vrot.slane %v2671_v49, 2  ;;  %v9693_v44 = vld [vmem:[%s12061_s3 + $0x408] sm:$0xff]  }
 0x227   : > { %12164 = vst [vmem:[#allocation24_spill] sm:$0xff] %v10526_v33  ;;  %12165 = vst [vmem:[#allocation25_spill] sm:$0xff] %v10531_v50 }
 0x22d   : > { %3575 = vmatmul.mubr.bf16.gmra.mrb[72].mxu1 %v10501_v40  ;;  %4812 = vmatmul.mubr.bf16.gmra.mrb[196].mxu0 %v10323_v46 }
 0x22e   : > { %3582 = vmatprep.mubr.bf16.mxu1 %v10506_v62  ;;  %4819 = vmatprep.mubr.bf16.mxu0 %v10511_v57 }
 0x230   : > { %v7811_v0 = vpop.f32.mrb[4].mxu1  ;;  %v8000_v1 = vpop.f32.mrb[124].mxu0 }
 0x231   : > { %v7812_v7 = vpop.f32.mrb[5].mxu1  ;;  %v8001_v46 = vpop.f32.mrb[125].mxu0 }
 0x232   : > { %v10515_v38 = vadd.f32 %v7812_v7, %v7811_v0  ;;  %v10517_v16 = vadd.f32 %v8001_v46, %v8000_v1  ;;  %v7814_v47 = vpop.f32.mrb[6].mxu1  ;;  %v8003_v17 = vpop.f32.mrb[126].mxu0  ;;  %v10535_v0 = vor.u32 %v2673_v63, %v2670_v9  ;;  %v10541_v1 = vsel %vm2388_vm2, %v2408_v3, %v2410_v61  ;;  %v10543_v7 = vld [vmem:[#allocation3 + $0x60] sm:$0xff]   ;;  %v9694_v3 = vld [vmem:[%s12061_s3 + $0x3c8] sm:$0xff]  }
 0x233   : > { %v7815_v25 = vpop.f32.mrb[7].mxu1  ;;  %v8004_v30 = vpop.f32.mrb[127].mxu0  ;;  %12166 = vst [vmem:[#allocation26_spill] sm:$0xff] %v10541_v1 }
 0x234   : > { %12161 = vst [vmem:[#allocation21_spill] sm:$0xff] %v10517_v16  ;;  %v10521_v35 = vadd.f32 %v7815_v25, %v7814_v47  ;;  %v10523_v42 = vadd.f32 %v8004_v30, %v8003_v17  ;;  %v10552_v46 = vsel %vm2559_vm1, %v2665_v11, %v10535_v0  ;;  %v9696_v17 = vld [vmem:[%s12061_s3 + $0x410] sm:$0xff]  }
 0x235   : > { %3583 = vmatmul.mubr.bf16.gmra.mrb[76].mxu1 %v10526_v33  ;;  %4820 = vmatmul.mubr.bf16.gmra.mrb[200].mxu0 %v10519_v34  ;;  %12167 = vst [vmem:[#allocation27_spill] sm:$0xff] %v10552_v46 }
 0x236   : > { %12163 = vst [vmem:[#allocation23_spill] sm:$0xff] %v10523_v42  ;;  %3590 = vmatprep.mubr.bf16.mxu1 %v10531_v50  ;;  %4860 = vmatprep.mubr.bf16.mxu0 %v10367_v10  ;;  %v12172_v42 = vrot.slane %v10543_v7, 1 }
 0x23d   : > { %3591 = vmatmul.mubr.bf16.gmra.mrb[80].mxu1 %v10541_v1  ;;  %4861 = vmatmul.mubr.bf16.vlgmr.msra.gmra.mrb[204].mxu0 %v10389_v26 }
 0x23e   : > { %3598 = vmatprep.mubr.bf16.mxu1 %v10552_v46  ;;  %4868 = vmatprep.mubr.bf16.mxu0 %v10397_v29 }
 0x23f   : > { %8339 = vmatpush3.bf16.msra.mxu0 %v9690_v43 }
 0x240   : > { %v7817_v5 = vpop.f32.mrb[8].mxu1  ;;  %v8006_v49 = vpop.f32.mrb[128].mxu0  ;;  %8340 = vmatprep.subr.bf16.mxu0 %v9693_v44 }
 0x241   : > { %v7818_v11 = vpop.f32.mrb[9].mxu1  ;;  %v8007_v25 = vpop.f32.mrb[129].mxu0 }
 0x242   : > { %v10563_v30 = vadd.f32 %v7818_v11, %v7817_v5  ;;  %v10565_v55 = vadd.f32 %v8007_v25, %v8006_v49  ;;  %v7820_v9 = vpop.f32.mrb[10].mxu1  ;;  %v8009_v63 = vpop.f32.mrb[130].mxu0  ;;  %v10577_v5 = vsel %vm2388_vm2, %v2410_v61, %v12172_v42  ;;  %v9676_v49 = vld [vmem:[#allocation3 + $0x10] sm:$0xff]   ;;  %v9698_v11 = vld [vmem:[%s12061_s3 + $0x418] sm:$0xff]  }
 0x243   : > { %v7821_v43 = vpop.f32.mrb[11].mxu1  ;;  %v8010_v2 = vpop.f32.mrb[131].mxu0  ;;  %8341 = vmatpush3.bf16.msra.mxu0 %v9694_v3  ;;  %12173 = vst [vmem:[#allocation32_spill] sm:$0xff] %v10577_v5  ;;  %v10587_v3 = vld [vmem:[#allocation3 + $0x8] sm:$0xff]   ;;  %v9699_v42 = vld [vmem:[%s12061_s3 + $0x3d8] sm:$0xff]   ;;  %v2846_v61 = vrot.slane %v9676_v49, 2 }
 0x244   : > { %12168 = vst [vmem:[#allocation28_spill] sm:$0xff] %v10563_v30  ;;  %12169 = vst [vmem:[#allocation29_spill] sm:$0xff] %v10565_v55  ;;  %v10570_v44 = vadd.f32 %v7821_v43, %v7820_v9  ;;  %v10572_v47 = vadd.f32 %v8010_v2, %v8009_v63  ;;  %8342 = vmatprep.subr.bf16.mxu0 %v9696_v17  ;;  %v12174_v2 = vmov 0.0   ;;  %v9703_v17 = vld [vmem:[%s12061_s3 + $0x420] sm:$0xff]   ;;  %v12067_v25 = vrot.slane %v10587_v3, 2  ;;  %v9678_v43 = vld [vmem:[#allocation3 + $0x18] sm:$0xff]  }
 0x245   : > { %3599 = vmatmul.mubr.bf16.gmra.mrb[84].mxu1 %v10577_v5  ;;  %4869 = vmatmul.mubr.bf16.gmra.mrb[208].mxu0 %v10418_v51  ;;  %12175 = vst [vmem:[#allocation33_spill] sm:$0xff] %v10587_v3  ;;  %v9677_v9 = vld [vmem:[%s12061_s3 + $0x80] sm:$0xff]   ;;  %v2848_v3 = vrot.slane %v9678_v43, 2  ;;  %v9683_v43 = vld [vmem:[%s12061_s3 + $0x90] sm:$0xff]  }
 0x246   : > { %12170 = vst [vmem:[#allocation30_spill] sm:$0xff] %v10570_v44  ;;  %12171 = vst [vmem:[#allocation31_spill] sm:$0xff] %v10572_v47  ;;  %4876 = vmatprep.mubr.bf16.mxu0 %v10424_v54  ;;  %8852 = vmatprep.mubr.msk.bf16.mxu1 %vm9836_vm3, %v12174_v2  ;;  %v10605_v63 = vsel %vm2842_vm4, %v12067_v25, %v2846_v61  ;;  %v9705_v49 = vld [vmem:[%s12061_s3 + $0x3e0] sm:$0xff]  }
 0x247   : > { %8343 = vmatpush3.bf16.msra.mxu0 %v9697_v32  ;;  %v9679_v32 = vld [vmem:[%s12061_s3 + $0xc8] sm:$0xff]   ;;  %12176 = vst [vmem:[#allocation34_spill] sm:$0xff] %v10605_v63 }
 0x248   : > { %8344 = vmatprep.subr.bf16.mxu0 %v9698_v11  ;;  %v9706_v11 = vld [vmem:[%s12061_s3 + $0x428] sm:$0xff]  }
 0x24b   : > { %8345 = vmatpush3.bf16.msra.mxu0 %v9699_v42  ;;  %v9680_v42 = vld [vmem:[%s12061_s3 + $0x88] sm:$0xff]  }
 0x24c   : > { %8346 = vmatprep.subr.bf16.mxu0 %v9703_v17  ;;  %v9682_v17 = vld [vmem:[%s12061_s3 + $0xd0] sm:$0xff]  }
 0x24d   : > { %8853 = vmatmul.mubr.bf16.vlgmr.msra.gmra.mrb[88].mxu1 %v10605_v63  ;;  %4877 = vmatmul.mubr.bf16.gmra.mrb[212].mxu0 %v10436_v4 }
 0x24e   : > { %8055 = vmatpush3.bf16.msra.mxu1 %v9677_v9  ;;  %4884 = vmatprep.mubr.bf16.mxu0 %v10442_v6  ;;  %v9707_v9 = vld [vmem:[%s12061_s3 + $0x3e8] sm:$0xff]  }
 0x24f   : > { %8856 = vmatprep.mubr.msk.bf16.mxu1 %vm9836_vm3, %v12174_v2  ;;  %8056 = vmatprep.subr.bf16.mxu1 %v9679_v32 }
 0x250   : > { %v7823_v25 = vpop.f32.mrb[12].mxu1  ;;  %v8012_v63 = vpop.f32.mrb[132].mxu0  ;;  %8347 = vmatpush3.bf16.msra.mxu0 %v9705_v49  ;;  %v9711_v49 = vld [vmem:[%s12061_s3 + $0x430] sm:$0xff]  }
 0x251   : > { %v7824_v47 = vpop.f32.mrb[13].mxu1  ;;  %v8013_v55 = vpop.f32.mrb[133].mxu0  ;;  %8348 = vmatprep.subr.bf16.mxu0 %v9706_v11  ;;  %v9713_v11 = vld [vmem:[%s12061_s3 + $0x3f0] sm:$0xff]  }
 0x252   : > { %v10627_v16 = vadd.f32 %v7824_v47, %v7823_v25  ;;  %v10629_v44 = vadd.f32 %v8013_v55, %v8012_v63  ;;  %v7826_v32 = vpop.f32.mrb[14].mxu1  ;;  %v8015_v34 = vpop.f32.mrb[134].mxu0  ;;  %8057 = vmatpush3.bf16.msra.mxu1 %v9680_v42  ;;  %v10642_v55 = vsel %vm2842_vm4, %v2846_v61, %v2848_v3  ;;  %v9681_v25 = vld [vmem:[#allocation3 + $0x20] sm:$0xff]   ;;  %v9686_v63 = vld [vmem:[%s12061_s3 + $0xd8] sm:$0xff]  }
 0x253   : > { %v7827_v30 = vpop.f32.mrb[15].mxu1  ;;  %v8016_v23 = vpop.f32.mrb[135].mxu0  ;;  %8058 = vmatprep.subr.bf16.mxu1 %v9682_v17  ;;  %12180 = vst [vmem:[#allocation38_spill] sm:$0xff] %v10642_v55  ;;  %v9691_v61 = vld [vmem:[%s12061_s3 + $0xe0] sm:$0xff]   ;;  %v9716_v42 = vld [vmem:[%s12061_s3 + $0x3f8] sm:$0xff]  }
 0x254   : > { %12177 = vst [vmem:[#allocation35_spill] sm:$0xff] %v10629_v44  ;;  %v10637_v20 = vadd.f32 %v7827_v30, %v7826_v32  ;;  %v10639_v47 = vadd.f32 %v8016_v23, %v8015_v34  ;;  %8349 = vmatpush3.bf16.msra.mxu0 %v9707_v9  ;;  %v9715_v23 = vld [vmem:[%s12061_s3 + $0x438] sm:$0xff]   ;;  %v2850_v30 = vrot.slane %v9681_v25, 2  ;;  %v9692_v17 = vld [vmem:[%s12061_s3 + $0xa0] sm:$0xff]  }
 0x255   : > { %8857 = vmatmul.mubr.bf16.gmra.mrb[92].mxu1 %v10642_v55  ;;  %4885 = vmatmul.mubr.bf16.gmra.mrb[216].mxu0 %v10458_v41  ;;  %v9687_v34 = vld [vmem:[%s12061_s3 + $0x98] sm:$0xff]   ;;  %v9727_v9 = vld [vmem:[%s12061_s3 + $0x540] sm:$0xff]  }
 0x256   : > { %12178 = vst [vmem:[#allocation36_spill] sm:$0xff] %v10637_v20  ;;  %12179 = vst [vmem:[#allocation37_spill] sm:$0xff] %v10639_v47  ;;  %4892 = vmatprep.mubr.bf16.mxu0 %v10463_v22  ;;  %8860 = vmatprep.mubr.msk.bf16.mxu1 %vm9836_vm3, %v12174_v2  ;;  %v10674_v32 = vsel %vm2842_vm4, %v2848_v3, %v2850_v30  ;;  %v9701_v3 = vld [vmem:[%s12061_s3 + $0xa8] sm:$0xff]  }
 0x257   : > { %8059 = vmatpush3.bf16.msra.mxu1 %v9683_v43  ;;  %8350 = vmatprep.subr.bf16.mxu0 %v9711_v49  ;;  %12181 = vst [vmem:[#allocation39_spill] sm:$0xff] %v10674_v32  ;;  %v9684_v43 = vld [vmem:[#allocation3 + $0x28] sm:$0xff]  }
 0x258   : > { %8060 = vmatprep.subr.bf16.mxu1 %v9686_v63  ;;  %8351 = vmatpush3.bf16.msra.mxu0 %v9713_v11  ;;  %v9700_v49 = vld [vmem:[%s12061_s3 + $0xe8] sm:$0xff]   ;;  %v2852_v11 = vrot.slane %v9684_v43, 2 }
 0x259   : > { %8352 = vmatprep.subr.bf16.mxu0 %v9715_v23  ;;  %v9712_v23 = vld [vmem:[%s12061_s3 + $0xf0] sm:$0xff]  }
 0x25a   : > { %v10702_v20 = vsel %vm2842_vm4, %v2850_v30, %v2852_v11  ;;  %v9688_v30 = vld [vmem:[#allocation3 + $0x38] sm:$0xff]  }
 0x25b   : > { %8061 = vmatpush3.bf16.msra.mxu1 %v9687_v34  ;;  %12185 = vst [vmem:[#allocation43_spill] sm:$0xff] %v10702_v20 }
 0x25c   : > { %8062 = vmatprep.subr.bf16.mxu1 %v9691_v61  ;;  %8353 = vmatpush3.bf16.msra.mxu0 %v9716_v42 }
 0x25d   : > { %8861 = vmatmul.mubr.bf16.gmra.mrb[96].mxu1 %v10674_v32  ;;  %4893 = vmatmul.mubr.bf16.gmra.mrb[220].mxu0 %v10468_v52 }
 0x25e   : > { %4900 = vmatprep.mubr.bf16.mxu0 %v10473_v14  ;;  %8864 = vmatprep.mubr.msk.bf16.mxu1 %vm9836_vm3, %v12174_v2 }
 0x25f   : > { %8063 = vmatpush3.bf16.msra.mxu1 %v9692_v17  ;;  %8521 = vmatprep.subr.bf16.mxu0 %v9727_v9  ;;  %v9714_v9 = vld [vmem:[%s12061_s3 + $0xb0] sm:$0xff]  }
 0x260   : > { %v7829_v25 = vpop.f32.mrb[16].mxu1  ;;  %v8018_v63 = vpop.f32.mrb[136].mxu0  ;;  %8064 = vmatprep.subr.bf16.mxu1 %v9700_v49 }
 0x261   : > { %v7830_v34 = vpop.f32.mrb[17].mxu1  ;;  %v8019_v61 = vpop.f32.mrb[137].mxu0 }
 0x262   : > { %v10690_v42 = vadd.f32 %v7830_v34, %v7829_v25  ;;  %v10692_v32 = vadd.f32 %v8019_v61, %v8018_v63  ;;  %v7832_v17 = vpop.f32.mrb[18].mxu1  ;;  %v8021_v55 = vpop.f32.mrb[138].mxu0  ;;  %v9685_v25 = vld [vmem:[#allocation3 + $0x30] sm:$0xff]   ;;  %v9718_v63 = vld [vmem:[%s12061_s3 + $0xf8] sm:$0xff]   ;;  %v2856_v34 = vrot.slane %v9688_v30, 2  ;;  %v9704_v30 = vld [vmem:[#allocation3 + $0x68] sm:$0xff]  }
 0x263   : > { %v7833_v47 = vpop.f32.mrb[19].mxu1  ;;  %v8022_v44 = vpop.f32.mrb[139].mxu0  ;;  %8065 = vmatpush3.bf16.msra.mxu1 %v9701_v3 }
 0x264   : > { %12182 = vst [vmem:[#allocation40_spill] sm:$0xff] %v10692_v32  ;;  %v10697_v43 = vadd.f32 %v7833_v47, %v7832_v17  ;;  %v10699_v49 = vadd.f32 %v8022_v44, %v8021_v55  ;;  %8066 = vmatprep.subr.bf16.mxu1 %v9712_v23  ;;  %v9719_v44 = vld [vmem:[%s12061_s3 + $0xb8] sm:$0xff]   ;;  %v2854_v47 = vrot.slane %v9685_v25, 2 }
 0x265   : > { %8865 = vmatmul.mubr.bf16.gmra.mrb[100].mxu1 %v10702_v20  ;;  %4901 = vmatmul.mubr.bf16.gmra.mrb[224].mxu0 %v10488_v24 }
 0x266   : > { %12183 = vst [vmem:[#allocation41_spill] sm:$0xff] %v10697_v43  ;;  %12184 = vst [vmem:[#allocation42_spill] sm:$0xff] %v10699_v49  ;;  %4908 = vmatprep.mubr.bf16.mxu0 %v10493_v28  ;;  %8868 = vmatprep.mubr.msk.bf16.mxu1 %vm9836_vm3, %v12174_v2  ;;  %v10716_v55 = vsel %vm2842_vm4, %v2852_v11, %v2854_v47  ;;  %v10733_v32 = vsel %vm2842_vm4, %v2854_v47, %v2856_v34  ;;  %v9695_v43 = vld [vmem:[#allocation3 + $0x40] sm:$0xff]  }
 0x267   : > { %8067 = vmatpush3.bf16.msra.mxu1 %v9714_v9  ;;  %12186 = vst [vmem:[#allocation44_spill] sm:$0xff] %v10716_v55  ;;  %12191 = vst [vmem:[#allocation49_spill] sm:$0xff] %v10733_v32 }
 0x268   : > { %8068 = vmatprep.subr.bf16.mxu1 %v9718_v63 }
 0x26b   : > { %8069 = vmatpush3.bf16.msra.mxu1 %v9719_v44 }
 0x26c   : > { %8896 = vmatprep.subr.bf16.mxu1 %v12174_v2 }
 0x26d   : > { %8869 = vmatmul.mubr.bf16.gmra.mrb[104].mxu1 %v10716_v55  ;;  %4909 = vmatmul.mubr.bf16.gmra.mrb[228].mxu0 %v10501_v40 }
 0x26e   : > { %4916 = vmatprep.mubr.bf16.mxu0 %v10506_v62  ;;  %8872 = vmatprep.mubr.msk.bf16.mxu1 %vm9836_vm3, %v12174_v2 }
 0x270   : > { %v7835_v3 = vpop.f32.mrb[20].mxu1  ;;  %v8024_v23 = vpop.f32.mrb[140].mxu0 }
 0x271   : > { %v7836_v61 = vpop.f32.mrb[21].mxu1  ;;  %v8025_v17 = vpop.f32.mrb[141].mxu0 }
 0x272   : > { %v10724_v9 = vadd.f32 %v7836_v61, %v7835_v3  ;;  %v10726_v11 = vadd.f32 %v8025_v17, %v8024_v23  ;;  %v7838_v25 = vpop.f32.mrb[22].mxu1  ;;  %v8027_v63 = vpop.f32.mrb[142].mxu0  ;;  %v2858_v3 = vrot.slane %v9695_v43, 2  ;;  %v2677_v23 = vshrl.u32 %v9704_v30, 16  ;;  %v9702_v17 = vld [vmem:[#allocation3 + $0x48] sm:$0xff]  }
 0x273   : > { %v7839_v44 = vpop.f32.mrb[23].mxu1  ;;  %v8028_v55 = vpop.f32.mrb[143].mxu0  ;;  %v2680_v61 = vshll.u32 %v9704_v30, 16  ;;  %v2860_v43 = vrot.slane %v9702_v17, 2  ;;  %v9708_v17 = vld [vmem:[#allocation3 + $0x50] sm:$0xff]  }
 0x274   : > { %12187 = vst [vmem:[#allocation45_spill] sm:$0xff] %v10724_v9  ;;  %12188 = vst [vmem:[#allocation46_spill] sm:$0xff] %v10726_v11  ;;  %v10728_v20 = vadd.f32 %v7839_v44, %v7838_v25  ;;  %v10730_v49 = vadd.f32 %v8028_v55, %v8027_v63  ;;  %v10741_v55 = vsel %vm2842_vm4, %v2856_v34, %v2858_v3  ;;  %v2679_v47 = vrot.slane %v2677_v23, 1 }
 0x275   : > { %8873 = vmatmul.mubr.bf16.gmra.mrb[108].mxu1 %v10733_v32  ;;  %4917 = vmatmul.mubr.bf16.gmra.mrb[232].mxu0 %v10526_v33  ;;  %12192 = vst [vmem:[#allocation50_spill] sm:$0xff] %v10741_v55  ;;  %v2682_v25 = vrot.slane %v2680_v61, 2  ;;  %v10759_v9 = vsel %vm2842_vm4, %v2858_v3, %v2860_v43 }
 0x276   : > { %12189 = vst [vmem:[#allocation47_spill] sm:$0xff] %v10728_v20  ;;  %12190 = vst [vmem:[#allocation48_spill] sm:$0xff] %v10730_v49  ;;  %4924 = vmatprep.mubr.bf16.mxu0 %v10531_v50  ;;  %8876 = vmatprep.mubr.msk.bf16.mxu1 %vm9836_vm3, %v12174_v2  ;;  %v10761_v50 = vld [vmem:[#allocation3 + $0x68] sm:$0xff]  }
 0x277   : > { %v10748_v49 = vor.u32 %v2682_v25, %v2679_v47  ;;  %12194 = vst [vmem:[#allocation52_spill] sm:$0xff] %v10759_v9  ;;  %12195 = vst [vmem:[#allocation53_spill] sm:$0xff] %v10761_v50  ;;  %v12090_v3 = vrot.slane %v10761_v50, 1  ;;  %v12198_v47 = vrot.slane %v10543_v7, 1 }
 0x279   : > { %12193 = vst [vmem:[#allocation51_spill] sm:$0xff] %v10748_v49  ;;  %v10782_v25 = vsel %vm2388_vm2, %v12198_v47, %v12090_v3 }
 0x27a   : > { %12199 = vst [vmem:[#allocation56_spill] sm:$0xff] %v10782_v25 }
 0x27d   : > { %8877 = vmatmul.mubr.bf16.gmra.mrb[112].mxu1 %v10741_v55  ;;  %4925 = vmatmul.mubr.bf16.gmra.mrb[236].mxu0 %v10541_v1 }
 0x27e   : > { %4932 = vmatprep.mubr.bf16.mxu0 %v10552_v46  ;;  %8880 = vmatprep.mubr.msk.bf16.mxu1 %vm9836_vm3, %v12174_v2 }
 0x280   : > { %v7841_v63 = vpop.f32.mrb[24].mxu1  ;;  %v8030_v44 = vpop.f32.mrb[144].mxu0 }
 0x281   : > { %v7842_v32 = vpop.f32.mrb[25].mxu1  ;;  %v8031_v30 = vpop.f32.mrb[145].mxu0 }
 0x282   : > { %v10750_v34 = vadd.f32 %v7842_v32, %v7841_v63  ;;  %v10752_v11 = vadd.f32 %v8031_v30, %v8030_v44  ;;  %v7844_v55 = vpop.f32.mrb[26].mxu1  ;;  %v8033_v20 = vpop.f32.mrb[146].mxu0  ;;  %v10768_v32 = vsel %vm2559_vm1, %v10535_v0, %v10748_v49  ;;  %v9717_v0 = vld [vmem:[#allocation3 + $0x58] sm:$0xff]   ;;  %v9721_v63 = vld [vmem:[#allocation3] sm:$0xfe]  }
 0x283   : > { %v7845_v23 = vpop.f32.mrb[27].mxu1  ;;  %v8034_v61 = vpop.f32.mrb[147].mxu0  ;;  %12196 = vst [vmem:[#allocation54_spill] sm:$0xff] %v10768_v32  ;;  %v2864_v30 = vrot.slane %v9717_v0, 2 }
 0x284   : > { %v10754_v1 = vadd.f32 %v7845_v23, %v7844_v55  ;;  %v10756_v46 = vadd.f32 %v8034_v61, %v8033_v20  ;;  %v2862_v20 = vrot.slane %v9708_v17, 2 }
 0x285   : > { %8881 = vmatmul.mubr.bf16.gmra.mrb[116].mxu1 %v10759_v9  ;;  %4933 = vmatmul.mubr.bf16.gmra.mrb[240].mxu0 %v10577_v5 }
 0x286   : > { %4940 = vmatprep.mubr.bf16.mxu0 %v10768_v32  ;;  %8884 = vmatprep.mubr.msk.bf16.mxu1 %vm9836_vm3, %v12174_v2  ;;  %v10775_v55 = vsel %vm2842_vm4, %v2860_v43, %v2862_v20  ;;  %v2564_v32 = vshll.u32 %v9721_v63, 16  ;;  %v10801_v0 = vsel %vm2842_vm4, %v2862_v20, %v2864_v30  ;;  %v9731_v20 = vld [vmem:[%s12061_s3 + $0x508] sm:$0xff]  }
 0x287   : > { %12197 = vst [vmem:[#allocation55_spill] sm:$0xff] %v10775_v55  ;;  %12202 = vst [vmem:[#allocation59_spill] sm:$0xff] %v10801_v0 }
 0x28d   : > { %8885 = vmatmul.mubr.bf16.gmra.mrb[120].mxu1 %v10775_v55  ;;  %4941 = vmatmul.mubr.bf16.gmra.mrb[244].mxu0 %v10782_v25  ;;  %v2561_v25 = vshrl.u32 %v9721_v63, 16  ;;  %v9816_v63 = vld [vmem:[#allocation3 + $0x18] sm:$0xff]  }
 0x28e   : > { %5500 = vmatprep.mubr.bf16.mxu0 %v10189_v8  ;;  %8888 = vmatprep.mubr.msk.bf16.mxu1 %vm9836_vm3, %v12174_v2  ;;  %v9728_v8 = vld [vmem:[%s12061_s3 + $0x500] sm:$0xff]  }
 0x290   : > { %v7847_v44 = vpop.f32.mrb[28].mxu1  ;;  %v8036_v43 = vpop.f32.mrb[148].mxu0 }
 0x291   : > { %v7848_v23 = vpop.f32.mrb[29].mxu1  ;;  %v8037_v61 = vpop.f32.mrb[149].mxu0 }
 0x292   : > { %v10789_v7 = vadd.f32 %v7848_v23, %v7847_v44  ;;  %v10791_v17 = vadd.f32 %v8037_v61, %v8036_v43  ;;  %v7850_v47 = vpop.f32.mrb[30].mxu1  ;;  %v8039_v3 = vpop.f32.mrb[150].mxu0  ;;  %v10803_v44 = vld [vmem:[#allocation3 + $0x60] sm:$0xff]   ;;  %v9730_v43 = vld [vmem:[%s12061_s3 + $0x548] sm:$0xff]   ;;  %v9732_v23 = vld [vmem:[%s12061_s3 + $0x550] sm:$0xff]  }
 0x293   : > { %v7851_v50 = vpop.f32.mrb[31].mxu1  ;;  %v8040_v49 = vpop.f32.mrb[151].mxu0  ;;  %12203 = vst [vmem:[#allocation60_spill] sm:$0xff] %v10803_v44 }
 0x294   : > { %12200 = vst [vmem:[#allocation57_spill] sm:$0xff] %v10791_v17  ;;  %v10796_v5 = vadd.f32 %v7851_v50, %v7850_v47  ;;  %v10798_v55 = vadd.f32 %v8040_v49, %v8039_v3  ;;  %v2563_v50 = vrot.slane %v2561_v25, 1  ;;  %v2566_v49 = vrot.slane %v2564_v32, 2  ;;  %v9733_v47 = vld [vmem:[%s12061_s3 + $0x510] sm:$0xff]   ;;  %v9734_v25 = vld [vmem:[%s12061_s3 + $0x558] sm:$0xff]  }
 0x295   : > { %8889 = vmatmul.mubr.bf16.gmra.mrb[124].mxu1 %v10801_v0  ;;  %5501 = vmatmul.mubr.bf16.vlgmr.msra.gmra.mrb[248].mxu0 %v9816_v63  ;;  %v12101_v3 = vrot.slane %v10803_v44, 2  ;;  %v9722_v63 = vld [vmem:[#allocation3] sm:$0xfe]   ;;  %v12205_v17 = vrot.slane %v10344_v59, 1  ;;  %v9724_v59 = vld [vmem:[%s12061_s3 + $0x108] sm:$0xff]  }
 0x296   : > { %12201 = vst [vmem:[#allocation58_spill] sm:$0xff] %v10798_v55  ;;  %5508 = vmatprep.mubr.bf16.mxu0 %v10214_v48  ;;  %8892 = vmatprep.mubr.msk.bf16.mxu1 %vm9836_vm3, %v12174_v2  ;;  %v2567_v61 = vor.u32 %v2566_v49, %v2563_v50 }
 0x297   : > { %8522 = vmatpush3.bf16.msra.mxu0 %v9728_v8  ;;  %v10825_v32 = vsel %vm2842_vm4, %v2864_v30, %v12101_v3  ;;  %v10831_v8 = vld [vmem:[#allocation3 + $0x20] sm:$0xff]   ;;  %v9735_v30 = vld [vmem:[%s12061_s3 + $0x518] sm:$0xff]  }
 0x298   : > { %8523 = vmatprep.subr.bf16.mxu0 %v9730_v43  ;;  %12204 = vst [vmem:[#allocation61_spill] sm:$0xff] %v10825_v32  ;;  %v2576_v43 = vsel %vm2559_vm1, %v2567_v61, %v10325_v18 }
 0x29b   : > { %8524 = vmatpush3.bf16.msra.mxu0 %v9731_v20  ;;  %v9737_v20 = vld [vmem:[%s12061_s3 + $0x560] sm:$0xff]  }
 0x29c   : > { %8525 = vmatprep.subr.bf16.mxu0 %v9732_v23 }
 0x29d   : > { %8893 = vmatmul.mubr.bf16.gmra.mrb[128].mxu1 %v10825_v32  ;;  %5509 = vmatmul.mubr.bf16.gmra.mrb[252].mxu0 %v10831_v8  ;;  %v9723_v32 = vld [vmem:[%s12061_s3 + $0x100] sm:$0xff]  }
 0x29e   : > { %4121 = vmatprep.mubr.bf16.mxu1 %v2576_v43  ;;  %5516 = vmatprep.mubr.bf16.mxu0 %v10225_v21 }
 0x29f   : > { %8526 = vmatpush3.bf16.msra.mxu0 %v9733_v47  ;;  %v2389_v47 = vrot.slane %v9722_v63, 1  ;;  %v10860_v63 = vld [vmem:[#allocation3 + $0x28] sm:$0xff]  }
 0x2a0   : > { %v7853_v50 = vpop.f32.mrb[32].mxu1  ;;  %v8042_v49 = vpop.f32.mrb[152].mxu0  ;;  %8527 = vmatprep.subr.bf16.mxu0 %v9734_v25 }
 0x2a1   : > { %v7854_v23 = vpop.f32.mrb[33].mxu1  ;;  %v8043_v3 = vpop.f32.mrb[153].mxu0 }
 0x2a2   : > { %v10843_v44 = vadd.f32 %v7854_v23, %v7853_v50  ;;  %v10845_v18 = vadd.f32 %v8043_v3, %v8042_v49  ;;  %v7856_v61 = vpop.f32.mrb[34].mxu1  ;;  %v8045_v43 = vpop.f32.mrb[154].mxu0  ;;  %v2391_v50 = vsel %vm2388_vm2, %v2389_v47, %v12205_v17  ;;  %v9738_v3 = vld [vmem:[%s12061_s3 + $0x520] sm:$0xff]   ;;  %v9743_v17 = vld [vmem:[%s12061_s3 + $0x570] sm:$0xff]   ;;  %v9746_v49 = vld [vmem:[%s12061_s3 + $0x578] sm:$0xff]  }
 0x2a3   : > { %v7857_v0 = vpop.f32.mrb[35].mxu1  ;;  %v8046_v9 = vpop.f32.mrb[155].mxu0  ;;  %8528 = vmatpush3.bf16.msra.mxu0 %v9735_v30  ;;  %v10886_v30 = vld [vmem:[#allocation3 + $0x30] sm:$0xff]  }
 0x2a4   : > { %v10850_v25 = vadd.f32 %v7857_v0, %v7856_v61  ;;  %v10852_v55 = vadd.f32 %v8046_v9, %v8045_v43  ;;  %8529 = vmatprep.subr.bf16.mxu0 %v9737_v20  ;;  %v9739_v0 = vld [vmem:[%s12061_s3 + $0x568] sm:$0xff]   ;;  %v9726_v20 = vld [vmem:[%s12061_s3 + $0x118] sm:$0xff]  }
 0x2a5   : > { %4122 = vmatmul.mubr.bf16.vlgmr.msra.gmra.mrb[132].mxu1 %v2391_v50  ;;  %5517 = vmatmul.mubr.bf16.gmra.mrb[0].mxu0 %v10860_v63  ;;  %v9740_v9 = vld [vmem:[%s12061_s3 + $0x528] sm:$0xff]   ;;  %v9747_v61 = vld [vmem:[%s12061_s3 + $0x538] sm:$0xff]  }
 0x2a6   : > { %8897 = vmatpush3.bf16.msra.mxu1 %v9723_v32  ;;  %4129 = vmatprep.mubr.bf16.mxu1 %v10340_v53  ;;  %v9725_v53 = vld [vmem:[%s12061_s3 + $0x110] sm:$0xff]  }
 0x2a7   : > { %5524 = vmatprep.mubr.bf16.mxu0 %v10236_v60  ;;  %8898 = vmatprep.subr.bf16.mxu1 %v12174_v2  ;;  %v9744_v32 = vld [vmem:[%s12061_s3 + $0x530] sm:$0xff]  }
 0x2a8   : > { %8530 = vmatpush3.bf16.msra.mxu0 %v9738_v3 }
 0x2a9   : > { %8531 = vmatprep.subr.bf16.mxu0 %v9739_v0 }
 0x2aa   : > { %8899 = vmatpush3.bf16.msra.mxu1 %v9724_v59 }
 0x2ab   : > { %8900 = vmatprep.subr.bf16.mxu1 %v12174_v2 }
 0x2ac   : > { %8532 = vmatpush3.bf16.msra.mxu0 %v9740_v9 }
 0x2ad   : > { %4130 = vmatmul.mubr.bf16.gmra.mrb[136].mxu1 %v10359_v31  ;;  %5525 = vmatmul.mubr.bf16.gmra.mrb[4].mxu0 %v10886_v30 }
 0x2ae   : > { %4137 = vmatprep.mubr.bf16.mxu1 %v10367_v10  ;;  %5532 = vmatprep.mubr.bf16.mxu0 %v10255_v37 }
 0x2af   : > { %8901 = vmatpush3.bf16.msra.mxu1 %v9725_v53  ;;  %8533 = vmatprep.subr.bf16.mxu0 %v9743_v17  ;;  %v9729_v53 = vld [vmem:[%s12061_s3 + $0x120] sm:$0xff]  }
 0x2b0   : > { %v7859_v23 = vpop.f32.mrb[36].mxu1  ;;  %v8048_v31 = vpop.f32.mrb[156].mxu0  ;;  %8902 = vmatprep.subr.bf16.mxu1 %v12174_v2  ;;  %8534 = vmatpush3.bf16.msra.mxu0 %v9744_v32  ;;  %v9754_v17 = vld [vmem:[%s12061_s3 + $0x5c0] sm:$0xff]  }
 0x2b1   : > { %v7860_v43 = vpop.f32.mrb[37].mxu1  ;;  %v8049_v47 = vpop.f32.mrb[157].mxu0  ;;  %8535 = vmatprep.subr.bf16.mxu0 %v9746_v49 }
 0x2b2   : > { %v10901_v10 = vadd.f32 %v7860_v43, %v7859_v23  ;;  %v10903_v50 = vadd.f32 %v8049_v47, %v8048_v31  ;;  %v7862_v3 = vpop.f32.mrb[38].mxu1  ;;  %v8051_v0 = vpop.f32.mrb[158].mxu0  ;;  %v10917_v23 = vld [vmem:[#allocation3 + $0x38] sm:$0xff]  }
 0x2b3   : > { %v7863_v59 = vpop.f32.mrb[39].mxu1  ;;  %v8052_v9 = vpop.f32.mrb[159].mxu0  ;;  %8903 = vmatpush3.bf16.msra.mxu1 %v9726_v20  ;;  %v9736_v20 = vld [vmem:[%s12061_s3 + $0x128] sm:$0xff]  }
 0x2b4   : > { %12206 = vst [vmem:[#allocation62_spill] sm:$0xff] %v10903_v50  ;;  %v10911_v32 = vadd.f32 %v7863_v59, %v7862_v3  ;;  %v10913_v49 = vadd.f32 %v8052_v9, %v8051_v0  ;;  %8904 = vmatprep.subr.bf16.mxu1 %v12174_v2  ;;  %8536 = vmatpush3.bf16.msra.mxu0 %v9747_v61  ;;  %v9745_v3 = vld [vmem:[%s12061_s3 + $0x130] sm:$0xff]   ;;  %v10935_v59 = vld [vmem:[#allocation3 + $0x40] sm:$0xff]   ;;  %v9748_v9 = vld [vmem:[%s12061_s3 + $0x138] sm:$0xff]  }
 0x2b5   : > { %4138 = vmatmul.mubr.bf16.gmra.mrb[140].mxu1 %v10389_v26  ;;  %5533 = vmatmul.mubr.bf16.gmra.mrb[8].mxu0 %v10917_v23  ;;  %v10954_v50 = vld [vmem:[#allocation3 + $0x48] sm:$0xff]  }
 0x2b6   : > { %12207 = vst [vmem:[#allocation63_spill] sm:$0xff] %v10913_v49  ;;  %4145 = vmatprep.mubr.bf16.mxu1 %v10397_v29  ;;  %5540 = vmatprep.mubr.bf16.mxu0 %v10266_v13 }
 0x2b7   : > { %8905 = vmatpush3.bf16.msra.mxu1 %v9729_v53  ;;  %8603 = vmatprep.subr.bf16.mxu0 %v9754_v17 }
 0x2b8   : > { %v8171_v31 = vpop.f32.mrb[160].mxu0  ;;  %8906 = vmatprep.subr.bf16.mxu1 %v12174_v2 }
 0x2b9   : > { %v8172_v61 = vpop.f32.mrb[161].mxu0 }
 0x2ba   : > { %v10926_v43 = vadd.f32 %v8172_v61, %v8171_v31  ;;  %v8174_v26 = vpop.f32.mrb[162].mxu0 }
 0x2bb   : > { %v8175_v47 = vpop.f32.mrb[163].mxu0  ;;  %8907 = vmatpush3.bf16.msra.mxu1 %v9736_v20 }
 0x2bc   : > { %v10931_v0 = vadd.f32 %v8175_v47, %v8174_v26  ;;  %8908 = vmatprep.subr.bf16.mxu1 %v12174_v2 }
 0x2bd   : > { %4146 = vmatmul.mubr.bf16.gmra.mrb[144].mxu1 %v10418_v51  ;;  %5541 = vmatmul.mubr.bf16.gmra.mrb[12].mxu0 %v10935_v59 }
 0x2be   : > { %4153 = vmatprep.mubr.bf16.mxu1 %v10424_v54  ;;  %5548 = vmatprep.mubr.bf16.mxu0 %v10277_v56 }
 0x2bf   : > { %8909 = vmatpush3.bf16.msra.mxu1 %v9745_v3 }
 0x2c0   : > { %v7865_v53 = vpop.f32.mrb[40].mxu1  ;;  %v8177_v17 = vpop.f32.mrb[164].mxu0  ;;  %8910 = vmatprep.subr.bf16.mxu1 %v12174_v2 }
 0x2c1   : > { %v7866_v20 = vpop.f32.mrb[41].mxu1  ;;  %v8178_v31 = vpop.f32.mrb[165].mxu0 }
 0x2c2   : > { %v10944_v61 = vadd.f32 %v7866_v20, %v7865_v53  ;;  %v10946_v26 = vadd.f32 %v8178_v31, %v8177_v17  ;;  %v7868_v47 = vpop.f32.mrb[42].mxu1  ;;  %v8180_v51 = vpop.f32.mrb[166].mxu0 }
 0x2c3   : > { %v7869_v29 = vpop.f32.mrb[43].mxu1  ;;  %v8181_v54 = vpop.f32.mrb[167].mxu0  ;;  %8911 = vmatpush3.bf16.msra.mxu1 %v9748_v9 }
 0x2c4   : > { %12208 = vst [vmem:[#allocation64_spill] sm:$0xff] %v10944_v61  ;;  %12209 = vst [vmem:[#allocation65_spill] sm:$0xff] %v10946_v26  ;;  %v10948_v3 = vadd.f32 %v7869_v29, %v7868_v47  ;;  %v10950_v49 = vadd.f32 %v8181_v54, %v8180_v51  ;;  %8956 = vmatprep.subr.bf16.mxu1 %v12174_v2 }
 0x2c5   : > { %4154 = vmatmul.mubr.bf16.gmra.mrb[148].mxu1 %v10436_v4  ;;  %5549 = vmatmul.mubr.bf16.gmra.mrb[16].mxu0 %v10954_v50 }
 0x2c6   : > { %12210 = vst [vmem:[#allocation66_spill] sm:$0xff] %v10948_v3  ;;  %12211 = vst [vmem:[#allocation67_spill] sm:$0xff] %v10950_v49  ;;  %4161 = vmatprep.mubr.bf16.mxu1 %v10442_v6  ;;  %5556 = vmatprep.mubr.bf16.mxu0 %v10294_v39  ;;  %v10965_v6 = vld [vmem:[#allocation3 + $0x50] sm:$0xff]  }
 0x2c8   : > { %v7887_v53 = vpop.f32.mrb[44].mxu1  ;;  %v8183_v17 = vpop.f32.mrb[168].mxu0 }
 0x2c9   : > { %v7888_v20 = vpop.f32.mrb[45].mxu1  ;;  %v8184_v9 = vpop.f32.mrb[169].mxu0 }
 0x2ca   : > { %v7889_v29 = vadd.f32 %v7888_v20, %v7887_v53  ;;  %v10959_v31 = vadd.f32 %v8184_v9, %v8183_v17  ;;  %v7890_v51 = vpop.f32.mrb[46].mxu1  ;;  %v8186_v54 = vpop.f32.mrb[170].mxu0  ;;  %v10974_v17 = vld [vmem:[#allocation3 + $0x70] sm:$0xff]  }
 0x2cb   : > { %v7891_v47 = vpop.f32.mrb[47].mxu1  ;;  %v8187_v49 = vpop.f32.mrb[171].mxu0 }
 0x2cc   : > { %v3521_v4 = vadd.f32 %v7889_v29, %v10479_v58  ;;  %v7892_v3 = vadd.f32 %v7891_v47, %v7890_v51  ;;  %v10962_v26 = vadd.f32 %v8187_v49, %v8186_v54 }
 0x2cd   : > { %4162 = vmatmul.mubr.bf16.gmra.mrb[152].mxu1 %v10458_v41  ;;  %5557 = vmatmul.mubr.bf16.gmra.mrb[20].mxu0 %v10965_v6  ;;  %v2233_v41 = vshrl.u32 %v10477_v12, 16 }
 0x2ce   : > { %12212 = vst [vmem:[#allocation68_spill] sm:$0xff] %v10962_v26  ;;  %v3524_v61 = vadd.f32 %v7892_v3, %v10483_v19  ;;  %4169 = vmatprep.mubr.bf16.mxu1 %v10463_v22  ;;  %5564 = vmatprep.mubr.bf16.mxu0 %v10321_v45  ;;  %v10972_v53 = vadd.f32 %v10453_v27, %v3521_v4  ;;  %v2237_v4 = vshll.u32 %v10974_v17, 16 }
 0x2d0   : > { %12213 = vst [vmem:[#allocation69_spill] sm:$0xff] %v10972_v53  ;;  %v7893_v58 = vpop.f32.mrb[48].mxu1  ;;  %v8189_v49 = vpop.f32.mrb[172].mxu0  ;;  %v10977_v20 = vadd.f32 %v10455_v36, %v3524_v61  ;;  %v10987_v36 = vld [vmem:[#allocation3 + $0x58] sm:$0xff]  }
 0x2d1   : > { %v7894_v9 = vpop.f32.mrb[49].mxu1  ;;  %v8190_v29 = vpop.f32.mrb[173].mxu0 }
 0x2d2   : > { %12214 = vst [vmem:[#allocation70_spill] sm:$0xff] %v10977_v20  ;;  %v7895_v51 = vadd.f32 %v7894_v9, %v7893_v58  ;;  %v10979_v54 = vadd.f32 %v8190_v29, %v8189_v49  ;;  %v7896_v19 = vpop.f32.mrb[50].mxu1  ;;  %v8192_v3 = vpop.f32.mrb[174].mxu0  ;;  %v12216_v58 = vld [vmem:[#allocation18_spill] sm:$0xff]  ;;  %v10997_v49 = vrot.slane %v2237_v4, 1  ;;  %v12217_v29 = vld [vmem:[#allocation15_spill] sm:$0xff] }
 0x2d3   : > { %v7897_v47 = vpop.f32.mrb[51].mxu1  ;;  %v8193_v22 = vpop.f32.mrb[175].mxu0 }
 0x2d4   : > { %v3529_v27 = vadd.f32 %v7895_v51, %v10515_v38  ;;  %v7898_v53 = vadd.f32 %v7897_v47, %v7896_v19  ;;  %v10984_v26 = vadd.f32 %v8193_v22, %v8192_v3  ;;  %v2235_v38 = vor.u32 %v2233_v41, %v12216_v58  ;;  %v12219_v41 = vld [vmem:[#allocation28_spill] sm:$0xff] }
 0x2d5   : > { %4170 = vmatmul.mubr.bf16.gmra.mrb[156].mxu1 %v10468_v52  ;;  %5565 = vmatmul.mubr.bf16.gmra.mrb[24].mxu0 %v10987_v36 }
 0x2d6   : > { %v3532_v61 = vadd.f32 %v7898_v53, %v10521_v35  ;;  %4177 = vmatprep.mubr.bf16.mxu1 %v10473_v14  ;;  %5572 = vmatprep.mubr.bf16.mxu0 %v10511_v57  ;;  %v10994_v12 = vadd.f32 %v10481_v15, %v3529_v27  ;;  %v11006_v15 = vsel %vm2124_vm0, %v2235_v38, %v10997_v49 }
 0x2d8   : > { %12215 = vst [vmem:[#allocation71_spill] sm:$0xff] %v10994_v12  ;;  %v7899_v22 = vpop.f32.mrb[52].mxu1  ;;  %v8195_v9 = vpop.f32.mrb[176].mxu0  ;;  %v11000_v51 = vadd.f32 %v12217_v29, %v3532_v61  ;;  %v12220_v61 = vld [vmem:[#allocation22_spill] sm:$0xff]  ;;  %v12222_v29 = vld [vmem:[#allocation21_spill] sm:$0xff] }
 0x2d9   : > { %v7900_v19 = vpop.f32.mrb[53].mxu1  ;;  %v8196_v3 = vpop.f32.mrb[177].mxu0 }
 0x2da   : > { %12218 = vst [vmem:[#allocation18_spill] sm:$0xff] %v11000_v51  ;;  %v7901_v47 = vadd.f32 %v7900_v19, %v7899_v22  ;;  %v11002_v35 = vadd.f32 %v8196_v3, %v8195_v9  ;;  %v7902_v53 = vpop.f32.mrb[54].mxu1  ;;  %v8198_v20 = vpop.f32.mrb[178].mxu0  ;;  %v12221_v22 = vld [vmem:[#allocation30_spill] sm:$0xff]  ;;  %v12224_v51 = vld [vmem:[#allocation23_spill] sm:$0xff] }
 0x2db   : > { %v7903_v14 = vpop.f32.mrb[55].mxu1  ;;  %v8199_v52 = vpop.f32.mrb[179].mxu0 }
 0x2dc   : > { %v3537_v4 = vadd.f32 %v7901_v47, %v12219_v41  ;;  %v7904_v27 = vadd.f32 %v7903_v14, %v7902_v53  ;;  %v11009_v58 = vadd.f32 %v8199_v52, %v8198_v20  ;;  %v11022_v20 = vld [vmem:[#allocation3 + $0x68] sm:$0xff]  }
 0x2dd   : > { %4178 = vmatmul.mubr.bf16.gmra.mrb[160].mxu1 %v10488_v24  ;;  %5573 = vmatmul.mubr.bf16.gmra.mrb[28].mxu0 %v12220_v61 }
 0x2de   : > { %v3540_v9 = vadd.f32 %v7904_v27, %v12221_v22  ;;  %4185 = vmatprep.mubr.bf16.mxu1 %v10493_v28  ;;  %5580 = vmatprep.mubr.bf16.mxu0 %v11006_v15  ;;  %v11017_v19 = vadd.f32 %v12222_v29, %v3537_v4 }
 0x2e0   : > { %12223 = vst [vmem:[#allocation15_spill] sm:$0xff] %v11017_v19  ;;  %v7905_v38 = vpop.f32.mrb[56].mxu1  ;;  %v8201_v3 = vpop.f32.mrb[180].mxu0  ;;  %v11020_v47 = vadd.f32 %v12224_v51, %v3540_v9  ;;  %v12226_v51 = vld [vmem:[#allocation36_spill] sm:$0xff] }
 0x2e1   : > { %v7906_v52 = vpop.f32.mrb[57].mxu1  ;;  %v8202_v14 = vpop.f32.mrb[181].mxu0 }
 0x2e2   : > { %12225 = vst [vmem:[#allocation28_spill] sm:$0xff] %v11020_v47  ;;  %v7907_v53 = vadd.f32 %v7906_v52, %v7905_v38  ;;  %v11024_v41 = vadd.f32 %v8202_v14, %v8201_v3  ;;  %v7908_v27 = vpop.f32.mrb[58].mxu1  ;;  %v8204_v61 = vpop.f32.mrb[182].mxu0  ;;  %v12227_v38 = vld [vmem:[#allocation29_spill] sm:$0xff]  ;;  %v12229_v47 = vld [vmem:[#allocation31_spill] sm:$0xff] }
 0x2e3   : > { %v7909_v22 = vpop.f32.mrb[59].mxu1  ;;  %v8205_v12 = vpop.f32.mrb[183].mxu0 }
 0x2e4   : > { %v3545_v28 = vadd.f32 %v7907_v53, %v10627_v16  ;;  %v7910_v4 = vadd.f32 %v7909_v22, %v7908_v27  ;;  %v11027_v29 = vadd.f32 %v8205_v12, %v8204_v61 }
 0x2e5   : > { %4186 = vmatmul.mubr.bf16.gmra.mrb[164].mxu1 %v10501_v40  ;;  %5581 = vmatmul.mubr.bf16.gmra.mrb[32].mxu0 %v11022_v20 }
 0x2e6   : > { %v3548_v9 = vadd.f32 %v7910_v4, %v12226_v51  ;;  %4193 = vmatprep.mubr.bf16.mxu1 %v10506_v62  ;;  %6261 = vmatprep.mubr.bf16.mxu0 %v10214_v48  ;;  %v11035_v3 = vadd.f32 %v12227_v38, %v3545_v28  ;;  %v9755_v48 = vld [vmem:[%s12061_s3 + $0x580] sm:$0xff]  }
 0x2e8   : > { %12228 = vst [vmem:[#allocation22_spill] sm:$0xff] %v11035_v3  ;;  %v7911_v52 = vpop.f32.mrb[60].mxu1  ;;  %v8207_v14 = vpop.f32.mrb[184].mxu0  ;;  %v11038_v16 = vadd.f32 %v12229_v47, %v3548_v9  ;;  %v9757_v47 = vld [vmem:[%s12061_s3 + $0x5c8] sm:$0xff]  }
 0x2e9   : > { %v7912_v12 = vpop.f32.mrb[61].mxu1  ;;  %v8208_v53 = vpop.f32.mrb[185].mxu0  ;;  %v12231_v9 = vld [vmem:[#allocation41_spill] sm:$0xff] }
 0x2ea   : > { %12230 = vst [vmem:[#allocation30_spill] sm:$0xff] %v11038_v16  ;;  %v7913_v27 = vadd.f32 %v7912_v12, %v7911_v52  ;;  %v11040_v61 = vadd.f32 %v8208_v53, %v8207_v14  ;;  %v7914_v22 = vpop.f32.mrb[62].mxu1  ;;  %v8210_v19 = vpop.f32.mrb[186].mxu0  ;;  %v12232_v14 = vld [vmem:[#allocation25_spill] sm:$0xff]  ;;  %v12233_v12 = vld [vmem:[#allocation35_spill] sm:$0xff] }
 0x2eb   : > { %v7915_v4 = vpop.f32.mrb[63].mxu1  ;;  %v8211_v51 = vpop.f32.mrb[187].mxu0  ;;  %v12237_v16 = vld [vmem:[#allocation45_spill] sm:$0xff] }
 0x2ec   : > { %v3553_v28 = vadd.f32 %v7913_v27, %v10690_v42  ;;  %v7916_v38 = vadd.f32 %v7915_v4, %v7914_v22  ;;  %v11046_v3 = vadd.f32 %v8211_v51, %v8210_v19  ;;  %v9758_v42 = vld [vmem:[%s12061_s3 + $0x588] sm:$0xff]  }
 0x2ed   : > { %4194 = vmatmul.mubr.bf16.gmra.mrb[168].mxu1 %v10526_v33  ;;  %6262 = vmatmul.mubr.bf16.vlgmr.msra.gmra.mrb[36].mxu0 %v10831_v8  ;;  %v9759_v8 = vld [vmem:[%s12061_s3 + $0x5d0] sm:$0xff]   ;;  %v12235_v22 = vld [vmem:[#allocation37_spill] sm:$0xff] }
 0x2ee   : > { %v3556_v52 = vadd.f32 %v7916_v38, %v12231_v9  ;;  %4201 = vmatprep.mubr.bf16.mxu1 %v12232_v14  ;;  %6269 = vmatprep.mubr.bf16.mxu0 %v10225_v21  ;;  %v11057_v53 = vadd.f32 %v12233_v12, %v3553_v28 }
 0x2ef   : > { %8604 = vmatpush3.bf16.msra.mxu0 %v9755_v48 }
 0x2f0   : > { %12234 = vst [vmem:[#allocation21_spill] sm:$0xff] %v11057_v53  ;;  %v7917_v19 = vpop.f32.mrb[64].mxu1  ;;  %v8213_v27 = vpop.f32.mrb[188].mxu0  ;;  %8605 = vmatprep.subr.bf16.mxu0 %v9757_v47  ;;  %v11066_v4 = vadd.f32 %v12235_v22, %v3556_v52  ;;  %v9760_v47 = vld [vmem:[%s12061_s3 + $0x590] sm:$0xff]   ;;  %v9761_v52 = vld [vmem:[%s12061_s3 + $0x5d8] sm:$0xff]  }
 0x2f1   : > { %v7918_v51 = vpop.f32.mrb[65].mxu1  ;;  %v8214_v21 = vpop.f32.mrb[189].mxu0  ;;  %v12240_v22 = vld [vmem:[#allocation40_spill] sm:$0xff] }
 0x2f2   : > { %12236 = vst [vmem:[#allocation23_spill] sm:$0xff] %v11066_v4  ;;  %v7919_v38 = vadd.f32 %v7918_v51, %v7917_v19  ;;  %v11068_v28 = vadd.f32 %v8214_v21, %v8213_v27  ;;  %v7920_v48 = vpop.f32.mrb[66].mxu1  ;;  %v8216_v9 = vpop.f32.mrb[190].mxu0  ;;  %v12238_v19 = vld [vmem:[#allocation26_spill] sm:$0xff]  ;;  %v12239_v27 = vld [vmem:[#allocation47_spill] sm:$0xff] }
 0x2f3   : > { %v7921_v12 = vpop.f32.mrb[67].mxu1  ;;  %v8217_v53 = vpop.f32.mrb[191].mxu0  ;;  %8606 = vmatpush3.bf16.msra.mxu0 %v9758_v42 }
 0x2f4   : > { %v3561_v14 = vadd.f32 %v7919_v38, %v12237_v16  ;;  %v7922_v33 = vadd.f32 %v7921_v12, %v7920_v48  ;;  %v11074_v62 = vadd.f32 %v8217_v53, %v8216_v9  ;;  %8607 = vmatprep.subr.bf16.mxu0 %v9759_v8  ;;  %v9749_v16 = vld [vmem:[#allocation3] sm:$0xfc]   ;;  %v9762_v8 = vld [vmem:[%s12061_s3 + $0x598] sm:$0xff]  }
 0x2f5   : > { %4202 = vmatmul.mubr.bf16.gmra.mrb[172].mxu1 %v12238_v19  ;;  %6270 = vmatmul.mubr.bf16.gmra.mrb[40].mxu0 %v10860_v63 }
 0x2f6   : > { %v3564_v42 = vadd.f32 %v7922_v33, %v12239_v27  ;;  %6277 = vmatprep.mubr.bf16.mxu0 %v10236_v60  ;;  %8912 = vmatprep.mubr.msk.bf16.mxu1 %vm9836_vm3, %v12174_v2  ;;  %v11086_v53 = vadd.f32 %v12240_v22, %v3561_v14  ;;  %v9764_v33 = vld [vmem:[%s12061_s3 + $0x5e0] sm:$0xff]   ;;  %v12242_v60 = vld [vmem:[#allocation42_spill] sm:$0xff]  ;;  %v2843_v27 = vrot.slane %v9749_v16, 2 }
 0x2f7   : > { %8608 = vmatpush3.bf16.msra.mxu0 %v9760_v47  ;;  %v9750_v22 = vld [vmem:[%s12061_s3 + $0x380] sm:$0xff]  }
 0x2f8   : > { %12241 = vst [vmem:[#allocation36_spill] sm:$0xff] %v11086_v53  ;;  %v7923_v51 = vpop.f32.mrb[68].mxu1  ;;  %v8219_v21 = vpop.f32.mrb[192].mxu0  ;;  %8609 = vmatprep.subr.bf16.mxu0 %v9761_v52  ;;  %v11095_v63 = vadd.f32 %v12242_v60, %v3564_v42  ;;  %v12244_v60 = vld [vmem:[#allocation33_spill] sm:$0xff] }
 0x2f9   : > { %v7924_v38 = vpop.f32.mrb[69].mxu1  ;;  %v8220_v48 = vpop.f32.mrb[193].mxu0  ;;  %v9765_v16 = vld [vmem:[%s12061_s3 + $0x5a0] sm:$0xff]  }
 0x2fa   : > { %12243 = vst [vmem:[#allocation29_spill] sm:$0xff] %v11095_v63  ;;  %v7925_v9 = vadd.f32 %v7924_v38, %v7923_v51  ;;  %v11097_v14 = vadd.f32 %v8220_v48, %v8219_v21  ;;  %v7926_v12 = vpop.f32.mrb[70].mxu1  ;;  %v8222_v47 = vpop.f32.mrb[194].mxu0  ;;  %v12245_v63 = vrot.slane %v12244_v60, 2  ;;  %v12246_v21 = vld [vmem:[#allocation46_spill] sm:$0xff] }
 0x2fb   : > { %v7927_v52 = vpop.f32.mrb[71].mxu1  ;;  %v8223_v53 = vpop.f32.mrb[195].mxu0  ;;  %8610 = vmatpush3.bf16.msra.mxu0 %v9762_v8  ;;  %v9766_v8 = vld [vmem:[%s12061_s3 + $0x5e8] sm:$0xff]   ;;  %v9770_v60 = vld [vmem:[%s12061_s3 + $0x5f0] sm:$0xff]  }
 0x2fc   : > { %v3569_v4 = vadd.f32 %v7925_v9, %v10750_v34  ;;  %v7928_v19 = vadd.f32 %v7927_v52, %v7926_v12  ;;  %v11103_v42 = vadd.f32 %v8223_v53, %v8222_v47  ;;  %v2845_v51 = vsel %vm2842_vm4, %v2843_v27, %v12245_v63  ;;  %8611 = vmatprep.subr.bf16.mxu0 %v9764_v33  ;;  %v9751_v53 = vld [vmem:[%s12061_s3 + $0x388] sm:$0xff]   ;;  %v9752_v52 = vld [vmem:[%s12061_s3 + $0x390] sm:$0xff]  }
 0x2fd   : > { %8913 = vmatmul.mubr.bf16.vlgmr.msra.gmra.mrb[88].mxu1 %v2845_v51  ;;  %6278 = vmatmul.mubr.bf16.gmra.mrb[44].mxu0 %v10886_v30 }
 0x2fe   : > { %v3572_v34 = vadd.f32 %v7928_v19, %v10754_v1  ;;  %8957 = vmatpush3.bf16.msra.mxu1 %v9750_v22  ;;  %6285 = vmatprep.mubr.bf16.mxu0 %v10255_v37  ;;  %v11121_v33 = vadd.f32 %v12246_v21, %v3569_v4  ;;  %v9767_v1 = vld [vmem:[%s12061_s3 + $0x5a8] sm:$0xff]   ;;  %v12247_v37 = vld [vmem:[#allocation48_spill] sm:$0xff] }
 0x2ff   : > { %8916 = vmatprep.mubr.msk.bf16.mxu1 %vm9836_vm3, %v12174_v2  ;;  %8958 = vmatprep.subr.bf16.mxu1 %v12174_v2  ;;  %v9773_v21 = vld [vmem:[%s12061_s3 + $0x5f8] sm:$0xff]  }
 0x300   : > { %v7929_v30 = vpop.f32.mrb[72].mxu1  ;;  %v8225_v63 = vpop.f32.mrb[196].mxu0  ;;  %8612 = vmatpush3.bf16.msra.mxu0 %v9765_v16  ;;  %v11130_v19 = vadd.f32 %v12247_v37, %v3572_v34  ;;  %v9771_v34 = vld [vmem:[%s12061_s3 + $0x5b0] sm:$0xff]  }
 0x301   : > { %v7930_v38 = vpop.f32.mrb[73].mxu1  ;;  %v8226_v48 = vpop.f32.mrb[197].mxu0  ;;  %8613 = vmatprep.subr.bf16.mxu0 %v9766_v8 }
 0x302   : > { %v7931_v4 = vadd.f32 %v7930_v38, %v7929_v30  ;;  %v11132_v9 = vadd.f32 %v8226_v48, %v8225_v63  ;;  %v7932_v12 = vpop.f32.mrb[74].mxu1  ;;  %v8228_v47 = vpop.f32.mrb[198].mxu0  ;;  %8959 = vmatpush3.bf16.msra.mxu1 %v9751_v53  ;;  %v12248_v53 = vld [vmem:[#allocation34_spill] sm:$0xff]  ;;  %v9753_v63 = vld [vmem:[%s12061_s3 + $0x398] sm:$0xff]  }
 0x303   : > { %v7933_v27 = vpop.f32.mrb[75].mxu1  ;;  %v8229_v22 = vpop.f32.mrb[199].mxu0  ;;  %8960 = vmatprep.subr.bf16.mxu1 %v12174_v2 }
 0x304   : > { %v3577_v51 = vadd.f32 %v7931_v4, %v10789_v7  ;;  %v7934_v16 = vadd.f32 %v7933_v27, %v7932_v12  ;;  %v11142_v8 = vadd.f32 %v8229_v22, %v8228_v47  ;;  %8614 = vmatpush3.bf16.msra.mxu0 %v9767_v1  ;;  %v9756_v22 = vld [vmem:[%s12061_s3 + $0x3a0] sm:$0xff]  }
 0x305   : > { %8917 = vmatmul.mubr.bf16.gmra.mrb[92].mxu1 %v12248_v53  ;;  %6286 = vmatmul.mubr.bf16.gmra.mrb[48].mxu0 %v10917_v23 }
 0x306   : > { %v3580_v30 = vadd.f32 %v7934_v16, %v10796_v5  ;;  %6293 = vmatprep.mubr.bf16.mxu0 %v10266_v13  ;;  %8920 = vmatprep.mubr.msk.bf16.mxu1 %vm9836_vm3, %v12174_v2  ;;  %v11157_v7 = vadd.f32 %v10752_v11, %v3577_v51  ;;  %v9774_v13 = vld [vmem:[%s12061_s3 + $0x5b8] sm:$0xff]   ;;  %v12249_v51 = vld [vmem:[#allocation38_spill] sm:$0xff] }
 0x307   : > { %8961 = vmatpush3.bf16.msra.mxu1 %v9752_v52  ;;  %8615 = vmatprep.subr.bf16.mxu0 %v9770_v60 }
 0x308   : > { %v7935_v23 = vpop.f32.mrb[76].mxu1  ;;  %v8231_v1 = vpop.f32.mrb[200].mxu0  ;;  %8962 = vmatprep.subr.bf16.mxu1 %v12174_v2  ;;  %8616 = vmatpush3.bf16.msra.mxu0 %v9771_v34  ;;  %v11167_v5 = vadd.f32 %v10756_v46, %v3580_v30  ;;  %v12250_v34 = vld [vmem:[#allocation57_spill] sm:$0xff] }
 0x309   : > { %v7936_v11 = vpop.f32.mrb[77].mxu1  ;;  %v8232_v37 = vpop.f32.mrb[201].mxu0  ;;  %8617 = vmatprep.subr.bf16.mxu0 %v9773_v21 }
 0x30a   : > { %v7937_v38 = vadd.f32 %v7936_v11, %v7935_v23  ;;  %v11169_v48 = vadd.f32 %v8232_v37, %v8231_v1  ;;  %v7938_v4 = vpop.f32.mrb[78].mxu1  ;;  %v8234_v12 = vpop.f32.mrb[202].mxu0 }
 0x30b   : > { %v7939_v47 = vpop.f32.mrb[79].mxu1  ;;  %v8235_v27 = vpop.f32.mrb[203].mxu0  ;;  %8963 = vmatpush3.bf16.msra.mxu1 %v9753_v63 }
 0x30c   : > { %v3585_v52 = vadd.f32 %v7937_v38, %v10843_v44  ;;  %v7940_v60 = vadd.f32 %v7939_v47, %v7938_v4  ;;  %v11175_v46 = vadd.f32 %v8235_v27, %v8234_v12  ;;  %8964 = vmatprep.subr.bf16.mxu1 %v12174_v2  ;;  %8618 = vmatpush3.bf16.msra.mxu0 %v9774_v13  ;;  %v9763_v44 = vld [vmem:[%s12061_s3 + $0x3a8] sm:$0xff]   ;;  %v9772_v4 = vld [vmem:[%s12061_s3 + $0x3b0] sm:$0xff]  }
 0x30d   : > { %8921 = vmatmul.mubr.bf16.gmra.mrb[96].mxu1 %v12249_v51  ;;  %6294 = vmatmul.mubr.bf16.gmra.mrb[52].mxu0 %v10935_v59 }
 0x30e   : > { %v3588_v16 = vadd.f32 %v7940_v60, %v10850_v25  ;;  %6301 = vmatprep.mubr.bf16.mxu0 %v10277_v56  ;;  %8924 = vmatprep.mubr.msk.bf16.mxu1 %vm9836_vm3, %v12174_v2  ;;  %v11185_v53 = vadd.f32 %v12250_v34, %v3585_v52  ;;  %v12251_v25 = vld [vmem:[#allocation58_spill] sm:$0xff]  ;;  %v12252_v52 = vld [vmem:[#allocation39_spill] sm:$0xff] }
 0x30f   : > { %8965 = vmatpush3.bf16.msra.mxu1 %v9756_v22  ;;  %9076 = vmatprep.subr.bf16.mxu0 %v12174_v2 }
 0x310   : > { %v7941_v21 = vpop.f32.mrb[80].mxu1  ;;  %v8253_v30 = vpop.f32.mrb[204].mxu0  ;;  %8966 = vmatprep.subr.bf16.mxu1 %v12174_v2  ;;  %v11193_v59 = vadd.f32 %v12251_v25, %v3588_v16 }
 0x311   : > { %v7942_v56 = vpop.f32.mrb[81].mxu1  ;;  %v8254_v63 = vpop.f32.mrb[205].mxu0 }
 0x312   : > { %v7943_v23 = vadd.f32 %v7942_v56, %v7941_v21  ;;  %v8255_v1 = vadd.f32 %v8254_v63, %v8253_v30  ;;  %v7944_v13 = vpop.f32.mrb[82].mxu1  ;;  %v8256_v11 = vpop.f32.mrb[206].mxu0 }
 0x313   : > { %v7945_v37 = vpop.f32.mrb[83].mxu1  ;;  %v8257_v38 = vpop.f32.mrb[207].mxu0  ;;  %8967 = vmatpush3.bf16.msra.mxu1 %v9763_v44 }
 0x314   : > { %v3593_v12 = vadd.f32 %v7943_v23, %v10901_v10  ;;  %v11200_v47 = vadd.f32 %v8255_v1, %v10926_v43  ;;  %v7946_v27 = vadd.f32 %v7945_v37, %v7944_v13  ;;  %v8258_v22 = vadd.f32 %v8257_v38, %v8256_v11  ;;  %8968 = vmatprep.subr.bf16.mxu1 %v12174_v2  ;;  %v9775_v43 = vld [vmem:[%s12061_s3 + $0x3b8] sm:$0xff]   ;;  %v12254_v13 = vld [vmem:[#allocation65_spill] sm:$0xff] }
 0x315   : > { %8925 = vmatmul.mubr.bf16.gmra.mrb[100].mxu1 %v12252_v52  ;;  %6302 = vmatmul.mubr.bf16.gmra.mrb[56].mxu0 %v10954_v50  ;;  %v12253_v23 = vld [vmem:[#allocation64_spill] sm:$0xff] }
 0x316   : > { %v3596_v60 = vadd.f32 %v7946_v27, %v10911_v32  ;;  %v11207_v16 = vadd.f32 %v8258_v22, %v10931_v0  ;;  %6309 = vmatprep.mubr.bf16.mxu0 %v10294_v39  ;;  %8928 = vmatprep.mubr.msk.bf16.mxu1 %vm9836_vm3, %v12174_v2  ;;  %v11213_v10 = vadd.f32 %v10845_v18, %v3593_v12  ;;  %v9776_v32 = vld [vmem:[%s12061_s3 + $0x480] sm:$0xff]   ;;  %v12257_v27 = vld [vmem:[#allocation67_spill] sm:$0xff] }
 0x317   : > { %8969 = vmatpush3.bf16.msra.mxu1 %v9772_v4  ;;  %v12255_v4 = vld [vmem:[#allocation43_spill] sm:$0xff] }
 0x318   : > { %v7947_v34 = vpop.f32.mrb[84].mxu1  ;;  %v8259_v50 = vpop.f32.mrb[208].mxu0  ;;  %8970 = vmatprep.subr.bf16.mxu1 %v12174_v2  ;;  %v11223_v39 = vadd.f32 %v10852_v55, %v3596_v60  ;;  %v12256_v55 = vld [vmem:[#allocation66_spill] sm:$0xff] }
 0x319   : > { %v7948_v0 = vpop.f32.mrb[85].mxu1  ;;  %v8260_v44 = vpop.f32.mrb[209].mxu0  ;;  %v12258_v60 = vld [vmem:[#allocation62_spill] sm:$0xff] }
 0x31a   : > { %v7949_v18 = vadd.f32 %v7948_v0, %v7947_v34  ;;  %v8261_v21 = vadd.f32 %v8260_v44, %v8259_v50  ;;  %v7950_v30 = vpop.f32.mrb[86].mxu1  ;;  %v8262_v25 = vpop.f32.mrb[210].mxu0  ;;  %v12260_v50 = vld [vmem:[#allocation63_spill] sm:$0xff] }
 0x31b   : > { %v7951_v56 = vpop.f32.mrb[87].mxu1  ;;  %v8263_v63 = vpop.f32.mrb[211].mxu0  ;;  %8971 = vmatpush3.bf16.msra.mxu1 %v9775_v43 }
 0x31c   : > { %v3601_v1 = vadd.f32 %v7949_v18, %v12253_v23  ;;  %v11227_v11 = vadd.f32 %v8261_v21, %v12254_v13  ;;  %v7952_v37 = vadd.f32 %v7951_v56, %v7950_v30  ;;  %v8264_v38 = vadd.f32 %v8263_v63, %v8262_v25  ;;  %8420 = vmatprep.subr.bf16.mxu1 %v9776_v32  ;;  %v12262_v25 = vld [vmem:[#allocation44_spill] sm:$0xff]  ;;  %v9768_v63 = vld [vmem:[#allocation3 + $0x78] ss:$0 sps:$4 sm:$0x11]  }
 0x31d   : > { %8929 = vmatmul.mubr.bf16.gmra.mrb[104].mxu1 %v12255_v4  ;;  %6310 = vmatmul.mubr.bf16.gmra.mrb[60].mxu0 %v10965_v6 }
 0x31e   : > { %v3604_v12 = vadd.f32 %v7952_v37, %v12256_v55  ;;  %v11233_v22 = vadd.f32 %v8264_v38, %v12257_v27  ;;  %6317 = vmatprep.mubr.bf16.mxu0 %v10321_v45  ;;  %8932 = vmatprep.mubr.msk.bf16.mxu1 %vm9836_vm3, %v12174_v2  ;;  %v11239_v43 = vadd.f32 %v12258_v60, %v3601_v1  ;;  %v12263_v45 = vld [vmem:[#allocation68_spill] sm:$0xff]  ;;  %v2241_v38 = vshrl.u32 %v10974_v17, 16  ;;  %v12264_v27 = vld [vmem:[#allocation49_spill] sm:$0xff] }
 0x31f   : > { %v2245_v55 = vshll.u32 %v9768_v63, 16  ;;  %v9825_v60 = vld [vmem:[#allocation3 + $0x60] sm:$0xff]  }
 0x320   : > { %12259 = vst [vmem:[#allocation31_spill] sm:$0xff] %v11239_v43  ;;  %v8265_v34 = vpop.f32.mrb[212].mxu0  ;;  %v11242_v32 = vadd.f32 %v12260_v50, %v3604_v12 }
 0x321   : > { %v8266_v0 = vpop.f32.mrb[213].mxu0  ;;  %v2247_v17 = vrot.slane %v2245_v55, 1 }
 0x322   : > { %12261 = vst [vmem:[#allocation41_spill] sm:$0xff] %v11242_v32  ;;  %v8267_v44 = vadd.f32 %v8266_v0, %v8265_v34  ;;  %v8268_v6 = vpop.f32.mrb[214].mxu0  ;;  %v2243_v34 = vor.u32 %v2241_v38, %v10997_v49  ;;  %v12266_v38 = vld [vmem:[#allocation52_spill] sm:$0xff] }
 0x323   : > { %v8269_v18 = vpop.f32.mrb[215].mxu0  ;;  %v12299_v32 = vld [vmem:[#allocation32_spill] sm:$0xff] }
 0x324   : > { %v11245_v21 = vadd.f32 %v8267_v44, %v10959_v31  ;;  %v8270_v30 = vadd.f32 %v8269_v18, %v8268_v6  ;;  %v2248_v18 = vsel %vm2124_vm0, %v2243_v34, %v2247_v17 }
 0x325   : > { %8933 = vmatmul.mubr.bf16.gmra.mrb[108].mxu1 %v12262_v25  ;;  %6318 = vmatmul.mubr.bf16.gmra.mrb[64].mxu0 %v10987_v36 }
 0x326   : > { %v11250_v56 = vadd.f32 %v8270_v30, %v12263_v45  ;;  %6325 = vmatprep.mubr.bf16.mxu0 %v10511_v57  ;;  %8936 = vmatprep.mubr.msk.bf16.mxu1 %vm9836_vm3, %v12174_v2  ;;  %v12265_v45 = vld [vmem:[#allocation50_spill] sm:$0xff] }
 0x328   : > { %v8271_v23 = vpop.f32.mrb[216].mxu0 }
 0x329   : > { %v8272_v1 = vpop.f32.mrb[217].mxu0 }
 0x32a   : > { %v8273_v13 = vadd.f32 %v8272_v1, %v8271_v23  ;;  %v8274_v37 = vpop.f32.mrb[218].mxu0  ;;  %v9769_v23 = vld [vmem:[#allocation3 + $0x70] sm:$0xff]  }
 0x32b   : > { %v8275_v31 = vpop.f32.mrb[219].mxu0 }
 0x32c   : > { %v11257_v12 = vadd.f32 %v8273_v13, %v10979_v54  ;;  %v8276_v36 = vadd.f32 %v8275_v31, %v8274_v37 }
 0x32d   : > { %8937 = vmatmul.mubr.bf16.gmra.mrb[112].mxu1 %v12264_v27  ;;  %6326 = vmatmul.mubr.bf16.gmra.mrb[68].mxu0 %v9825_v60 }
 0x32e   : > { %v11261_v57 = vadd.f32 %v8276_v36, %v10984_v26  ;;  %6333 = vmatprep.mubr.bf16.mxu0 %v11006_v15  ;;  %8940 = vmatprep.mubr.msk.bf16.mxu1 %vm9836_vm3, %v12174_v2 }
 0x330   : > { %v8277_v50 = vpop.f32.mrb[220].mxu0 }
 0x331   : > { %v8278_v0 = vpop.f32.mrb[221].mxu0 }
 0x332   : > { %v8279_v54 = vadd.f32 %v8278_v0, %v8277_v50  ;;  %v8280_v44 = vpop.f32.mrb[222].mxu0  ;;  %v12269_v0 = vld [vmem:[#allocation55_spill] sm:$0xff] }
 0x333   : > { %v8281_v6 = vpop.f32.mrb[223].mxu0 }
 0x334   : > { %v11269_v30 = vadd.f32 %v8279_v54, %v11002_v35  ;;  %v8282_v26 = vadd.f32 %v8281_v6, %v8280_v44  ;;  %v12270_v54 = vld [vmem:[#allocation9_spill] sm:$0xff]  ;;  %v12271_v6 = vld [vmem:[#allocation10_spill] sm:$0xff] }
 0x335   : > { %8941 = vmatmul.mubr.bf16.gmra.mrb[116].mxu1 %v12265_v45  ;;  %6334 = vmatmul.mubr.bf16.gmra.mrb[72].mxu0 %v11022_v20  ;;  %v12267_v20 = vld [vmem:[#allocation8_spill] sm:$0xff] }
 0x336   : > { %v11274_v15 = vadd.f32 %v8282_v26, %v11009_v58  ;;  %8944 = vmatprep.mubr.msk.bf16.mxu1 %vm9836_vm3, %v12174_v2  ;;  %6341 = vmatprep.mubr.bf16.mxu0 %v2248_v18 }
 0x338   : > { %v8283_v49 = vpop.f32.mrb[224].mxu0 }
 0x339   : > { %v8284_v63 = vpop.f32.mrb[225].mxu0 }
 0x33a   : > { %v8285_v1 = vadd.f32 %v8284_v63, %v8283_v49  ;;  %v8286_v13 = vpop.f32.mrb[226].mxu0 }
 0x33b   : > { %v8287_v37 = vpop.f32.mrb[227].mxu0 }
 0x33c   : > { %v11279_v35 = vadd.f32 %v8285_v1, %v11024_v41  ;;  %v8288_v31 = vadd.f32 %v8287_v37, %v8286_v13  ;;  %v11291_v41 = vld [vmem:[%s12061_s3 + $0x600] sm:$0xff]   ;;  %v12274_v37 = vld [vmem:[#allocation59_spill] sm:$0xff] }
 0x33d   : > { %8945 = vmatmul.mubr.bf16.gmra.mrb[120].mxu1 %v12266_v38  ;;  %6342 = vmatmul.mubr.bf16.gmra.mrb[76].mxu0 %v9769_v23  ;;  %12268 = vst [vmem:[#allocation35_spill] sm:$0xff] %v11291_v41  ;;  %v11315_v23 = vld [vmem:[%s12061_s3 + $0x610] sm:$0xff]  }
 0x33e   : > { %v11283_v58 = vadd.f32 %v8288_v31, %v11027_v29  ;;  %6382 = vmatprep.mubr.bf16.mxu0 %v12267_v20  ;;  %8948 = vmatprep.mubr.msk.bf16.mxu1 %vm9836_vm3, %v12174_v2  ;;  %12273 = vst [vmem:[#allocation45_spill] sm:$0xff] %v11315_v23  ;;  %v12275_v31 = vld [vmem:[#allocation11_spill] sm:$0xff] }
 0x340   : > { %v8289_v55 = vpop.f32.mrb[228].mxu0 }
 0x341   : > { %v8290_v36 = vpop.f32.mrb[229].mxu0 }
 0x342   : > { %v8291_v60 = vadd.f32 %v8290_v36, %v8289_v55  ;;  %v8292_v34 = vpop.f32.mrb[230].mxu0  ;;  %v12276_v36 = vld [vmem:[#allocation12_spill] sm:$0xff] }
 0x343   : > { %v8293_v17 = vpop.f32.mrb[231].mxu0 }
 0x344   : > { %v11294_v50 = vadd.f32 %v8291_v60, %v11040_v61  ;;  %v8294_v29 = vadd.f32 %v8293_v17, %v8292_v34  ;;  %v11308_v61 = vld [vmem:[%s12061_s3 + $0x608] sm:$0xff]  }
 0x345   : > { %8949 = vmatmul.mubr.bf16.gmra.mrb[124].mxu1 %v12269_v0  ;;  %6383 = vmatmul.mubr.bf16.vlgmr.msra.gmra.mrb[80].mxu0 %v12270_v54  ;;  %12272 = vst [vmem:[#allocation37_spill] sm:$0xff] %v11308_v61 }
 0x346   : > { %v11299_v44 = vadd.f32 %v8294_v29, %v11046_v3  ;;  %6390 = vmatprep.mubr.bf16.mxu0 %v12271_v6  ;;  %8952 = vmatprep.mubr.msk.bf16.mxu1 %vm9836_vm3, %v12174_v2 }
 0x347   : > { %9077 = vmatpush3.bf16.msra.mxu0 %v11291_v41  ;;  %v12294_v41 = vld [vmem:[#allocation26_spill] sm:$0xff] }
 0x348   : > { %v8295_v18 = vpop.f32.mrb[232].mxu0  ;;  %9078 = vmatprep.subr.bf16.mxu0 %v12174_v2 }
 0x349   : > { %v8296_v26 = vpop.f32.mrb[233].mxu0 }
 0x34a   : > { %v8297_v49 = vadd.f32 %v8296_v26, %v8295_v18  ;;  %v8298_v63 = vpop.f32.mrb[234].mxu0  ;;  %v9778_v26 = vld [vmem:[%s12061_s3 + $0x488] sm:$0xff]  }
 0x34b   : > { %v8299_v3 = vpop.f32.mrb[235].mxu0  ;;  %9079 = vmatpush3.bf16.msra.mxu0 %v11308_v61  ;;  %v9791_v61 = vld [vmem:[%s12061_s3 + $0x4a8] sm:$0xff]  }
 0x34c   : > { %v11318_v1 = vadd.f32 %v8297_v49, %v11068_v28  ;;  %v8300_v13 = vadd.f32 %v8299_v3, %v8298_v63  ;;  %9080 = vmatprep.subr.bf16.mxu0 %v12174_v2  ;;  %v11333_v28 = vld [vmem:[%s12061_s3 + $0x618] sm:$0xff]   ;;  %v11350_v3 = vld [vmem:[%s12061_s3 + $0x620] sm:$0xff]  }
 0x34d   : > { %8953 = vmatmul.mubr.bf16.gmra.mrb[128].mxu1 %v12274_v37  ;;  %6391 = vmatmul.mubr.bf16.gmra.mrb[84].mxu0 %v12275_v31  ;;  %12277 = vst [vmem:[#allocation47_spill] sm:$0xff] %v11333_v28  ;;  %12278 = vst [vmem:[#allocation40_spill] sm:$0xff] %v11350_v3 }
 0x34e   : > { %v11324_v55 = vadd.f32 %v8300_v13, %v11074_v62  ;;  %6398 = vmatprep.mubr.bf16.mxu0 %v12276_v36  ;;  %8972 = vmatprep.mubr.msk.bf16.mxu1 %vm9836_vm3, %v12174_v2  ;;  %v9777_v62 = vld [vmem:[%s12061_s3 + $0x440] sm:$0xff]  }
 0x34f   : > { %9081 = vmatpush3.bf16.msra.mxu0 %v11315_v23  ;;  %v12279_v13 = vld [vmem:[#allocation13_spill] sm:$0xff]  ;;  %v9782_v23 = vld [vmem:[%s12061_s3 + $0x498] sm:$0xff]  }
 0x350   : > { %v8301_v60 = vpop.f32.mrb[236].mxu0  ;;  %9082 = vmatprep.subr.bf16.mxu0 %v12174_v2 }
 0x351   : > { %v8302_v34 = vpop.f32.mrb[237].mxu0 }
 0x352   : > { %v8303_v17 = vadd.f32 %v8302_v34, %v8301_v60  ;;  %v8304_v29 = vpop.f32.mrb[238].mxu0  ;;  %v12280_v34 = vld [vmem:[#allocation14_spill] sm:$0xff] }
 0x353   : > { %v8305_v18 = vpop.f32.mrb[239].mxu0  ;;  %9083 = vmatpush3.bf16.msra.mxu0 %v11333_v28 }
 0x354   : > { %v11344_v49 = vadd.f32 %v8303_v17, %v11097_v14  ;;  %v8306_v63 = vadd.f32 %v8305_v18, %v8304_v29  ;;  %9084 = vmatprep.subr.bf16.mxu0 %v12174_v2  ;;  %v9779_v14 = vld [vmem:[%s12061_s3 + $0x448] sm:$0xff]  }
 0x355   : > { %8973 = vmatmul.mubr.bf16.vlgmr.msra.gmra.mrb[88].mxu1 %v12249_v51  ;;  %6399 = vmatmul.mubr.bf16.gmra.mrb[88].mxu0 %v12279_v13  ;;  %v9780_v51 = vld [vmem:[%s12061_s3 + $0x490] sm:$0xff]  }
 0x356   : > { %v11355_v60 = vadd.f32 %v8306_v63, %v11103_v42  ;;  %8421 = vmatpush3.bf16.msra.mxu1 %v9777_v62  ;;  %6406 = vmatprep.mubr.bf16.mxu0 %v12280_v34  ;;  %v11370_v42 = vld [vmem:[%s12061_s3 + $0x628] sm:$0xff]  }
 0x357   : > { %8976 = vmatprep.mubr.msk.bf16.mxu1 %vm9836_vm3, %v12174_v2  ;;  %8422 = vmatprep.subr.bf16.mxu1 %v9778_v26  ;;  %12281 = vst [vmem:[#allocation42_spill] sm:$0xff] %v11370_v42  ;;  %v9781_v26 = vld [vmem:[%s12061_s3 + $0x450] sm:$0xff]  }
 0x358   : > { %v8307_v17 = vpop.f32.mrb[240].mxu0  ;;  %9085 = vmatpush3.bf16.msra.mxu0 %v11350_v3 }
 0x359   : > { %v8308_v29 = vpop.f32.mrb[241].mxu0  ;;  %9086 = vmatprep.subr.bf16.mxu0 %v12174_v2 }
 0x35a   : > { %v8309_v62 = vadd.f32 %v8308_v29, %v8307_v17  ;;  %v8310_v18 = vpop.f32.mrb[242].mxu0  ;;  %8423 = vmatpush3.bf16.msra.mxu1 %v9779_v14  ;;  %v11386_v14 = vld [vmem:[%s12061_s3 + $0x630] sm:$0xff]   ;;  %v9783_v17 = vld [vmem:[%s12061_s3 + $0x458] sm:$0xff]  }
 0x35b   : > { %v8311_v63 = vpop.f32.mrb[243].mxu0  ;;  %8424 = vmatprep.subr.bf16.mxu1 %v9780_v51  ;;  %12282 = vst [vmem:[#allocation33_spill] sm:$0xff] %v11386_v14 }
 0x35c   : > { %v11377_v28 = vadd.f32 %v8309_v62, %v11132_v9  ;;  %v8312_v3 = vadd.f32 %v8311_v63, %v8310_v18  ;;  %9087 = vmatpush3.bf16.msra.mxu0 %v11370_v42  ;;  %v12283_v9 = vld [vmem:[#allocation17_spill] sm:$0xff] }
 0x35d   : > { %8977 = vmatmul.mubr.bf16.gmra.mrb[92].mxu1 %v12252_v52  ;;  %6407 = vmatmul.mubr.bf16.gmra.mrb[92].mxu0 %v10488_v24  ;;  %v9785_v62 = vld [vmem:[%s12061_s3 + $0x4a0] sm:$0xff]   ;;  %v12295_v52 = vld [vmem:[#allocation27_spill] sm:$0xff] }
 0x35e   : > { %v11391_v51 = vadd.f32 %v8312_v3, %v11142_v8  ;;  %6414 = vmatprep.mubr.bf16.mxu0 %v12283_v9  ;;  %8980 = vmatprep.mubr.msk.bf16.mxu1 %vm9836_vm3, %v12174_v2  ;;  %v11407_v8 = vld [vmem:[%s12061_s3 + $0x638] sm:$0xff]  }
 0x35f   : > { %8425 = vmatpush3.bf16.msra.mxu1 %v9781_v26  ;;  %9088 = vmatprep.subr.bf16.mxu0 %v12174_v2  ;;  %12284 = vst [vmem:[#allocation46_spill] sm:$0xff] %v11407_v8 }
 0x360   : > { %v8313_v29 = vpop.f32.mrb[244].mxu0  ;;  %8426 = vmatprep.subr.bf16.mxu1 %v9782_v23  ;;  %9089 = vmatpush3.bf16.msra.mxu0 %v11386_v14  ;;  %v9786_v23 = vld [vmem:[%s12061_s3 + $0x460] sm:$0xff]  }
 0x361   : > { %v8314_v3 = vpop.f32.mrb[245].mxu0  ;;  %9090 = vmatprep.subr.bf16.mxu0 %v12174_v2 }
 0x362   : > { %v8315_v18 = vadd.f32 %v8314_v3, %v8313_v29  ;;  %v8316_v63 = vpop.f32.mrb[246].mxu0  ;;  %v12287_v29 = vld [vmem:[#allocation20_spill] sm:$0xff]  ;;  %v9797_v3 = vld [vmem:[%s12061_s3 + $0x4b0] sm:$0xff]  }
 0x363   : > { %v8317_v26 = vpop.f32.mrb[247].mxu0  ;;  %8427 = vmatpush3.bf16.msra.mxu1 %v9783_v17 }
 0x364   : > { %v11414_v42 = vadd.f32 %v8315_v18, %v11169_v48  ;;  %v8318_v14 = vadd.f32 %v8317_v26, %v8316_v63  ;;  %8428 = vmatprep.subr.bf16.mxu1 %v9785_v62  ;;  %9091 = vmatpush3.bf16.msra.mxu0 %v11407_v8  ;;  %v9792_v48 = vld [vmem:[%s12061_s3 + $0x468] sm:$0xff]   ;;  %v9799_v26 = vld [vmem:[%s12061_s3 + $0x470] sm:$0xff]   ;;  %v12290_v8 = vld [vmem:[#allocation24_spill] sm:$0xff] }
 0x365   : > { %8981 = vmatmul.mubr.bf16.gmra.mrb[96].mxu1 %v12255_v4  ;;  %6415 = vmatmul.mubr.bf16.gmra.mrb[96].mxu0 %v10501_v40  ;;  %v12297_v40 = vld [vmem:[#allocation69_spill] sm:$0xff] }
 0x366   : > { %12285 = vst [vmem:[#allocation48_spill] sm:$0xff] %v11414_v42  ;;  %v11423_v17 = vadd.f32 %v8318_v14, %v11175_v46  ;;  %6422 = vmatprep.mubr.bf16.mxu0 %v12287_v29  ;;  %8984 = vmatprep.mubr.msk.bf16.mxu1 %vm9836_vm3, %v12174_v2 }
 0x367   : > { %8429 = vmatpush3.bf16.msra.mxu1 %v9786_v23 }
 0x368   : > { %12286 = vst [vmem:[#allocation34_spill] sm:$0xff] %v11423_v17  ;;  %v8354_v62 = vpop.f32.mrb[248].mxu0  ;;  %8430 = vmatprep.subr.bf16.mxu1 %v9791_v61  ;;  %v9801_v61 = vld [vmem:[%s12061_s3 + $0x4b8] sm:$0xff]  }
 0x369   : > { %v8355_v18 = vpop.f32.mrb[249].mxu0 }
 0x36a   : > { %v11434_v63 = vadd.f32 %v8355_v18, %v8354_v62  ;;  %v8357_v46 = vpop.f32.mrb[250].mxu0  ;;  %v12291_v62 = vld [vmem:[#allocation25_spill] sm:$0xff] }
 0x36b   : > { %v8358_v14 = vpop.f32.mrb[251].mxu0  ;;  %8431 = vmatpush3.bf16.msra.mxu1 %v9792_v48  ;;  %v9802_v48 = vld [vmem:[%s12061_s3 + $0x478] sm:$0xff]  }
 0x36c   : > { %12288 = vst [vmem:[#allocation38_spill] sm:$0xff] %v11434_v63  ;;  %v11439_v23 = vadd.f32 %v8358_v14, %v8357_v46  ;;  %8432 = vmatprep.subr.bf16.mxu1 %v9797_v3 }
 0x36d   : > { %8985 = vmatmul.mubr.bf16.gmra.mrb[100].mxu1 %v12262_v25  ;;  %6423 = vmatmul.mubr.bf16.gmra.mrb[100].mxu0 %v12290_v8 }
 0x36e   : > { %12289 = vst [vmem:[#allocation57_spill] sm:$0xff] %v11439_v23  ;;  %6430 = vmatprep.mubr.bf16.mxu0 %v12291_v62  ;;  %8988 = vmatprep.mubr.msk.bf16.mxu1 %vm9836_vm3, %v12174_v2 }
 0x36f   : > { %8433 = vmatpush3.bf16.msra.mxu1 %v9799_v26  ;;  %v9788_v26 = vld [vmem:[#allocation3 + $0x70] sm:$0xff]  }
 0x370   : > { %v8360_v18 = vpop.f32.mrb[252].mxu0  ;;  %8434 = vmatprep.subr.bf16.mxu1 %v9801_v61  ;;  %v2686_v62 = vshrl.u32 %v9788_v26, 16 }
 0x371   : > { %v8361_v3 = vpop.f32.mrb[253].mxu0 }
 0x372   : > { %v11452_v46 = vadd.f32 %v8361_v3, %v8360_v18  ;;  %v8363_v14 = vpop.f32.mrb[254].mxu0  ;;  %v2688_v42 = vrot.slane %v2686_v62, 1 }
 0x373   : > { %v8364_v23 = vpop.f32.mrb[255].mxu0  ;;  %8435 = vmatpush3.bf16.msra.mxu1 %v9802_v48  ;;  %v2689_v48 = vshll.u32 %v9788_v26, 16  ;;  %v12300_v26 = vld [vmem:[#allocation70_spill] sm:$0xff] }
 0x374   : > { %12292 = vst [vmem:[#allocation58_spill] sm:$0xff] %v11452_v46  ;;  %v11454_v63 = vadd.f32 %v8364_v23, %v8363_v14  ;;  %9016 = vmatprep.subr.bf16.mxu1 %v12174_v2 }
 0x375   : > { %8989 = vmatmul.mubr.bf16.gmra.mrb[104].mxu1 %v12264_v27  ;;  %6431 = vmatmul.mubr.bf16.gmra.mrb[104].mxu0 %v12294_v41  ;;  %v9795_v41 = vld [vmem:[#allocation3 + $0x78] ss:$0 sps:$4 sm:$0x33]   ;;  %v2691_v24 = vrot.slane %v2689_v48, 2 }
 0x376   : > { %12293 = vst [vmem:[#allocation64_spill] sm:$0xff] %v11454_v63  ;;  %6438 = vmatprep.mubr.bf16.mxu0 %v12295_v52  ;;  %8992 = vmatprep.mubr.msk.bf16.mxu1 %vm9836_vm3, %v12174_v2 }
 0x377   : > { %v2692_v48 = vor.u32 %v2691_v24, %v2688_v42  ;;  %v12307_v24 = vld [vmem:[#allocation51_spill] sm:$0xff] }
 0x378   : > { %v8070_v61 = vpop.f32.mrb[132].mxu1  ;;  %v8366_v18 = vpop.f32.mrb[0].mxu0 }
 0x379   : > { %v8071_v3 = vpop.f32.mrb[133].mxu1  ;;  %v8367_v46 = vpop.f32.mrb[1].mxu0  ;;  %v11488_v42 = vsel %vm2559_vm1, %v12307_v24, %v2692_v48  ;;  %v9796_v24 = vld [vmem:[#allocation3 + $0x78] ss:$0 sps:$4 sm:$0x11]  }
 0x37a   : > { %v8072_v23 = vadd.f32 %v8071_v3, %v8070_v61  ;;  %v11462_v14 = vadd.f32 %v8367_v46, %v8366_v18  ;;  %v8073_v63 = vpop.f32.mrb[134].mxu1  ;;  %v8369_v8 = vpop.f32.mrb[2].mxu0  ;;  %v12301_v46 = vld [vmem:[#allocation54_spill] sm:$0xff] }
 0x37b   : > { %v8074_v27 = vpop.f32.mrb[135].mxu1  ;;  %v8370_v29 = vpop.f32.mrb[3].mxu0 }
 0x37c   : > { %12296 = vst [vmem:[#allocation65_spill] sm:$0xff] %v11462_v14  ;;  %v9153_v17 = vadd.f32 %v12297_v40, %v8072_v23  ;;  %v8075_v52 = vadd.f32 %v8074_v27, %v8073_v63  ;;  %v11465_v9 = vadd.f32 %v8370_v29, %v8369_v8  ;;  %v2695_v40 = vshrl.u32 %v9795_v41, 16 }
 0x37d   : > { %8993 = vmatmul.mubr.bf16.gmra.mrb[108].mxu1 %v12265_v45  ;;  %6439 = vmatmul.mubr.bf16.gmra.mrb[108].mxu0 %v12299_v32  ;;  %v2698_v27 = vshll.u32 %v9795_v41, 16 }
 0x37e   : > { %12298 = vst [vmem:[#allocation43_spill] sm:$0xff] %v11465_v9  ;;  %v9160_v61 = vadd.f32 %v12300_v26, %v8075_v52  ;;  %6446 = vmatprep.mubr.bf16.mxu0 %v12301_v46  ;;  %8996 = vmatprep.mubr.msk.bf16.mxu1 %vm9836_vm3, %v12174_v2  ;;  %v11474_v18 = vadd.f32 %v9153_v17, %v11200_v47  ;;  %v2697_v46 = vrot.slane %v2695_v40, 1  ;;  %v9710_v17 = vld [vmem:[#allocation3 + $0x70] sm:$0xff]  }
 0x37f   : > { %v2700_v47 = vrot.slane %v2698_v27, 2 }
 0x380   : > { %12302 = vst [vmem:[#allocation66_spill] sm:$0xff] %v11474_v18  ;;  %v8076_v8 = vpop.f32.mrb[136].mxu1  ;;  %v8372_v29 = vpop.f32.mrb[4].mxu0  ;;  %v11477_v63 = vadd.f32 %v9160_v61, %v11207_v16  ;;  %v12304_v18 = vld [vmem:[#allocation71_spill] sm:$0xff]  ;;  %v12306_v16 = vld [vmem:[#allocation56_spill] sm:$0xff]  ;;  %v12308_v61 = vld [vmem:[#allocation18_spill] sm:$0xff] }
 0x381   : > { %v8077_v3 = vpop.f32.mrb[137].mxu1  ;;  %v8373_v62 = vpop.f32.mrb[5].mxu0 }
 0x382   : > { %v8078_v23 = vadd.f32 %v8077_v3, %v8076_v8  ;;  %v11479_v52 = vadd.f32 %v8373_v62, %v8372_v29  ;;  %v8079_v26 = vpop.f32.mrb[138].mxu1  ;;  %v8375_v9 = vpop.f32.mrb[6].mxu0 }
 0x383   : > { %v8080_v14 = vpop.f32.mrb[139].mxu1  ;;  %v8376_v45 = vpop.f32.mrb[7].mxu0 }
 0x384   : > { %12303 = vst [vmem:[#allocation67_spill] sm:$0xff] %v11479_v52  ;;  %v9167_v41 = vadd.f32 %v12304_v18, %v8078_v23  ;;  %v8081_v32 = vadd.f32 %v8080_v14, %v8079_v26  ;;  %v11482_v43 = vadd.f32 %v8376_v45, %v8375_v9  ;;  %v2701_v45 = vor.u32 %v2700_v47, %v2697_v46 }
 0x385   : > { %8997 = vmatmul.mubr.bf16.gmra.mrb[112].mxu1 %v12266_v38  ;;  %6447 = vmatmul.mubr.bf16.gmra.mrb[112].mxu0 %v12306_v16  ;;  %v2416_v9 = vrot.slane %v9710_v17, 1  ;;  %v12311_v17 = vld [vmem:[#allocation15_spill] sm:$0xff] }
 0x386   : > { %12305 = vst [vmem:[#allocation62_spill] sm:$0xff] %v11482_v43  ;;  %v9174_v8 = vadd.f32 %v12308_v61, %v8081_v32  ;;  %6454 = vmatprep.mubr.bf16.mxu0 %v11488_v42  ;;  %9000 = vmatprep.mubr.msk.bf16.mxu1 %vm9836_vm3, %v12174_v2  ;;  %v11495_v18 = vadd.f32 %v9167_v41, %v11227_v11  ;;  %v12309_v41 = vld [vmem:[#allocation53_spill] sm:$0xff] }
 0x387   : > { %v2702_v11 = vsel %vm2559_vm1, %v2692_v48, %v2701_v45  ;;  %v12310_v46 = vrot.slane %v12309_v41, 1  ;;  %v2418_v48 = vrot.slane %v9796_v24, 1 }
 0x388   : > { %v8082_v14 = vpop.f32.mrb[140].mxu1  ;;  %v8378_v40 = vpop.f32.mrb[8].mxu0  ;;  %v11498_v27 = vadd.f32 %v9174_v8, %v11233_v22 }
 0x389   : > { %v8083_v29 = vpop.f32.mrb[141].mxu1  ;;  %v8379_v3 = vpop.f32.mrb[9].mxu0  ;;  %v11506_v47 = vsel %vm2388_vm2, %v12310_v46, %v2416_v9  ;;  %v2419_v46 = vsel %vm2388_vm2, %v2416_v9, %v2418_v48 }
 0x38a   : > { %v8084_v62 = vadd.f32 %v8083_v29, %v8082_v14  ;;  %v11500_v23 = vadd.f32 %v8379_v3, %v8378_v40  ;;  %v8085_v32 = vpop.f32.mrb[142].mxu1  ;;  %v8381_v26 = vpop.f32.mrb[10].mxu0  ;;  %v12312_v40 = vld [vmem:[#allocation28_spill] sm:$0xff] }
 0x38b   : > { %v8086_v61 = vpop.f32.mrb[143].mxu1  ;;  %v8382_v43 = vpop.f32.mrb[11].mxu0 }
 0x38c   : > { %v9181_v22 = vadd.f32 %v12311_v17, %v8084_v62  ;;  %v8087_v8 = vadd.f32 %v8086_v61, %v8085_v32  ;;  %v11509_v52 = vadd.f32 %v8382_v43, %v8381_v26 }
 0x38d   : > { %9001 = vmatmul.mubr.bf16.gmra.mrb[116].mxu1 %v12269_v0  ;;  %6455 = vmatmul.mubr.bf16.gmra.mrb[116].mxu0 %v11506_v47 }
 0x38e   : > { %v11514_v14 = vadd.f32 %v9181_v22, %v11245_v21  ;;  %v9187_v29 = vadd.f32 %v12312_v40, %v8087_v8  ;;  %9004 = vmatprep.mubr.msk.bf16.mxu1 %vm9836_vm3, %v12174_v2  ;;  %6462 = vmatprep.mubr.bf16.mxu0 %v2702_v11  ;;  %v12314_v8 = vld [vmem:[#allocation22_spill] sm:$0xff] }
 0x390   : > { %v11520_v45 = vadd.f32 %v9187_v29, %v11250_v56  ;;  %v8088_v3 = vpop.f32.mrb[144].mxu1  ;;  %v8384_v43 = vpop.f32.mrb[12].mxu0  ;;  %v12316_v29 = vld [vmem:[#allocation30_spill] sm:$0xff] }
 0x391   : > { %v8089_v62 = vpop.f32.mrb[145].mxu1  ;;  %v8385_v32 = vpop.f32.mrb[13].mxu0 }
 0x392   : > { %v8090_v26 = vadd.f32 %v8089_v62, %v8088_v3  ;;  %v11522_v61 = vadd.f32 %v8385_v32, %v8384_v43  ;;  %v8091_v41 = vpop.f32.mrb[146].mxu1  ;;  %v8387_v21 = vpop.f32.mrb[14].mxu0 }
 0x393   : > { %v8092_v17 = vpop.f32.mrb[147].mxu1  ;;  %v8388_v22 = vpop.f32.mrb[15].mxu0 }
 0x394   : > { %12313 = vst [vmem:[#allocation63_spill] sm:$0xff] %v11522_v61  ;;  %v9193_v40 = vadd.f32 %v12314_v8, %v8090_v26  ;;  %v8093_v11 = vadd.f32 %v8092_v17, %v8091_v41  ;;  %v11526_v24 = vadd.f32 %v8388_v22, %v8387_v21  ;;  %v12318_v22 = vld [vmem:[#allocation21_spill] sm:$0xff] }
 0x395   : > { %9005 = vmatmul.mubr.bf16.gmra.mrb[120].mxu1 %v12274_v37  ;;  %6463 = vmatmul.mubr.bf16.gmra.mrb[120].mxu0 %v2419_v46 }
 0x396   : > { %12315 = vst [vmem:[#allocation44_spill] sm:$0xff] %v11526_v24  ;;  %v11530_v56 = vadd.f32 %v9193_v40, %v11257_v12  ;;  %v9199_v3 = vadd.f32 %v12316_v29, %v8093_v11  ;;  %9008 = vmatprep.mubr.msk.bf16.mxu1 %vm9836_vm3, %v12174_v2  ;;  %9092 = vmatprep.mubr.msk.bf16.mxu0 %vm9836_vm3, %v12174_v2  ;;  %v11545_v29 = vld [vmem:[#allocation3 + $0x68] sm:$0xff]  }
 0x398   : > { %v11538_v9 = vadd.f32 %v9199_v3, %v11261_v57  ;;  %v8094_v48 = vpop.f32.mrb[148].mxu1  ;;  %v8390_v43 = vpop.f32.mrb[16].mxu0  ;;  %v12320_v57 = vld [vmem:[#allocation61_spill] sm:$0xff] }
 0x399   : > { %v8095_v62 = vpop.f32.mrb[149].mxu1  ;;  %v8391_v32 = vpop.f32.mrb[17].mxu0 }
 0x39a   : > { %v8096_v26 = vadd.f32 %v8095_v62, %v8094_v48  ;;  %v11540_v41 = vadd.f32 %v8391_v32, %v8390_v43  ;;  %v8097_v12 = vpop.f32.mrb[150].mxu1  ;;  %v8393_v21 = vpop.f32.mrb[18].mxu0  ;;  %v12321_v48 = vld [vmem:[#allocation23_spill] sm:$0xff] }
 0x39b   : > { %v8098_v46 = vpop.f32.mrb[151].mxu1  ;;  %v8394_v17 = vpop.f32.mrb[19].mxu0 }
 0x39c   : > { %12317 = vst [vmem:[#allocation68_spill] sm:$0xff] %v11540_v41  ;;  %v9205_v8 = vadd.f32 %v12318_v22, %v8096_v26  ;;  %v8099_v40 = vadd.f32 %v8098_v46, %v8097_v12  ;;  %v11543_v11 = vadd.f32 %v8394_v17, %v8393_v21  ;;  %v12144_v12 = vrot.slane %v11545_v29, 2 }
 0x39d   : > { %9009 = vmatmul.mubr.bf16.gmra.mrb[124].mxu1 %v12320_v57  ;;  %9093 = vmatmul.mubr.bf16.vlgmr.msra.gmra.mrb[124].mxu0 %v12255_v4 }
 0x39e   : > { %12319 = vst [vmem:[#allocation52_spill] sm:$0xff] %v11543_v11  ;;  %v11550_v3 = vadd.f32 %v9205_v8, %v11269_v30  ;;  %v9211_v43 = vadd.f32 %v12321_v48, %v8099_v40  ;;  %9012 = vmatprep.mubr.msk.bf16.mxu1 %vm9836_vm3, %v12174_v2  ;;  %9096 = vmatprep.mubr.msk.bf16.mxu0 %vm9836_vm3, %v12174_v2  ;;  %v12323_v11 = vld [vmem:[#allocation36_spill] sm:$0xff] }
 0x3a0   : > { %v11558_v62 = vadd.f32 %v9211_v43, %v11274_v15  ;;  %v8100_v32 = vpop.f32.mrb[152].mxu1  ;;  %v8396_v26 = vpop.f32.mrb[20].mxu0  ;;  %v12325_v15 = vld [vmem:[#allocation60_spill] sm:$0xff] }
 0x3a1   : > { %v8101_v21 = vpop.f32.mrb[153].mxu1  ;;  %v8397_v46 = vpop.f32.mrb[21].mxu0  ;;  %v12326_v43 = vrot.slane %v12325_v15, 2 }
 0x3a2   : > { %12322 = vst [vmem:[#allocation8_spill] sm:$0xff] %v11558_v62  ;;  %v8102_v17 = vadd.f32 %v8101_v21, %v8100_v32  ;;  %v11561_v30 = vadd.f32 %v8397_v46, %v8396_v26  ;;  %v8103_v22 = vpop.f32.mrb[154].mxu1  ;;  %v8399_v8 = vpop.f32.mrb[22].mxu0  ;;  %v12327_v26 = vld [vmem:[#allocation29_spill] sm:$0xff] }
 0x3a3   : > { %v8104_v40 = vpop.f32.mrb[155].mxu1  ;;  %v8400_v48 = vpop.f32.mrb[23].mxu0  ;;  %v11571_v62 = vsel %vm2842_vm4, %v12326_v43, %v12144_v12 }
 0x3a4   : > { %v9217_v41 = vadd.f32 %v12323_v11, %v8102_v17  ;;  %v8105_v24 = vadd.f32 %v8104_v40, %v8103_v22  ;;  %v11564_v61 = vadd.f32 %v8400_v48, %v8399_v8  ;;  %v12328_v11 = vld [vmem:[#allocation6_spill] sm:$0xff] }
 0x3a5   : > { %9013 = vmatmul.mubr.bf16.gmra.mrb[128].mxu1 %v11571_v62  ;;  %9097 = vmatmul.mubr.bf16.gmra.mrb[128].mxu0 %v12262_v25 }
 0x3a6   : > { %12324 = vst [vmem:[#allocation55_spill] sm:$0xff] %v11564_v61  ;;  %v11576_v32 = vadd.f32 %v9217_v41, %v11279_v35  ;;  %v9223_v21 = vadd.f32 %v12327_v26, %v8105_v24  ;;  %5621 = vmatprep.mubr.bf16.mxu1 %v12328_v11  ;;  %v9804_v35 = vld [vmem:[%s12061_s3 + $0x4c0] sm:$0xff]  }
 0x3a8   : > { %v11581_v46 = vadd.f32 %v9223_v21, %v11283_v58  ;;  %v8106_v17 = vpop.f32.mrb[156].mxu1  ;;  %v8402_v22 = vpop.f32.mrb[24].mxu0  ;;  %v12329_v21 = vld [vmem:[#allocation7_spill] sm:$0xff] }
 0x3a9   : > { %v8107_v8 = vpop.f32.mrb[157].mxu1  ;;  %v8403_v40 = vpop.f32.mrb[25].mxu0 }
 0x3aa   : > { %v8108_v48 = vadd.f32 %v8107_v8, %v8106_v17  ;;  %v11583_v15 = vadd.f32 %v8403_v40, %v8402_v22  ;;  %v8109_v43 = vpop.f32.mrb[158].mxu1  ;;  %v8405_v12 = vpop.f32.mrb[26].mxu0  ;;  %v9805_v22 = vld [vmem:[%s12061_s3 + $0x4c8] sm:$0xff]  }
 0x3ab   : > { %v8110_v41 = vpop.f32.mrb[159].mxu1  ;;  %v8406_v24 = vpop.f32.mrb[27].mxu0 }
 0x3ac   : > { %v9229_v26 = vadd.f32 %v11121_v33, %v8108_v48  ;;  %v8111_v11 = vadd.f32 %v8110_v41, %v8109_v43  ;;  %v11589_v58 = vadd.f32 %v8406_v24, %v8405_v12 }
 0x3ad   : > { %5622 = vmatmul.mubr.bf16.vlgmr.msra.gmra.mrb[176].mxu1 %v12329_v21 }
 0x3ae   : > { %v11593_v61 = vadd.f32 %v9229_v26, %v11294_v50  ;;  %v9235_v17 = vadd.f32 %v11130_v19, %v8111_v11  ;;  %9017 = vmatpush3.bf16.msra.mxu1 %v9804_v35  ;;  %5629 = vmatprep.mubr.bf16.mxu1 %v12267_v20  ;;  %v9806_v20 = vld [vmem:[%s12061_s3 + $0x4d0] sm:$0xff]  }
 0x3af   : > { %9018 = vmatprep.subr.bf16.mxu1 %v12174_v2 }
 0x3b0   : > { %v11602_v33 = vadd.f32 %v9235_v17, %v11299_v44  ;;  %v8112_v12 = vpop.f32.mrb[160].mxu1  ;;  %v8408_v8 = vpop.f32.mrb[28].mxu0 }
 0x3b1   : > { %v8113_v40 = vpop.f32.mrb[161].mxu1  ;;  %v8409_v48 = vpop.f32.mrb[29].mxu0 }
 0x3b2   : > { %v8114_v50 = vadd.f32 %v8113_v40, %v8112_v12  ;;  %v11604_v43 = vadd.f32 %v8409_v48, %v8408_v8  ;;  %v8115_v19 = vpop.f32.mrb[162].mxu1  ;;  %v8411_v35 = vpop.f32.mrb[30].mxu0  ;;  %9019 = vmatpush3.bf16.msra.mxu1 %v9805_v22  ;;  %v9807_v22 = vld [vmem:[%s12061_s3 + $0x4d8] sm:$0xff]  }
 0x3b3   : > { %v8116_v41 = vpop.f32.mrb[163].mxu1  ;;  %v8412_v24 = vpop.f32.mrb[31].mxu0  ;;  %9020 = vmatprep.subr.bf16.mxu1 %v12174_v2 }
 0x3b4   : > { %v9241_v44 = vadd.f32 %v11157_v7, %v8114_v50  ;;  %v8117_v26 = vadd.f32 %v8116_v41, %v8115_v19  ;;  %v11611_v11 = vadd.f32 %v8412_v24, %v8411_v35 }
 0x3b5   : > { %5630 = vmatmul.mubr.bf16.gmra.mrb[180].mxu1 %v12270_v54 }
 0x3b6   : > { %12330 = vst [vmem:[#allocation9_spill] sm:$0xff] %v11611_v11  ;;  %v11615_v21 = vadd.f32 %v9241_v44, %v11318_v1  ;;  %v9247_v17 = vadd.f32 %v11167_v5, %v8117_v26  ;;  %5637 = vmatprep.mubr.bf16.mxu1 %v12271_v6  ;;  %9021 = vmatpush3.bf16.msra.mxu1 %v9806_v20  ;;  %v9808_v6 = vld [vmem:[%s12061_s3 + $0x4e0] sm:$0xff]   ;;  %v9809_v26 = vld [vmem:[%s12061_s3 + $0x4e8] sm:$0xff]  }
 0x3b7   : > { %9022 = vmatprep.subr.bf16.mxu1 %v12174_v2  ;;  %v12362_v11 = vld [vmem:[#allocation46_spill] sm:$0xff] }
 0x3b8   : > { %v11624_v7 = vadd.f32 %v9247_v17, %v11324_v55  ;;  %v8118_v12 = vpop.f32.mrb[164].mxu1  ;;  %v8414_v8 = vpop.f32.mrb[32].mxu0 }
 0x3b9   : > { %v8119_v54 = vpop.f32.mrb[165].mxu1  ;;  %v8415_v40 = vpop.f32.mrb[33].mxu0 }
 0x3ba   : > { %v8120_v1 = vadd.f32 %v8119_v54, %v8118_v12  ;;  %v8121_v48 = vpop.f32.mrb[166].mxu1  ;;  %v11626_v50 = vadd.f32 %v8415_v40, %v8414_v8  ;;  %v8417_v5 = vpop.f32.mrb[34].mxu0  ;;  %9023 = vmatpush3.bf16.msra.mxu1 %v9807_v22 }
 0x3bb   : > { %v8122_v19 = vpop.f32.mrb[167].mxu1  ;;  %v8418_v35 = vpop.f32.mrb[35].mxu0  ;;  %9024 = vmatprep.subr.bf16.mxu1 %v12174_v2 }
 0x3bc   : > { %12331 = vst [vmem:[#allocation10_spill] sm:$0xff] %v11626_v50  ;;  %v9253_v55 = vadd.f32 %v11185_v53, %v8120_v1  ;;  %v8123_v20 = vadd.f32 %v8122_v19, %v8121_v48  ;;  %v11633_v41 = vadd.f32 %v8418_v35, %v8417_v5  ;;  %v9811_v35 = vld [vmem:[%s12061_s3 + $0x4f8] sm:$0xff]   ;;  %v12357_v50 = vld [vmem:[#allocation42_spill] sm:$0xff] }
 0x3bd   : > { %5638 = vmatmul.mubr.bf16.gmra.mrb[184].mxu1 %v12275_v31 }
 0x3be   : > { %12332 = vst [vmem:[#allocation59_spill] sm:$0xff] %v11633_v41  ;;  %v11637_v24 = vadd.f32 %v9253_v55, %v11344_v49  ;;  %v9259_v44 = vadd.f32 %v11193_v59, %v8123_v20  ;;  %5645 = vmatprep.mubr.bf16.mxu1 %v12276_v36  ;;  %9025 = vmatpush3.bf16.msra.mxu1 %v9808_v6  ;;  %v9810_v36 = vld [vmem:[%s12061_s3 + $0x4f0] sm:$0xff]  }
 0x3bf   : > { %9026 = vmatprep.subr.bf16.mxu1 %v12174_v2 }
 0x3c0   : > { %v11646_v53 = vadd.f32 %v9259_v44, %v11355_v60  ;;  %v8124_v17 = vpop.f32.mrb[168].mxu1  ;;  %v8537_v22 = vpop.f32.mrb[36].mxu0 }
 0x3c1   : > { %v8125_v31 = vpop.f32.mrb[169].mxu1  ;;  %v8538_v12 = vpop.f32.mrb[37].mxu0 }
 0x3c2   : > { %v8126_v49 = vadd.f32 %v8125_v31, %v8124_v17  ;;  %v11648_v8 = vadd.f32 %v8538_v12, %v8537_v22  ;;  %v8127_v59 = vpop.f32.mrb[170].mxu1  ;;  %v8540_v54 = vpop.f32.mrb[38].mxu0  ;;  %9027 = vmatpush3.bf16.msra.mxu1 %v9809_v26  ;;  %v12335_v31 = vld [vmem:[#allocation31_spill] sm:$0xff] }
 0x3c3   : > { %v8128_v40 = vpop.f32.mrb[171].mxu1  ;;  %v8541_v1 = vpop.f32.mrb[39].mxu0  ;;  %9028 = vmatprep.subr.bf16.mxu1 %v12174_v2 }
 0x3c4   : > { %v9265_v60 = vadd.f32 %v11213_v10, %v8126_v49  ;;  %v8129_v48 = vadd.f32 %v8128_v40, %v8127_v59  ;;  %v11655_v5 = vadd.f32 %v8541_v1, %v8540_v54  ;;  %v12337_v54 = vld [vmem:[#allocation48_spill] sm:$0xff]  ;;  %v12339_v40 = vld [vmem:[#allocation41_spill] sm:$0xff] }
 0x3c5   : > { %5646 = vmatmul.mubr.bf16.gmra.mrb[188].mxu1 %v12279_v13 }
 0x3c6   : > { %v11659_v6 = vadd.f32 %v9265_v60, %v11377_v28  ;;  %v9271_v19 = vadd.f32 %v11223_v39, %v8129_v48  ;;  %5653 = vmatprep.mubr.bf16.mxu1 %v12280_v34  ;;  %9029 = vmatpush3.bf16.msra.mxu1 %v9810_v36  ;;  %v12340_v60 = vld [vmem:[#allocation17_spill] sm:$0xff]  ;;  %v12341_v48 = vld [vmem:[#allocation34_spill] sm:$0xff] }
 0x3c7   : > { %9030 = vmatprep.subr.bf16.mxu1 %v12174_v2 }
 0x3c8   : > { %12333 = vst [vmem:[#allocation11_spill] sm:$0xff] %v11659_v6  ;;  %v11668_v10 = vadd.f32 %v9271_v19, %v11391_v51  ;;  %v8130_v55 = vpop.f32.mrb[172].mxu1  ;;  %v8543_v20 = vpop.f32.mrb[40].mxu0  ;;  %v12336_v51 = vld [vmem:[#allocation16_spill] sm:$0xff] }
 0x3c9   : > { %v8131_v13 = vpop.f32.mrb[173].mxu1  ;;  %v8544_v44 = vpop.f32.mrb[41].mxu0 }
 0x3ca   : > { %12334 = vst [vmem:[#allocation12_spill] sm:$0xff] %v11668_v10  ;;  %v8132_v28 = vadd.f32 %v8131_v13, %v8130_v55  ;;  %v11670_v26 = vadd.f32 %v8544_v44, %v8543_v20  ;;  %v8133_v39 = vpop.f32.mrb[174].mxu1  ;;  %v8546_v17 = vpop.f32.mrb[42].mxu0  ;;  %9031 = vmatpush3.bf16.msra.mxu1 %v9811_v35 }
 0x3cb   : > { %v8134_v34 = vpop.f32.mrb[175].mxu1  ;;  %v8547_v22 = vpop.f32.mrb[43].mxu0  ;;  %9136 = vmatprep.subr.bf16.mxu1 %v12174_v2 }
 0x3cc   : > { %v9277_v12 = vadd.f32 %v12335_v31, %v8132_v28  ;;  %v8135_v49 = vadd.f32 %v8134_v34, %v8133_v39  ;;  %v11674_v59 = vadd.f32 %v8547_v22, %v8546_v17  ;;  %v12343_v39 = vld [vmem:[#allocation19_spill] sm:$0xff]  ;;  %v12344_v17 = vld [vmem:[#allocation20_spill] sm:$0xff] }
 0x3cd   : > { %5654 = vmatmul.mubr.bf16.gmra.mrb[192].mxu1 %v12336_v51 }
 0x3ce   : > { %v11678_v36 = vadd.f32 %v9277_v12, %v12337_v54  ;;  %v9283_v1 = vadd.f32 %v12339_v40, %v8135_v49  ;;  %5661 = vmatprep.mubr.bf16.mxu1 %v12340_v60  ;;  %v12345_v54 = vld [vmem:[#allocation24_spill] sm:$0xff]  ;;  %v12346_v40 = vld [vmem:[#allocation25_spill] sm:$0xff] }
 0x3d0   : > { %12338 = vst [vmem:[#allocation13_spill] sm:$0xff] %v11678_v36  ;;  %v11683_v19 = vadd.f32 %v9283_v1, %v12341_v48  ;;  %v8549_v35 = vpop.f32.mrb[44].mxu0 }
 0x3d1   : > { %v8550_v55 = vpop.f32.mrb[45].mxu0 }
 0x3d2   : > { %12342 = vst [vmem:[#allocation14_spill] sm:$0xff] %v11683_v19  ;;  %v11685_v20 = vadd.f32 %v8550_v55, %v8549_v35  ;;  %v8552_v13 = vpop.f32.mrb[46].mxu0 }
 0x3d3   : > { %v8553_v44 = vpop.f32.mrb[47].mxu0 }
 0x3d4   : > { %v11687_v28 = vadd.f32 %v8553_v44, %v8552_v13  ;;  %v12347_v44 = vld [vmem:[#allocation26_spill] sm:$0xff] }
 0x3d5   : > { %5662 = vmatmul.mubr.bf16.gmra.mrb[196].mxu1 %v12343_v39  ;;  %v12348_v39 = vld [vmem:[#allocation27_spill] sm:$0xff] }
 0x3d6   : > { %5669 = vmatprep.mubr.bf16.mxu1 %v12344_v17 }
 0x3d8   : > { %v8555_v34 = vpop.f32.mrb[48].mxu0 }
 0x3d9   : > { %v8556_v22 = vpop.f32.mrb[49].mxu0 }
 0x3da   : > { %v11691_v31 = vadd.f32 %v8556_v22, %v8555_v34  ;;  %v8558_v12 = vpop.f32.mrb[50].mxu0 }
 0x3db   : > { %v8559_v49 = vpop.f32.mrb[51].mxu0 }
 0x3dc   : > { %v11693_v51 = vadd.f32 %v8559_v49, %v8558_v12 }
 0x3dd   : > { %5670 = vmatmul.mubr.bf16.gmra.mrb[200].mxu1 %v12345_v54 }
 0x3de   : > { %5677 = vmatprep.mubr.bf16.mxu1 %v12346_v40  ;;  %v12349_v40 = vld [vmem:[#allocation32_spill] sm:$0xff] }
 0x3e0   : > { %v8561_v1 = vpop.f32.mrb[52].mxu0 }
 0x3e1   : > { %v8562_v60 = vpop.f32.mrb[53].mxu0 }
 0x3e2   : > { %v11697_v48 = vadd.f32 %v8562_v60, %v8561_v1  ;;  %v8564_v35 = vpop.f32.mrb[54].mxu0  ;;  %v12350_v1 = vld [vmem:[#allocation54_spill] sm:$0xff] }
 0x3e3   : > { %v8565_v55 = vpop.f32.mrb[55].mxu0 }
 0x3e4   : > { %v11699_v13 = vadd.f32 %v8565_v55, %v8564_v35 }
 0x3e5   : > { %5678 = vmatmul.mubr.bf16.gmra.mrb[204].mxu1 %v12347_v44 }
 0x3e6   : > { %5685 = vmatprep.mubr.bf16.mxu1 %v12348_v39 }
 0x3e8   : > { %v8567_v17 = vpop.f32.mrb[56].mxu0 }
 0x3e9   : > { %v8568_v34 = vpop.f32.mrb[57].mxu0 }
 0x3ea   : > { %v11703_v22 = vadd.f32 %v8568_v34, %v8567_v17  ;;  %v8570_v12 = vpop.f32.mrb[58].mxu0 }
 0x3eb   : > { %v8571_v49 = vpop.f32.mrb[59].mxu0 }
 0x3ec   : > { %v11705_v54 = vadd.f32 %v8571_v49, %v8570_v12 }
 0x3ed   : > { %5686 = vmatmul.mubr.bf16.gmra.mrb[208].mxu1 %v12349_v40 }
 0x3ee   : > { %5693 = vmatprep.mubr.bf16.mxu1 %v12350_v1 }
 0x3f0   : > { %v8573_v60 = vpop.f32.mrb[60].mxu0 }
 0x3f1   : > { %v8574_v19 = vpop.f32.mrb[61].mxu0 }
 0x3f2   : > { %v11709_v35 = vadd.f32 %v8574_v19, %v8573_v60  ;;  %v8576_v55 = vpop.f32.mrb[62].mxu0 }
 0x3f3   : > { %v8577_v44 = vpop.f32.mrb[63].mxu0 }
 0x3f4   : > { %v11711_v36 = vadd.f32 %v8577_v44, %v8576_v55  ;;  %v12351_v44 = vld [vmem:[#allocation39_spill] sm:$0xff] }
 0x3f5   : > { %5694 = vmatmul.mubr.bf16.gmra.mrb[212].mxu1 %v12306_v16 }
 0x3f6   : > { %5701 = vmatprep.mubr.bf16.mxu1 %v11488_v42 }
 0x3f8   : > { %v8579_v39 = vpop.f32.mrb[64].mxu0 }
 0x3f9   : > { %v8580_v17 = vpop.f32.mrb[65].mxu0 }
 0x3fa   : > { %v11715_v34 = vadd.f32 %v8580_v17, %v8579_v39  ;;  %v8582_v12 = vpop.f32.mrb[66].mxu0  ;;  %v12352_v39 = vld [vmem:[#allocation35_spill] sm:$0xff] }
 0x3fb   : > { %v8583_v49 = vpop.f32.mrb[67].mxu0 }
 0x3fc   : > { %v11717_v40 = vadd.f32 %v8583_v49, %v8582_v12 }
 0x3fd   : > { %5702 = vmatmul.mubr.bf16.gmra.mrb[216].mxu1 %v11506_v47 }
 0x3fe   : > { %9032 = vmatprep.mubr.msk.bf16.mxu1 %vm9836_vm3, %v12174_v2 }
 0x400   : > { %v8585_v19 = vpop.f32.mrb[68].mxu0 }
 0x401   : > { %v8586_v1 = vpop.f32.mrb[69].mxu0 }
 0x402   : > { %v11722_v60 = vadd.f32 %v8586_v1, %v8585_v19  ;;  %v8588_v16 = vpop.f32.mrb[70].mxu0  ;;  %v12353_v19 = vld [vmem:[#allocation37_spill] sm:$0xff] }
 0x403   : > { %v8589_v55 = vpop.f32.mrb[71].mxu0 }
 0x404   : > { %v11724_v42 = vadd.f32 %v8589_v55, %v8588_v16  ;;  %v12354_v55 = vld [vmem:[#allocation45_spill] sm:$0xff] }
 0x405   : > { %9033 = vmatmul.mubr.bf16.vlgmr.msra.gmra.mrb[88].mxu1 %v12351_v44 }
 0x406   : > { %9144 = vmatpush3.bf16.msra.mxu1 %v12352_v39  ;;  %9036 = vmatprep.mubr.msk.bf16.mxu1 %vm9836_vm3, %v12174_v2 }
 0x407   : > { %9137 = vmatprep.subr.bf16.mxu1 %v12174_v2 }
 0x408   : > { %v8591_v47 = vpop.f32.mrb[72].mxu0 }
 0x409   : > { %v8592_v17 = vpop.f32.mrb[73].mxu0 }
 0x40a   : > { %v11731_v12 = vadd.f32 %v8592_v17, %v8591_v47  ;;  %v8594_v49 = vpop.f32.mrb[74].mxu0  ;;  %9145 = vmatpush3.bf16.msra.mxu1 %v12353_v19  ;;  %v12355_v19 = vld [vmem:[#allocation47_spill] sm:$0xff] }
 0x40b   : > { %v8595_v1 = vpop.f32.mrb[75].mxu0  ;;  %9138 = vmatprep.subr.bf16.mxu1 %v12174_v2 }
 0x40c   : > { %v11735_v16 = vadd.f32 %v8595_v1, %v8594_v49 }
 0x40d   : > { %9037 = vmatmul.mubr.bf16.gmra.mrb[92].mxu1 %v12255_v4  ;;  %v12356_v4 = vld [vmem:[#allocation40_spill] sm:$0xff] }
 0x40e   : > { %9040 = vmatprep.mubr.msk.bf16.mxu1 %vm9836_vm3, %v12174_v2  ;;  %9146 = vmatpush3.bf16.msra.mxu1 %v12354_v55 }
 0x40f   : > { %9139 = vmatprep.subr.bf16.mxu1 %v12174_v2 }
 0x410   : > { %v8597_v44 = vpop.f32.mrb[76].mxu0 }
 0x411   : > { %v8598_v39 = vpop.f32.mrb[77].mxu0 }
 0x412   : > { %v11742_v47 = vadd.f32 %v8598_v39, %v8597_v44  ;;  %v8600_v17 = vpop.f32.mrb[78].mxu0  ;;  %9147 = vmatpush3.bf16.msra.mxu1 %v12355_v19 }
 0x413   : > { %v8601_v41 = vpop.f32.mrb[79].mxu0  ;;  %9140 = vmatprep.subr.bf16.mxu1 %v12174_v2 }
 0x414   : > { %v11746_v49 = vadd.f32 %v8601_v41, %v8600_v17  ;;  %v12359_v17 = vld [vmem:[#allocation49_spill] sm:$0xff] }
 0x415   : > { %9041 = vmatmul.mubr.bf16.gmra.mrb[96].mxu1 %v12262_v25 }
 0x416   : > { %9044 = vmatprep.mubr.msk.bf16.mxu1 %vm9836_vm3, %v12174_v2  ;;  %9148 = vmatpush3.bf16.msra.mxu1 %v12356_v4  ;;  %v12361_v4 = vld [vmem:[#allocation33_spill] sm:$0xff] }
 0x417   : > { %9141 = vmatprep.subr.bf16.mxu1 %v12174_v2 }
 0x418   : > { %v8619_v1 = vpop.f32.mrb[80].mxu0 }
 0x419   : > { %v8620_v55 = vpop.f32.mrb[81].mxu0 }
 0x41a   : > { %v8621_v44 = vadd.f32 %v8620_v55, %v8619_v1  ;;  %v8622_v39 = vpop.f32.mrb[82].mxu0  ;;  %9149 = vmatpush3.bf16.msra.mxu1 %v12357_v50 }
 0x41b   : > { %v8623_v19 = vpop.f32.mrb[83].mxu0  ;;  %9142 = vmatprep.subr.bf16.mxu1 %v12174_v2 }
 0x41c   : > { %v11756_v41 = vadd.f32 %v8621_v44, %v11648_v8  ;;  %v8624_v25 = vadd.f32 %v8623_v19, %v8622_v39 }
 0x41d   : > { %9045 = vmatmul.mubr.bf16.gmra.mrb[100].mxu1 %v12359_v17 }
 0x41e   : > { %12358 = vst [vmem:[#allocation69_spill] sm:$0xff] %v11756_v41  ;;  %v11760_v10 = vadd.f32 %v8624_v25, %v11655_v5  ;;  %9048 = vmatprep.mubr.msk.bf16.mxu1 %vm9836_vm3, %v12174_v2  ;;  %9150 = vmatpush3.bf16.msra.mxu1 %v12361_v4  ;;  %v12363_v5 = vld [vmem:[#allocation50_spill] sm:$0xff] }
 0x41f   : > { %9143 = vmatprep.subr.bf16.mxu1 %v12174_v2 }
 0x420   : > { %12360 = vst [vmem:[#allocation70_spill] sm:$0xff] %v11760_v10  ;;  %v8625_v50 = vpop.f32.mrb[84].mxu0 }
 0x421   : > { %v8626_v1 = vpop.f32.mrb[85].mxu0 }
 0x422   : > { %v8627_v55 = vadd.f32 %v8626_v1, %v8625_v50  ;;  %v8628_v6 = vpop.f32.mrb[86].mxu0  ;;  %9151 = vmatpush3.bf16.msra.mxu1 %v12362_v11 }
 0x423   : > { %v8629_v8 = vpop.f32.mrb[87].mxu0 }
 0x424   : > { %v11768_v44 = vadd.f32 %v8627_v55, %v11670_v26  ;;  %v8630_v39 = vadd.f32 %v8629_v8, %v8628_v6 }
 0x425   : > { %9049 = vmatmul.mubr.bf16.gmra.mrb[104].mxu1 %v12363_v5 }
 0x426   : > { %v11772_v19 = vadd.f32 %v8630_v39, %v11674_v59  ;;  %9052 = vmatprep.mubr.msk.bf16.mxu1 %vm9836_vm3, %v12174_v2 }
 0x428   : > { %12364 = vst [vmem:[#allocation71_spill] sm:$0xff] %v11772_v19  ;;  %v8631_v25 = vpop.f32.mrb[88].mxu0 }
 0x429   : > { %v8632_v4 = vpop.f32.mrb[89].mxu0 }
 0x42a   : > { %v8633_v10 = vadd.f32 %v8632_v4, %v8631_v25  ;;  %v8634_v50 = vpop.f32.mrb[90].mxu0 }
 0x42b   : > { %v8635_v1 = vpop.f32.mrb[91].mxu0 }
 0x42c   : > { %v11777_v11 = vadd.f32 %v8633_v10, %v11685_v20  ;;  %v8636_v41 = vadd.f32 %v8635_v1, %v8634_v50 }
 0x42d   : > { %9053 = vmatmul.mubr.bf16.gmra.mrb[108].mxu1 %v12266_v38 }
 0x42e   : > { %v11781_v6 = vadd.f32 %v8636_v41, %v11687_v28  ;;  %9056 = vmatprep.mubr.msk.bf16.mxu1 %vm9836_vm3, %v12174_v2 }
 0x430   : > { %v8637_v26 = vpop.f32.mrb[92].mxu0 }
 0x431   : > { %v8638_v59 = vpop.f32.mrb[93].mxu0 }
 0x432   : > { %v8639_v55 = vadd.f32 %v8638_v59, %v8637_v26  ;;  %v8640_v8 = vpop.f32.mrb[94].mxu0 }
 0x433   : > { %v8641_v39 = vpop.f32.mrb[95].mxu0 }
 0x434   : > { %v11786_v25 = vadd.f32 %v8639_v55, %v11691_v31  ;;  %v8642_v4 = vadd.f32 %v8641_v39, %v8640_v8 }
 0x435   : > { %9057 = vmatmul.mubr.bf16.gmra.mrb[112].mxu1 %v12269_v0 }
 0x436   : > { %v11790_v10 = vadd.f32 %v8642_v4, %v11693_v51  ;;  %9060 = vmatprep.mubr.msk.bf16.mxu1 %vm9836_vm3, %v12174_v2 }
 0x438   : > { %v8643_v20 = vpop.f32.mrb[96].mxu0 }
 0x439   : > { %v8644_v28 = vpop.f32.mrb[97].mxu0 }
 0x43a   : > { %v8645_v41 = vadd.f32 %v8644_v28, %v8643_v20  ;;  %v8646_v50 = vpop.f32.mrb[98].mxu0 }
 0x43b   : > { %v8647_v1 = vpop.f32.mrb[99].mxu0 }
 0x43c   : > { %v11795_v26 = vadd.f32 %v8645_v41, %v11697_v48  ;;  %v8648_v59 = vadd.f32 %v8647_v1, %v8646_v50 }
 0x43d   : > { %9061 = vmatmul.mubr.bf16.gmra.mrb[116].mxu1 %v12274_v37 }
 0x43e   : > { %v11799_v31 = vadd.f32 %v8648_v59, %v11699_v13  ;;  %9064 = vmatprep.mubr.msk.bf16.mxu1 %vm9836_vm3, %v12174_v2 }
 0x440   : > { %v8649_v51 = vpop.f32.mrb[100].mxu0 }
 0x441   : > { %v8650_v55 = vpop.f32.mrb[101].mxu0 }
 0x442   : > { %v8651_v8 = vadd.f32 %v8650_v55, %v8649_v51  ;;  %v8652_v39 = vpop.f32.mrb[102].mxu0 }
 0x443   : > { %v8653_v4 = vpop.f32.mrb[103].mxu0 }
 0x444   : > { %v11804_v20 = vadd.f32 %v8651_v8, %v11703_v22  ;;  %v8654_v28 = vadd.f32 %v8653_v4, %v8652_v39  ;;  %v11815_v22 = vld [vmem:[#allocation3 + $0x70] sm:$0xff]  }
 0x445   : > { %9065 = vmatmul.mubr.bf16.gmra.mrb[120].mxu1 %v12320_v57  ;;  %v12145_v39 = vrot.slane %v11815_v22, 2 }
 0x446   : > { %v11808_v48 = vadd.f32 %v8654_v28, %v11705_v54  ;;  %9068 = vmatprep.mubr.msk.bf16.mxu1 %vm9836_vm3, %v12174_v2 }
 0x448   : > { %v8655_v13 = vpop.f32.mrb[104].mxu0 }
 0x449   : > { %v8656_v41 = vpop.f32.mrb[105].mxu0 }
 0x44a   : > { %v8657_v50 = vadd.f32 %v8656_v41, %v8655_v13  ;;  %v8658_v1 = vpop.f32.mrb[106].mxu0 }
 0x44b   : > { %v8659_v59 = vpop.f32.mrb[107].mxu0 }
 0x44c   : > { %v11813_v51 = vadd.f32 %v8657_v50, %v11709_v35  ;;  %v8660_v55 = vadd.f32 %v8659_v59, %v8658_v1  ;;  %v12365_v1 = vrot.slane %v11545_v29, 2 }
 0x44d   : > { %9069 = vmatmul.mubr.bf16.gmra.mrb[124].mxu1 %v11571_v62 }
 0x44e   : > { %v11819_v8 = vadd.f32 %v8660_v55, %v11711_v36  ;;  %9072 = vmatprep.mubr.msk.bf16.mxu1 %vm9836_vm3, %v12174_v2  ;;  %v11832_v36 = vsel %vm2842_vm4, %v12365_v1, %v12145_v39 }
 0x450   : > { %v8661_v54 = vpop.f32.mrb[108].mxu0 }
 0x451   : > { %v8662_v4 = vpop.f32.mrb[109].mxu0 }
 0x452   : > { %v8663_v28 = vadd.f32 %v8662_v4, %v8661_v54  ;;  %v8664_v13 = vpop.f32.mrb[110].mxu0 }
 0x453   : > { %v8665_v41 = vpop.f32.mrb[111].mxu0 }
 0x454   : > { %v11825_v35 = vadd.f32 %v8663_v28, %v11715_v34  ;;  %v8666_v50 = vadd.f32 %v8665_v41, %v8664_v13 }
 0x455   : > { %9073 = vmatmul.mubr.bf16.gmra.mrb[128].mxu1 %v11832_v36 }
 0x456   : > { %v11836_v59 = vadd.f32 %v8666_v50, %v11717_v40  ;;  %9100 = vmatprep.mubr.msk.bf16.mxu1 %vm9836_vm3, %v12174_v2 }
 0x458   : > { %v8667_v55 = vpop.f32.mrb[112].mxu0 }
 0x459   : > { %v8668_v54 = vpop.f32.mrb[113].mxu0 }
 0x45a   : > { %v8669_v34 = vadd.f32 %v8668_v54, %v8667_v55  ;;  %v8670_v4 = vpop.f32.mrb[114].mxu0 }
 0x45b   : > { %v8671_v28 = vpop.f32.mrb[115].mxu0 }
 0x45c   : > { %v11841_v13 = vadd.f32 %v8669_v34, %v11722_v60  ;;  %v8672_v29 = vadd.f32 %v8671_v28, %v8670_v4 }
 0x45d   : > { %9101 = vmatmul.mubr.bf16.vlgmr.msra.gmra.mrb[96].mxu1 %v12359_v17 }
 0x45e   : > { %v11845_v41 = vadd.f32 %v8672_v29, %v11724_v42  ;;  %9104 = vmatprep.mubr.msk.bf16.mxu1 %vm9836_vm3, %v12174_v2 }
 0x460   : > { %v8673_v40 = vpop.f32.mrb[116].mxu0 }
 0x461   : > { %v8674_v50 = vpop.f32.mrb[117].mxu0 }
 0x462   : > { %v8675_v1 = vadd.f32 %v8674_v50, %v8673_v40  ;;  %v8676_v39 = vpop.f32.mrb[118].mxu0 }
 0x463   : > { %v8677_v19 = vpop.f32.mrb[119].mxu0 }
 0x464   : > { %v11850_v55 = vadd.f32 %v8675_v1, %v11731_v12  ;;  %v8678_v54 = vadd.f32 %v8677_v19, %v8676_v39 }
 0x465   : > { %9105 = vmatmul.mubr.bf16.gmra.mrb[100].mxu1 %v12363_v5 }
 0x466   : > { %v11854_v60 = vadd.f32 %v8678_v54, %v11735_v16  ;;  %9108 = vmatprep.mubr.msk.bf16.mxu1 %vm9836_vm3, %v12174_v2 }
 0x468   : > { %v8679_v42 = vpop.f32.mrb[120].mxu0 }
 0x469   : > { %v8680_v17 = vpop.f32.mrb[121].mxu0 }
 0x46a   : > { %v8681_v34 = vadd.f32 %v8680_v17, %v8679_v42  ;;  %v8682_v4 = vpop.f32.mrb[122].mxu0 }
 0x46b   : > { %v8683_v28 = vpop.f32.mrb[123].mxu0 }
 0x46c   : > { %v11859_v29 = vadd.f32 %v8681_v34, %v11742_v47  ;;  %v8684_v40 = vadd.f32 %v8683_v28, %v8682_v4 }
 0x46d   : > { %9109 = vmatmul.mubr.bf16.gmra.mrb[104].mxu1 %v12266_v38 }
 0x46e   : > { %v11863_v12 = vadd.f32 %v8684_v40, %v11746_v49  ;;  %9112 = vmatprep.mubr.msk.bf16.mxu1 %vm9836_vm3, %v12174_v2  ;;  %v12369_v40 = vld [vmem:[#allocation57_spill] sm:$0xff] }
 0x470   : > { %v11867_v16 = vpop.f32.mrb[124].mxu0 }
 0x471   : > { %v9094_v5 = vpop.f32.mrb[125].mxu0 }
 0x472   : > { %v11869_v19 = vpop.f32.mrb[126].mxu0 }
 0x473   : > { %v9095_v39 = vpop.f32.mrb[127].mxu0 }
 0x474   : > { %v12370_v39 = vld [vmem:[#allocation66_spill] sm:$0xff] }
 0x475   : > { %9113 = vmatmul.mubr.bf16.gmra.mrb[108].mxu1 %v12269_v0  ;;  %v12368_v0 = vld [vmem:[#allocation38_spill] sm:$0xff] }
 0x476   : > { %9116 = vmatprep.mubr.msk.bf16.mxu1 %vm9836_vm3, %v12174_v2 }
 0x478   : > { %v11874_v47 = vpop.f32.mrb[128].mxu0 }
 0x479   : > { %12366 = vst [vmem:[#allocation56_spill] sm:$0xff] %v11874_v47  ;;  %v9098_v38 = vpop.f32.mrb[129].mxu0 }
 0x47a   : > { %v11876_v50 = vpop.f32.mrb[130].mxu0 }
 0x47b   : > { %12367 = vst [vmem:[#allocation51_spill] sm:$0xff] %v11876_v50  ;;  %v9099_v49 = vpop.f32.mrb[131].mxu0 }
 0x47d   : > { %9117 = vmatmul.mubr.bf16.gmra.mrb[112].mxu1 %v12274_v37 }
 0x47e   : > { %9120 = vmatprep.mubr.msk.bf16.mxu1 %vm9836_vm3, %v12174_v2 }
 0x480   : > { %v8436_v1 = vpop.f32.mrb[176].mxu1 }
 0x481   : > { %v8437_v54 = vpop.f32.mrb[177].mxu1 }
 0x482   : > { %v8438_v42 = vadd.f32 %v8437_v54, %v8436_v1  ;;  %v8439_v17 = vpop.f32.mrb[178].mxu1 }
 0x483   : > { %v8440_v34 = vpop.f32.mrb[179].mxu1 }
 0x484   : > { %v5624_v4 = vadd.f32 %v8438_v42, %v12368_v0  ;;  %v8441_v28 = vadd.f32 %v8440_v34, %v8439_v17  ;;  %v12371_v42 = vld [vmem:[#allocation58_spill] sm:$0xff] }
 0x485   : > { %9121 = vmatmul.mubr.bf16.gmra.mrb[116].mxu1 %v12320_v57  ;;  %v12372_v57 = vld [vmem:[#allocation64_spill] sm:$0xff] }
 0x486   : > { %v5627_v5 = vadd.f32 %v8441_v28, %v12369_v40  ;;  %9124 = vmatprep.mubr.msk.bf16.mxu1 %vm9836_vm3, %v12174_v2  ;;  %v11887_v37 = vadd.f32 %v12370_v39, %v5624_v4 }
 0x488   : > { %v8442_v38 = vpop.f32.mrb[180].mxu1  ;;  %v11890_v49 = vadd.f32 %v11477_v63, %v5627_v5 }
 0x489   : > { %v8443_v1 = vpop.f32.mrb[181].mxu1 }
 0x48a   : > { %v8444_v54 = vadd.f32 %v8443_v1, %v8442_v38  ;;  %v8445_v50 = vpop.f32.mrb[182].mxu1  ;;  %v9813_v38 = vld [vmem:[#allocation3 + $0x78] ss:$0 sps:$4 sm:$0x33]  }
 0x48b   : > { %v8446_v47 = vpop.f32.mrb[183].mxu1 }
 0x48c   : > { %v5632_v17 = vadd.f32 %v8444_v54, %v12371_v42  ;;  %v8447_v34 = vadd.f32 %v8446_v47, %v8445_v50  ;;  %v12373_v47 = vld [vmem:[#allocation65_spill] sm:$0xff]  ;;  %v12374_v54 = vld [vmem:[#allocation43_spill] sm:$0xff] }
 0x48d   : > { %9125 = vmatmul.mubr.bf16.gmra.mrb[120].mxu1 %v11571_v62 }
 0x48e   : > { %v5635_v0 = vadd.f32 %v8447_v34, %v12372_v57  ;;  %9128 = vmatprep.mubr.msk.bf16.mxu1 %vm9836_vm3, %v12174_v2  ;;  %v11898_v4 = vadd.f32 %v11495_v18, %v5632_v17  ;;  %v2872_v18 = vrot.slane %v9813_v38, 2  ;;  %v12376_v38 = vld [vmem:[#allocation67_spill] sm:$0xff] }
 0x490   : > { %v8448_v28 = vpop.f32.mrb[184].mxu1  ;;  %v11901_v63 = vadd.f32 %v11498_v27, %v5635_v0 }
 0x491   : > { %v8449_v40 = vpop.f32.mrb[185].mxu1 }
 0x492   : > { %v8450_v5 = vadd.f32 %v8449_v40, %v8448_v28  ;;  %v8451_v39 = vpop.f32.mrb[186].mxu1 }
 0x493   : > { %v8452_v1 = vpop.f32.mrb[187].mxu1 }
 0x494   : > { %v5640_v50 = vadd.f32 %v8450_v5, %v12373_v47  ;;  %v8453_v62 = vadd.f32 %v8452_v1, %v8451_v39  ;;  %v12375_v5 = vrot.slane %v11815_v22, 2  ;;  %v12377_v47 = vld [vmem:[#allocation62_spill] sm:$0xff] }
 0x495   : > { %9129 = vmatmul.mubr.bf16.gmra.mrb[124].mxu1 %v11832_v36 }
 0x496   : > { %v5643_v42 = vadd.f32 %v8453_v62, %v12374_v54  ;;  %9132 = vmatprep.mubr.msk.bf16.mxu1 %vm9836_vm3, %v12174_v2  ;;  %v9183_v17 = vadd.f32 %v11514_v14, %v5640_v50  ;;  %v2873_v36 = vsel %vm2842_vm4, %v12375_v5, %v2872_v18 }
 0x498   : > { %v8454_v27 = vpop.f32.mrb[188].mxu1  ;;  %v11910_v34 = vadd.f32 %v9183_v17, %v11777_v11  ;;  %v9189_v57 = vadd.f32 %v11520_v45, %v5643_v42 }
 0x499   : > { %v8455_v0 = vpop.f32.mrb[189].mxu1 }
 0x49a   : > { %v8456_v28 = vadd.f32 %v8455_v0, %v8454_v27  ;;  %v8457_v40 = vpop.f32.mrb[190].mxu1  ;;  %v11917_v39 = vadd.f32 %v9189_v57, %v11781_v6 }
 0x49b   : > { %v8458_v2 = vpop.f32.mrb[191].mxu1 }
 0x49c   : > { %v5648_v1 = vadd.f32 %v8456_v28, %v12376_v38  ;;  %v8459_v14 = vadd.f32 %v8458_v2, %v8457_v40  ;;  %v12378_v40 = vld [vmem:[#allocation8_spill] sm:$0xff] }
 0x49d   : > { %9133 = vmatmul.mubr.bf16.gmra.mrb[128].mxu1 %v2873_v36 }
 0x49e   : > { %v5651_v11 = vadd.f32 %v8459_v14, %v12377_v47  ;;  %v9195_v50 = vadd.f32 %v11530_v56, %v5648_v1  ;;  %v12379_v1 = vld [vmem:[#allocation63_spill] sm:$0xff]  ;;  %v12380_v47 = vld [vmem:[#allocation44_spill] sm:$0xff] }
 0x4a0   : > { %v8460_v45 = vpop.f32.mrb[192].mxu1  ;;  %v11923_v62 = vadd.f32 %v9195_v50, %v11786_v25  ;;  %v9201_v22 = vadd.f32 %v11538_v9, %v5651_v11 }
 0x4a1   : > { %v8461_v54 = vpop.f32.mrb[193].mxu1 }
 0x4a2   : > { %v8462_v42 = vadd.f32 %v8461_v54, %v8460_v45  ;;  %v8463_v18 = vpop.f32.mrb[194].mxu1  ;;  %v11927_v6 = vadd.f32 %v9201_v22, %v11790_v10 }
 0x4a3   : > { %v8464_v17 = vpop.f32.mrb[195].mxu1 }
 0x4a4   : > { %v5656_v27 = vadd.f32 %v8462_v42, %v11500_v23  ;;  %v8465_v57 = vadd.f32 %v8464_v17, %v8463_v18  ;;  %v12381_v18 = vld [vmem:[#allocation68_spill] sm:$0xff] }
 0x4a6   : > { %v5659_v0 = vadd.f32 %v8465_v57, %v11509_v52  ;;  %v9207_v56 = vadd.f32 %v11550_v3, %v5656_v27  ;;  %v12382_v57 = vld [vmem:[#allocation52_spill] sm:$0xff] }
 0x4a8   : > { %v8466_v28 = vpop.f32.mrb[196].mxu1  ;;  %v11933_v25 = vadd.f32 %v9207_v56, %v11795_v26  ;;  %v9213_v9 = vadd.f32 %v12378_v40, %v5659_v0 }
 0x4a9   : > { %v8467_v5 = vpop.f32.mrb[197].mxu1 }
 0x4aa   : > { %v8468_v36 = vadd.f32 %v8467_v5, %v8466_v28  ;;  %v8469_v2 = vpop.f32.mrb[198].mxu1  ;;  %v11937_v10 = vadd.f32 %v9213_v9, %v11799_v31 }
 0x4ab   : > { %v8470_v38 = vpop.f32.mrb[199].mxu1 }
 0x4ac   : > { %v5664_v23 = vadd.f32 %v8468_v36, %v12379_v1  ;;  %v8471_v14 = vadd.f32 %v8470_v38, %v8469_v2  ;;  %v12383_v38 = vld [vmem:[#allocation55_spill] sm:$0xff] }
 0x4ae   : > { %v5667_v52 = vadd.f32 %v8471_v14, %v12380_v47  ;;  %v9219_v3 = vadd.f32 %v11576_v32, %v5664_v23 }
 0x4b0   : > { %v8472_v11 = vpop.f32.mrb[200].mxu1  ;;  %v11943_v26 = vadd.f32 %v9219_v3, %v11804_v20  ;;  %v9225_v50 = vadd.f32 %v11581_v46, %v5667_v52 }
 0x4b1   : > { %v8473_v45 = vpop.f32.mrb[201].mxu1 }
 0x4b2   : > { %v8474_v22 = vadd.f32 %v8473_v45, %v8472_v11  ;;  %v8475_v54 = vpop.f32.mrb[202].mxu1  ;;  %v11947_v31 = vadd.f32 %v9225_v50, %v11808_v48 }
 0x4b3   : > { %v8476_v42 = vpop.f32.mrb[203].mxu1 }
 0x4b4   : > { %v5672_v17 = vadd.f32 %v8474_v22, %v12381_v18  ;;  %v8477_v27 = vadd.f32 %v8476_v42, %v8475_v54 }
 0x4b6   : > { %v5675_v0 = vadd.f32 %v8477_v27, %v12382_v57  ;;  %v9231_v32 = vadd.f32 %v11593_v61, %v5672_v17  ;;  %v12384_v27 = vld [vmem:[#allocation9_spill] sm:$0xff]  ;;  %v12385_v57 = vld [vmem:[#allocation11_spill] sm:$0xff] }
 0x4b8   : > { %v8478_v56 = vpop.f32.mrb[204].mxu1  ;;  %v11953_v20 = vadd.f32 %v9231_v32, %v11813_v51  ;;  %v9237_v46 = vadd.f32 %v11602_v33, %v5675_v0  ;;  %v12386_v32 = vld [vmem:[#allocation12_spill] sm:$0xff] }
 0x4b9   : > { %v8479_v28 = vpop.f32.mrb[205].mxu1 }
 0x4ba   : > { %v8480_v40 = vadd.f32 %v8479_v28, %v8478_v56  ;;  %v8481_v9 = vpop.f32.mrb[206].mxu1  ;;  %v11957_v48 = vadd.f32 %v9237_v46, %v11819_v8 }
 0x4bb   : > { %v8482_v5 = vpop.f32.mrb[207].mxu1 }
 0x4bc   : > { %v5680_v36 = vadd.f32 %v8480_v40, %v11561_v30  ;;  %v8483_v2 = vadd.f32 %v8482_v5, %v8481_v9  ;;  %v12387_v9 = vld [vmem:[#allocation10_spill] sm:$0xff] }
 0x4be   : > { %v5683_v1 = vadd.f32 %v8483_v2, %v12383_v38  ;;  %v9243_v61 = vadd.f32 %v11615_v21, %v5680_v36  ;;  %v12388_v36 = vld [vmem:[#allocation59_spill] sm:$0xff]  ;;  %v12389_v38 = vld [vmem:[#allocation13_spill] sm:$0xff] }
 0x4c0   : > { %v8484_v23 = vpop.f32.mrb[208].mxu1  ;;  %v11963_v51 = vadd.f32 %v9243_v61, %v11825_v35  ;;  %v9249_v33 = vadd.f32 %v11624_v7, %v5683_v1 }
 0x4c1   : > { %v8485_v14 = vpop.f32.mrb[209].mxu1 }
 0x4c2   : > { %v8486_v47 = vadd.f32 %v8485_v14, %v8484_v23  ;;  %v8487_v52 = vpop.f32.mrb[210].mxu1  ;;  %v11967_v8 = vadd.f32 %v9249_v33, %v11836_v59  ;;  %v12390_v23 = vld [vmem:[#allocation14_spill] sm:$0xff] }
 0x4c3   : > { %v8488_v3 = vpop.f32.mrb[211].mxu1 }
 0x4c4   : > { %v5688_v30 = vadd.f32 %v8486_v47, %v11583_v15  ;;  %v8489_v11 = vadd.f32 %v8488_v3, %v8487_v52  ;;  %v12391_v3 = vld [vmem:[#allocation69_spill] sm:$0xff] }
 0x4c6   : > { %v5691_v50 = vadd.f32 %v8489_v11, %v11589_v58  ;;  %v9255_v21 = vadd.f32 %v11637_v24, %v5688_v30 }
 0x4c8   : > { %v8490_v45 = vpop.f32.mrb[212].mxu1  ;;  %v11973_v35 = vadd.f32 %v9255_v21, %v11841_v13  ;;  %v9261_v7 = vadd.f32 %v11646_v53, %v5691_v50 }
 0x4c9   : > { %v8491_v22 = vpop.f32.mrb[213].mxu1 }
 0x4ca   : > { %v8492_v54 = vadd.f32 %v8491_v22, %v8490_v45  ;;  %v8493_v42 = vpop.f32.mrb[214].mxu1  ;;  %v11977_v59 = vadd.f32 %v9261_v7, %v11845_v41  ;;  %v12392_v45 = vld [vmem:[#allocation70_spill] sm:$0xff] }
 0x4cb   : > { %v8494_v18 = vpop.f32.mrb[215].mxu1 }
 0x4cc   : > { %v5696_v15 = vadd.f32 %v8492_v54, %v11604_v43  ;;  %v8495_v17 = vadd.f32 %v8494_v18, %v8493_v42 }
 0x4ce   : > { %v5699_v58 = vadd.f32 %v8495_v17, %v12384_v27  ;;  %v9267_v24 = vadd.f32 %v12385_v57, %v5696_v15  ;;  %v12394_v27 = vld [vmem:[#allocation71_spill] sm:$0xff] }
 0x4d0   : > { %v8496_v0 = vpop.f32.mrb[216].mxu1  ;;  %v11983_v13 = vadd.f32 %v9267_v24, %v11850_v55  ;;  %v9273_v53 = vadd.f32 %v12386_v32, %v5699_v58  ;;  %v12395_v58 = vld [vmem:[#allocation51_spill] sm:$0xff] }
 0x4d1   : > { %v8497_v56 = vpop.f32.mrb[217].mxu1 }
 0x4d2   : > { %v8498_v46 = vadd.f32 %v8497_v56, %v8496_v0  ;;  %v8499_v28 = vpop.f32.mrb[218].mxu1  ;;  %v11987_v41 = vadd.f32 %v9273_v53, %v11854_v60 }
 0x4d3   : > { %v8500_v40 = vpop.f32.mrb[219].mxu1 }
 0x4d4   : > { %v5704_v43 = vadd.f32 %v8498_v46, %v12387_v9  ;;  %v8501_v5 = vadd.f32 %v8500_v40, %v8499_v28 }
 0x4d6   : > { %v5707_v2 = vadd.f32 %v8501_v5, %v12388_v36  ;;  %v9279_v1 = vadd.f32 %v12389_v38, %v5704_v43 }
 0x4d8   : > { %v5744_v61 = vpop.f32.mrb[88].mxu1  ;;  %v11993_v55 = vadd.f32 %v9279_v1, %v11859_v29  ;;  %v9285_v33 = vadd.f32 %v12390_v23, %v5707_v2  ;;  %v12018_v1 = vld [vmem:[%s12062_s4] ss:$0 sm:$0xff] }
 0x4d9   : > { %v9156_v14 = vadd.f32 %v11887_v37, %v5744_v61  ;;  %v9034_v47 = vpop.f32.mrb[89].mxu1 }
 0x4da   : > { %v5747_v52 = vpop.f32.mrb[90].mxu1  ;;  %v11998_v60 = vadd.f32 %v9285_v33, %v11863_v12 }
 0x4db   : > { %v9157_v30 = vadd.f32 %v9156_v14, %v12391_v3  ;;  %v9163_v11 = vadd.f32 %v11890_v49, %v5747_v52  ;;  %v9035_v50 = vpop.f32.mrb[91].mxu1  ;;  %v12393_v49 = vld [vmem:[#allocation56_spill] sm:$0xff] }
 0x4dd   : > { %v9158_v21 = vadd.f32 %v9157_v30, %v11867_v16  ;;  %v9164_v7 = vadd.f32 %v9163_v11, %v12392_v45 }
 0x4df   : > { %6614 = vst [vmem:[#allocation5] sm:$0xff] %v9158_v21  ;;  %v9165_v29 = vadd.f32 %v9164_v7, %v11869_v19 }
 0x4e0   : > { %v5752_v22 = vpop.f32.mrb[92].mxu1 }
 0x4e1   : > { %6615 = vst [vmem:[#allocation5 + $0x8] sm:$0xff] %v9165_v29  ;;  %v9170_v37 = vadd.f32 %v11898_v4, %v5752_v22  ;;  %v9038_v54 = vpop.f32.mrb[93].mxu1 }
 0x4e2   : > { %v5755_v42 = vpop.f32.mrb[94].mxu1 }
 0x4e3   : > { %v9171_v12 = vadd.f32 %v9170_v37, %v11768_v44  ;;  %v9177_v18 = vadd.f32 %v11901_v63, %v5755_v42  ;;  %v9039_v15 = vpop.f32.mrb[95].mxu1 }
 0x4e5   : > { %v9172_v17 = vadd.f32 %v9171_v12, %v12393_v49  ;;  %v9178_v16 = vadd.f32 %v9177_v18, %v12394_v27 }
 0x4e7   : > { %6616 = vst [vmem:[#allocation5 + $0x10] sm:$0xff] %v9172_v17  ;;  %v9179_v57 = vadd.f32 %v9178_v16, %v12395_v58 }
 0x4e8   : > { %v6636_v56 = vld [vmem:[#allocation5] ss:$2 sm:$0xff]  ;;  %v6656_v46 = vld [vmem:[#allocation5 + $0x1] ss:$2 sm:$0xff] }
 0x4e9   : > { %6617 = vst [vmem:[#allocation5 + $0x18] sm:$0xff] %v9179_v57  ;;  %v6675_v9 = vmax.f32 %v6636_v56, %v6656_v46 }
 0x4f0   : > { %v6658_v53 = vld [vmem:[#allocation5 + $0x11] ss:$2 sm:$0xff]  ;;  %v6686_v63 = vld [vmem:[#allocation5 + $0x10] ss:$2 sm:$0xff] }
 0x4f1   : > { %v6707_v28 = vmax.f32 %v6686_v63, %v6658_v53  ;;  %v6638_v36 = vld [vmem:[#allocation5 + $0x10] ss:$2 sm:$0xff] }
 0x4f2   : > { %v6676_v33 = vmax.f32 %v6638_v36, %v6658_v53 }
 0x4f3   : > { %v6717_v2 = vmax.f32 %v6675_v9, %v6707_v28 }
 0x530   : > { %v6521_v19 = vpop.f32.mrb[96].mxu1 }
 0x531   : > { %v9185_v24 = vadd.f32 %v11910_v34, %v6521_v19  ;;  %v9102_v0 = vpop.f32.mrb[97].mxu1 }
 0x532   : > { %v6524_v4 = vpop.f32.mrb[98].mxu1 }
 0x533   : > { %6618 = vst [vmem:[#allocation5 + $0x20] sm:$0xff] %v9185_v24  ;;  %v9191_v32 = vadd.f32 %v11917_v39, %v6524_v4  ;;  %v9103_v44 = vpop.f32.mrb[99].mxu1 }
 0x535   : > { %6619 = vst [vmem:[#allocation5 + $0x28] sm:$0xff] %v9191_v32 }
 0x538   : > { %v6529_v40 = vpop.f32.mrb[100].mxu1 }
 0x539   : > { %v9197_v43 = vadd.f32 %v11923_v62, %v6529_v40  ;;  %v9106_v5 = vpop.f32.mrb[101].mxu1  ;;  %v6734_v62 = vadd.f32 %v12018_v1, %v6717_v2 }
 0x53a   : > { %v6532_v34 = vpop.f32.mrb[102].mxu1 }
 0x53b   : > { %6620 = vst [vmem:[#allocation5 + $0x30] sm:$0xff] %v9197_v43  ;;  %v9203_v38 = vadd.f32 %v11927_v6, %v6532_v34  ;;  %v9107_v39 = vpop.f32.mrb[103].mxu1  ;;  %v6744_v50 = vmax.f32 %v6734_v62, 0.0 }
 0x53c   : > { %v6660_v61 = vld [vmem:[#allocation5 + $0x21] ss:$2 sm:$0xff]  ;;  %v6688_v23 = vld [vmem:[#allocation5 + $0x20] ss:$2 sm:$0xff] }
 0x53d   : > { %v6708_v14 = vmax.f32 %v6688_v23, %v6660_v61  ;;  %6621 = vst [vmem:[#allocation5 + $0x38] sm:$0xff] %v9203_v38  ;;  %v6640_v54 = vld [vmem:[#allocation5 + $0x20] ss:$2 sm:$0xff] }
 0x53e   : > { %v6677_v12 = vmax.f32 %v6640_v54, %v6660_v61 }
 0x53f   : > { %v6718_v47 = vmax.f32 %v6676_v33, %v6708_v14 }
 0x540   : > { %v6537_v52 = vpop.f32.mrb[104].mxu1 }
 0x541   : > { %v6735_v3 = vadd.f32 %v12018_v1, %v6718_v47  ;;  %v9209_v6 = vadd.f32 %v11933_v25, %v6537_v52  ;;  %v9110_v30 = vpop.f32.mrb[105].mxu1 }
 0x542   : > { %v6540_v11 = vpop.f32.mrb[106].mxu1 }
 0x543   : > { %v6745_v21 = vmax.f32 %v6735_v3, 0.0  ;;  %6622 = vst [vmem:[#allocation5 + $0x40] sm:$0xff] %v9209_v6  ;;  %v9215_v45 = vadd.f32 %v11937_v10, %v6540_v11  ;;  %v9111_v7 = vpop.f32.mrb[107].mxu1 }
 0x544   : > { %v6662_v29 = vld [vmem:[#allocation5 + $0x31] ss:$2 sm:$0xff]  ;;  %v6690_v22 = vld [vmem:[#allocation5 + $0x30] ss:$2 sm:$0xff] }
 0x545   : > { %v7684_v37 = vpack.c.bf16 %v6745_v21, %v6744_v50  ;;  %6623 = vst [vmem:[#allocation5 + $0x48] sm:$0xff] %v9215_v45  ;;  %v6709_v25 = vmax.f32 %v6690_v22, %v6662_v29  ;;  %v6642_v10 = vld [vmem:[#allocation5 + $0x30] ss:$2 sm:$0xff] }
 0x546   : > { %v6678_v19 = vmax.f32 %v6642_v10, %v6662_v29 }
 0x547   : > { %7685 = vst [vmem:[%s12028_s29] sm:$0xff] %v7684_v37   ;;  %v6719_v17 = vmax.f32 %v6677_v12, %v6709_v25 }
 0x548   : > { %v6545_v42 = vpop.f32.mrb[108].mxu1 }
 0x549   : > { %v9221_v18 = vadd.f32 %v11943_v26, %v6545_v42  ;;  %v9114_v15 = vpop.f32.mrb[109].mxu1  ;;  %v6736_v0 = vadd.f32 %v12018_v1, %v6719_v17 }
 0x54a   : > { %v6548_v49 = vpop.f32.mrb[110].mxu1 }
 0x54b   : > { %6624 = vst [vmem:[#allocation5 + $0x50] sm:$0xff] %v9221_v18  ;;  %v9227_v27 = vadd.f32 %v11947_v31, %v6548_v49  ;;  %v9115_v16 = vpop.f32.mrb[111].mxu1  ;;  %v6746_v56 = vmax.f32 %v6736_v0, 0.0 }
 0x54c   : > { %v6664_v58 = vld [vmem:[#allocation5 + $0x41] ss:$2 sm:$0xff]  ;;  %v6692_v57 = vld [vmem:[#allocation5 + $0x40] ss:$2 sm:$0xff] }
 0x54d   : > { %v6710_v24 = vmax.f32 %v6692_v57, %v6664_v58  ;;  %6625 = vst [vmem:[#allocation5 + $0x58] sm:$0xff] %v9227_v27  ;;  %v6644_v5 = vld [vmem:[#allocation5 + $0x40] ss:$2 sm:$0xff] }
 0x54e   : > { %v6679_v2 = vmax.f32 %v6644_v5, %v6664_v58 }
 0x54f   : > { %v6720_v4 = vmax.f32 %v6678_v19, %v6710_v24 }
 0x550   : > { %v6553_v32 = vpop.f32.mrb[112].mxu1 }
 0x551   : > { %v6737_v26 = vadd.f32 %v12018_v1, %v6720_v4  ;;  %v9233_v44 = vadd.f32 %v11953_v20, %v6553_v32  ;;  %v9118_v53 = vpop.f32.mrb[113].mxu1 }
 0x552   : > { %v6556_v63 = vpop.f32.mrb[114].mxu1 }
 0x553   : > { %v6747_v46 = vmax.f32 %v6737_v26, 0.0  ;;  %6626 = vst [vmem:[#allocation5 + $0x60] sm:$0xff] %v9233_v44  ;;  %v9239_v31 = vadd.f32 %v11957_v48, %v6556_v63  ;;  %v9119_v28 = vpop.f32.mrb[115].mxu1 }
 0x554   : > { %v6666_v40 = vld [vmem:[#allocation5 + $0x51] ss:$2 sm:$0xff]  ;;  %v6694_v9 = vld [vmem:[#allocation5 + $0x50] ss:$2 sm:$0xff] }
 0x555   : > { %v7689_v43 = vpack.c.bf16 %v6747_v46, %v6746_v56  ;;  %6627 = vst [vmem:[#allocation5 + $0x68] sm:$0xff] %v9239_v31  ;;  %v6711_v36 = vmax.f32 %v6694_v9, %v6666_v40  ;;  %v6646_v39 = vld [vmem:[#allocation5 + $0x50] ss:$2 sm:$0xff] }
 0x556   : > { %v6680_v47 = vmax.f32 %v6646_v39, %v6666_v40 }
 0x557   : > { %7719 = vst [vmem:[%s12028_s29 + $0x8] sm:$0xff] %v7689_v43   ;;  %v6721_v23 = vmax.f32 %v6679_v2, %v6711_v36 }
 0x558   : > { %v6561_v34 = vpop.f32.mrb[116].mxu1 }
 0x559   : > { %v9245_v38 = vadd.f32 %v11963_v51, %v6561_v34  ;;  %v9122_v20 = vpop.f32.mrb[117].mxu1  ;;  %v6738_v3 = vadd.f32 %v12018_v1, %v6721_v23 }
 0x55a   : > { %v6564_v61 = vpop.f32.mrb[118].mxu1 }
 0x55b   : > { %6628 = vst [vmem:[#allocation5 + $0x70] sm:$0xff] %v9245_v38  ;;  %v9251_v33 = vadd.f32 %v11967_v8, %v6564_v61  ;;  %v9123_v48 = vpop.f32.mrb[119].mxu1  ;;  %v6748_v45 = vmax.f32 %v6738_v3, 0.0 }
 0x55c   : > { %v6668_v14 = vld [vmem:[#allocation5 + $0x61] ss:$2 sm:$0xff]  ;;  %v6696_v62 = vld [vmem:[#allocation5 + $0x60] ss:$2 sm:$0xff] }
 0x55d   : > { %v6712_v52 = vmax.f32 %v6696_v62, %v6668_v14  ;;  %6629 = vst [vmem:[#allocation5 + $0x78] sm:$0xff] %v9251_v33  ;;  %v6648_v25 = vld [vmem:[#allocation5 + $0x60] ss:$2 sm:$0xff] }
 0x55e   : > { %v6681_v18 = vmax.f32 %v6648_v25, %v6668_v14 }
 0x55f   : > { %v6722_v6 = vmax.f32 %v6680_v47, %v6712_v52 }
 0x560   : > { %v6569_v30 = vpop.f32.mrb[120].mxu1 }
 0x561   : > { %v6739_v51 = vadd.f32 %v12018_v1, %v6722_v6  ;;  %v9257_v11 = vadd.f32 %v11973_v35, %v6569_v30  ;;  %v9126_v50 = vpop.f32.mrb[121].mxu1 }
 0x562   : > { %v6572_v21 = vpop.f32.mrb[122].mxu1 }
 0x563   : > { %v6749_v7 = vmax.f32 %v6739_v51, 0.0  ;;  %6630 = vst [vmem:[#allocation5 + $0x80] sm:$0xff] %v9257_v11  ;;  %v9263_v8 = vadd.f32 %v11977_v59, %v6572_v21  ;;  %v9127_v29 = vpop.f32.mrb[123].mxu1 }
 0x564   : > { %v6670_v22 = vld [vmem:[#allocation5 + $0x71] ss:$2 sm:$0xff]  ;;  %v6698_v37 = vld [vmem:[#allocation5 + $0x70] ss:$2 sm:$0xff] }
 0x565   : > { %v7694_v54 = vpack.c.bf16 %v6749_v7, %v6748_v45  ;;  %6631 = vst [vmem:[#allocation5 + $0x88] sm:$0xff] %v9263_v8  ;;  %v6713_v42 = vmax.f32 %v6698_v37, %v6670_v22  ;;  %v6650_v10 = vld [vmem:[#allocation5 + $0x70] ss:$2 sm:$0xff] }
 0x566   : > { %v6682_v57 = vmax.f32 %v6650_v10, %v6670_v22 }
 0x567   : > { %7720 = vst [vmem:[%s12028_s29 + $0x10] sm:$0xff] %v7694_v54   ;;  %v6723_v17 = vmax.f32 %v6681_v18, %v6713_v42 }
 0x568   : > { %v6577_v12 = vpop.f32.mrb[124].mxu1 }
 0x569   : > { %v9269_v15 = vadd.f32 %v11983_v13, %v6577_v12  ;;  %v9130_v35 = vpop.f32.mrb[125].mxu1  ;;  %v6740_v24 = vadd.f32 %v12018_v1, %v6723_v17 }
 0x56a   : > { %v6580_v49 = vpop.f32.mrb[126].mxu1 }
 0x56b   : > { %6632 = vst [vmem:[#allocation5 + $0x90] sm:$0xff] %v9269_v15  ;;  %v9275_v27 = vadd.f32 %v11987_v41, %v6580_v49  ;;  %v9131_v59 = vpop.f32.mrb[127].mxu1  ;;  %v6750_v53 = vmax.f32 %v6740_v24, 0.0 }
 0x56c   : > { %v6672_v16 = vld [vmem:[#allocation5 + $0x81] ss:$2 sm:$0xff]  ;;  %v6700_v58 = vld [vmem:[#allocation5 + $0x80] ss:$2 sm:$0xff] }
 0x56d   : > { %v6714_v19 = vmax.f32 %v6700_v58, %v6672_v16  ;;  %6633 = vst [vmem:[#allocation5 + $0x98] sm:$0xff] %v9275_v27  ;;  %v6652_v40 = vld [vmem:[#allocation5 + $0x80] ss:$2 sm:$0xff] }
 0x56e   : > { %v6683_v43 = vmax.f32 %v6652_v40, %v6672_v16 }
 0x56f   : > { %v6724_v0 = vmax.f32 %v6682_v57, %v6714_v19 }
 0x570   : > { %v6585_v4 = vpop.f32.mrb[128].mxu1 }
 0x571   : > { %v6741_v13 = vadd.f32 %v12018_v1, %v6724_v0  ;;  %v9281_v32 = vadd.f32 %v11993_v55, %v6585_v4  ;;  %v9134_v26 = vpop.f32.mrb[129].mxu1 }
 0x572   : > { %v6588_v44 = vpop.f32.mrb[130].mxu1 }
 0x573   : > { %v6751_v63 = vmax.f32 %v6741_v13, 0.0  ;;  %6634 = vst [vmem:[#allocation5 + $0xa0] sm:$0xff] %v9281_v32  ;;  %v9287_v41 = vadd.f32 %v11998_v60, %v6588_v44  ;;  %v9135_v56 = vpop.f32.mrb[131].mxu1 }
 0x574   : > { %v6674_v46 = vld [vmem:[#allocation5 + $0x91] ss:$2 sm:$0xff]  ;;  %v6702_v31 = vld [vmem:[#allocation5 + $0x90] ss:$2 sm:$0xff] }
 0x575   : > { %v7699_v28 = vpack.c.bf16 %v6751_v63, %v6750_v53  ;;  %6635 = vst [vmem:[#allocation5 + $0xa8] sm:$0xff] %v9287_v41  ;;  %v6715_v9 = vmax.f32 %v6702_v31, %v6674_v46  ;;  %v6654_v5 = vld [vmem:[#allocation5 + $0x90] ss:$2 sm:$0xff] }
 0x576   : > { %v6684_v2 = vmax.f32 %v6654_v5, %v6674_v46 }
 0x577   : > { %7721 = vst [vmem:[%s12028_s29 + $0x18] sm:$0xff] %v7699_v28   ;;  %v6725_v36 = vmax.f32 %v6683_v43, %v6715_v9 }
 0x579   : > { %v6742_v20 = vadd.f32 %v12018_v1, %v6725_v36 }
 0x57b   : > { %v6752_v61 = vmax.f32 %v6742_v20, 0.0 }
 0x57c   : > { %v6704_v55 = vld [vmem:[#allocation5 + $0xa0] ss:$2 sm:$0xff]  ;;  %v6706_v34 = vld [vmem:[#allocation5 + $0xa1] ss:$2 sm:$0xff] }
 0x57d   : > { %v6716_v38 = vmax.f32 %v6704_v55, %v6706_v34 }
 0x57f   : > { %v6726_v39 = vmax.f32 %v6684_v2, %v6716_v38 }
 0x581   : > { %v6743_v60 = vadd.f32 %v12018_v1, %v6726_v39 }
 0x583   : > { %v6753_v23 = vmax.f32 %v6743_v60, 0.0 }
 0x585   : > { %v7704_v33 = vpack.c.bf16 %v6753_v23, %v6752_v61 }
 0x587   : > { %7722 = vst [vmem:[%s12028_s29 + $0x20] sm:$0xff] %v7704_v33  }
 0x588 PF: > { %s15_s18 = sadd.s32 1, %s9832_s18  }
 0x589   : > { %p12_p4 = scmp.ge.s32.totalorder %s15_s18, 4  }
 0x58b   :  { %14 = sbr.rel (!%p12_p4) target bundleno = 1 (0x1), region = 215 }

</bundles_post_ra>
